<compile_context>
chip_gen: v6e
topology: v6e:2x2x1
jax: 0.10.0
libtpu: 0.0.40
codegen_flags: <defaults>
</compile_context>

<pallas_src>
import functools

import jax
import jax.numpy as jnp
from jax.experimental import pallas as pl
from jax.experimental.pallas import tpu as pltpu


# MXU input dtype (f32 accumulation everywhere).  Set to jnp.float32 for full
# precision; bf16 roughly doubles MXU throughput and halves weight DMA bytes.
MM_DTYPE = jnp.bfloat16


# -----------------------------------------------------------------------------
# In-kernel elementwise helpers (EUP-friendly)
# -----------------------------------------------------------------------------
_SQRT_2_OVER_PI = 0.7978845608028654


def _gelu(x):
    # tanh-based GELU (PyTorch F.gelu(approximate='tanh')); ~1e-3 max abs
    # deviation from the exact erf-based default.
    return 0.5 * x * (1.0 + jnp.tanh(_SQRT_2_OVER_PI * (x + 0.044715 * x * x * x)))


def _sigmoid(x):
    return pl.reciprocal(1.0 + jnp.exp(-x), approx=True)


def _shift_lanes(x, delta):
    """z[:, L] = x[:, L + delta] (static delta), zeros outside the flat axis."""
    if delta == 0:
        return x
    c, n = x.shape
    zeros = jnp.zeros((c, abs(delta)), x.dtype)
    if delta > 0:
        return jnp.concatenate([x[:, delta:], zeros], axis=1)
    return jnp.concatenate([zeros, x[:, : n + delta]], axis=1)


def _segment_group_norm(x, seg, seg_t, count, gamma, beta, eps):
    """GroupNorm(groups=1) applied independently to each length-T lane segment.

    x: (C, Fout*T); seg: (Fout*T, Fout) one-hot segment matrix; seg_t = seg.T.
    Segment statistics are gathered / re-broadcast with tiny MXU matmuls so the
    (C, Fout*T) lane-dense layout is never reshaped.
    """
    f32 = jnp.float32
    s1 = jnp.sum(x, axis=0, keepdims=True)                       # (1, FT)
    s2 = jnp.sum(x * x, axis=0, keepdims=True)
    m = jnp.dot(s1, seg, preferred_element_type=f32) / count     # (1, Fout)
    v = jnp.dot(s2, seg, preferred_element_type=f32) / count - m * m
    inv = jax.lax.rsqrt(jnp.maximum(v, 0.0) + eps)
    m_b = jnp.dot(m, seg_t, preferred_element_type=f32)          # (1, FT)
    inv_b = jnp.dot(inv, seg_t, preferred_element_type=f32)
    return (x - m_b) * inv_b * gamma + beta


def _full_group_norm(x, count, gamma, beta, eps):
    """GroupNorm(groups=1) over the whole (C, FT) block (single-pass stats)."""
    mu = jnp.sum(x, keepdims=True) / count                       # (1, 1)
    var = jnp.sum(x * x, keepdims=True) / count - mu * mu
    inv = jax.lax.rsqrt(jnp.maximum(var, 0.0) + eps)
    return (x - mu) * inv * gamma + beta


# -----------------------------------------------------------------------------
# Fused HEncLayer kernel: one grid step == one batch sample, everything in VMEM
# -----------------------------------------------------------------------------
def _henc_layer_kernel(*refs, chout, hidden_real, dconv_depth, t_len, fout,
                       n_phase, eps, add_emb, mm_dtype):
    refs = list(refs)
    out_ref = refs.pop()                       # (1, chout, Fout*T)
    it = iter(refs)
    xr_ref = next(it)                          # (1, Cin*stride, nblk*T)
    wq_ref = next(it)                          # (n_phase, chout, Cin*stride)
    bc_ref = next(it)                          # (chout, 1)
    n1g_ref = next(it)
    n1b_ref = next(it)
    drefs = [tuple(next(it) for _ in range(9)) for _ in range(dconv_depth)]
    rww_ref = next(it)                         # (2*chout, chout)
    rwb_ref = next(it)                         # (2*chout, 1)
    n2g_ref = next(it)
    n2b_ref = next(it)
    seg_ref = next(it)                         # (FT, Fout)
    segt_ref = next(it)                        # (Fout, FT)
    masks_ref = next(it)                       # (2*dconv_depth, FT)
    emb_ref = next(it) if add_emb else None    # (chout, FT)

    f32 = jnp.float32
    ft = fout * t_len

    # ---- strided frequency conv: K taps folded into n_phase lane-dense matmuls
    xrm = xr_ref[0].astype(mm_dtype)                               # (Cin*s, nblk*T)
    y = jnp.dot(wq_ref[0].astype(mm_dtype), xrm[:, 0:ft],
                preferred_element_type=f32)
    for q in range(1, n_phase):
        a_q = xrm[:, q * t_len: q * t_len + ft]                    # contiguous slice
        y = y + jnp.dot(wq_ref[q].astype(mm_dtype), a_q,
                        preferred_element_type=f32)
    y = y + bc_ref[...]                                            # (chout, FT)

    # ---- norm1 (GroupNorm(1, chout) over the whole sample) + GELU
    y = _full_group_norm(y, chout * ft, n1g_ref[...], n1b_ref[...], eps)
    y = _gelu(y)

    seg = seg_ref[...]
    seg_t = segt_ref[...]

    # ---- DConv residual stack (per-(b, f) samples handled in the flat layout)
    for d in range(dconv_depth):
        (w1_ref, b1_ref, g1_ref, be1_ref,
         w2_ref, b2_ref, g2_ref, be2_ref, sc_ref) = drefs[d]
        dil = 2 ** d

        yk = y.astype(mm_dtype)
        h = jnp.dot(w1_ref[1].astype(mm_dtype), yk,                # centre tap
                    preferred_element_type=f32)
        for j, k in enumerate((0, 2)):                             # off-centre taps
            delta = (k - 1) * dil
            mask = masks_ref[2 * d + j: 2 * d + j + 1, :]          # (1, FT)
            zk = _shift_lanes(y, delta) * mask
            h = h + jnp.dot(w1_ref[k].astype(mm_dtype), zk.astype(mm_dtype),
                            preferred_element_type=f32)
        h = h + b1_ref[...]                                        # (hidden_p, FT)

        # per-(b, f) GroupNorm(1, hidden) + GELU (zero-padded channels stay 0)
        h = _segment_group_norm(h, seg, seg_t, hidden_real * t_len,
                                g1_ref[...], be1_ref[...], eps)
        h = _gelu(h)

        # 1x1 conv -> 2*chout, per-(b, f) GroupNorm, GLU, LayerScale, residual
        g = jnp.dot(w2_ref[...].astype(mm_dtype), h.astype(mm_dtype),
                    preferred_element_type=f32) + b2_ref[...]
        g = _segment_group_norm(g, seg, seg_t, 2 * chout * t_len,
                                g2_ref[...], be2_ref[...], eps)
        y = y + sc_ref[...] * (g[:chout, :] * _sigmoid(g[chout:, :]))

    # ---- rewrite 1x1 conv -> norm2 (whole sample) -> GLU
    r = jnp.dot(rww_ref[...].astype(mm_dtype), y.astype(mm_dtype),
                preferred_element_type=f32) + rwb_ref[...]
    r = _full_group_norm(r, 2 * chout * ft, n2g_ref[...], n2b_ref[...], eps)
    out = r[:chout, :] * _sigmoid(r[chout:, :])

    if add_emb:
        out = out + emb_ref[...]                                   # fused freq_emb add
    out_ref[0] = out


# -----------------------------------------------------------------------------
# Wrapper: layout plumbing (pure XLA glue) + single pallas_call per HEncLayer
# -----------------------------------------------------------------------------
def henc_layer_pallas(lp, meta_l, x, emb_flat=None, kernel_size=8, stride=4):
    B, cin, fr, t_len = x.shape
    chout = lp["bconv"].shape[0]
    depth = len(lp["dconv"])
    assert kernel_size % stride == 0
    n_phase = kernel_size // stride
    pad = kernel_size // 4
    fout = (fr + 2 * pad - kernel_size) // stride + 1
    ft = fout * t_len
    fpad = fr + 2 * pad
    nblk = -(-fpad // stride)
    assert nblk >= fout + n_phase - 1

    # zero-pad the frequency axis and rearrange so the strided conv becomes
    # n_phase contiguous lane-slices inside the kernel (no im2col in HBM):
    #   xr[b, c*stride + r, m*T + t] = x_pad[b, c, m*stride + r, t]
    xp = jnp.pad(x, ((0, 0), (0, 0), (pad, pad + nblk * stride - fpad), (0, 0)))
    xr = (xp.reshape(B, cin, nblk, stride, t_len)
            .transpose(0, 1, 3, 2, 4)
            .reshape(B, cin * stride, nblk * t_len))

    # one-hot segment matrix for the per-(b, f) GroupNorms inside DConv
    seg_id = jnp.arange(ft, dtype=jnp.int32) // t_len
    seg = (seg_id[:, None] == jnp.arange(fout, dtype=jnp.int32)[None, :]
           ).astype(jnp.float32)                                    # (FT, Fout)
    seg_t = jnp.transpose(seg)                                      # (Fout, FT)

    # dilated-conv boundary masks: one row per (dconv layer, off-centre tap)
    tpos = jnp.arange(ft, dtype=jnp.int32) % t_len
    rows = []
    for d in range(depth):
        dil = 2 ** d
        rows.append(tpos >= dil)          # tap k=0 (delta = -dil)
        rows.append(tpos < t_len - dil)   # tap k=2 (delta = +dil)
    masks = jnp.stack(rows).astype(jnp.float32)                     # (2*depth, FT)

    args, in_specs = [], []

    def add(a, spec=None):
        args.append(a)
        in_specs.append(spec if spec is not None
                        else pl.BlockSpec(a.shape, lambda b, _n=a.ndim: (0,) * _n))

    add(xr, pl.BlockSpec((1, cin * stride, nblk * t_len), lambda b: (b, 0, 0)))
    for name in ("wq", "bconv", "n1_g", "n1_b"):
        add(lp[name])
    for dl in lp["dconv"]:
        for name in ("w1", "b1", "g1", "be1", "w2", "b2", "g2", "be2", "scale"):
            add(dl[name])
    for name in ("rw_w", "rw_b", "n2_g", "n2_b"):
        add(lp[name])
    add(seg)
    add(seg_t)
    add(masks)
    if emb_flat is not None:
        add(emb_flat)

    kern = functools.partial(
        _henc_layer_kernel, chout=chout, hidden_real=meta_l["hidden"],
        dconv_depth=depth, t_len=t_len, fout=fout, n_phase=n_phase,
        eps=1e-5, add_emb=emb_flat is not None, mm_dtype=MM_DTYPE)

    out = pl.pallas_call(
        kern,
        out_shape=jax.ShapeDtypeStruct((B, chout, ft), jnp.float32),
        grid=(B,),
        in_specs=in_specs,
        out_specs=pl.BlockSpec((1, chout, ft), lambda b: (b, 0, 0)),
        compiler_params=pltpu.CompilerParams(
            dimension_semantics=("parallel",)),
    )(*args)
    return out.reshape(B, chout, fout, t_len)


def hlayer_block_forward(params, x, meta, freq=True, freq_emb_weight=0.2):
    """HLayerBlock.forward with encoder_hidden_states=None."""
    kernel_size = meta["kernel_size"]
    stride = meta["stride"]
    hidden_states = []
    lengths = []
    out = x
    for idx, (lp, lm) in enumerate(zip(params["layers"], meta["layers"])):
        lengths.append(out.shape[-1])
        emb_flat = None
        if freq and idx == 0 and params["freq_emb"] is not None:
            _, _, fr, t_len = out.shape
            pad = kernel_size // 4
            fout = (fr + 2 * pad - kernel_size) // stride + 1
            chout = lp["bconv"].shape[0]
            # ScaledEmbedding(arange(Fout)) * emb_scale, pre-weighted & broadcast
            emb = params["freq_emb"][:fout] * meta["emb_scale"]     # (Fout, 48)
            emb_flat = (freq_emb_weight
                        * jnp.broadcast_to(emb.T[:, :, None], (chout, fout, t_len))
                        ).reshape(chout, fout * t_len)
        out = henc_layer_pallas(lp, lm, out, emb_flat=emb_flat,
                                kernel_size=kernel_size, stride=stride)
        hidden_states.append(out)
    return hidden_states, lengths


# -----------------------------------------------------------------------------
# Deterministic parameter construction (shapes from __init__), pre-transposed
# for the fused kernel; MXU weights stored in MM_DTYPE, everything else f32.
# -----------------------------------------------------------------------------
def init_params(key, chins, chouts, kernel_size=8, stride=4, dconv_depth=2,
                dconv_comp=8, dconv_init=1e-3, emb_scale=10.0, emb_smooth=True):
    assert chouts[0] == 48, "ScaledEmbedding(512, 48) is hard-coded in the module"
    keys = iter(jax.random.split(key, 256))

    def nrm(shape, s=0.1):
        return s * jax.random.normal(next(keys), shape, jnp.float32)

    n_phase = kernel_size // stride
    layers, meta_layers = [], []
    for cin, cout in zip(chins, chouts):
        hidden = max(1, cout // dconv_comp)
        hidden_p = ((hidden + 7) // 8) * 8       # sublane padding (zero weights)

        conv_w = nrm((cout, cin, kernel_size, 1))            # torch Conv2d layout
        conv_b = nrm((cout,), 0.01)
        # wq[q, co, c*stride + r] = conv_w[co, c, q*stride + r, 0]
        wq = (conv_w[..., 0].reshape(cout, cin, n_phase, stride)
              .transpose(2, 0, 1, 3).reshape(n_phase, cout, cin * stride))

        dlayers = []
        for _ in range(dconv_depth):
            w1 = nrm((hidden, cout, 3))                      # Conv1d(C, h, 3)
            b1 = nrm((hidden,), 0.01)
            w2 = nrm((2 * cout, hidden, 1))                  # Conv1d(h, 2C, 1)
            b2 = nrm((2 * cout,), 0.01)
            w1p = jnp.zeros((3, hidden_p, cout), jnp.float32)
            w1p = w1p.at[:, :hidden, :].set(jnp.transpose(w1, (2, 0, 1)))
            w2p = jnp.zeros((2 * cout, hidden_p), jnp.float32)
            w2p = w2p.at[:, :hidden].set(w2[:, :, 0])
            dlayers.append(dict(
                w1=w1p.astype(MM_DTYPE),
                b1=jnp.zeros((hidden_p, 1), jnp.float32).at[:hidden, 0].set(b1),
                g1=jnp.zeros((hidden_p, 1), jnp.float32).at[:hidden, 0].set(1.0),
                be1=jnp.zeros((hidden_p, 1), jnp.float32),
                w2=w2p.astype(MM_DTYPE),
                b2=b2.reshape(2 * cout, 1),
                g2=jnp.ones((2 * cout, 1), jnp.float32),
                be2=jnp.zeros((2 * cout, 1), jnp.float32),
                scale=jnp.full((cout, 1), dconv_init, jnp.float32),  # LayerScale
            ))
        layers.append(dict(
            wq=wq.astype(MM_DTYPE),
            bconv=conv_b.reshape(cout, 1),
            n1_g=jnp.ones((cout, 1), jnp.float32),
            n1_b=jnp.zeros((cout, 1), jnp.float32),
            rw_w=nrm((2 * cout, cout, 1, 1)).reshape(2 * cout, cout).astype(MM_DTYPE),
            rw_b=nrm((2 * cout,), 0.01).reshape(2 * cout, 1),
            n2_g=jnp.ones((2 * cout, 1), jnp.float32),
            n2_b=jnp.zeros((2 * cout, 1), jnp.float32),
            dconv=dlayers,
        ))
        meta_layers.append(dict(hidden=hidden))

    # ScaledEmbedding(512, 48, smooth=True, scale=10): stored weight after init
    w = jax.random.normal(next(keys), (512, 48), jnp.float32)
    if emb_smooth:
        w = jnp.cumsum(w, axis=0) / jnp.sqrt(
            jnp.arange(1, 513, dtype=jnp.float32))[:, None]
    w = w / emb_scale

    params = dict(layers=layers, freq_emb=w)
    meta = dict(layers=meta_layers, emb_scale=float(emb_scale),
                kernel_size=kernel_size, stride=stride)
    return params, meta


# -----------------------------------------------------------------------------
if __name__ == "__main__":
    key = jax.random.PRNGKey(0)
    pkey, xkey = jax.random.split(key)

    # depth=2; chouts[0] must be 48 (ScaledEmbedding(512, 48) hard-coded)
    chins = (4, 48)
    chouts = (48, 32)
    params, meta = init_params(pkey, chins, chouts)

    B, Fr, T = 2, 32, 16
    x = jax.random.normal(xkey, (B, chins[0], Fr, T), jnp.float32)  # NCHW = (B,C,F,T)

    fwd = jax.jit(functools.partial(hlayer_block_forward, meta=meta))
    hidden_states, lengths = fwd(params, x)
    jax.block_until_ready(hidden_states)

    assert hidden_states[0].shape == (B, 48, 8, T)
    assert hidden_states[1].shape == (B, 32, 2, T)
    assert [int(l) for l in lengths] == [T, T]
    assert all(bool(jnp.isfinite(h).all()) for h in hidden_states)
    print("KERNEL_OK")
</pallas_src>

<mosaic_0001>
module attributes {stable_mosaic.version = 11 : i64} {
  func.func @_henc_layer_kernel(%arg0: i32, %arg1: memref<1x16x144xf32, #tpu.memory_space<vmem>>, %arg2: memref<2x48x16xbf16, #tpu.memory_space<vmem>>, %arg3: memref<48x1xf32, #tpu.memory_space<vmem>>, %arg4: memref<48x1xf32, #tpu.memory_space<vmem>>, %arg5: memref<48x1xf32, #tpu.memory_space<vmem>>, %arg6: memref<3x8x48xbf16, #tpu.memory_space<vmem>>, %arg7: memref<8x1xf32, #tpu.memory_space<vmem>>, %arg8: memref<8x1xf32, #tpu.memory_space<vmem>>, %arg9: memref<8x1xf32, #tpu.memory_space<vmem>>, %arg10: memref<96x8xbf16, #tpu.memory_space<vmem>>, %arg11: memref<96x1xf32, #tpu.memory_space<vmem>>, %arg12: memref<96x1xf32, #tpu.memory_space<vmem>>, %arg13: memref<96x1xf32, #tpu.memory_space<vmem>>, %arg14: memref<48x1xf32, #tpu.memory_space<vmem>>, %arg15: memref<3x8x48xbf16, #tpu.memory_space<vmem>>, %arg16: memref<8x1xf32, #tpu.memory_space<vmem>>, %arg17: memref<8x1xf32, #tpu.memory_space<vmem>>, %arg18: memref<8x1xf32, #tpu.memory_space<vmem>>, %arg19: memref<96x8xbf16, #tpu.memory_space<vmem>>, %arg20: memref<96x1xf32, #tpu.memory_space<vmem>>, %arg21: memref<96x1xf32, #tpu.memory_space<vmem>>, %arg22: memref<96x1xf32, #tpu.memory_space<vmem>>, %arg23: memref<48x1xf32, #tpu.memory_space<vmem>>, %arg24: memref<96x48xbf16, #tpu.memory_space<vmem>>, %arg25: memref<96x1xf32, #tpu.memory_space<vmem>>, %arg26: memref<96x1xf32, #tpu.memory_space<vmem>>, %arg27: memref<96x1xf32, #tpu.memory_space<vmem>>, %arg28: memref<128x8xf32, #tpu.memory_space<vmem>>, %arg29: memref<8x128xf32, #tpu.memory_space<vmem>>, %arg30: memref<4x128xf32, #tpu.memory_space<vmem>>, %arg31: memref<48x128xf32, #tpu.memory_space<vmem>>, %arg32: memref<1x48x128xf32, #tpu.memory_space<vmem>>) attributes {dimension_semantics = [#tpu.dimension_semantics<parallel>], iteration_bounds = array<i64: 2>, scalar_prefetch = 0 : i64, scratch_operands = 0 : i64, tpu.core_type = #tpu.core_type<tc>, window_params = [{transform_indices = @transform_0, window_bounds = array<i64: 1, 16, 144>}, {pipeline_mode = #tpu.pipeline_mode<synchronous>, transform_indices = @transform_1, window_bounds = array<i64: 2, 48, 16>}, {pipeline_mode = #tpu.pipeline_mode<synchronous>, transform_indices = @transform_2, window_bounds = array<i64: 48, 1>}, {pipeline_mode = #tpu.pipeline_mode<synchronous>, transform_indices = @transform_3, window_bounds = array<i64: 48, 1>}, {pipeline_mode = #tpu.pipeline_mode<synchronous>, transform_indices = @transform_4, window_bounds = array<i64: 48, 1>}, {pipeline_mode = #tpu.pipeline_mode<synchronous>, transform_indices = @transform_5, window_bounds = array<i64: 3, 8, 48>}, {pipeline_mode = #tpu.pipeline_mode<synchronous>, transform_indices = @transform_6, window_bounds = array<i64: 8, 1>}, {pipeline_mode = #tpu.pipeline_mode<synchronous>, transform_indices = @transform_7, window_bounds = array<i64: 8, 1>}, {pipeline_mode = #tpu.pipeline_mode<synchronous>, transform_indices = @transform_8, window_bounds = array<i64: 8, 1>}, {pipeline_mode = #tpu.pipeline_mode<synchronous>, transform_indices = @transform_9, window_bounds = array<i64: 96, 8>}, {pipeline_mode = #tpu.pipeline_mode<synchronous>, transform_indices = @transform_10, window_bounds = array<i64: 96, 1>}, {pipeline_mode = #tpu.pipeline_mode<synchronous>, transform_indices = @transform_11, window_bounds = array<i64: 96, 1>}, {pipeline_mode = #tpu.pipeline_mode<synchronous>, transform_indices = @transform_12, window_bounds = array<i64: 96, 1>}, {pipeline_mode = #tpu.pipeline_mode<synchronous>, transform_indices = @transform_13, window_bounds = array<i64: 48, 1>}, {pipeline_mode = #tpu.pipeline_mode<synchronous>, transform_indices = @transform_14, window_bounds = array<i64: 3, 8, 48>}, {pipeline_mode = #tpu.pipeline_mode<synchronous>, transform_indices = @transform_15, window_bounds = array<i64: 8, 1>}, {pipeline_mode = #tpu.pipeline_mode<synchronous>, transform_indices = @transform_16, window_bounds = array<i64: 8, 1>}, {pipeline_mode = #tpu.pipeline_mode<synchronous>, transform_indices = @transform_17, window_bounds = array<i64: 8, 1>}, {pipeline_mode = #tpu.pipeline_mode<synchronous>, transform_indices = @transform_18, window_bounds = array<i64: 96, 8>}, {pipeline_mode = #tpu.pipeline_mode<synchronous>, transform_indices = @transform_19, window_bounds = array<i64: 96, 1>}, {pipeline_mode = #tpu.pipeline_mode<synchronous>, transform_indices = @transform_20, window_bounds = array<i64: 96, 1>}, {pipeline_mode = #tpu.pipeline_mode<synchronous>, transform_indices = @transform_21, window_bounds = array<i64: 96, 1>}, {pipeline_mode = #tpu.pipeline_mode<synchronous>, transform_indices = @transform_22, window_bounds = array<i64: 48, 1>}, {pipeline_mode = #tpu.pipeline_mode<synchronous>, transform_indices = @transform_23, window_bounds = array<i64: 96, 48>}, {pipeline_mode = #tpu.pipeline_mode<synchronous>, transform_indices = @transform_24, window_bounds = array<i64: 96, 1>}, {pipeline_mode = #tpu.pipeline_mode<synchronous>, transform_indices = @transform_25, window_bounds = array<i64: 96, 1>}, {pipeline_mode = #tpu.pipeline_mode<synchronous>, transform_indices = @transform_26, window_bounds = array<i64: 96, 1>}, {pipeline_mode = #tpu.pipeline_mode<synchronous>, transform_indices = @transform_27, window_bounds = array<i64: 128, 8>}, {pipeline_mode = #tpu.pipeline_mode<synchronous>, transform_indices = @transform_28, window_bounds = array<i64: 8, 128>}, {pipeline_mode = #tpu.pipeline_mode<synchronous>, transform_indices = @transform_29, window_bounds = array<i64: 4, 128>}, {pipeline_mode = #tpu.pipeline_mode<synchronous>, transform_indices = @transform_30, window_bounds = array<i64: 48, 128>}, {transform_indices = @transform_31, window_bounds = array<i64: 1, 48, 128>}]} {
    %c0 = arith.constant 0 : index
    %c0_0 = arith.constant 0 : index
    %c0_1 = arith.constant 0 : index
    %0 = vector.load %arg1[%c0, %c0_0, %c0_1] : memref<1x16x144xf32, #tpu.memory_space<vmem>>, vector<1x16x144xf32>
    %1 = vector.shape_cast %0 : vector<1x16x144xf32> to vector<16x144xf32>
    %2 = arith.truncf %1 : vector<16x144xf32> to vector<16x144xbf16>
    %c0_2 = arith.constant 0 : index
    %c0_3 = arith.constant 0 : index
    %c0_4 = arith.constant 0 : index
    %3 = vector.load %arg2[%c0_2, %c0_3, %c0_4] : memref<2x48x16xbf16, #tpu.memory_space<vmem>>, vector<1x48x16xbf16>
    %4 = vector.shape_cast %3 : vector<1x48x16xbf16> to vector<48x16xbf16>
    %5 = vector.extract_strided_slice %2 {offsets = [0, 0], sizes = [16, 128], strides = [1, 1]} : vector<16x144xbf16> to vector<16x128xbf16>
    %cst = arith.constant dense<0.000000e+00> : vector<48x128xf32>
    %6 = tpu.matmul %4, %5, %cst {dimension_numbers = #tpu.dot_dimension_numbers<[1], [0], [0], [1], [0, 0, 1, 1], [], []>} : vector<48x16xbf16>, vector<16x128xbf16>, vector<48x128xf32> -> vector<48x128xf32>
    %7 = vector.extract_strided_slice %2 {offsets = [0, 16], sizes = [16, 128], strides = [1, 1]} : vector<16x144xbf16> to vector<16x128xbf16>
    %c1 = arith.constant 1 : index
    %c0_5 = arith.constant 0 : index
    %c0_6 = arith.constant 0 : index
    %8 = vector.load %arg2[%c1, %c0_5, %c0_6] : memref<2x48x16xbf16, #tpu.memory_space<vmem>>, vector<1x48x16xbf16>
    %9 = vector.shape_cast %8 : vector<1x48x16xbf16> to vector<48x16xbf16>
    %cst_7 = arith.constant dense<0.000000e+00> : vector<48x128xf32>
    %10 = tpu.matmul %9, %7, %cst_7 {dimension_numbers = #tpu.dot_dimension_numbers<[1], [0], [0], [1], [0, 0, 1, 1], [], []>} : vector<48x16xbf16>, vector<16x128xbf16>, vector<48x128xf32> -> vector<48x128xf32>
    %11 = arith.addf %6, %10 : vector<48x128xf32>
    %c0_8 = arith.constant 0 : index
    %c0_9 = arith.constant 0 : index
    %12 = vector.load %arg3[%c0_8, %c0_9] : memref<48x1xf32, #tpu.memory_space<vmem>>, vector<48x1xf32>
    %13 = vector.broadcast %12 : vector<48x1xf32> to vector<48x128xf32>
    %14 = arith.addf %11, %13 : vector<48x128xf32>
    %c0_10 = arith.constant 0 : index
    %c0_11 = arith.constant 0 : index
    %15 = vector.load %arg4[%c0_10, %c0_11] : memref<48x1xf32, #tpu.memory_space<vmem>>, vector<48x1xf32>
    %c0_12 = arith.constant 0 : index
    %c0_13 = arith.constant 0 : index
    %16 = vector.load %arg5[%c0_12, %c0_13] : memref<48x1xf32, #tpu.memory_space<vmem>>, vector<48x1xf32>
    %17 = vector.shape_cast %14 : vector<48x128xf32> to vector<1x48x128xf32>
    %cst_14 = arith.constant dense<0.000000e+00> : vector<1xf32>
    %18 = vector.multi_reduction <add>, %17, %cst_14 [1, 2] : vector<1x48x128xf32> to vector<1xf32>
    %19 = vector.shape_cast %18 : vector<1xf32> to vector<1x1x1xf32>
    %20 = vector.extract %19[0, 0, 0] : f32 from vector<1x1x1xf32>
    %21 = vector.broadcast %20 : f32 to vector<1x1xf32>
    %cst_15 = arith.constant 6.144000e+03 : f32
    %22 = vector.broadcast %cst_15 : f32 to vector<1x1xf32>
    %23 = arith.divf %21, %22 : vector<1x1xf32>
    %24 = arith.mulf %14, %14 : vector<48x128xf32>
    %25 = vector.shape_cast %24 : vector<48x128xf32> to vector<1x48x128xf32>
    %cst_16 = arith.constant dense<0.000000e+00> : vector<1xf32>
    %26 = vector.multi_reduction <add>, %25, %cst_16 [1, 2] : vector<1x48x128xf32> to vector<1xf32>
    %27 = vector.shape_cast %26 : vector<1xf32> to vector<1x1x1xf32>
    %28 = vector.extract %27[0, 0, 0] : f32 from vector<1x1x1xf32>
    %29 = vector.broadcast %28 : f32 to vector<1x1xf32>
    %cst_17 = arith.constant 6.144000e+03 : f32
    %30 = vector.broadcast %cst_17 : f32 to vector<1x1xf32>
    %31 = arith.divf %29, %30 : vector<1x1xf32>
    %32 = arith.mulf %23, %23 : vector<1x1xf32>
    %33 = arith.subf %31, %32 : vector<1x1xf32>
    %cst_18 = arith.constant 0.000000e+00 : f32
    %34 = vector.broadcast %cst_18 : f32 to vector<1x1xf32>
    %35 = arith.maximumf %33, %34 : vector<1x1xf32>
    %cst_19 = arith.constant 9.99999974E-6 : f32
    %36 = vector.broadcast %cst_19 : f32 to vector<1x1xf32>
    %37 = arith.addf %35, %36 : vector<1x1xf32>
    %38 = math.rsqrt %37 : vector<1x1xf32>
    %39 = vector.broadcast %23 : vector<1x1xf32> to vector<48x128xf32>
    %40 = arith.subf %14, %39 : vector<48x128xf32>
    %41 = vector.broadcast %38 : vector<1x1xf32> to vector<48x128xf32>
    %42 = arith.mulf %40, %41 : vector<48x128xf32>
    %43 = vector.broadcast %15 : vector<48x1xf32> to vector<48x128xf32>
    %44 = arith.mulf %42, %43 : vector<48x128xf32>
    %45 = vector.broadcast %16 : vector<48x1xf32> to vector<48x128xf32>
    %46 = arith.addf %44, %45 : vector<48x128xf32>
    %cst_20 = arith.constant 5.000000e-01 : f32
    %47 = vector.broadcast %cst_20 : f32 to vector<48x128xf32>
    %48 = arith.mulf %47, %46 : vector<48x128xf32>
    %cst_21 = arith.constant 4.471500e-02 : f32
    %49 = vector.broadcast %cst_21 : f32 to vector<48x128xf32>
    %50 = arith.mulf %49, %46 : vector<48x128xf32>
    %51 = arith.mulf %50, %46 : vector<48x128xf32>
    %52 = arith.mulf %51, %46 : vector<48x128xf32>
    %53 = arith.addf %46, %52 : vector<48x128xf32>
    %cst_22 = arith.constant 0.797884583 : f32
    %54 = vector.broadcast %cst_22 : f32 to vector<48x128xf32>
    %55 = arith.mulf %54, %53 : vector<48x128xf32>
    %56 = math.tanh %55 : vector<48x128xf32>
    %cst_23 = arith.constant 1.000000e+00 : f32
    %57 = vector.broadcast %cst_23 : f32 to vector<48x128xf32>
    %58 = arith.addf %57, %56 : vector<48x128xf32>
    %59 = arith.mulf %48, %58 : vector<48x128xf32>
    %c0_24 = arith.constant 0 : index
    %c0_25 = arith.constant 0 : index
    %60 = vector.load %arg28[%c0_24, %c0_25] : memref<128x8xf32, #tpu.memory_space<vmem>>, vector<128x8xf32>
    %c0_26 = arith.constant 0 : index
    %c0_27 = arith.constant 0 : index
    %61 = vector.load %arg29[%c0_26, %c0_27] : memref<8x128xf32, #tpu.memory_space<vmem>>, vector<8x128xf32>
    %62 = arith.truncf %59 : vector<48x128xf32> to vector<48x128xbf16>
    %c1_28 = arith.constant 1 : index
    %c0_29 = arith.constant 0 : index
    %c0_30 = arith.constant 0 : index
    %63 = vector.load %arg6[%c1_28, %c0_29, %c0_30] : memref<3x8x48xbf16, #tpu.memory_space<vmem>>, vector<1x8x48xbf16>
    %64 = vector.shape_cast %63 : vector<1x8x48xbf16> to vector<8x48xbf16>
    %cst_31 = arith.constant dense<0.000000e+00> : vector<8x128xf32>
    %65 = tpu.matmul %64, %62, %cst_31 {dimension_numbers = #tpu.dot_dimension_numbers<[1], [0], [0], [1], [0, 0, 1, 1], [], []>} : vector<8x48xbf16>, vector<48x128xbf16>, vector<8x128xf32> -> vector<8x128xf32>
    %c0_32 = arith.constant 0 : index
    %c0_33 = arith.constant 0 : index
    %66 = vector.load %arg30[%c0_32, %c0_33] : memref<4x128xf32, #tpu.memory_space<vmem>>, vector<1x128xf32>
    %cst_34 = arith.constant 0.000000e+00 : f32
    %67 = vector.broadcast %cst_34 : f32 to vector<48x1xf32>
    %68 = vector.extract_strided_slice %59 {offsets = [0, 0], sizes = [48, 127], strides = [1, 1]} : vector<48x128xf32> to vector<48x127xf32>
    %69 = tpu.concatenate %67, %68 in 1 : vector<48x1xf32>, vector<48x127xf32> -> vector<48x128xf32>
    %70 = vector.broadcast %66 : vector<1x128xf32> to vector<48x128xf32>
    %71 = arith.mulf %69, %70 : vector<48x128xf32>
    %c0_35 = arith.constant 0 : index
    %c0_36 = arith.constant 0 : index
    %c0_37 = arith.constant 0 : index
    %72 = vector.load %arg6[%c0_35, %c0_36, %c0_37] : memref<3x8x48xbf16, #tpu.memory_space<vmem>>, vector<1x8x48xbf16>
    %73 = vector.shape_cast %72 : vector<1x8x48xbf16> to vector<8x48xbf16>
    %74 = arith.truncf %71 : vector<48x128xf32> to vector<48x128xbf16>
    %cst_38 = arith.constant dense<0.000000e+00> : vector<8x128xf32>
    %75 = tpu.matmul %73, %74, %cst_38 {dimension_numbers = #tpu.dot_dimension_numbers<[1], [0], [0], [1], [0, 0, 1, 1], [], []>} : vector<8x48xbf16>, vector<48x128xbf16>, vector<8x128xf32> -> vector<8x128xf32>
    %76 = arith.addf %65, %75 : vector<8x128xf32>
    %c1_39 = arith.constant 1 : index
    %c0_40 = arith.constant 0 : index
    %77 = vector.load %arg30[%c1_39, %c0_40] : memref<4x128xf32, #tpu.memory_space<vmem>>, vector<1x128xf32>
    %cst_41 = arith.constant 0.000000e+00 : f32
    %78 = vector.broadcast %cst_41 : f32 to vector<48x1xf32>
    %79 = vector.extract_strided_slice %59 {offsets = [0, 1], sizes = [48, 127], strides = [1, 1]} : vector<48x128xf32> to vector<48x127xf32>
    %80 = tpu.concatenate %79, %78 in 1 : vector<48x127xf32>, vector<48x1xf32> -> vector<48x128xf32>
    %81 = vector.broadcast %77 : vector<1x128xf32> to vector<48x128xf32>
    %82 = arith.mulf %80, %81 : vector<48x128xf32>
    %c2 = arith.constant 2 : index
    %c0_42 = arith.constant 0 : index
    %c0_43 = arith.constant 0 : index
    %83 = vector.load %arg6[%c2, %c0_42, %c0_43] : memref<3x8x48xbf16, #tpu.memory_space<vmem>>, vector<1x8x48xbf16>
    %84 = vector.shape_cast %83 : vector<1x8x48xbf16> to vector<8x48xbf16>
    %85 = arith.truncf %82 : vector<48x128xf32> to vector<48x128xbf16>
    %cst_44 = arith.constant dense<0.000000e+00> : vector<8x128xf32>
    %86 = tpu.matmul %84, %85, %cst_44 {dimension_numbers = #tpu.dot_dimension_numbers<[1], [0], [0], [1], [0, 0, 1, 1], [], []>} : vector<8x48xbf16>, vector<48x128xbf16>, vector<8x128xf32> -> vector<8x128xf32>
    %87 = arith.addf %76, %86 : vector<8x128xf32>
    %c0_45 = arith.constant 0 : index
    %c0_46 = arith.constant 0 : index
    %88 = vector.load %arg7[%c0_45, %c0_46] : memref<8x1xf32, #tpu.memory_space<vmem>>, vector<8x1xf32>
    %89 = vector.broadcast %88 : vector<8x1xf32> to vector<8x128xf32>
    %90 = arith.addf %87, %89 : vector<8x128xf32>
    %c0_47 = arith.constant 0 : index
    %c0_48 = arith.constant 0 : index
    %91 = vector.load %arg8[%c0_47, %c0_48] : memref<8x1xf32, #tpu.memory_space<vmem>>, vector<8x1xf32>
    %c0_49 = arith.constant 0 : index
    %c0_50 = arith.constant 0 : index
    %92 = vector.load %arg9[%c0_49, %c0_50] : memref<8x1xf32, #tpu.memory_space<vmem>>, vector<8x1xf32>
    %cst_51 = arith.constant dense<0.000000e+00> : vector<128xf32>
    %93 = vector.multi_reduction <add>, %90, %cst_51 [0] : vector<8x128xf32> to vector<128xf32>
    %94 = vector.shape_cast %93 : vector<128xf32> to vector<1x128xf32>
    %95 = arith.mulf %90, %90 : vector<8x128xf32>
    %cst_52 = arith.constant dense<0.000000e+00> : vector<128xf32>
    %96 = vector.multi_reduction <add>, %95, %cst_52 [0] : vector<8x128xf32> to vector<128xf32>
    %97 = vector.shape_cast %96 : vector<128xf32> to vector<1x128xf32>
    %cst_53 = arith.constant dense<0.000000e+00> : vector<1x8xf32>
    %98 = tpu.matmul %94, %60, %cst_53 {dimension_numbers = #tpu.dot_dimension_numbers<[1], [0], [0], [1], [0, 0, 1, 1], [], []>} : vector<1x128xf32>, vector<128x8xf32>, vector<1x8xf32> -> vector<1x8xf32>
    %cst_54 = arith.constant 9.600000e+01 : f32
    %99 = vector.broadcast %cst_54 : f32 to vector<1x8xf32>
    %100 = arith.divf %98, %99 : vector<1x8xf32>
    %cst_55 = arith.constant dense<0.000000e+00> : vector<1x8xf32>
    %101 = tpu.matmul %97, %60, %cst_55 {dimension_numbers = #tpu.dot_dimension_numbers<[1], [0], [0], [1], [0, 0, 1, 1], [], []>} : vector<1x128xf32>, vector<128x8xf32>, vector<1x8xf32> -> vector<1x8xf32>
    %cst_56 = arith.constant 9.600000e+01 : f32
    %102 = vector.broadcast %cst_56 : f32 to vector<1x8xf32>
    %103 = arith.divf %101, %102 : vector<1x8xf32>
    %104 = arith.mulf %100, %100 : vector<1x8xf32>
    %105 = arith.subf %103, %104 : vector<1x8xf32>
    %cst_57 = arith.constant 0.000000e+00 : f32
    %106 = vector.broadcast %cst_57 : f32 to vector<1x8xf32>
    %107 = arith.maximumf %105, %106 : vector<1x8xf32>
    %cst_58 = arith.constant 9.99999974E-6 : f32
    %108 = vector.broadcast %cst_58 : f32 to vector<1x8xf32>
    %109 = arith.addf %107, %108 : vector<1x8xf32>
    %110 = math.rsqrt %109 : vector<1x8xf32>
    %cst_59 = arith.constant dense<0.000000e+00> : vector<1x128xf32>
    %111 = tpu.matmul %100, %61, %cst_59 {dimension_numbers = #tpu.dot_dimension_numbers<[1], [0], [0], [1], [0, 0, 1, 1], [], []>} : vector<1x8xf32>, vector<8x128xf32>, vector<1x128xf32> -> vector<1x128xf32>
    %cst_60 = arith.constant dense<0.000000e+00> : vector<1x128xf32>
    %112 = tpu.matmul %110, %61, %cst_60 {dimension_numbers = #tpu.dot_dimension_numbers<[1], [0], [0], [1], [0, 0, 1, 1], [], []>} : vector<1x8xf32>, vector<8x128xf32>, vector<1x128xf32> -> vector<1x128xf32>
    %113 = vector.broadcast %111 : vector<1x128xf32> to vector<8x128xf32>
    %114 = arith.subf %90, %113 : vector<8x128xf32>
    %115 = vector.broadcast %112 : vector<1x128xf32> to vector<8x128xf32>
    %116 = arith.mulf %114, %115 : vector<8x128xf32>
    %117 = vector.broadcast %91 : vector<8x1xf32> to vector<8x128xf32>
    %118 = arith.mulf %116, %117 : vector<8x128xf32>
    %119 = vector.broadcast %92 : vector<8x1xf32> to vector<8x128xf32>
    %120 = arith.addf %118, %119 : vector<8x128xf32>
    %cst_61 = arith.constant 5.000000e-01 : f32
    %121 = vector.broadcast %cst_61 : f32 to vector<8x128xf32>
    %122 = arith.mulf %121, %120 : vector<8x128xf32>
    %cst_62 = arith.constant 4.471500e-02 : f32
    %123 = vector.broadcast %cst_62 : f32 to vector<8x128xf32>
    %124 = arith.mulf %123, %120 : vector<8x128xf32>
    %125 = arith.mulf %124, %120 : vector<8x128xf32>
    %126 = arith.mulf %125, %120 : vector<8x128xf32>
    %127 = arith.addf %120, %126 : vector<8x128xf32>
    %cst_63 = arith.constant 0.797884583 : f32
    %128 = vector.broadcast %cst_63 : f32 to vector<8x128xf32>
    %129 = arith.mulf %128, %127 : vector<8x128xf32>
    %130 = math.tanh %129 : vector<8x128xf32>
    %cst_64 = arith.constant 1.000000e+00 : f32
    %131 = vector.broadcast %cst_64 : f32 to vector<8x128xf32>
    %132 = arith.addf %131, %130 : vector<8x128xf32>
    %133 = arith.mulf %122, %132 : vector<8x128xf32>
    %c0_65 = arith.constant 0 : index
    %c0_66 = arith.constant 0 : index
    %134 = vector.load %arg10[%c0_65, %c0_66] : memref<96x8xbf16, #tpu.memory_space<vmem>>, vector<96x8xbf16>
    %135 = arith.truncf %133 : vector<8x128xf32> to vector<8x128xbf16>
    %cst_67 = arith.constant dense<0.000000e+00> : vector<96x128xf32>
    %136 = tpu.matmul %134, %135, %cst_67 {dimension_numbers = #tpu.dot_dimension_numbers<[1], [0], [0], [1], [0, 0, 1, 1], [], []>} : vector<96x8xbf16>, vector<8x128xbf16>, vector<96x128xf32> -> vector<96x128xf32>
    %c0_68 = arith.constant 0 : index
    %c0_69 = arith.constant 0 : index
    %137 = vector.load %arg11[%c0_68, %c0_69] : memref<96x1xf32, #tpu.memory_space<vmem>>, vector<96x1xf32>
    %138 = vector.broadcast %137 : vector<96x1xf32> to vector<96x128xf32>
    %139 = arith.addf %136, %138 : vector<96x128xf32>
    %c0_70 = arith.constant 0 : index
    %c0_71 = arith.constant 0 : index
    %140 = vector.load %arg12[%c0_70, %c0_71] : memref<96x1xf32, #tpu.memory_space<vmem>>, vector<96x1xf32>
    %c0_72 = arith.constant 0 : index
    %c0_73 = arith.constant 0 : index
    %141 = vector.load %arg13[%c0_72, %c0_73] : memref<96x1xf32, #tpu.memory_space<vmem>>, vector<96x1xf32>
    %cst_74 = arith.constant dense<0.000000e+00> : vector<128xf32>
    %142 = vector.multi_reduction <add>, %139, %cst_74 [0] : vector<96x128xf32> to vector<128xf32>
    %143 = vector.shape_cast %142 : vector<128xf32> to vector<1x128xf32>
    %144 = arith.mulf %139, %139 : vector<96x128xf32>
    %cst_75 = arith.constant dense<0.000000e+00> : vector<128xf32>
    %145 = vector.multi_reduction <add>, %144, %cst_75 [0] : vector<96x128xf32> to vector<128xf32>
    %146 = vector.shape_cast %145 : vector<128xf32> to vector<1x128xf32>
    %cst_76 = arith.constant dense<0.000000e+00> : vector<1x8xf32>
    %147 = tpu.matmul %143, %60, %cst_76 {dimension_numbers = #tpu.dot_dimension_numbers<[1], [0], [0], [1], [0, 0, 1, 1], [], []>} : vector<1x128xf32>, vector<128x8xf32>, vector<1x8xf32> -> vector<1x8xf32>
    %cst_77 = arith.constant 1.536000e+03 : f32
    %148 = vector.broadcast %cst_77 : f32 to vector<1x8xf32>
    %149 = arith.divf %147, %148 : vector<1x8xf32>
    %cst_78 = arith.constant dense<0.000000e+00> : vector<1x8xf32>
    %150 = tpu.matmul %146, %60, %cst_78 {dimension_numbers = #tpu.dot_dimension_numbers<[1], [0], [0], [1], [0, 0, 1, 1], [], []>} : vector<1x128xf32>, vector<128x8xf32>, vector<1x8xf32> -> vector<1x8xf32>
    %cst_79 = arith.constant 1.536000e+03 : f32
    %151 = vector.broadcast %cst_79 : f32 to vector<1x8xf32>
    %152 = arith.divf %150, %151 : vector<1x8xf32>
    %153 = arith.mulf %149, %149 : vector<1x8xf32>
    %154 = arith.subf %152, %153 : vector<1x8xf32>
    %cst_80 = arith.constant 0.000000e+00 : f32
    %155 = vector.broadcast %cst_80 : f32 to vector<1x8xf32>
    %156 = arith.maximumf %154, %155 : vector<1x8xf32>
    %cst_81 = arith.constant 9.99999974E-6 : f32
    %157 = vector.broadcast %cst_81 : f32 to vector<1x8xf32>
    %158 = arith.addf %156, %157 : vector<1x8xf32>
    %159 = math.rsqrt %158 : vector<1x8xf32>
    %cst_82 = arith.constant dense<0.000000e+00> : vector<1x128xf32>
    %160 = tpu.matmul %149, %61, %cst_82 {dimension_numbers = #tpu.dot_dimension_numbers<[1], [0], [0], [1], [0, 0, 1, 1], [], []>} : vector<1x8xf32>, vector<8x128xf32>, vector<1x128xf32> -> vector<1x128xf32>
    %cst_83 = arith.constant dense<0.000000e+00> : vector<1x128xf32>
    %161 = tpu.matmul %159, %61, %cst_83 {dimension_numbers = #tpu.dot_dimension_numbers<[1], [0], [0], [1], [0, 0, 1, 1], [], []>} : vector<1x8xf32>, vector<8x128xf32>, vector<1x128xf32> -> vector<1x128xf32>
    %162 = vector.broadcast %160 : vector<1x128xf32> to vector<96x128xf32>
    %163 = arith.subf %139, %162 : vector<96x128xf32>
    %164 = vector.broadcast %161 : vector<1x128xf32> to vector<96x128xf32>
    %165 = arith.mulf %163, %164 : vector<96x128xf32>
    %166 = vector.broadcast %140 : vector<96x1xf32> to vector<96x128xf32>
    %167 = arith.mulf %165, %166 : vector<96x128xf32>
    %168 = vector.broadcast %141 : vector<96x1xf32> to vector<96x128xf32>
    %169 = arith.addf %167, %168 : vector<96x128xf32>
    %c0_84 = arith.constant 0 : index
    %c0_85 = arith.constant 0 : index
    %170 = vector.load %arg14[%c0_84, %c0_85] : memref<48x1xf32, #tpu.memory_space<vmem>>, vector<48x1xf32>
    %171 = vector.extract_strided_slice %169 {offsets = [0, 0], sizes = [48, 128], strides = [1, 1]} : vector<96x128xf32> to vector<48x128xf32>
    %172 = vector.extract_strided_slice %169 {offsets = [48, 0], sizes = [48, 128], strides = [1, 1]} : vector<96x128xf32> to vector<48x128xf32>
    %cst_86 = arith.constant 0.000000e+00 : f32
    %173 = vector.broadcast %cst_86 : f32 to vector<48x128xf32>
    %174 = arith.subf %173, %172 : vector<48x128xf32>
    %175 = math.exp %174 : vector<48x128xf32>
    %cst_87 = arith.constant 1.000000e+00 : f32
    %176 = vector.broadcast %cst_87 : f32 to vector<48x128xf32>
    %177 = arith.addf %176, %175 : vector<48x128xf32>
    %178 = tpu.reciprocal %177 {approx = true} : vector<48x128xf32> -> vector<48x128xf32>
    %179 = arith.mulf %171, %178 : vector<48x128xf32>
    %180 = vector.broadcast %170 : vector<48x1xf32> to vector<48x128xf32>
    %181 = arith.mulf %180, %179 : vector<48x128xf32>
    %182 = arith.addf %59, %181 : vector<48x128xf32>
    %183 = arith.truncf %182 : vector<48x128xf32> to vector<48x128xbf16>
    %c1_88 = arith.constant 1 : index
    %c0_89 = arith.constant 0 : index
    %c0_90 = arith.constant 0 : index
    %184 = vector.load %arg15[%c1_88, %c0_89, %c0_90] : memref<3x8x48xbf16, #tpu.memory_space<vmem>>, vector<1x8x48xbf16>
    %185 = vector.shape_cast %184 : vector<1x8x48xbf16> to vector<8x48xbf16>
    %cst_91 = arith.constant dense<0.000000e+00> : vector<8x128xf32>
    %186 = tpu.matmul %185, %183, %cst_91 {dimension_numbers = #tpu.dot_dimension_numbers<[1], [0], [0], [1], [0, 0, 1, 1], [], []>} : vector<8x48xbf16>, vector<48x128xbf16>, vector<8x128xf32> -> vector<8x128xf32>
    %c2_92 = arith.constant 2 : index
    %c0_93 = arith.constant 0 : index
    %187 = vector.load %arg30[%c2_92, %c0_93] : memref<4x128xf32, #tpu.memory_space<vmem>>, vector<1x128xf32>
    %cst_94 = arith.constant 0.000000e+00 : f32
    %188 = vector.broadcast %cst_94 : f32 to vector<48x2xf32>
    %189 = vector.extract_strided_slice %182 {offsets = [0, 0], sizes = [48, 126], strides = [1, 1]} : vector<48x128xf32> to vector<48x126xf32>
    %190 = tpu.concatenate %188, %189 in 1 : vector<48x2xf32>, vector<48x126xf32> -> vector<48x128xf32>
    %191 = vector.broadcast %187 : vector<1x128xf32> to vector<48x128xf32>
    %192 = arith.mulf %190, %191 : vector<48x128xf32>
    %c0_95 = arith.constant 0 : index
    %c0_96 = arith.constant 0 : index
    %c0_97 = arith.constant 0 : index
    %193 = vector.load %arg15[%c0_95, %c0_96, %c0_97] : memref<3x8x48xbf16, #tpu.memory_space<vmem>>, vector<1x8x48xbf16>
    %194 = vector.shape_cast %193 : vector<1x8x48xbf16> to vector<8x48xbf16>
    %195 = arith.truncf %192 : vector<48x128xf32> to vector<48x128xbf16>
    %cst_98 = arith.constant dense<0.000000e+00> : vector<8x128xf32>
    %196 = tpu.matmul %194, %195, %cst_98 {dimension_numbers = #tpu.dot_dimension_numbers<[1], [0], [0], [1], [0, 0, 1, 1], [], []>} : vector<8x48xbf16>, vector<48x128xbf16>, vector<8x128xf32> -> vector<8x128xf32>
    %197 = arith.addf %186, %196 : vector<8x128xf32>
    %c3 = arith.constant 3 : index
    %c0_99 = arith.constant 0 : index
    %198 = vector.load %arg30[%c3, %c0_99] : memref<4x128xf32, #tpu.memory_space<vmem>>, vector<1x128xf32>
    %cst_100 = arith.constant 0.000000e+00 : f32
    %199 = vector.broadcast %cst_100 : f32 to vector<48x2xf32>
    %200 = vector.extract_strided_slice %182 {offsets = [0, 2], sizes = [48, 126], strides = [1, 1]} : vector<48x128xf32> to vector<48x126xf32>
    %201 = tpu.concatenate %200, %199 in 1 : vector<48x126xf32>, vector<48x2xf32> -> vector<48x128xf32>
    %202 = vector.broadcast %198 : vector<1x128xf32> to vector<48x128xf32>
    %203 = arith.mulf %201, %202 : vector<48x128xf32>
    %c2_101 = arith.constant 2 : index
    %c0_102 = arith.constant 0 : index
    %c0_103 = arith.constant 0 : index
    %204 = vector.load %arg15[%c2_101, %c0_102, %c0_103] : memref<3x8x48xbf16, #tpu.memory_space<vmem>>, vector<1x8x48xbf16>
    %205 = vector.shape_cast %204 : vector<1x8x48xbf16> to vector<8x48xbf16>
    %206 = arith.truncf %203 : vector<48x128xf32> to vector<48x128xbf16>
    %cst_104 = arith.constant dense<0.000000e+00> : vector<8x128xf32>
    %207 = tpu.matmul %205, %206, %cst_104 {dimension_numbers = #tpu.dot_dimension_numbers<[1], [0], [0], [1], [0, 0, 1, 1], [], []>} : vector<8x48xbf16>, vector<48x128xbf16>, vector<8x128xf32> -> vector<8x128xf32>
    %208 = arith.addf %197, %207 : vector<8x128xf32>
    %c0_105 = arith.constant 0 : index
    %c0_106 = arith.constant 0 : index
    %209 = vector.load %arg16[%c0_105, %c0_106] : memref<8x1xf32, #tpu.memory_space<vmem>>, vector<8x1xf32>
    %210 = vector.broadcast %209 : vector<8x1xf32> to vector<8x128xf32>
    %211 = arith.addf %208, %210 : vector<8x128xf32>
    %c0_107 = arith.constant 0 : index
    %c0_108 = arith.constant 0 : index
    %212 = vector.load %arg17[%c0_107, %c0_108] : memref<8x1xf32, #tpu.memory_space<vmem>>, vector<8x1xf32>
    %c0_109 = arith.constant 0 : index
    %c0_110 = arith.constant 0 : index
    %213 = vector.load %arg18[%c0_109, %c0_110] : memref<8x1xf32, #tpu.memory_space<vmem>>, vector<8x1xf32>
    %cst_111 = arith.constant dense<0.000000e+00> : vector<128xf32>
    %214 = vector.multi_reduction <add>, %211, %cst_111 [0] : vector<8x128xf32> to vector<128xf32>
    %215 = vector.shape_cast %214 : vector<128xf32> to vector<1x128xf32>
    %216 = arith.mulf %211, %211 : vector<8x128xf32>
    %cst_112 = arith.constant dense<0.000000e+00> : vector<128xf32>
    %217 = vector.multi_reduction <add>, %216, %cst_112 [0] : vector<8x128xf32> to vector<128xf32>
    %218 = vector.shape_cast %217 : vector<128xf32> to vector<1x128xf32>
    %cst_113 = arith.constant dense<0.000000e+00> : vector<1x8xf32>
    %219 = tpu.matmul %215, %60, %cst_113 {dimension_numbers = #tpu.dot_dimension_numbers<[1], [0], [0], [1], [0, 0, 1, 1], [], []>} : vector<1x128xf32>, vector<128x8xf32>, vector<1x8xf32> -> vector<1x8xf32>
    %cst_114 = arith.constant 9.600000e+01 : f32
    %220 = vector.broadcast %cst_114 : f32 to vector<1x8xf32>
    %221 = arith.divf %219, %220 : vector<1x8xf32>
    %cst_115 = arith.constant dense<0.000000e+00> : vector<1x8xf32>
    %222 = tpu.matmul %218, %60, %cst_115 {dimension_numbers = #tpu.dot_dimension_numbers<[1], [0], [0], [1], [0, 0, 1, 1], [], []>} : vector<1x128xf32>, vector<128x8xf32>, vector<1x8xf32> -> vector<1x8xf32>
    %cst_116 = arith.constant 9.600000e+01 : f32
    %223 = vector.broadcast %cst_116 : f32 to vector<1x8xf32>
    %224 = arith.divf %222, %223 : vector<1x8xf32>
    %225 = arith.mulf %221, %221 : vector<1x8xf32>
    %226 = arith.subf %224, %225 : vector<1x8xf32>
    %cst_117 = arith.constant 0.000000e+00 : f32
    %227 = vector.broadcast %cst_117 : f32 to vector<1x8xf32>
    %228 = arith.maximumf %226, %227 : vector<1x8xf32>
    %cst_118 = arith.constant 9.99999974E-6 : f32
    %229 = vector.broadcast %cst_118 : f32 to vector<1x8xf32>
    %230 = arith.addf %228, %229 : vector<1x8xf32>
    %231 = math.rsqrt %230 : vector<1x8xf32>
    %cst_119 = arith.constant dense<0.000000e+00> : vector<1x128xf32>
    %232 = tpu.matmul %221, %61, %cst_119 {dimension_numbers = #tpu.dot_dimension_numbers<[1], [0], [0], [1], [0, 0, 1, 1], [], []>} : vector<1x8xf32>, vector<8x128xf32>, vector<1x128xf32> -> vector<1x128xf32>
    %cst_120 = arith.constant dense<0.000000e+00> : vector<1x128xf32>
    %233 = tpu.matmul %231, %61, %cst_120 {dimension_numbers = #tpu.dot_dimension_numbers<[1], [0], [0], [1], [0, 0, 1, 1], [], []>} : vector<1x8xf32>, vector<8x128xf32>, vector<1x128xf32> -> vector<1x128xf32>
    %234 = vector.broadcast %232 : vector<1x128xf32> to vector<8x128xf32>
    %235 = arith.subf %211, %234 : vector<8x128xf32>
    %236 = vector.broadcast %233 : vector<1x128xf32> to vector<8x128xf32>
    %237 = arith.mulf %235, %236 : vector<8x128xf32>
    %238 = vector.broadcast %212 : vector<8x1xf32> to vector<8x128xf32>
    %239 = arith.mulf %237, %238 : vector<8x128xf32>
    %240 = vector.broadcast %213 : vector<8x1xf32> to vector<8x128xf32>
    %241 = arith.addf %239, %240 : vector<8x128xf32>
    %cst_121 = arith.constant 5.000000e-01 : f32
    %242 = vector.broadcast %cst_121 : f32 to vector<8x128xf32>
    %243 = arith.mulf %242, %241 : vector<8x128xf32>
    %cst_122 = arith.constant 4.471500e-02 : f32
    %244 = vector.broadcast %cst_122 : f32 to vector<8x128xf32>
    %245 = arith.mulf %244, %241 : vector<8x128xf32>
    %246 = arith.mulf %245, %241 : vector<8x128xf32>
    %247 = arith.mulf %246, %241 : vector<8x128xf32>
    %248 = arith.addf %241, %247 : vector<8x128xf32>
    %cst_123 = arith.constant 0.797884583 : f32
    %249 = vector.broadcast %cst_123 : f32 to vector<8x128xf32>
    %250 = arith.mulf %249, %248 : vector<8x128xf32>
    %251 = math.tanh %250 : vector<8x128xf32>
    %cst_124 = arith.constant 1.000000e+00 : f32
    %252 = vector.broadcast %cst_124 : f32 to vector<8x128xf32>
    %253 = arith.addf %252, %251 : vector<8x128xf32>
    %254 = arith.mulf %243, %253 : vector<8x128xf32>
    %c0_125 = arith.constant 0 : index
    %c0_126 = arith.constant 0 : index
    %255 = vector.load %arg19[%c0_125, %c0_126] : memref<96x8xbf16, #tpu.memory_space<vmem>>, vector<96x8xbf16>
    %256 = arith.truncf %254 : vector<8x128xf32> to vector<8x128xbf16>
    %cst_127 = arith.constant dense<0.000000e+00> : vector<96x128xf32>
    %257 = tpu.matmul %255, %256, %cst_127 {dimension_numbers = #tpu.dot_dimension_numbers<[1], [0], [0], [1], [0, 0, 1, 1], [], []>} : vector<96x8xbf16>, vector<8x128xbf16>, vector<96x128xf32> -> vector<96x128xf32>
    %c0_128 = arith.constant 0 : index
    %c0_129 = arith.constant 0 : index
    %258 = vector.load %arg20[%c0_128, %c0_129] : memref<96x1xf32, #tpu.memory_space<vmem>>, vector<96x1xf32>
    %259 = vector.broadcast %258 : vector<96x1xf32> to vector<96x128xf32>
    %260 = arith.addf %257, %259 : vector<96x128xf32>
    %c0_130 = arith.constant 0 : index
    %c0_131 = arith.constant 0 : index
    %261 = vector.load %arg21[%c0_130, %c0_131] : memref<96x1xf32, #tpu.memory_space<vmem>>, vector<96x1xf32>
    %c0_132 = arith.constant 0 : index
    %c0_133 = arith.constant 0 : index
    %262 = vector.load %arg22[%c0_132, %c0_133] : memref<96x1xf32, #tpu.memory_space<vmem>>, vector<96x1xf32>
    %cst_134 = arith.constant dense<0.000000e+00> : vector<128xf32>
    %263 = vector.multi_reduction <add>, %260, %cst_134 [0] : vector<96x128xf32> to vector<128xf32>
    %264 = vector.shape_cast %263 : vector<128xf32> to vector<1x128xf32>
    %265 = arith.mulf %260, %260 : vector<96x128xf32>
    %cst_135 = arith.constant dense<0.000000e+00> : vector<128xf32>
    %266 = vector.multi_reduction <add>, %265, %cst_135 [0] : vector<96x128xf32> to vector<128xf32>
    %267 = vector.shape_cast %266 : vector<128xf32> to vector<1x128xf32>
    %cst_136 = arith.constant dense<0.000000e+00> : vector<1x8xf32>
    %268 = tpu.matmul %264, %60, %cst_136 {dimension_numbers = #tpu.dot_dimension_numbers<[1], [0], [0], [1], [0, 0, 1, 1], [], []>} : vector<1x128xf32>, vector<128x8xf32>, vector<1x8xf32> -> vector<1x8xf32>
    %cst_137 = arith.constant 1.536000e+03 : f32
    %269 = vector.broadcast %cst_137 : f32 to vector<1x8xf32>
    %270 = arith.divf %268, %269 : vector<1x8xf32>
    %cst_138 = arith.constant dense<0.000000e+00> : vector<1x8xf32>
    %271 = tpu.matmul %267, %60, %cst_138 {dimension_numbers = #tpu.dot_dimension_numbers<[1], [0], [0], [1], [0, 0, 1, 1], [], []>} : vector<1x128xf32>, vector<128x8xf32>, vector<1x8xf32> -> vector<1x8xf32>
    %cst_139 = arith.constant 1.536000e+03 : f32
    %272 = vector.broadcast %cst_139 : f32 to vector<1x8xf32>
    %273 = arith.divf %271, %272 : vector<1x8xf32>
    %274 = arith.mulf %270, %270 : vector<1x8xf32>
    %275 = arith.subf %273, %274 : vector<1x8xf32>
    %cst_140 = arith.constant 0.000000e+00 : f32
    %276 = vector.broadcast %cst_140 : f32 to vector<1x8xf32>
    %277 = arith.maximumf %275, %276 : vector<1x8xf32>
    %cst_141 = arith.constant 9.99999974E-6 : f32
    %278 = vector.broadcast %cst_141 : f32 to vector<1x8xf32>
    %279 = arith.addf %277, %278 : vector<1x8xf32>
    %280 = math.rsqrt %279 : vector<1x8xf32>
    %cst_142 = arith.constant dense<0.000000e+00> : vector<1x128xf32>
    %281 = tpu.matmul %270, %61, %cst_142 {dimension_numbers = #tpu.dot_dimension_numbers<[1], [0], [0], [1], [0, 0, 1, 1], [], []>} : vector<1x8xf32>, vector<8x128xf32>, vector<1x128xf32> -> vector<1x128xf32>
    %cst_143 = arith.constant dense<0.000000e+00> : vector<1x128xf32>
    %282 = tpu.matmul %280, %61, %cst_143 {dimension_numbers = #tpu.dot_dimension_numbers<[1], [0], [0], [1], [0, 0, 1, 1], [], []>} : vector<1x8xf32>, vector<8x128xf32>, vector<1x128xf32> -> vector<1x128xf32>
    %283 = vector.broadcast %281 : vector<1x128xf32> to vector<96x128xf32>
    %284 = arith.subf %260, %283 : vector<96x128xf32>
    %285 = vector.broadcast %282 : vector<1x128xf32> to vector<96x128xf32>
    %286 = arith.mulf %284, %285 : vector<96x128xf32>
    %287 = vector.broadcast %261 : vector<96x1xf32> to vector<96x128xf32>
    %288 = arith.mulf %286, %287 : vector<96x128xf32>
    %289 = vector.broadcast %262 : vector<96x1xf32> to vector<96x128xf32>
    %290 = arith.addf %288, %289 : vector<96x128xf32>
    %c0_144 = arith.constant 0 : index
    %c0_145 = arith.constant 0 : index
    %291 = vector.load %arg23[%c0_144, %c0_145] : memref<48x1xf32, #tpu.memory_space<vmem>>, vector<48x1xf32>
    %292 = vector.extract_strided_slice %290 {offsets = [0, 0], sizes = [48, 128], strides = [1, 1]} : vector<96x128xf32> to vector<48x128xf32>
    %293 = vector.extract_strided_slice %290 {offsets = [48, 0], sizes = [48, 128], strides = [1, 1]} : vector<96x128xf32> to vector<48x128xf32>
    %cst_146 = arith.constant 0.000000e+00 : f32
    %294 = vector.broadcast %cst_146 : f32 to vector<48x128xf32>
    %295 = arith.subf %294, %293 : vector<48x128xf32>
    %296 = math.exp %295 : vector<48x128xf32>
    %cst_147 = arith.constant 1.000000e+00 : f32
    %297 = vector.broadcast %cst_147 : f32 to vector<48x128xf32>
    %298 = arith.addf %297, %296 : vector<48x128xf32>
    %299 = tpu.reciprocal %298 {approx = true} : vector<48x128xf32> -> vector<48x128xf32>
    %300 = arith.mulf %292, %299 : vector<48x128xf32>
    %301 = vector.broadcast %291 : vector<48x1xf32> to vector<48x128xf32>
    %302 = arith.mulf %301, %300 : vector<48x128xf32>
    %303 = arith.addf %182, %302 : vector<48x128xf32>
    %c0_148 = arith.constant 0 : index
    %c0_149 = arith.constant 0 : index
    %304 = vector.load %arg24[%c0_148, %c0_149] : memref<96x48xbf16, #tpu.memory_space<vmem>>, vector<96x48xbf16>
    %305 = arith.truncf %303 : vector<48x128xf32> to vector<48x128xbf16>
    %cst_150 = arith.constant dense<0.000000e+00> : vector<96x128xf32>
    %306 = tpu.matmul %304, %305, %cst_150 {dimension_numbers = #tpu.dot_dimension_numbers<[1], [0], [0], [1], [0, 0, 1, 1], [], []>} : vector<96x48xbf16>, vector<48x128xbf16>, vector<96x128xf32> -> vector<96x128xf32>
    %c0_151 = arith.constant 0 : index
    %c0_152 = arith.constant 0 : index
    %307 = vector.load %arg25[%c0_151, %c0_152] : memref<96x1xf32, #tpu.memory_space<vmem>>, vector<96x1xf32>
    %308 = vector.broadcast %307 : vector<96x1xf32> to vector<96x128xf32>
    %309 = arith.addf %306, %308 : vector<96x128xf32>
    %c0_153 = arith.constant 0 : index
    %c0_154 = arith.constant 0 : index
    %310 = vector.load %arg26[%c0_153, %c0_154] : memref<96x1xf32, #tpu.memory_space<vmem>>, vector<96x1xf32>
    %c0_155 = arith.constant 0 : index
    %c0_156 = arith.constant 0 : index
    %311 = vector.load %arg27[%c0_155, %c0_156] : memref<96x1xf32, #tpu.memory_space<vmem>>, vector<96x1xf32>
    %312 = vector.shape_cast %309 : vector<96x128xf32> to vector<1x96x128xf32>
    %cst_157 = arith.constant dense<0.000000e+00> : vector<1xf32>
    %313 = vector.multi_reduction <add>, %312, %cst_157 [1, 2] : vector<1x96x128xf32> to vector<1xf32>
    %314 = vector.shape_cast %313 : vector<1xf32> to vector<1x1x1xf32>
    %315 = vector.extract %314[0, 0, 0] : f32 from vector<1x1x1xf32>
    %316 = vector.broadcast %315 : f32 to vector<1x1xf32>
    %cst_158 = arith.constant 1.228800e+04 : f32
    %317 = vector.broadcast %cst_158 : f32 to vector<1x1xf32>
    %318 = arith.divf %316, %317 : vector<1x1xf32>
    %319 = arith.mulf %309, %309 : vector<96x128xf32>
    %320 = vector.shape_cast %319 : vector<96x128xf32> to vector<1x96x128xf32>
    %cst_159 = arith.constant dense<0.000000e+00> : vector<1xf32>
    %321 = vector.multi_reduction <add>, %320, %cst_159 [1, 2] : vector<1x96x128xf32> to vector<1xf32>
    %322 = vector.shape_cast %321 : vector<1xf32> to vector<1x1x1xf32>
    %323 = vector.extract %322[0, 0, 0] : f32 from vector<1x1x1xf32>
    %324 = vector.broadcast %323 : f32 to vector<1x1xf32>
    %cst_160 = arith.constant 1.228800e+04 : f32
    %325 = vector.broadcast %cst_160 : f32 to vector<1x1xf32>
    %326 = arith.divf %324, %325 : vector<1x1xf32>
    %327 = arith.mulf %318, %318 : vector<1x1xf32>
    %328 = arith.subf %326, %327 : vector<1x1xf32>
    %cst_161 = arith.constant 0.000000e+00 : f32
    %329 = vector.broadcast %cst_161 : f32 to vector<1x1xf32>
    %330 = arith.maximumf %328, %329 : vector<1x1xf32>
    %cst_162 = arith.constant 9.99999974E-6 : f32
    %331 = vector.broadcast %cst_162 : f32 to vector<1x1xf32>
    %332 = arith.addf %330, %331 : vector<1x1xf32>
    %333 = math.rsqrt %332 : vector<1x1xf32>
    %334 = vector.broadcast %318 : vector<1x1xf32> to vector<96x128xf32>
    %335 = arith.subf %309, %334 : vector<96x128xf32>
    %336 = vector.broadcast %333 : vector<1x1xf32> to vector<96x128xf32>
    %337 = arith.mulf %335, %336 : vector<96x128xf32>
    %338 = vector.broadcast %310 : vector<96x1xf32> to vector<96x128xf32>
    %339 = arith.mulf %337, %338 : vector<96x128xf32>
    %340 = vector.broadcast %311 : vector<96x1xf32> to vector<96x128xf32>
    %341 = arith.addf %339, %340 : vector<96x128xf32>
    %342 = vector.extract_strided_slice %341 {offsets = [0, 0], sizes = [48, 128], strides = [1, 1]} : vector<96x128xf32> to vector<48x128xf32>
    %343 = vector.extract_strided_slice %341 {offsets = [48, 0], sizes = [48, 128], strides = [1, 1]} : vector<96x128xf32> to vector<48x128xf32>
    %cst_163 = arith.constant 0.000000e+00 : f32
    %344 = vector.broadcast %cst_163 : f32 to vector<48x128xf32>
    %345 = arith.subf %344, %343 : vector<48x128xf32>
    %346 = math.exp %345 : vector<48x128xf32>
    %cst_164 = arith.constant 1.000000e+00 : f32
    %347 = vector.broadcast %cst_164 : f32 to vector<48x128xf32>
    %348 = arith.addf %347, %346 : vector<48x128xf32>
    %349 = tpu.reciprocal %348 {approx = true} : vector<48x128xf32> -> vector<48x128xf32>
    %350 = arith.mulf %342, %349 : vector<48x128xf32>
    %c0_165 = arith.constant 0 : index
    %c0_166 = arith.constant 0 : index
    %351 = vector.load %arg31[%c0_165, %c0_166] : memref<48x128xf32, #tpu.memory_space<vmem>>, vector<48x128xf32>
    %352 = arith.addf %350, %351 : vector<48x128xf32>
    %c0_167 = arith.constant 0 : index
    %c0_168 = arith.constant 0 : index
    %c0_169 = arith.constant 0 : index
    %353 = vector.load %arg32[%c0_167, %c0_168, %c0_169] : memref<1x48x128xf32, #tpu.memory_space<vmem>>, vector<1x48x128xf32>
    %354 = vector.shape_cast %353 : vector<1x48x128xf32> to vector<48x128xf32>
    %355 = vector.shape_cast %352 : vector<48x128xf32> to vector<1x48x128xf32>
    tpu.vector_store %arg32[%c0_167, %c0_168, %c0_169], %355 {strides = array<i32>} : memref<1x48x128xf32, #tpu.memory_space<vmem>>, vector<1x48x128xf32>,
    return
  }
  func.func @transform_0(%arg0: i32) -> (i32, i32, i32) {
    %c0_i32 = arith.constant 0 : i32
    %c0_i32_0 = arith.constant 0 : i32
    %c0_i32_1 = arith.constant 0 : i32
    return %arg0, %c0_i32, %c0_i32_0 : i32, i32, i32
  }
  func.func @transform_1(%arg0: i32) -> (i32, i32, i32) {
    %c0_i32 = arith.constant 0 : i32
    %c0_i32_0 = arith.constant 0 : i32
    %c0_i32_1 = arith.constant 0 : i32
    %c0_i32_2 = arith.constant 0 : i32
    return %c0_i32, %c0_i32_0, %c0_i32_1 : i32, i32, i32
  }
  func.func @transform_2(%arg0: i32) -> (i32, i32) {
    %c0_i32 = arith.constant 0 : i32
    %c0_i32_0 = arith.constant 0 : i32
    %c0_i32_1 = arith.constant 0 : i32
    return %c0_i32, %c0_i32_0 : i32, i32
  }
  func.func @transform_3(%arg0: i32) -> (i32, i32) {
    %c0_i32 = arith.constant 0 : i32
    %c0_i32_0 = arith.constant 0 : i32
    %c0_i32_1 = arith.constant 0 : i32
    return %c0_i32, %c0_i32_0 : i32, i32
  }
  func.func @transform_4(%arg0: i32) -> (i32, i32) {
    %c0_i32 = arith.constant 0 : i32
    %c0_i32_0 = arith.constant 0 : i32
    %c0_i32_1 = arith.constant 0 : i32
    return %c0_i32, %c0_i32_0 : i32, i32
  }
  func.func @transform_5(%arg0: i32) -> (i32, i32, i32) {
    %c0_i32 = arith.constant 0 : i32
    %c0_i32_0 = arith.constant 0 : i32
    %c0_i32_1 = arith.constant 0 : i32
    %c0_i32_2 = arith.constant 0 : i32
    return %c0_i32, %c0_i32_0, %c0_i32_1 : i32, i32, i32
  }
  func.func @transform_6(%arg0: i32) -> (i32, i32) {
    %c0_i32 = arith.constant 0 : i32
    %c0_i32_0 = arith.constant 0 : i32
    %c0_i32_1 = arith.constant 0 : i32
    return %c0_i32, %c0_i32_0 : i32, i32
  }
  func.func @transform_7(%arg0: i32) -> (i32, i32) {
    %c0_i32 = arith.constant 0 : i32
    %c0_i32_0 = arith.constant 0 : i32
    %c0_i32_1 = arith.constant 0 : i32
    return %c0_i32, %c0_i32_0 : i32, i32
  }
  func.func @transform_8(%arg0: i32) -> (i32, i32) {
    %c0_i32 = arith.constant 0 : i32
    %c0_i32_0 = arith.constant 0 : i32
    %c0_i32_1 = arith.constant 0 : i32
    return %c0_i32, %c0_i32_0 : i32, i32
  }
  func.func @transform_9(%arg0: i32) -> (i32, i32) {
    %c0_i32 = arith.constant 0 : i32
    %c0_i32_0 = arith.constant 0 : i32
    %c0_i32_1 = arith.constant 0 : i32
    return %c0_i32, %c0_i32_0 : i32, i32
  }
  func.func @transform_10(%arg0: i32) -> (i32, i32) {
    %c0_i32 = arith.constant 0 : i32
    %c0_i32_0 = arith.constant 0 : i32
    %c0_i32_1 = arith.constant 0 : i32
    return %c0_i32, %c0_i32_0 : i32, i32
  }
  func.func @transform_11(%arg0: i32) -> (i32, i32) {
    %c0_i32 = arith.constant 0 : i32
    %c0_i32_0 = arith.constant 0 : i32
    %c0_i32_1 = arith.constant 0 : i32
    return %c0_i32, %c0_i32_0 : i32, i32
  }
  func.func @transform_12(%arg0: i32) -> (i32, i32) {
    %c0_i32 = arith.constant 0 : i32
    %c0_i32_0 = arith.constant 0 : i32
    %c0_i32_1 = arith.constant 0 : i32
    return %c0_i32, %c0_i32_0 : i32, i32
  }
  func.func @transform_13(%arg0: i32) -> (i32, i32) {
    %c0_i32 = arith.constant 0 : i32
    %c0_i32_0 = arith.constant 0 : i32
    %c0_i32_1 = arith.constant 0 : i32
    return %c0_i32, %c0_i32_0 : i32, i32
  }
  func.func @transform_14(%arg0: i32) -> (i32, i32, i32) {
    %c0_i32 = arith.constant 0 : i32
    %c0_i32_0 = arith.constant 0 : i32
    %c0_i32_1 = arith.constant 0 : i32
    %c0_i32_2 = arith.constant 0 : i32
    return %c0_i32, %c0_i32_0, %c0_i32_1 : i32, i32, i32
  }
  func.func @transform_15(%arg0: i32) -> (i32, i32) {
    %c0_i32 = arith.constant 0 : i32
    %c0_i32_0 = arith.constant 0 : i32
    %c0_i32_1 = arith.constant 0 : i32
    return %c0_i32, %c0_i32_0 : i32, i32
  }
  func.func @transform_16(%arg0: i32) -> (i32, i32) {
    %c0_i32 = arith.constant 0 : i32
    %c0_i32_0 = arith.constant 0 : i32
    %c0_i32_1 = arith.constant 0 : i32
    return %c0_i32, %c0_i32_0 : i32, i32
  }
  func.func @transform_17(%arg0: i32) -> (i32, i32) {
    %c0_i32 = arith.constant 0 : i32
    %c0_i32_0 = arith.constant 0 : i32
    %c0_i32_1 = arith.constant 0 : i32
    return %c0_i32, %c0_i32_0 : i32, i32
  }
  func.func @transform_18(%arg0: i32) -> (i32, i32) {
    %c0_i32 = arith.constant 0 : i32
    %c0_i32_0 = arith.constant 0 : i32
    %c0_i32_1 = arith.constant 0 : i32
    return %c0_i32, %c0_i32_0 : i32, i32
  }
  func.func @transform_19(%arg0: i32) -> (i32, i32) {
    %c0_i32 = arith.constant 0 : i32
    %c0_i32_0 = arith.constant 0 : i32
    %c0_i32_1 = arith.constant 0 : i32
    return %c0_i32, %c0_i32_0 : i32, i32
  }
  func.func @transform_20(%arg0: i32) -> (i32, i32) {
    %c0_i32 = arith.constant 0 : i32
    %c0_i32_0 = arith.constant 0 : i32
    %c0_i32_1 = arith.constant 0 : i32
    return %c0_i32, %c0_i32_0 : i32, i32
  }
  func.func @transform_21(%arg0: i32) -> (i32, i32) {
    %c0_i32 = arith.constant 0 : i32
    %c0_i32_0 = arith.constant 0 : i32
    %c0_i32_1 = arith.constant 0 : i32
    return %c0_i32, %c0_i32_0 : i32, i32
  }
  func.func @transform_22(%arg0: i32) -> (i32, i32) {
    %c0_i32 = arith.constant 0 : i32
    %c0_i32_0 = arith.constant 0 : i32
    %c0_i32_1 = arith.constant 0 : i32
    return %c0_i32, %c0_i32_0 : i32, i32
  }
  func.func @transform_23(%arg0: i32) -> (i32, i32) {
    %c0_i32 = arith.constant 0 : i32
    %c0_i32_0 = arith.constant 0 : i32
    %c0_i32_1 = arith.constant 0 : i32
    return %c0_i32, %c0_i32_0 : i32, i32
  }
  func.func @transform_24(%arg0: i32) -> (i32, i32) {
    %c0_i32 = arith.constant 0 : i32
    %c0_i32_0 = arith.constant 0 : i32
    %c0_i32_1 = arith.constant 0 : i32
    return %c0_i32, %c0_i32_0 : i32, i32
  }
  func.func @transform_25(%arg0: i32) -> (i32, i32) {
    %c0_i32 = arith.constant 0 : i32
    %c0_i32_0 = arith.constant 0 : i32
    %c0_i32_1 = arith.constant 0 : i32
    return %c0_i32, %c0_i32_0 : i32, i32
  }
  func.func @transform_26(%arg0: i32) -> (i32, i32) {
    %c0_i32 = arith.constant 0 : i32
    %c0_i32_0 = arith.constant 0 : i32
    %c0_i32_1 = arith.constant 0 : i32
    return %c0_i32, %c0_i32_0 : i32, i32
  }
  func.func @transform_27(%arg0: i32) -> (i32, i32) {
    %c0_i32 = arith.constant 0 : i32
    %c0_i32_0 = arith.constant 0 : i32
    %c0_i32_1 = arith.constant 0 : i32
    return %c0_i32, %c0_i32_0 : i32, i32
  }
  func.func @transform_28(%arg0: i32) -> (i32, i32) {
    %c0_i32 = arith.constant 0 : i32
    %c0_i32_0 = arith.constant 0 : i32
    %c0_i32_1 = arith.constant 0 : i32
    return %c0_i32, %c0_i32_0 : i32, i32
  }
  func.func @transform_29(%arg0: i32) -> (i32, i32) {
    %c0_i32 = arith.constant 0 : i32
    %c0_i32_0 = arith.constant 0 : i32
    %c0_i32_1 = arith.constant 0 : i32
    return %c0_i32, %c0_i32_0 : i32, i32
  }
  func.func @transform_30(%arg0: i32) -> (i32, i32) {
    %c0_i32 = arith.constant 0 : i32
    %c0_i32_0 = arith.constant 0 : i32
    %c0_i32_1 = arith.constant 0 : i32
    return %c0_i32, %c0_i32_0 : i32, i32
  }
  func.func @transform_31(%arg0: i32) -> (i32, i32, i32) {
    %c0_i32 = arith.constant 0 : i32
    %c0_i32_0 = arith.constant 0 : i32
    %c0_i32_1 = arith.constant 0 : i32
    return %arg0, %c0_i32, %c0_i32_0 : i32, i32, i32
  }
}

module attributes {stable_mosaic.version = 11 : i64} {
  func.func @_henc_layer_kernel(%arg0: i32, %arg1: memref<1x192x48xf32, #tpu.memory_space<vmem>>, %arg2: memref<2x32x192xbf16, #tpu.memory_space<vmem>>, %arg3: memref<32x1xf32, #tpu.memory_space<vmem>>, %arg4: memref<32x1xf32, #tpu.memory_space<vmem>>, %arg5: memref<32x1xf32, #tpu.memory_space<vmem>>, %arg6: memref<3x8x32xbf16, #tpu.memory_space<vmem>>, %arg7: memref<8x1xf32, #tpu.memory_space<vmem>>, %arg8: memref<8x1xf32, #tpu.memory_space<vmem>>, %arg9: memref<8x1xf32, #tpu.memory_space<vmem>>, %arg10: memref<64x8xbf16, #tpu.memory_space<vmem>>, %arg11: memref<64x1xf32, #tpu.memory_space<vmem>>, %arg12: memref<64x1xf32, #tpu.memory_space<vmem>>, %arg13: memref<64x1xf32, #tpu.memory_space<vmem>>, %arg14: memref<32x1xf32, #tpu.memory_space<vmem>>, %arg15: memref<3x8x32xbf16, #tpu.memory_space<vmem>>, %arg16: memref<8x1xf32, #tpu.memory_space<vmem>>, %arg17: memref<8x1xf32, #tpu.memory_space<vmem>>, %arg18: memref<8x1xf32, #tpu.memory_space<vmem>>, %arg19: memref<64x8xbf16, #tpu.memory_space<vmem>>, %arg20: memref<64x1xf32, #tpu.memory_space<vmem>>, %arg21: memref<64x1xf32, #tpu.memory_space<vmem>>, %arg22: memref<64x1xf32, #tpu.memory_space<vmem>>, %arg23: memref<32x1xf32, #tpu.memory_space<vmem>>, %arg24: memref<64x32xbf16, #tpu.memory_space<vmem>>, %arg25: memref<64x1xf32, #tpu.memory_space<vmem>>, %arg26: memref<64x1xf32, #tpu.memory_space<vmem>>, %arg27: memref<64x1xf32, #tpu.memory_space<vmem>>, %arg28: memref<32x2xf32, #tpu.memory_space<vmem>>, %arg29: memref<2x32xf32, #tpu.memory_space<vmem>>, %arg30: memref<4x32xf32, #tpu.memory_space<vmem>>, %arg31: memref<1x32x32xf32, #tpu.memory_space<vmem>>) attributes {dimension_semantics = [#tpu.dimension_semantics<parallel>], iteration_bounds = array<i64: 2>, scalar_prefetch = 0 : i64, scratch_operands = 0 : i64, tpu.core_type = #tpu.core_type<tc>, window_params = [{transform_indices = @transform_0, window_bounds = array<i64: 1, 192, 48>}, {pipeline_mode = #tpu.pipeline_mode<synchronous>, transform_indices = @transform_1, window_bounds = array<i64: 2, 32, 192>}, {pipeline_mode = #tpu.pipeline_mode<synchronous>, transform_indices = @transform_2, window_bounds = array<i64: 32, 1>}, {pipeline_mode = #tpu.pipeline_mode<synchronous>, transform_indices = @transform_3, window_bounds = array<i64: 32, 1>}, {pipeline_mode = #tpu.pipeline_mode<synchronous>, transform_indices = @transform_4, window_bounds = array<i64: 32, 1>}, {pipeline_mode = #tpu.pipeline_mode<synchronous>, transform_indices = @transform_5, window_bounds = array<i64: 3, 8, 32>}, {pipeline_mode = #tpu.pipeline_mode<synchronous>, transform_indices = @transform_6, window_bounds = array<i64: 8, 1>}, {pipeline_mode = #tpu.pipeline_mode<synchronous>, transform_indices = @transform_7, window_bounds = array<i64: 8, 1>}, {pipeline_mode = #tpu.pipeline_mode<synchronous>, transform_indices = @transform_8, window_bounds = array<i64: 8, 1>}, {pipeline_mode = #tpu.pipeline_mode<synchronous>, transform_indices = @transform_9, window_bounds = array<i64: 64, 8>}, {pipeline_mode = #tpu.pipeline_mode<synchronous>, transform_indices = @transform_10, window_bounds = array<i64: 64, 1>}, {pipeline_mode = #tpu.pipeline_mode<synchronous>, transform_indices = @transform_11, window_bounds = array<i64: 64, 1>}, {pipeline_mode = #tpu.pipeline_mode<synchronous>, transform_indices = @transform_12, window_bounds = array<i64: 64, 1>}, {pipeline_mode = #tpu.pipeline_mode<synchronous>, transform_indices = @transform_13, window_bounds = array<i64: 32, 1>}, {pipeline_mode = #tpu.pipeline_mode<synchronous>, transform_indices = @transform_14, window_bounds = array<i64: 3, 8, 32>}, {pipeline_mode = #tpu.pipeline_mode<synchronous>, transform_indices = @transform_15, window_bounds = array<i64: 8, 1>}, {pipeline_mode = #tpu.pipeline_mode<synchronous>, transform_indices = @transform_16, window_bounds = array<i64: 8, 1>}, {pipeline_mode = #tpu.pipeline_mode<synchronous>, transform_indices = @transform_17, window_bounds = array<i64: 8, 1>}, {pipeline_mode = #tpu.pipeline_mode<synchronous>, transform_indices = @transform_18, window_bounds = array<i64: 64, 8>}, {pipeline_mode = #tpu.pipeline_mode<synchronous>, transform_indices = @transform_19, window_bounds = array<i64: 64, 1>}, {pipeline_mode = #tpu.pipeline_mode<synchronous>, transform_indices = @transform_20, window_bounds = array<i64: 64, 1>}, {pipeline_mode = #tpu.pipeline_mode<synchronous>, transform_indices = @transform_21, window_bounds = array<i64: 64, 1>}, {pipeline_mode = #tpu.pipeline_mode<synchronous>, transform_indices = @transform_22, window_bounds = array<i64: 32, 1>}, {pipeline_mode = #tpu.pipeline_mode<synchronous>, transform_indices = @transform_23, window_bounds = array<i64: 64, 32>}, {pipeline_mode = #tpu.pipeline_mode<synchronous>, transform_indices = @transform_24, window_bounds = array<i64: 64, 1>}, {pipeline_mode = #tpu.pipeline_mode<synchronous>, transform_indices = @transform_25, window_bounds = array<i64: 64, 1>}, {pipeline_mode = #tpu.pipeline_mode<synchronous>, transform_indices = @transform_26, window_bounds = array<i64: 64, 1>}, {pipeline_mode = #tpu.pipeline_mode<synchronous>, transform_indices = @transform_27, window_bounds = array<i64: 32, 2>}, {pipeline_mode = #tpu.pipeline_mode<synchronous>, transform_indices = @transform_28, window_bounds = array<i64: 2, 32>}, {pipeline_mode = #tpu.pipeline_mode<synchronous>, transform_indices = @transform_29, window_bounds = array<i64: 4, 32>}, {transform_indices = @transform_30, window_bounds = array<i64: 1, 32, 32>}]} {
    %c0 = arith.constant 0 : index
    %c0_0 = arith.constant 0 : index
    %c0_1 = arith.constant 0 : index
    %0 = vector.load %arg1[%c0, %c0_0, %c0_1] : memref<1x192x48xf32, #tpu.memory_space<vmem>>, vector<1x192x48xf32>
    %1 = vector.shape_cast %0 : vector<1x192x48xf32> to vector<192x48xf32>
    %2 = arith.truncf %1 : vector<192x48xf32> to vector<192x48xbf16>
    %c0_2 = arith.constant 0 : index
    %c0_3 = arith.constant 0 : index
    %c0_4 = arith.constant 0 : index
    %3 = vector.load %arg2[%c0_2, %c0_3, %c0_4] : memref<2x32x192xbf16, #tpu.memory_space<vmem>>, vector<1x32x192xbf16>
    %4 = vector.shape_cast %3 : vector<1x32x192xbf16> to vector<32x192xbf16>
    %5 = vector.extract_strided_slice %2 {offsets = [0, 0], sizes = [192, 32], strides = [1, 1]} : vector<192x48xbf16> to vector<192x32xbf16>
    %cst = arith.constant dense<0.000000e+00> : vector<32x32xf32>
    %6 = tpu.matmul %4, %5, %cst {dimension_numbers = #tpu.dot_dimension_numbers<[1], [0], [0], [1], [0, 0, 1, 1], [], []>} : vector<32x192xbf16>, vector<192x32xbf16>, vector<32x32xf32> -> vector<32x32xf32>
    %7 = vector.extract_strided_slice %2 {offsets = [0, 16], sizes = [192, 32], strides = [1, 1]} : vector<192x48xbf16> to vector<192x32xbf16>
    %c1 = arith.constant 1 : index
    %c0_5 = arith.constant 0 : index
    %c0_6 = arith.constant 0 : index
    %8 = vector.load %arg2[%c1, %c0_5, %c0_6] : memref<2x32x192xbf16, #tpu.memory_space<vmem>>, vector<1x32x192xbf16>
    %9 = vector.shape_cast %8 : vector<1x32x192xbf16> to vector<32x192xbf16>
    %cst_7 = arith.constant dense<0.000000e+00> : vector<32x32xf32>
    %10 = tpu.matmul %9, %7, %cst_7 {dimension_numbers = #tpu.dot_dimension_numbers<[1], [0], [0], [1], [0, 0, 1, 1], [], []>} : vector<32x192xbf16>, vector<192x32xbf16>, vector<32x32xf32> -> vector<32x32xf32>
    %11 = arith.addf %6, %10 : vector<32x32xf32>
    %c0_8 = arith.constant 0 : index
    %c0_9 = arith.constant 0 : index
    %12 = vector.load %arg3[%c0_8, %c0_9] : memref<32x1xf32, #tpu.memory_space<vmem>>, vector<32x1xf32>
    %13 = vector.broadcast %12 : vector<32x1xf32> to vector<32x32xf32>
    %14 = arith.addf %11, %13 : vector<32x32xf32>
    %c0_10 = arith.constant 0 : index
    %c0_11 = arith.constant 0 : index
    %15 = vector.load %arg4[%c0_10, %c0_11] : memref<32x1xf32, #tpu.memory_space<vmem>>, vector<32x1xf32>
    %c0_12 = arith.constant 0 : index
    %c0_13 = arith.constant 0 : index
    %16 = vector.load %arg5[%c0_12, %c0_13] : memref<32x1xf32, #tpu.memory_space<vmem>>, vector<32x1xf32>
    %17 = vector.shape_cast %14 : vector<32x32xf32> to vector<1x32x32xf32>
    %cst_14 = arith.constant dense<0.000000e+00> : vector<1xf32>
    %18 = vector.multi_reduction <add>, %17, %cst_14 [1, 2] : vector<1x32x32xf32> to vector<1xf32>
    %19 = vector.shape_cast %18 : vector<1xf32> to vector<1x1x1xf32>
    %20 = vector.extract %19[0, 0, 0] : f32 from vector<1x1x1xf32>
    %21 = vector.broadcast %20 : f32 to vector<1x1xf32>
    %cst_15 = arith.constant 1.024000e+03 : f32
    %22 = vector.broadcast %cst_15 : f32 to vector<1x1xf32>
    %23 = arith.divf %21, %22 : vector<1x1xf32>
    %24 = arith.mulf %14, %14 : vector<32x32xf32>
    %25 = vector.shape_cast %24 : vector<32x32xf32> to vector<1x32x32xf32>
    %cst_16 = arith.constant dense<0.000000e+00> : vector<1xf32>
    %26 = vector.multi_reduction <add>, %25, %cst_16 [1, 2] : vector<1x32x32xf32> to vector<1xf32>
    %27 = vector.shape_cast %26 : vector<1xf32> to vector<1x1x1xf32>
    %28 = vector.extract %27[0, 0, 0] : f32 from vector<1x1x1xf32>
    %29 = vector.broadcast %28 : f32 to vector<1x1xf32>
    %cst_17 = arith.constant 1.024000e+03 : f32
    %30 = vector.broadcast %cst_17 : f32 to vector<1x1xf32>
    %31 = arith.divf %29, %30 : vector<1x1xf32>
    %32 = arith.mulf %23, %23 : vector<1x1xf32>
    %33 = arith.subf %31, %32 : vector<1x1xf32>
    %cst_18 = arith.constant 0.000000e+00 : f32
    %34 = vector.broadcast %cst_18 : f32 to vector<1x1xf32>
    %35 = arith.maximumf %33, %34 : vector<1x1xf32>
    %cst_19 = arith.constant 9.99999974E-6 : f32
    %36 = vector.broadcast %cst_19 : f32 to vector<1x1xf32>
    %37 = arith.addf %35, %36 : vector<1x1xf32>
    %38 = math.rsqrt %37 : vector<1x1xf32>
    %39 = vector.broadcast %23 : vector<1x1xf32> to vector<32x32xf32>
    %40 = arith.subf %14, %39 : vector<32x32xf32>
    %41 = vector.broadcast %38 : vector<1x1xf32> to vector<32x32xf32>
    %42 = arith.mulf %40, %41 : vector<32x32xf32>
    %43 = vector.broadcast %15 : vector<32x1xf32> to vector<32x32xf32>
    %44 = arith.mulf %42, %43 : vector<32x32xf32>
    %45 = vector.broadcast %16 : vector<32x1xf32> to vector<32x32xf32>
    %46 = arith.addf %44, %45 : vector<32x32xf32>
    %cst_20 = arith.constant 5.000000e-01 : f32
    %47 = vector.broadcast %cst_20 : f32 to vector<32x32xf32>
    %48 = arith.mulf %47, %46 : vector<32x32xf32>
    %cst_21 = arith.constant 4.471500e-02 : f32
    %49 = vector.broadcast %cst_21 : f32 to vector<32x32xf32>
    %50 = arith.mulf %49, %46 : vector<32x32xf32>
    %51 = arith.mulf %50, %46 : vector<32x32xf32>
    %52 = arith.mulf %51, %46 : vector<32x32xf32>
    %53 = arith.addf %46, %52 : vector<32x32xf32>
    %cst_22 = arith.constant 0.797884583 : f32
    %54 = vector.broadcast %cst_22 : f32 to vector<32x32xf32>
    %55 = arith.mulf %54, %53 : vector<32x32xf32>
    %56 = math.tanh %55 : vector<32x32xf32>
    %cst_23 = arith.constant 1.000000e+00 : f32
    %57 = vector.broadcast %cst_23 : f32 to vector<32x32xf32>
    %58 = arith.addf %57, %56 : vector<32x32xf32>
    %59 = arith.mulf %48, %58 : vector<32x32xf32>
    %c0_24 = arith.constant 0 : index
    %c0_25 = arith.constant 0 : index
    %60 = vector.load %arg28[%c0_24, %c0_25] : memref<32x2xf32, #tpu.memory_space<vmem>>, vector<32x2xf32>
    %c0_26 = arith.constant 0 : index
    %c0_27 = arith.constant 0 : index
    %61 = vector.load %arg29[%c0_26, %c0_27] : memref<2x32xf32, #tpu.memory_space<vmem>>, vector<2x32xf32>
    %62 = arith.truncf %59 : vector<32x32xf32> to vector<32x32xbf16>
    %c1_28 = arith.constant 1 : index
    %c0_29 = arith.constant 0 : index
    %c0_30 = arith.constant 0 : index
    %63 = vector.load %arg6[%c1_28, %c0_29, %c0_30] : memref<3x8x32xbf16, #tpu.memory_space<vmem>>, vector<1x8x32xbf16>
    %64 = vector.shape_cast %63 : vector<1x8x32xbf16> to vector<8x32xbf16>
    %cst_31 = arith.constant dense<0.000000e+00> : vector<8x32xf32>
    %65 = tpu.matmul %64, %62, %cst_31 {dimension_numbers = #tpu.dot_dimension_numbers<[1], [0], [0], [1], [0, 0, 1, 1], [], []>} : vector<8x32xbf16>, vector<32x32xbf16>, vector<8x32xf32> -> vector<8x32xf32>
    %c0_32 = arith.constant 0 : index
    %c0_33 = arith.constant 0 : index
    %66 = vector.load %arg30[%c0_32, %c0_33] : memref<4x32xf32, #tpu.memory_space<vmem>>, vector<1x32xf32>
    %cst_34 = arith.constant 0.000000e+00 : f32
    %67 = vector.broadcast %cst_34 : f32 to vector<32x1xf32>
    %68 = vector.extract_strided_slice %59 {offsets = [0, 0], sizes = [32, 31], strides = [1, 1]} : vector<32x32xf32> to vector<32x31xf32>
    %69 = tpu.concatenate %67, %68 in 1 : vector<32x1xf32>, vector<32x31xf32> -> vector<32x32xf32>
    %70 = vector.broadcast %66 : vector<1x32xf32> to vector<32x32xf32>
    %71 = arith.mulf %69, %70 : vector<32x32xf32>
    %c0_35 = arith.constant 0 : index
    %c0_36 = arith.constant 0 : index
    %c0_37 = arith.constant 0 : index
    %72 = vector.load %arg6[%c0_35, %c0_36, %c0_37] : memref<3x8x32xbf16, #tpu.memory_space<vmem>>, vector<1x8x32xbf16>
    %73 = vector.shape_cast %72 : vector<1x8x32xbf16> to vector<8x32xbf16>
    %74 = arith.truncf %71 : vector<32x32xf32> to vector<32x32xbf16>
    %cst_38 = arith.constant dense<0.000000e+00> : vector<8x32xf32>
    %75 = tpu.matmul %73, %74, %cst_38 {dimension_numbers = #tpu.dot_dimension_numbers<[1], [0], [0], [1], [0, 0, 1, 1], [], []>} : vector<8x32xbf16>, vector<32x32xbf16>, vector<8x32xf32> -> vector<8x32xf32>
    %76 = arith.addf %65, %75 : vector<8x32xf32>
    %c1_39 = arith.constant 1 : index
    %c0_40 = arith.constant 0 : index
    %77 = vector.load %arg30[%c1_39, %c0_40] : memref<4x32xf32, #tpu.memory_space<vmem>>, vector<1x32xf32>
    %cst_41 = arith.constant 0.000000e+00 : f32
    %78 = vector.broadcast %cst_41 : f32 to vector<32x1xf32>
    %79 = vector.extract_strided_slice %59 {offsets = [0, 1], sizes = [32, 31], strides = [1, 1]} : vector<32x32xf32> to vector<32x31xf32>
    %80 = tpu.concatenate %79, %78 in 1 : vector<32x31xf32>, vector<32x1xf32> -> vector<32x32xf32>
    %81 = vector.broadcast %77 : vector<1x32xf32> to vector<32x32xf32>
    %82 = arith.mulf %80, %81 : vector<32x32xf32>
    %c2 = arith.constant 2 : index
    %c0_42 = arith.constant 0 : index
    %c0_43 = arith.constant 0 : index
    %83 = vector.load %arg6[%c2, %c0_42, %c0_43] : memref<3x8x32xbf16, #tpu.memory_space<vmem>>, vector<1x8x32xbf16>
    %84 = vector.shape_cast %83 : vector<1x8x32xbf16> to vector<8x32xbf16>
    %85 = arith.truncf %82 : vector<32x32xf32> to vector<32x32xbf16>
    %cst_44 = arith.constant dense<0.000000e+00> : vector<8x32xf32>
    %86 = tpu.matmul %84, %85, %cst_44 {dimension_numbers = #tpu.dot_dimension_numbers<[1], [0], [0], [1], [0, 0, 1, 1], [], []>} : vector<8x32xbf16>, vector<32x32xbf16>, vector<8x32xf32> -> vector<8x32xf32>
    %87 = arith.addf %76, %86 : vector<8x32xf32>
    %c0_45 = arith.constant 0 : index
    %c0_46 = arith.constant 0 : index
    %88 = vector.load %arg7[%c0_45, %c0_46] : memref<8x1xf32, #tpu.memory_space<vmem>>, vector<8x1xf32>
    %89 = vector.broadcast %88 : vector<8x1xf32> to vector<8x32xf32>
    %90 = arith.addf %87, %89 : vector<8x32xf32>
    %c0_47 = arith.constant 0 : index
    %c0_48 = arith.constant 0 : index
    %91 = vector.load %arg8[%c0_47, %c0_48] : memref<8x1xf32, #tpu.memory_space<vmem>>, vector<8x1xf32>
    %c0_49 = arith.constant 0 : index
    %c0_50 = arith.constant 0 : index
    %92 = vector.load %arg9[%c0_49, %c0_50] : memref<8x1xf32, #tpu.memory_space<vmem>>, vector<8x1xf32>
    %cst_51 = arith.constant dense<0.000000e+00> : vector<32xf32>
    %93 = vector.multi_reduction <add>, %90, %cst_51 [0] : vector<8x32xf32> to vector<32xf32>
    %94 = vector.shape_cast %93 : vector<32xf32> to vector<1x32xf32>
    %95 = arith.mulf %90, %90 : vector<8x32xf32>
    %cst_52 = arith.constant dense<0.000000e+00> : vector<32xf32>
    %96 = vector.multi_reduction <add>, %95, %cst_52 [0] : vector<8x32xf32> to vector<32xf32>
    %97 = vector.shape_cast %96 : vector<32xf32> to vector<1x32xf32>
    %cst_53 = arith.constant dense<0.000000e+00> : vector<1x2xf32>
    %98 = tpu.matmul %94, %60, %cst_53 {dimension_numbers = #tpu.dot_dimension_numbers<[1], [0], [0], [1], [0, 0, 1, 1], [], []>} : vector<1x32xf32>, vector<32x2xf32>, vector<1x2xf32> -> vector<1x2xf32>
    %cst_54 = arith.constant 6.400000e+01 : f32
    %99 = vector.broadcast %cst_54 : f32 to vector<1x2xf32>
    %100 = arith.divf %98, %99 : vector<1x2xf32>
    %cst_55 = arith.constant dense<0.000000e+00> : vector<1x2xf32>
    %101 = tpu.matmul %97, %60, %cst_55 {dimension_numbers = #tpu.dot_dimension_numbers<[1], [0], [0], [1], [0, 0, 1, 1], [], []>} : vector<1x32xf32>, vector<32x2xf32>, vector<1x2xf32> -> vector<1x2xf32>
    %cst_56 = arith.constant 6.400000e+01 : f32
    %102 = vector.broadcast %cst_56 : f32 to vector<1x2xf32>
    %103 = arith.divf %101, %102 : vector<1x2xf32>
    %104 = arith.mulf %100, %100 : vector<1x2xf32>
    %105 = arith.subf %103, %104 : vector<1x2xf32>
    %cst_57 = arith.constant 0.000000e+00 : f32
    %106 = vector.broadcast %cst_57 : f32 to vector<1x2xf32>
    %107 = arith.maximumf %105, %106 : vector<1x2xf32>
    %cst_58 = arith.constant 9.99999974E-6 : f32
    %108 = vector.broadcast %cst_58 : f32 to vector<1x2xf32>
    %109 = arith.addf %107, %108 : vector<1x2xf32>
    %110 = math.rsqrt %109 : vector<1x2xf32>
    %cst_59 = arith.constant dense<0.000000e+00> : vector<1x32xf32>
    %111 = tpu.matmul %100, %61, %cst_59 {dimension_numbers = #tpu.dot_dimension_numbers<[1], [0], [0], [1], [0, 0, 1, 1], [], []>} : vector<1x2xf32>, vector<2x32xf32>, vector<1x32xf32> -> vector<1x32xf32>
    %cst_60 = arith.constant dense<0.000000e+00> : vector<1x32xf32>
    %112 = tpu.matmul %110, %61, %cst_60 {dimension_numbers = #tpu.dot_dimension_numbers<[1], [0], [0], [1], [0, 0, 1, 1], [], []>} : vector<1x2xf32>, vector<2x32xf32>, vector<1x32xf32> -> vector<1x32xf32>
    %113 = vector.broadcast %111 : vector<1x32xf32> to vector<8x32xf32>
    %114 = arith.subf %90, %113 : vector<8x32xf32>
    %115 = vector.broadcast %112 : vector<1x32xf32> to vector<8x32xf32>
    %116 = arith.mulf %114, %115 : vector<8x32xf32>
    %117 = vector.broadcast %91 : vector<8x1xf32> to vector<8x32xf32>
    %118 = arith.mulf %116, %117 : vector<8x32xf32>
    %119 = vector.broadcast %92 : vector<8x1xf32> to vector<8x32xf32>
    %120 = arith.addf %118, %119 : vector<8x32xf32>
    %cst_61 = arith.constant 5.000000e-01 : f32
    %121 = vector.broadcast %cst_61 : f32 to vector<8x32xf32>
    %122 = arith.mulf %121, %120 : vector<8x32xf32>
    %cst_62 = arith.constant 4.471500e-02 : f32
    %123 = vector.broadcast %cst_62 : f32 to vector<8x32xf32>
    %124 = arith.mulf %123, %120 : vector<8x32xf32>
    %125 = arith.mulf %124, %120 : vector<8x32xf32>
    %126 = arith.mulf %125, %120 : vector<8x32xf32>
    %127 = arith.addf %120, %126 : vector<8x32xf32>
    %cst_63 = arith.constant 0.797884583 : f32
    %128 = vector.broadcast %cst_63 : f32 to vector<8x32xf32>
    %129 = arith.mulf %128, %127 : vector<8x32xf32>
    %130 = math.tanh %129 : vector<8x32xf32>
    %cst_64 = arith.constant 1.000000e+00 : f32
    %131 = vector.broadcast %cst_64 : f32 to vector<8x32xf32>
    %132 = arith.addf %131, %130 : vector<8x32xf32>
    %133 = arith.mulf %122, %132 : vector<8x32xf32>
    %c0_65 = arith.constant 0 : index
    %c0_66 = arith.constant 0 : index
    %134 = vector.load %arg10[%c0_65, %c0_66] : memref<64x8xbf16, #tpu.memory_space<vmem>>, vector<64x8xbf16>
    %135 = arith.truncf %133 : vector<8x32xf32> to vector<8x32xbf16>
    %cst_67 = arith.constant dense<0.000000e+00> : vector<64x32xf32>
    %136 = tpu.matmul %134, %135, %cst_67 {dimension_numbers = #tpu.dot_dimension_numbers<[1], [0], [0], [1], [0, 0, 1, 1], [], []>} : vector<64x8xbf16>, vector<8x32xbf16>, vector<64x32xf32> -> vector<64x32xf32>
    %c0_68 = arith.constant 0 : index
    %c0_69 = arith.constant 0 : index
    %137 = vector.load %arg11[%c0_68, %c0_69] : memref<64x1xf32, #tpu.memory_space<vmem>>, vector<64x1xf32>
    %138 = vector.broadcast %137 : vector<64x1xf32> to vector<64x32xf32>
    %139 = arith.addf %136, %138 : vector<64x32xf32>
    %c0_70 = arith.constant 0 : index
    %c0_71 = arith.constant 0 : index
    %140 = vector.load %arg12[%c0_70, %c0_71] : memref<64x1xf32, #tpu.memory_space<vmem>>, vector<64x1xf32>
    %c0_72 = arith.constant 0 : index
    %c0_73 = arith.constant 0 : index
    %141 = vector.load %arg13[%c0_72, %c0_73] : memref<64x1xf32, #tpu.memory_space<vmem>>, vector<64x1xf32>
    %cst_74 = arith.constant dense<0.000000e+00> : vector<32xf32>
    %142 = vector.multi_reduction <add>, %139, %cst_74 [0] : vector<64x32xf32> to vector<32xf32>
    %143 = vector.shape_cast %142 : vector<32xf32> to vector<1x32xf32>
    %144 = arith.mulf %139, %139 : vector<64x32xf32>
    %cst_75 = arith.constant dense<0.000000e+00> : vector<32xf32>
    %145 = vector.multi_reduction <add>, %144, %cst_75 [0] : vector<64x32xf32> to vector<32xf32>
    %146 = vector.shape_cast %145 : vector<32xf32> to vector<1x32xf32>
    %cst_76 = arith.constant dense<0.000000e+00> : vector<1x2xf32>
    %147 = tpu.matmul %143, %60, %cst_76 {dimension_numbers = #tpu.dot_dimension_numbers<[1], [0], [0], [1], [0, 0, 1, 1], [], []>} : vector<1x32xf32>, vector<32x2xf32>, vector<1x2xf32> -> vector<1x2xf32>
    %cst_77 = arith.constant 1.024000e+03 : f32
    %148 = vector.broadcast %cst_77 : f32 to vector<1x2xf32>
    %149 = arith.divf %147, %148 : vector<1x2xf32>
    %cst_78 = arith.constant dense<0.000000e+00> : vector<1x2xf32>
    %150 = tpu.matmul %146, %60, %cst_78 {dimension_numbers = #tpu.dot_dimension_numbers<[1], [0], [0], [1], [0, 0, 1, 1], [], []>} : vector<1x32xf32>, vector<32x2xf32>, vector<1x2xf32> -> vector<1x2xf32>
    %cst_79 = arith.constant 1.024000e+03 : f32
    %151 = vector.broadcast %cst_79 : f32 to vector<1x2xf32>
    %152 = arith.divf %150, %151 : vector<1x2xf32>
    %153 = arith.mulf %149, %149 : vector<1x2xf32>
    %154 = arith.subf %152, %153 : vector<1x2xf32>
    %cst_80 = arith.constant 0.000000e+00 : f32
    %155 = vector.broadcast %cst_80 : f32 to vector<1x2xf32>
    %156 = arith.maximumf %154, %155 : vector<1x2xf32>
    %cst_81 = arith.constant 9.99999974E-6 : f32
    %157 = vector.broadcast %cst_81 : f32 to vector<1x2xf32>
    %158 = arith.addf %156, %157 : vector<1x2xf32>
    %159 = math.rsqrt %158 : vector<1x2xf32>
    %cst_82 = arith.constant dense<0.000000e+00> : vector<1x32xf32>
    %160 = tpu.matmul %149, %61, %cst_82 {dimension_numbers = #tpu.dot_dimension_numbers<[1], [0], [0], [1], [0, 0, 1, 1], [], []>} : vector<1x2xf32>, vector<2x32xf32>, vector<1x32xf32> -> vector<1x32xf32>
    %cst_83 = arith.constant dense<0.000000e+00> : vector<1x32xf32>
    %161 = tpu.matmul %159, %61, %cst_83 {dimension_numbers = #tpu.dot_dimension_numbers<[1], [0], [0], [1], [0, 0, 1, 1], [], []>} : vector<1x2xf32>, vector<2x32xf32>, vector<1x32xf32> -> vector<1x32xf32>
    %162 = vector.broadcast %160 : vector<1x32xf32> to vector<64x32xf32>
    %163 = arith.subf %139, %162 : vector<64x32xf32>
    %164 = vector.broadcast %161 : vector<1x32xf32> to vector<64x32xf32>
    %165 = arith.mulf %163, %164 : vector<64x32xf32>
    %166 = vector.broadcast %140 : vector<64x1xf32> to vector<64x32xf32>
    %167 = arith.mulf %165, %166 : vector<64x32xf32>
    %168 = vector.broadcast %141 : vector<64x1xf32> to vector<64x32xf32>
    %169 = arith.addf %167, %168 : vector<64x32xf32>
    %c0_84 = arith.constant 0 : index
    %c0_85 = arith.constant 0 : index
    %170 = vector.load %arg14[%c0_84, %c0_85] : memref<32x1xf32, #tpu.memory_space<vmem>>, vector<32x1xf32>
    %171 = vector.extract_strided_slice %169 {offsets = [0, 0], sizes = [32, 32], strides = [1, 1]} : vector<64x32xf32> to vector<32x32xf32>
    %172 = vector.extract_strided_slice %169 {offsets = [32, 0], sizes = [32, 32], strides = [1, 1]} : vector<64x32xf32> to vector<32x32xf32>
    %cst_86 = arith.constant 0.000000e+00 : f32
    %173 = vector.broadcast %cst_86 : f32 to vector<32x32xf32>
    %174 = arith.subf %173, %172 : vector<32x32xf32>
    %175 = math.exp %174 : vector<32x32xf32>
    %cst_87 = arith.constant 1.000000e+00 : f32
    %176 = vector.broadcast %cst_87 : f32 to vector<32x32xf32>
    %177 = arith.addf %176, %175 : vector<32x32xf32>
    %178 = tpu.reciprocal %177 {approx = true} : vector<32x32xf32> -> vector<32x32xf32>
    %179 = arith.mulf %171, %178 : vector<32x32xf32>
    %180 = vector.broadcast %170 : vector<32x1xf32> to vector<32x32xf32>
    %181 = arith.mulf %180, %179 : vector<32x32xf32>
    %182 = arith.addf %59, %181 : vector<32x32xf32>
    %183 = arith.truncf %182 : vector<32x32xf32> to vector<32x32xbf16>
    %c1_88 = arith.constant 1 : index
    %c0_89 = arith.constant 0 : index
    %c0_90 = arith.constant 0 : index
    %184 = vector.load %arg15[%c1_88, %c0_89, %c0_90] : memref<3x8x32xbf16, #tpu.memory_space<vmem>>, vector<1x8x32xbf16>
    %185 = vector.shape_cast %184 : vector<1x8x32xbf16> to vector<8x32xbf16>
    %cst_91 = arith.constant dense<0.000000e+00> : vector<8x32xf32>
    %186 = tpu.matmul %185, %183, %cst_91 {dimension_numbers = #tpu.dot_dimension_numbers<[1], [0], [0], [1], [0, 0, 1, 1], [], []>} : vector<8x32xbf16>, vector<32x32xbf16>, vector<8x32xf32> -> vector<8x32xf32>
    %c2_92 = arith.constant 2 : index
    %c0_93 = arith.constant 0 : index
    %187 = vector.load %arg30[%c2_92, %c0_93] : memref<4x32xf32, #tpu.memory_space<vmem>>, vector<1x32xf32>
    %cst_94 = arith.constant 0.000000e+00 : f32
    %188 = vector.broadcast %cst_94 : f32 to vector<32x2xf32>
    %189 = vector.extract_strided_slice %182 {offsets = [0, 0], sizes = [32, 30], strides = [1, 1]} : vector<32x32xf32> to vector<32x30xf32>
    %190 = tpu.concatenate %188, %189 in 1 : vector<32x2xf32>, vector<32x30xf32> -> vector<32x32xf32>
    %191 = vector.broadcast %187 : vector<1x32xf32> to vector<32x32xf32>
    %192 = arith.mulf %190, %191 : vector<32x32xf32>
    %c0_95 = arith.constant 0 : index
    %c0_96 = arith.constant 0 : index
    %c0_97 = arith.constant 0 : index
    %193 = vector.load %arg15[%c0_95, %c0_96, %c0_97] : memref<3x8x32xbf16, #tpu.memory_space<vmem>>, vector<1x8x32xbf16>
    %194 = vector.shape_cast %193 : vector<1x8x32xbf16> to vector<8x32xbf16>
    %195 = arith.truncf %192 : vector<32x32xf32> to vector<32x32xbf16>
    %cst_98 = arith.constant dense<0.000000e+00> : vector<8x32xf32>
    %196 = tpu.matmul %194, %195, %cst_98 {dimension_numbers = #tpu.dot_dimension_numbers<[1], [0], [0], [1], [0, 0, 1, 1], [], []>} : vector<8x32xbf16>, vector<32x32xbf16>, vector<8x32xf32> -> vector<8x32xf32>
    %197 = arith.addf %186, %196 : vector<8x32xf32>
    %c3 = arith.constant 3 : index
    %c0_99 = arith.constant 0 : index
    %198 = vector.load %arg30[%c3, %c0_99] : memref<4x32xf32, #tpu.memory_space<vmem>>, vector<1x32xf32>
    %cst_100 = arith.constant 0.000000e+00 : f32
    %199 = vector.broadcast %cst_100 : f32 to vector<32x2xf32>
    %200 = vector.extract_strided_slice %182 {offsets = [0, 2], sizes = [32, 30], strides = [1, 1]} : vector<32x32xf32> to vector<32x30xf32>
    %201 = tpu.concatenate %200, %199 in 1 : vector<32x30xf32>, vector<32x2xf32> -> vector<32x32xf32>
    %202 = vector.broadcast %198 : vector<1x32xf32> to vector<32x32xf32>
    %203 = arith.mulf %201, %202 : vector<32x32xf32>
    %c2_101 = arith.constant 2 : index
    %c0_102 = arith.constant 0 : index
    %c0_103 = arith.constant 0 : index
    %204 = vector.load %arg15[%c2_101, %c0_102, %c0_103] : memref<3x8x32xbf16, #tpu.memory_space<vmem>>, vector<1x8x32xbf16>
    %205 = vector.shape_cast %204 : vector<1x8x32xbf16> to vector<8x32xbf16>
    %206 = arith.truncf %203 : vector<32x32xf32> to vector<32x32xbf16>
    %cst_104 = arith.constant dense<0.000000e+00> : vector<8x32xf32>
    %207 = tpu.matmul %205, %206, %cst_104 {dimension_numbers = #tpu.dot_dimension_numbers<[1], [0], [0], [1], [0, 0, 1, 1], [], []>} : vector<8x32xbf16>, vector<32x32xbf16>, vector<8x32xf32> -> vector<8x32xf32>
    %208 = arith.addf %197, %207 : vector<8x32xf32>
    %c0_105 = arith.constant 0 : index
    %c0_106 = arith.constant 0 : index
    %209 = vector.load %arg16[%c0_105, %c0_106] : memref<8x1xf32, #tpu.memory_space<vmem>>, vector<8x1xf32>
    %210 = vector.broadcast %209 : vector<8x1xf32> to vector<8x32xf32>
    %211 = arith.addf %208, %210 : vector<8x32xf32>
    %c0_107 = arith.constant 0 : index
    %c0_108 = arith.constant 0 : index
    %212 = vector.load %arg17[%c0_107, %c0_108] : memref<8x1xf32, #tpu.memory_space<vmem>>, vector<8x1xf32>
    %c0_109 = arith.constant 0 : index
    %c0_110 = arith.constant 0 : index
    %213 = vector.load %arg18[%c0_109, %c0_110] : memref<8x1xf32, #tpu.memory_space<vmem>>, vector<8x1xf32>
    %cst_111 = arith.constant dense<0.000000e+00> : vector<32xf32>
    %214 = vector.multi_reduction <add>, %211, %cst_111 [0] : vector<8x32xf32> to vector<32xf32>
    %215 = vector.shape_cast %214 : vector<32xf32> to vector<1x32xf32>
    %216 = arith.mulf %211, %211 : vector<8x32xf32>
    %cst_112 = arith.constant dense<0.000000e+00> : vector<32xf32>
    %217 = vector.multi_reduction <add>, %216, %cst_112 [0] : vector<8x32xf32> to vector<32xf32>
    %218 = vector.shape_cast %217 : vector<32xf32> to vector<1x32xf32>
    %cst_113 = arith.constant dense<0.000000e+00> : vector<1x2xf32>
    %219 = tpu.matmul %215, %60, %cst_113 {dimension_numbers = #tpu.dot_dimension_numbers<[1], [0], [0], [1], [0, 0, 1, 1], [], []>} : vector<1x32xf32>, vector<32x2xf32>, vector<1x2xf32> -> vector<1x2xf32>
    %cst_114 = arith.constant 6.400000e+01 : f32
    %220 = vector.broadcast %cst_114 : f32 to vector<1x2xf32>
    %221 = arith.divf %219, %220 : vector<1x2xf32>
    %cst_115 = arith.constant dense<0.000000e+00> : vector<1x2xf32>
    %222 = tpu.matmul %218, %60, %cst_115 {dimension_numbers = #tpu.dot_dimension_numbers<[1], [0], [0], [1], [0, 0, 1, 1], [], []>} : vector<1x32xf32>, vector<32x2xf32>, vector<1x2xf32> -> vector<1x2xf32>
    %cst_116 = arith.constant 6.400000e+01 : f32
    %223 = vector.broadcast %cst_116 : f32 to vector<1x2xf32>
    %224 = arith.divf %222, %223 : vector<1x2xf32>
    %225 = arith.mulf %221, %221 : vector<1x2xf32>
    %226 = arith.subf %224, %225 : vector<1x2xf32>
    %cst_117 = arith.constant 0.000000e+00 : f32
    %227 = vector.broadcast %cst_117 : f32 to vector<1x2xf32>
    %228 = arith.maximumf %226, %227 : vector<1x2xf32>
    %cst_118 = arith.constant 9.99999974E-6 : f32
    %229 = vector.broadcast %cst_118 : f32 to vector<1x2xf32>
    %230 = arith.addf %228, %229 : vector<1x2xf32>
    %231 = math.rsqrt %230 : vector<1x2xf32>
    %cst_119 = arith.constant dense<0.000000e+00> : vector<1x32xf32>
    %232 = tpu.matmul %221, %61, %cst_119 {dimension_numbers = #tpu.dot_dimension_numbers<[1], [0], [0], [1], [0, 0, 1, 1], [], []>} : vector<1x2xf32>, vector<2x32xf32>, vector<1x32xf32> -> vector<1x32xf32>
    %cst_120 = arith.constant dense<0.000000e+00> : vector<1x32xf32>
    %233 = tpu.matmul %231, %61, %cst_120 {dimension_numbers = #tpu.dot_dimension_numbers<[1], [0], [0], [1], [0, 0, 1, 1], [], []>} : vector<1x2xf32>, vector<2x32xf32>, vector<1x32xf32> -> vector<1x32xf32>
    %234 = vector.broadcast %232 : vector<1x32xf32> to vector<8x32xf32>
    %235 = arith.subf %211, %234 : vector<8x32xf32>
    %236 = vector.broadcast %233 : vector<1x32xf32> to vector<8x32xf32>
    %237 = arith.mulf %235, %236 : vector<8x32xf32>
    %238 = vector.broadcast %212 : vector<8x1xf32> to vector<8x32xf32>
    %239 = arith.mulf %237, %238 : vector<8x32xf32>
    %240 = vector.broadcast %213 : vector<8x1xf32> to vector<8x32xf32>
    %241 = arith.addf %239, %240 : vector<8x32xf32>
    %cst_121 = arith.constant 5.000000e-01 : f32
    %242 = vector.broadcast %cst_121 : f32 to vector<8x32xf32>
    %243 = arith.mulf %242, %241 : vector<8x32xf32>
    %cst_122 = arith.constant 4.471500e-02 : f32
    %244 = vector.broadcast %cst_122 : f32 to vector<8x32xf32>
    %245 = arith.mulf %244, %241 : vector<8x32xf32>
    %246 = arith.mulf %245, %241 : vector<8x32xf32>
    %247 = arith.mulf %246, %241 : vector<8x32xf32>
    %248 = arith.addf %241, %247 : vector<8x32xf32>
    %cst_123 = arith.constant 0.797884583 : f32
    %249 = vector.broadcast %cst_123 : f32 to vector<8x32xf32>
    %250 = arith.mulf %249, %248 : vector<8x32xf32>
    %251 = math.tanh %250 : vector<8x32xf32>
    %cst_124 = arith.constant 1.000000e+00 : f32
    %252 = vector.broadcast %cst_124 : f32 to vector<8x32xf32>
    %253 = arith.addf %252, %251 : vector<8x32xf32>
    %254 = arith.mulf %243, %253 : vector<8x32xf32>
    %c0_125 = arith.constant 0 : index
    %c0_126 = arith.constant 0 : index
    %255 = vector.load %arg19[%c0_125, %c0_126] : memref<64x8xbf16, #tpu.memory_space<vmem>>, vector<64x8xbf16>
    %256 = arith.truncf %254 : vector<8x32xf32> to vector<8x32xbf16>
    %cst_127 = arith.constant dense<0.000000e+00> : vector<64x32xf32>
    %257 = tpu.matmul %255, %256, %cst_127 {dimension_numbers = #tpu.dot_dimension_numbers<[1], [0], [0], [1], [0, 0, 1, 1], [], []>} : vector<64x8xbf16>, vector<8x32xbf16>, vector<64x32xf32> -> vector<64x32xf32>
    %c0_128 = arith.constant 0 : index
    %c0_129 = arith.constant 0 : index
    %258 = vector.load %arg20[%c0_128, %c0_129] : memref<64x1xf32, #tpu.memory_space<vmem>>, vector<64x1xf32>
    %259 = vector.broadcast %258 : vector<64x1xf32> to vector<64x32xf32>
    %260 = arith.addf %257, %259 : vector<64x32xf32>
    %c0_130 = arith.constant 0 : index
    %c0_131 = arith.constant 0 : index
    %261 = vector.load %arg21[%c0_130, %c0_131] : memref<64x1xf32, #tpu.memory_space<vmem>>, vector<64x1xf32>
    %c0_132 = arith.constant 0 : index
    %c0_133 = arith.constant 0 : index
    %262 = vector.load %arg22[%c0_132, %c0_133] : memref<64x1xf32, #tpu.memory_space<vmem>>, vector<64x1xf32>
    %cst_134 = arith.constant dense<0.000000e+00> : vector<32xf32>
    %263 = vector.multi_reduction <add>, %260, %cst_134 [0] : vector<64x32xf32> to vector<32xf32>
    %264 = vector.shape_cast %263 : vector<32xf32> to vector<1x32xf32>
    %265 = arith.mulf %260, %260 : vector<64x32xf32>
    %cst_135 = arith.constant dense<0.000000e+00> : vector<32xf32>
    %266 = vector.multi_reduction <add>, %265, %cst_135 [0] : vector<64x32xf32> to vector<32xf32>
    %267 = vector.shape_cast %266 : vector<32xf32> to vector<1x32xf32>
    %cst_136 = arith.constant dense<0.000000e+00> : vector<1x2xf32>
    %268 = tpu.matmul %264, %60, %cst_136 {dimension_numbers = #tpu.dot_dimension_numbers<[1], [0], [0], [1], [0, 0, 1, 1], [], []>} : vector<1x32xf32>, vector<32x2xf32>, vector<1x2xf32> -> vector<1x2xf32>
    %cst_137 = arith.constant 1.024000e+03 : f32
    %269 = vector.broadcast %cst_137 : f32 to vector<1x2xf32>
    %270 = arith.divf %268, %269 : vector<1x2xf32>
    %cst_138 = arith.constant dense<0.000000e+00> : vector<1x2xf32>
    %271 = tpu.matmul %267, %60, %cst_138 {dimension_numbers = #tpu.dot_dimension_numbers<[1], [0], [0], [1], [0, 0, 1, 1], [], []>} : vector<1x32xf32>, vector<32x2xf32>, vector<1x2xf32> -> vector<1x2xf32>
    %cst_139 = arith.constant 1.024000e+03 : f32
    %272 = vector.broadcast %cst_139 : f32 to vector<1x2xf32>
    %273 = arith.divf %271, %272 : vector<1x2xf32>
    %274 = arith.mulf %270, %270 : vector<1x2xf32>
    %275 = arith.subf %273, %274 : vector<1x2xf32>
    %cst_140 = arith.constant 0.000000e+00 : f32
    %276 = vector.broadcast %cst_140 : f32 to vector<1x2xf32>
    %277 = arith.maximumf %275, %276 : vector<1x2xf32>
    %cst_141 = arith.constant 9.99999974E-6 : f32
    %278 = vector.broadcast %cst_141 : f32 to vector<1x2xf32>
    %279 = arith.addf %277, %278 : vector<1x2xf32>
    %280 = math.rsqrt %279 : vector<1x2xf32>
    %cst_142 = arith.constant dense<0.000000e+00> : vector<1x32xf32>
    %281 = tpu.matmul %270, %61, %cst_142 {dimension_numbers = #tpu.dot_dimension_numbers<[1], [0], [0], [1], [0, 0, 1, 1], [], []>} : vector<1x2xf32>, vector<2x32xf32>, vector<1x32xf32> -> vector<1x32xf32>
    %cst_143 = arith.constant dense<0.000000e+00> : vector<1x32xf32>
    %282 = tpu.matmul %280, %61, %cst_143 {dimension_numbers = #tpu.dot_dimension_numbers<[1], [0], [0], [1], [0, 0, 1, 1], [], []>} : vector<1x2xf32>, vector<2x32xf32>, vector<1x32xf32> -> vector<1x32xf32>
    %283 = vector.broadcast %281 : vector<1x32xf32> to vector<64x32xf32>
    %284 = arith.subf %260, %283 : vector<64x32xf32>
    %285 = vector.broadcast %282 : vector<1x32xf32> to vector<64x32xf32>
    %286 = arith.mulf %284, %285 : vector<64x32xf32>
    %287 = vector.broadcast %261 : vector<64x1xf32> to vector<64x32xf32>
    %288 = arith.mulf %286, %287 : vector<64x32xf32>
    %289 = vector.broadcast %262 : vector<64x1xf32> to vector<64x32xf32>
    %290 = arith.addf %288, %289 : vector<64x32xf32>
    %c0_144 = arith.constant 0 : index
    %c0_145 = arith.constant 0 : index
    %291 = vector.load %arg23[%c0_144, %c0_145] : memref<32x1xf32, #tpu.memory_space<vmem>>, vector<32x1xf32>
    %292 = vector.extract_strided_slice %290 {offsets = [0, 0], sizes = [32, 32], strides = [1, 1]} : vector<64x32xf32> to vector<32x32xf32>
    %293 = vector.extract_strided_slice %290 {offsets = [32, 0], sizes = [32, 32], strides = [1, 1]} : vector<64x32xf32> to vector<32x32xf32>
    %cst_146 = arith.constant 0.000000e+00 : f32
    %294 = vector.broadcast %cst_146 : f32 to vector<32x32xf32>
    %295 = arith.subf %294, %293 : vector<32x32xf32>
    %296 = math.exp %295 : vector<32x32xf32>
    %cst_147 = arith.constant 1.000000e+00 : f32
    %297 = vector.broadcast %cst_147 : f32 to vector<32x32xf32>
    %298 = arith.addf %297, %296 : vector<32x32xf32>
    %299 = tpu.reciprocal %298 {approx = true} : vector<32x32xf32> -> vector<32x32xf32>
    %300 = arith.mulf %292, %299 : vector<32x32xf32>
    %301 = vector.broadcast %291 : vector<32x1xf32> to vector<32x32xf32>
    %302 = arith.mulf %301, %300 : vector<32x32xf32>
    %303 = arith.addf %182, %302 : vector<32x32xf32>
    %c0_148 = arith.constant 0 : index
    %c0_149 = arith.constant 0 : index
    %304 = vector.load %arg24[%c0_148, %c0_149] : memref<64x32xbf16, #tpu.memory_space<vmem>>, vector<64x32xbf16>
    %305 = arith.truncf %303 : vector<32x32xf32> to vector<32x32xbf16>
    %cst_150 = arith.constant dense<0.000000e+00> : vector<64x32xf32>
    %306 = tpu.matmul %304, %305, %cst_150 {dimension_numbers = #tpu.dot_dimension_numbers<[1], [0], [0], [1], [0, 0, 1, 1], [], []>} : vector<64x32xbf16>, vector<32x32xbf16>, vector<64x32xf32> -> vector<64x32xf32>
    %c0_151 = arith.constant 0 : index
    %c0_152 = arith.constant 0 : index
    %307 = vector.load %arg25[%c0_151, %c0_152] : memref<64x1xf32, #tpu.memory_space<vmem>>, vector<64x1xf32>
    %308 = vector.broadcast %307 : vector<64x1xf32> to vector<64x32xf32>
    %309 = arith.addf %306, %308 : vector<64x32xf32>
    %c0_153 = arith.constant 0 : index
    %c0_154 = arith.constant 0 : index
    %310 = vector.load %arg26[%c0_153, %c0_154] : memref<64x1xf32, #tpu.memory_space<vmem>>, vector<64x1xf32>
    %c0_155 = arith.constant 0 : index
    %c0_156 = arith.constant 0 : index
    %311 = vector.load %arg27[%c0_155, %c0_156] : memref<64x1xf32, #tpu.memory_space<vmem>>, vector<64x1xf32>
    %312 = vector.shape_cast %309 : vector<64x32xf32> to vector<1x64x32xf32>
    %cst_157 = arith.constant dense<0.000000e+00> : vector<1xf32>
    %313 = vector.multi_reduction <add>, %312, %cst_157 [1, 2] : vector<1x64x32xf32> to vector<1xf32>
    %314 = vector.shape_cast %313 : vector<1xf32> to vector<1x1x1xf32>
    %315 = vector.extract %314[0, 0, 0] : f32 from vector<1x1x1xf32>
    %316 = vector.broadcast %315 : f32 to vector<1x1xf32>
    %cst_158 = arith.constant 2.048000e+03 : f32
    %317 = vector.broadcast %cst_158 : f32 to vector<1x1xf32>
    %318 = arith.divf %316, %317 : vector<1x1xf32>
    %319 = arith.mulf %309, %309 : vector<64x32xf32>
    %320 = vector.shape_cast %319 : vector<64x32xf32> to vector<1x64x32xf32>
    %cst_159 = arith.constant dense<0.000000e+00> : vector<1xf32>
    %321 = vector.multi_reduction <add>, %320, %cst_159 [1, 2] : vector<1x64x32xf32> to vector<1xf32>
    %322 = vector.shape_cast %321 : vector<1xf32> to vector<1x1x1xf32>
    %323 = vector.extract %322[0, 0, 0] : f32 from vector<1x1x1xf32>
    %324 = vector.broadcast %323 : f32 to vector<1x1xf32>
    %cst_160 = arith.constant 2.048000e+03 : f32
    %325 = vector.broadcast %cst_160 : f32 to vector<1x1xf32>
    %326 = arith.divf %324, %325 : vector<1x1xf32>
    %327 = arith.mulf %318, %318 : vector<1x1xf32>
    %328 = arith.subf %326, %327 : vector<1x1xf32>
    %cst_161 = arith.constant 0.000000e+00 : f32
    %329 = vector.broadcast %cst_161 : f32 to vector<1x1xf32>
    %330 = arith.maximumf %328, %329 : vector<1x1xf32>
    %cst_162 = arith.constant 9.99999974E-6 : f32
    %331 = vector.broadcast %cst_162 : f32 to vector<1x1xf32>
    %332 = arith.addf %330, %331 : vector<1x1xf32>
    %333 = math.rsqrt %332 : vector<1x1xf32>
    %334 = vector.broadcast %318 : vector<1x1xf32> to vector<64x32xf32>
    %335 = arith.subf %309, %334 : vector<64x32xf32>
    %336 = vector.broadcast %333 : vector<1x1xf32> to vector<64x32xf32>
    %337 = arith.mulf %335, %336 : vector<64x32xf32>
    %338 = vector.broadcast %310 : vector<64x1xf32> to vector<64x32xf32>
    %339 = arith.mulf %337, %338 : vector<64x32xf32>
    %340 = vector.broadcast %311 : vector<64x1xf32> to vector<64x32xf32>
    %341 = arith.addf %339, %340 : vector<64x32xf32>
    %342 = vector.extract_strided_slice %341 {offsets = [0, 0], sizes = [32, 32], strides = [1, 1]} : vector<64x32xf32> to vector<32x32xf32>
    %343 = vector.extract_strided_slice %341 {offsets = [32, 0], sizes = [32, 32], strides = [1, 1]} : vector<64x32xf32> to vector<32x32xf32>
    %cst_163 = arith.constant 0.000000e+00 : f32
    %344 = vector.broadcast %cst_163 : f32 to vector<32x32xf32>
    %345 = arith.subf %344, %343 : vector<32x32xf32>
    %346 = math.exp %345 : vector<32x32xf32>
    %cst_164 = arith.constant 1.000000e+00 : f32
    %347 = vector.broadcast %cst_164 : f32 to vector<32x32xf32>
    %348 = arith.addf %347, %346 : vector<32x32xf32>
    %349 = tpu.reciprocal %348 {approx = true} : vector<32x32xf32> -> vector<32x32xf32>
    %350 = arith.mulf %342, %349 : vector<32x32xf32>
    %c0_165 = arith.constant 0 : index
    %c0_166 = arith.constant 0 : index
    %c0_167 = arith.constant 0 : index
    %351 = vector.load %arg31[%c0_165, %c0_166, %c0_167] : memref<1x32x32xf32, #tpu.memory_space<vmem>>, vector<1x32x32xf32>
    %352 = vector.shape_cast %351 : vector<1x32x32xf32> to vector<32x32xf32>
    %353 = vector.shape_cast %350 : vector<32x32xf32> to vector<1x32x32xf32>
    tpu.vector_store %arg31[%c0_165, %c0_166, %c0_167], %353 {strides = array<i32>} : memref<1x32x32xf32, #tpu.memory_space<vmem>>, vector<1x32x32xf32>,
    return
  }
  func.func @transform_0(%arg0: i32) -> (i32, i32, i32) {
    %c0_i32 = arith.constant 0 : i32
    %c0_i32_0 = arith.constant 0 : i32
    %c0_i32_1 = arith.constant 0 : i32
    return %arg0, %c0_i32, %c0_i32_0 : i32, i32, i32
  }
  func.func @transform_1(%arg0: i32) -> (i32, i32, i32) {
    %c0_i32 = arith.constant 0 : i32
    %c0_i32_0 = arith.constant 0 : i32
    %c0_i32_1 = arith.constant 0 : i32
    %c0_i32_2 = arith.constant 0 : i32
    return %c0_i32, %c0_i32_0, %c0_i32_1 : i32, i32, i32
  }
  func.func @transform_2(%arg0: i32) -> (i32, i32) {
    %c0_i32 = arith.constant 0 : i32
    %c0_i32_0 = arith.constant 0 : i32
    %c0_i32_1 = arith.constant 0 : i32
    return %c0_i32, %c0_i32_0 : i32, i32
  }
  func.func @transform_3(%arg0: i32) -> (i32, i32) {
    %c0_i32 = arith.constant 0 : i32
    %c0_i32_0 = arith.constant 0 : i32
    %c0_i32_1 = arith.constant 0 : i32
    return %c0_i32, %c0_i32_0 : i32, i32
  }
  func.func @transform_4(%arg0: i32) -> (i32, i32) {
    %c0_i32 = arith.constant 0 : i32
    %c0_i32_0 = arith.constant 0 : i32
    %c0_i32_1 = arith.constant 0 : i32
    return %c0_i32, %c0_i32_0 : i32, i32
  }
  func.func @transform_5(%arg0: i32) -> (i32, i32, i32) {
    %c0_i32 = arith.constant 0 : i32
    %c0_i32_0 = arith.constant 0 : i32
    %c0_i32_1 = arith.constant 0 : i32
    %c0_i32_2 = arith.constant 0 : i32
    return %c0_i32, %c0_i32_0, %c0_i32_1 : i32, i32, i32
  }
  func.func @transform_6(%arg0: i32) -> (i32, i32) {
    %c0_i32 = arith.constant 0 : i32
    %c0_i32_0 = arith.constant 0 : i32
    %c0_i32_1 = arith.constant 0 : i32
    return %c0_i32, %c0_i32_0 : i32, i32
  }
  func.func @transform_7(%arg0: i32) -> (i32, i32) {
    %c0_i32 = arith.constant 0 : i32
    %c0_i32_0 = arith.constant 0 : i32
    %c0_i32_1 = arith.constant 0 : i32
    return %c0_i32, %c0_i32_0 : i32, i32
  }
  func.func @transform_8(%arg0: i32) -> (i32, i32) {
    %c0_i32 = arith.constant 0 : i32
    %c0_i32_0 = arith.constant 0 : i32
    %c0_i32_1 = arith.constant 0 : i32
    return %c0_i32, %c0_i32_0 : i32, i32
  }
  func.func @transform_9(%arg0: i32) -> (i32, i32) {
    %c0_i32 = arith.constant 0 : i32
    %c0_i32_0 = arith.constant 0 : i32
    %c0_i32_1 = arith.constant 0 : i32
    return %c0_i32, %c0_i32_0 : i32, i32
  }
  func.func @transform_10(%arg0: i32) -> (i32, i32) {
    %c0_i32 = arith.constant 0 : i32
    %c0_i32_0 = arith.constant 0 : i32
    %c0_i32_1 = arith.constant 0 : i32
    return %c0_i32, %c0_i32_0 : i32, i32
  }
  func.func @transform_11(%arg0: i32) -> (i32, i32) {
    %c0_i32 = arith.constant 0 : i32
    %c0_i32_0 = arith.constant 0 : i32
    %c0_i32_1 = arith.constant 0 : i32
    return %c0_i32, %c0_i32_0 : i32, i32
  }
  func.func @transform_12(%arg0: i32) -> (i32, i32) {
    %c0_i32 = arith.constant 0 : i32
    %c0_i32_0 = arith.constant 0 : i32
    %c0_i32_1 = arith.constant 0 : i32
    return %c0_i32, %c0_i32_0 : i32, i32
  }
  func.func @transform_13(%arg0: i32) -> (i32, i32) {
    %c0_i32 = arith.constant 0 : i32
    %c0_i32_0 = arith.constant 0 : i32
    %c0_i32_1 = arith.constant 0 : i32
    return %c0_i32, %c0_i32_0 : i32, i32
  }
  func.func @transform_14(%arg0: i32) -> (i32, i32, i32) {
    %c0_i32 = arith.constant 0 : i32
    %c0_i32_0 = arith.constant 0 : i32
    %c0_i32_1 = arith.constant 0 : i32
    %c0_i32_2 = arith.constant 0 : i32
    return %c0_i32, %c0_i32_0, %c0_i32_1 : i32, i32, i32
  }
  func.func @transform_15(%arg0: i32) -> (i32, i32) {
    %c0_i32 = arith.constant 0 : i32
    %c0_i32_0 = arith.constant 0 : i32
    %c0_i32_1 = arith.constant 0 : i32
    return %c0_i32, %c0_i32_0 : i32, i32
  }
  func.func @transform_16(%arg0: i32) -> (i32, i32) {
    %c0_i32 = arith.constant 0 : i32
    %c0_i32_0 = arith.constant 0 : i32
    %c0_i32_1 = arith.constant 0 : i32
    return %c0_i32, %c0_i32_0 : i32, i32
  }
  func.func @transform_17(%arg0: i32) -> (i32, i32) {
    %c0_i32 = arith.constant 0 : i32
    %c0_i32_0 = arith.constant 0 : i32
    %c0_i32_1 = arith.constant 0 : i32
    return %c0_i32, %c0_i32_0 : i32, i32
  }
  func.func @transform_18(%arg0: i32) -> (i32, i32) {
    %c0_i32 = arith.constant 0 : i32
    %c0_i32_0 = arith.constant 0 : i32
    %c0_i32_1 = arith.constant 0 : i32
    return %c0_i32, %c0_i32_0 : i32, i32
  }
  func.func @transform_19(%arg0: i32) -> (i32, i32) {
    %c0_i32 = arith.constant 0 : i32
    %c0_i32_0 = arith.constant 0 : i32
    %c0_i32_1 = arith.constant 0 : i32
    return %c0_i32, %c0_i32_0 : i32, i32
  }
  func.func @transform_20(%arg0: i32) -> (i32, i32) {
    %c0_i32 = arith.constant 0 : i32
    %c0_i32_0 = arith.constant 0 : i32
    %c0_i32_1 = arith.constant 0 : i32
    return %c0_i32, %c0_i32_0 : i32, i32
  }
  func.func @transform_21(%arg0: i32) -> (i32, i32) {
    %c0_i32 = arith.constant 0 : i32
    %c0_i32_0 = arith.constant 0 : i32
    %c0_i32_1 = arith.constant 0 : i32
    return %c0_i32, %c0_i32_0 : i32, i32
  }
  func.func @transform_22(%arg0: i32) -> (i32, i32) {
    %c0_i32 = arith.constant 0 : i32
    %c0_i32_0 = arith.constant 0 : i32
    %c0_i32_1 = arith.constant 0 : i32
    return %c0_i32, %c0_i32_0 : i32, i32
  }
  func.func @transform_23(%arg0: i32) -> (i32, i32) {
    %c0_i32 = arith.constant 0 : i32
    %c0_i32_0 = arith.constant 0 : i32
    %c0_i32_1 = arith.constant 0 : i32
    return %c0_i32, %c0_i32_0 : i32, i32
  }
  func.func @transform_24(%arg0: i32) -> (i32, i32) {
    %c0_i32 = arith.constant 0 : i32
    %c0_i32_0 = arith.constant 0 : i32
    %c0_i32_1 = arith.constant 0 : i32
    return %c0_i32, %c0_i32_0 : i32, i32
  }
  func.func @transform_25(%arg0: i32) -> (i32, i32) {
    %c0_i32 = arith.constant 0 : i32
    %c0_i32_0 = arith.constant 0 : i32
    %c0_i32_1 = arith.constant 0 : i32
    return %c0_i32, %c0_i32_0 : i32, i32
  }
  func.func @transform_26(%arg0: i32) -> (i32, i32) {
    %c0_i32 = arith.constant 0 : i32
    %c0_i32_0 = arith.constant 0 : i32
    %c0_i32_1 = arith.constant 0 : i32
    return %c0_i32, %c0_i32_0 : i32, i32
  }
  func.func @transform_27(%arg0: i32) -> (i32, i32) {
    %c0_i32 = arith.constant 0 : i32
    %c0_i32_0 = arith.constant 0 : i32
    %c0_i32_1 = arith.constant 0 : i32
    return %c0_i32, %c0_i32_0 : i32, i32
  }
  func.func @transform_28(%arg0: i32) -> (i32, i32) {
    %c0_i32 = arith.constant 0 : i32
    %c0_i32_0 = arith.constant 0 : i32
    %c0_i32_1 = arith.constant 0 : i32
    return %c0_i32, %c0_i32_0 : i32, i32
  }
  func.func @transform_29(%arg0: i32) -> (i32, i32) {
    %c0_i32 = arith.constant 0 : i32
    %c0_i32_0 = arith.constant 0 : i32
    %c0_i32_1 = arith.constant 0 : i32
    return %c0_i32, %c0_i32_0 : i32, i32
  }
  func.func @transform_30(%arg0: i32) -> (i32, i32, i32) {
    %c0_i32 = arith.constant 0 : i32
    %c0_i32_0 = arith.constant 0 : i32
    %c0_i32_1 = arith.constant 0 : i32
    return %arg0, %c0_i32, %c0_i32_0 : i32, i32, i32
  }
}

</mosaic_0001>

<bundles_post_ra>
// kernel: hlayer_block_forward.2
= control target key start
LH: loop header
LB: loop body
LE: loop exit
PB: predicated region body
PF: predicated region fallthrough
CT: control target
= control target key end

     0   :  { %s5792_s6 = smov 1   ;;  %s5793_s10 = smov 2   ;;  %s7174_s0 = inlined_call_operand.smem [shape: u32[32], index: -1, kind: input, shape index: {}] }
   0x1   :  { %s5839_s5 = sld [smem:[%s7174_s0]]   ;;  %s5794_s14 = smov 3  }
   0x2   :  { %s5844_s9 = sld [smem:[%s7174_s0 + %s5792_s6]]   ;;  %s5795_s18 = smov 4  }
   0x3   :  { %s5849_s13 = sld [smem:[%s7174_s0 + %s5793_s10]]   ;;  %s5796_s22 = smov 5  }
   0x4   :  { %s5854_s17 = sld [smem:[%s7174_s0 + %s5794_s14]]   ;;  %s5797_s26 = smov 6  }
   0x5   :  { %s5859_s21 = sld [smem:[%s7174_s0 + %s5795_s18]]   ;;  %s5798_s30 = smov 7  }
   0x6   :  { %s5864_s25 = sld [smem:[%s7174_s0 + %s5796_s22]]   ;;  %s5799_s4 = smov 8  }
   0x7   :  { %s5869_s29 = sld [smem:[%s7174_s0 + %s5797_s26]]   ;;  %s5800_s10 = smov 9  }
   0x8   :  { %s5874_s3 = sld [smem:[%s7174_s0 + %s5798_s30]]   ;;  %s5801_s15 = smov 10  }
   0x9   :  { %s5879_s8 = sld [smem:[%s7174_s0 + %s5799_s4]]   ;;  %s5802_s20 = smov 11  }
   0xa   :  { %s5884_s14 = sld [smem:[%s7174_s0 + %s5800_s10]]   ;;  %s5803_s26 = smov 12  }
   0xb   :  { %s5889_s19 = sld [smem:[%s7174_s0 + %s5801_s15]]   ;;  %s5804_s1 = smov 13  }
   0xc   :  { %s5894_s24 = sld [smem:[%s7174_s0 + %s5802_s20]]   ;;  %s5805_s7 = smov 14  }
   0xd   :  { %s5899_s30 = sld [smem:[%s7174_s0 + %s5803_s26]]   ;;  %s5806_s15 = smov 15  }
   0xe   :  { %s5904_s6 = sld [smem:[%s7174_s0 + %s5804_s1]]   ;;  %s5807_s22 = smov 16  }
   0xf   :  { %s5909_s12 = sld [smem:[%s7174_s0 + %s5805_s7]]   ;;  %s5808_s28 = smov 17  }
  0x10   :  { %7188 = sst [smem:[#allocation2_spill]] %s5884_s14  ;;  %s5809_s7 = smov 18  }
  0x11   :  { %s5914_s20 = sld [smem:[%s7174_s0 + %s5806_s15]]   ;;  %s5810_s15 = smov 19  }
  0x12   :  { %s5919_s27 = sld [smem:[%s7174_s0 + %s5807_s22]]   ;;  %s5811_s22 = smov 20  }
  0x13   :  { %s5924_s4 = sld [smem:[%s7174_s0 + %s5808_s28]]   ;;  %s5812_s28 = smov 21  }
  0x15   :  { %7189 = sst [smem:[#allocation3_spill]] %s5909_s12 }
  0x16   :  { %s5929_s12 = sld [smem:[%s7174_s0 + %s5809_s7]]   ;;  %s5813_s7 = smov 22  }
  0x17   :  { %7190 = sst [smem:[#allocation4_spill]] %s5914_s20 }
  0x18   :  { %7191 = sst [smem:[#allocation5_spill]] %s5919_s27 }
  0x19   :  { %7192 = sst [smem:[#allocation6_spill]] %s5924_s4 }
  0x1a   :  { %s5934_s20 = sld [smem:[%s7174_s0 + %s5810_s15]]   ;;  %s5814_s15 = smov 23  }
  0x1b   :  { %s5939_s27 = sld [smem:[%s7174_s0 + %s5811_s22]]   ;;  %s5815_s22 = smov 24  }
  0x1c   :  { %7193 = sst [smem:[#allocation7_spill]] %s5929_s12 }
  0x1d   :  { %s5944_s4 = sld [smem:[%s7174_s0 + %s5812_s28]]   ;;  %s5816_s28 = smov 25  }
  0x1e   :  { %s5949_s12 = sld [smem:[%s7174_s0 + %s5813_s7]]   ;;  %s5817_s7 = smov 26  }
  0x20   :  { %7194 = sst [smem:[#allocation8_spill]] %s5934_s20 }
  0x21   :  { %7195 = sst [smem:[#allocation9_spill]] %s5939_s27 }
  0x22   :  { %s5954_s20 = sld [smem:[%s7174_s0 + %s5814_s15]]   ;;  %s5818_s15 = smov 27  }
  0x23   :  { %7196 = sst [smem:[#allocation10_spill]] %s5944_s4 }
  0x24   :  { %7197 = sst [smem:[#allocation11_spill]] %s5949_s12 }
  0x25   :  { %s5959_s27 = sld [smem:[%s7174_s0 + %s5815_s22]]   ;;  %s5819_s22 = smov 28  }
  0x26   :  { %s5964_s4 = sld [smem:[%s7174_s0 + %s5816_s28]]   ;;  %s5820_s28 = smov 29  }
  0x27   :  { %s5969_s12 = sld [smem:[%s7174_s0 + %s5817_s7]]   ;;  %s5821_s7 = smov 30  }
  0x28   :  { %7198 = sst [smem:[#allocation12_spill]] %s5954_s20 }
  0x29   :  { %s5974_s20 = sld [smem:[%s7174_s0 + %s5818_s15]]   ;;  %s5822_s15 = smov 31  }
  0x2a   :  { %s5994_s14 = sld [smem:[%s7174_s0 + %s5822_s15]]  }
  0x2b   :  { %7199 = sst [smem:[#allocation13_spill]] %s5959_s27 }
  0x2c   :  { %7200 = sst [smem:[#allocation14_spill]] %s5964_s4 }
  0x2d   :  { %7201 = sst [smem:[#allocation15_spill]] %s5969_s12 }
  0x2e   :  { %s5979_s27 = sld [smem:[%s7174_s0 + %s5819_s22]]   ;;  %s5996_s22 = smov 0  }
  0x2f   :  { %s5984_s4 = sld [smem:[%s7174_s0 + %s5820_s28]]  }
  0x30   :  { %s5989_s12 = sld [smem:[%s7174_s0 + %s5821_s7]]  }
  0x31 LB: > { %s4835_s23 = sadd.s32 4294967295, %s5790_s22   ;;  %p4839_p0 = scmp.ge.s32.totalorder %s5790_s22, 1  ;;  %s5790_s22 = sphi %s5996_s22, %s73_s22  }
  0x32   : > { %p869_p1 = scmp.lt.s32.totalorder %s5790_s22, 3 }
  0x34   : > { %p870_p2 = pnand %p4839_p0, %p869_p1 }
  0x35   : > { %p949_p3 = scmp.lt.s32.totalorder (!%p870_p2), %s4835_s23, 1  ;;  %s5825_s28 = smov (!%p870_p2), 112  }
  0x36   : > { %873 = sbr.rel (%p870_p2) target bundleno = 4177 (0x1051), region = 144  ;;  %s5827_s7 = smov (!%p870_p2), 1  }
  0x37   : > { %s5828_s10 = smov (!%p870_p2), 127   ;;  %s7202_s11 = sld [smem:[#allocation2_spill]] (!%p870_p2) }
  0x38   : > { %s5829_s15 = smov (!%p870_p2), 2   ;;  %s7203_s16 = sld [smem:[#allocation3_spill]] (!%p870_p2) }
  0x39   : > { %s5830_s18 = smov (!%p870_p2), 126  }
  0x3b   : > { %v5823_v0 = vmov 0.0   ;;  %vm5824_vm0 = vmmov 0   ;;  %s7217_s23 = smov (!%p949_p3, %s4835_s23), 1  ;;  %v5643_v4 = vld [vmem:[%s5844_s9] sm:$0xff]   ;;  %vm1003_vm1 = vcmask 130048   ;;  %v5645_v8 = vld [vmem:[%s5844_s9 + $0x8] sm:$0xff]  }
  0x3c   : > { %5143 = vmatprep.subr.bf16.mxu1 %v5823_v0  ;;  %5145 = vmatprep.mubr.msk.bf16.mxu1 %vm5824_vm0, %v5823_v0  ;;  %s4921_s0 = sshll.u32 %s7217_s23, 5  ;;  %v1151_v9 = vld [vmem:[%s5849_s13] sm:$0xff]  ;;  %v5826_v10 = vmov 0   ;;  %v1153_v11 = vld [vmem:[%s5849_s13 + $0x10] sm:$0xff]  ;;  %v1152_v12 = vld [vmem:[%s5849_s13 + $0x8] sm:$0xff]  ;;  %vm1000_vm2 = vcmask 916480  }
  0x3d   : > { %5129 = vmatprep.subr.bf16.mxu0 %v5823_v0  ;;  %5131 = vmatprep.mubr.msk.bf16.mxu0 %vm5824_vm0, %v5823_v0  ;;  %s953_s26 = scalar_lea.vmem %s5839_s5, %s4921_s0  ;;  %v5647_v13 = vld [vmem:[%s5844_s9 + $0x10] sm:$0xff]   ;;  %v1156_v14 = vld [vmem:[%s5849_s13 + $0x28] sm:$0xff]  ;;  %v1154_v15 = vld [vmem:[%s5849_s13 + $0x18] sm:$0xff]  ;;  %vm1434_vm3 = vcmask 7168   ;;  %vm1561_vm4 = vcmask 1039360   ;;  %vm1455_vm5 = vcmask 392192  }
  0x3e   : > { %v960_v1 = vld [vmem:[%s953_s26] sm:$0xff]  ;;  %v962_v2 = vld [vmem:[%s953_s26 + $0x10] sm:$0xff]  ;;  %v961_v3 = vld [vmem:[%s953_s26 + $0x8] sm:$0xff]  ;;  %5641 = vset.pattern.permute.xlu1 %v5826_v10  ;;  %5642 = vset.pattern.permute.xlu0 %v5826_v10  ;;  %vm1797_vm6 = vcmask 64512   ;;  %vm2108_vm7 = vcmask 1043456   ;;  %s7204_s0 = sld [smem:[#allocation5_spill]] }
  0x3f   : > { %v964_v5 = vpack.c.bf16 %v962_v2, %v960_v1  ;;  %v963_v6 = vld [vmem:[%s953_s26 + $0x18] sm:$0xff]  ;;  %1159 = vperm.xlu1 %5641, %v1151_v9   ;;  %v1155_v16 = vld [vmem:[%s5849_s13 + $0x20] sm:$0xff]  ;;  %v5648_v22 = vld [vmem:[%s5844_s9 + $0x28] sm:$0xff]   ;;  %s7205_s26 = sld [smem:[#allocation4_spill]]  ;;  %vm2847_vm8 = vcmask 15360   ;;  %vm2973_vm9 = vcmask 1031168  }
  0x40   : > { %v965_v7 = vpack.c.bf16 %v963_v6, %v961_v3  ;;  %v5644_v20 = vld [vmem:[%s5844_s9 + $0x18] sm:$0xff]   ;;  %v5646_v21 = vld [vmem:[%s5844_s9 + $0x20] sm:$0xff]  }
  0x41   : > { %996 = vrot.lane.b32.xlu0 %v964_v5, %s5825_s28  ;;  %5144 = vmatpush3.bf16.msra.mxu1 %v964_v5 }
  0x42   : > { %5157 = vmatprep.subr.bf16.mxu1 %v5823_v0 }
  0x43   : > { %1164 = vperm.xlu1 %5641, %v1152_v12  }
  0x44   : > { %5146 = vmatmul.mubr.msk.bf16.vlgmr.msra.gmra.mxu1 %vm1003_vm1, %v5643_v4 }
  0x45   : > { %998 = vrot.lane.b32.xlu0 %v965_v7, %s5825_s28  ;;  %5149 = vmatprep.mubr.msk.bf16.mxu1 %vm5824_vm0, %v5823_v0  ;;  %s7206_s28 = sld [smem:[#allocation8_spill]] }
  0x47   : > { %1174 = vperm.xlu1 %5641, %v1154_v15  }
  0x49   : > { %1169 = vperm.xlu0 %5642, %v1153_v11  }
  0x4b   : > { %1179 = vperm.xlu1 %5641, %v1155_v16  }
  0x4c   : > { %5150 = vmatmul.mubr.msk.bf16.gmra.mxu1 %vm1003_vm1, %v5645_v8 }
  0x4d   : > { %5153 = vmatprep.mubr.msk.bf16.mxu1 %vm5824_vm0, %v5823_v0  ;;  %1184 = vperm.xlu0 %5642, %v1156_v14  }
  0x54   : > { %5154 = vmatmul.mubr.msk.bf16.gmra.mxu1 %vm1003_vm1, %v5647_v13 }
  0x55   : > { %5163 = vmatprep.mubr.msk.bf16.mxu1 %vm5824_vm0, %v5823_v0 }
  0xb3   : > { %v997_v17 = vpop.permute.xlu0 %996 }
  0xb7   : > { %v999_v18 = vpop.permute.xlu0 %998 }
  0xb8   : > { %v1001_v19 = vsel %vm1000_vm2, %v997_v17, %v999_v18  ;;  %v1198_v18 = vld [vmem:[%s5854_s17 + $0x28] sm:$0xff] }
  0xb9   : > { %5130 = vmatpush3.bf16.msra.mxu0 %v1001_v19  ;;  %v1203_v19 = vld [vmem:[%s5859_s21 + $0x20] sm:$0xff] }
  0xba   : > { %5177 = vmatprep.subr.bf16.mxu0 %v5823_v0  ;;  %v1160_v35 = vpop.permute.xlu1 %1159 }
  0xbc   : > { %5132 = vmatmul.mubr.msk.bf16.vlgmr.msra.gmra.mxu0 %vm1003_vm1, %v5644_v20  ;;  %v1197_v20 = vld [vmem:[%s5854_s17 + $0x20] sm:$0xff] }
  0xbd   : > { %5135 = vmatprep.mubr.msk.bf16.mxu0 %vm5824_vm0, %v5823_v0 }
  0xbe   : > { %v1165_v39 = vpop.permute.xlu1 %1164 }
  0xc2   : > { %v1175_v48 = vpop.permute.xlu1 %1174 }
  0xc4   : > { %5136 = vmatmul.mubr.msk.bf16.gmra.mxu0 %vm1003_vm1, %v5646_v21  ;;  %v1170_v46 = vpop.permute.xlu0 %1169  ;;  %v1195_v21 = vld [vmem:[%s5854_s17 + $0x10] sm:$0xff] }
  0xc5   : > { %5139 = vmatprep.mubr.msk.bf16.mxu0 %vm5824_vm0, %v5823_v0 }
  0xc6   : > { %v1180_v61 = vpop.permute.xlu1 %1179 }
  0xc8   : > { %v1185_v9 = vpop.permute.xlu0 %1184 }
  0xcc   : > { %5140 = vmatmul.mubr.msk.bf16.gmra.mxu0 %vm1003_vm1, %v5648_v22  ;;  %v1204_v22 = vld [vmem:[%s5859_s21 + $0x28] sm:$0xff] }
  0xcd   : > { %5183 = vmatprep.mubr.msk.bf16.mxu0 %vm5824_vm0, %v5823_v0 }
 0x104   : > { %v1128_v23 = vpop.f32.mrf.mxu1 }
 0x106   : > { %v5147_v24 = vpop.f32.mrf.mxu1 }
 0x107   : > { %v1196_v24 = vld [vmem:[%s5854_s17 + $0x18] sm:$0xff] }
 0x108   : > { %v1131_v25 = vpop.f32.mrf.mxu1 }
 0x10a   : > { %v5148_v26 = vpop.f32.mrf.mxu1 }
 0x10b   : > { %v1202_v26 = vld [vmem:[%s5859_s21 + $0x18] sm:$0xff] }
 0x10c   : > { %v1136_v27 = vpop.f32.mrf.mxu1 }
 0x10e   : > { %v5151_v28 = vpop.f32.mrf.mxu1 }
 0x10f   : > { %v1194_v28 = vld [vmem:[%s5854_s17 + $0x8] sm:$0xff] }
 0x110   : > { %v1139_v29 = vpop.f32.mrf.mxu1 }
 0x112   : > { %v5152_v30 = vpop.f32.mrf.mxu1 }
 0x114   : > { %v1144_v31 = vpop.f32.mrf.mxu1 }
 0x116   : > { %v5155_v32 = vpop.f32.mrf.mxu1 }
 0x118   : > { %v1147_v33 = vpop.f32.mrf.mxu1 }
 0x11a   : > { %v5156_v34 = vpop.f32.mrf.mxu1 }
 0x17c   : > { %v1047_v36 = vpop.f32.mrf.mxu0 }
 0x17d   : > { %v1129_v43 = vadd.f32 %v1128_v23, %v1047_v36  ;;  %v1201_v23 = vld [vmem:[%s5859_s21 + $0x10] sm:$0xff] }
 0x17e   : > { %v5133_v37 = vpop.f32.mrf.mxu0 }
 0x17f   : > { %v6048_v50 = vadd.f32 %v1160_v35, %v1129_v43 }
 0x180   : > { %v1050_v38 = vpop.f32.mrf.mxu0 }
 0x181   : > { %v1132_v41 = vadd.f32 %v1131_v25, %v1050_v38  ;;  %v1222_v57 = vmul.f32 %v6048_v50, %v6048_v50  ;;  %v1193_v25 = vld [vmem:[%s5854_s17] sm:$0xff] }
 0x182   : > { %v5134_v40 = vpop.f32.mrf.mxu0 }
 0x183   : > { %v6046_v47 = vadd.f32 %v1165_v39, %v1132_v41 }
 0x184   : > { %v1055_v42 = vpop.f32.mrf.mxu0 }
 0x185   : > { %v1137_v44 = vadd.f32 %v1136_v27, %v1055_v42  ;;  %v1223_v54 = vmul.f32 %v6046_v47, %v6046_v47  ;;  %v1205_v58 = vadd.f32 %v6046_v47, %v6048_v50  ;;  %v1199_v27 = vld [vmem:[%s5859_s21] sm:$0xff] }
 0x186   : > { %v5137_v45 = vpop.f32.mrf.mxu0 }
 0x187   : > { %v6050_v51 = vadd.f32 %v1170_v46, %v1137_v44  ;;  %v1228_v63 = vadd.f32 %v1223_v54, %v1222_v57 }
 0x188   : > { %v1058_v49 = vpop.f32.mrf.mxu0 }
 0x189   : > { %v1140_v52 = vadd.f32 %v1139_v29, %v1058_v49  ;;  %v1224_v59 = vmul.f32 %v6050_v51, %v6050_v51  ;;  %v1206_v1 = vadd.f32 %v1205_v58, %v6050_v51  ;;  %v1200_v29 = vld [vmem:[%s5859_s21 + $0x8] sm:$0xff] }
 0x18a   : > { %v5138_v53 = vpop.f32.mrf.mxu0 }
 0x18b   : > { %v6054_v55 = vadd.f32 %v1175_v48, %v1140_v52  ;;  %v1229_v8 = vadd.f32 %v1228_v63, %v1224_v59 }
 0x18c   : > { %v1063_v56 = vpop.f32.mrf.mxu0 }
 0x18d   : > { %v1145_v60 = vadd.f32 %v1144_v31, %v1063_v56  ;;  %v1225_v2 = vmul.f32 %v6054_v55, %v6054_v55  ;;  %v1207_v6 = vadd.f32 %v1206_v1, %v6054_v55 }
 0x18e   : > { %v5141_v62 = vpop.f32.mrf.mxu0 }
 0x18f   : > { %v6065_v3 = vadd.f32 %v1180_v61, %v1145_v60  ;;  %v1230_v13 = vadd.f32 %v1229_v8, %v1225_v2 }
 0x190   : > { %v1066_v4 = vpop.f32.mrf.mxu0 }
 0x191   : > { %v1148_v5 = vadd.f32 %v1147_v33, %v1066_v4  ;;  %v1226_v7 = vmul.f32 %v6065_v3, %v6065_v3  ;;  %v1208_v12 = vadd.f32 %v1207_v6, %v6065_v3 }
 0x192   : > { %v5142_v10 = vpop.f32.mrf.mxu0 }
 0x193   : > { %v6070_v11 = vadd.f32 %v1185_v9, %v1148_v5  ;;  %v1231_v16 = vadd.f32 %v1230_v13, %v1226_v7 }
 0x195   : > { %v1209_v14 = vadd.f32 %v1208_v12, %v6070_v11  ;;  %v1227_v15 = vmul.f32 %v6070_v11, %v6070_v11 }
 0x197   : > { %1210 = vadd.xlane.f32.xlu1 %v1209_v14  ;;  %v1232_v17 = vadd.f32 %v1231_v16, %v1227_v15 }
 0x199   : > { %1233 = vadd.xlane.f32.xlu0 %v1232_v17 }
 0x1a8   : > { %1288 = vperm.xlu1 %5641, %v1198_v18  }
 0x1ac   : > { %1319 = vperm.xlu1 %5641, %v1203_v19  }
 0x1af   : > { %1283 = vperm.xlu0 %5642, %v1197_v20  }
 0x1b0   : > { %1273 = vperm.xlu1 %5641, %v1195_v21  }
 0x1b3   : > { %1324 = vperm.xlu0 %5642, %v1204_v22  }
 0x1b4   : > { %1309 = vperm.xlu1 %5641, %v1201_v23  }
 0x1b7   : > { %1278 = vperm.xlu0 %5642, %v1196_v24  }
 0x1b8   : > { %1263 = vperm.xlu1 %5641, %v1193_v25  }
 0x1bb   : > { %1314 = vperm.xlu0 %5642, %v1202_v26  }
 0x1bc   : > { %1299 = vperm.xlu1 %5641, %v1199_v27  }
 0x1bf   : > { %1268 = vperm.xlu0 %5642, %v1194_v28  }
 0x1c3   : > { %1304 = vperm.xlu0 %5642, %v1200_v29  }
 0x220   : > { %v1211_v30 = vpop.xlane.xlu1 %1210 }
 0x221   : > { %v1212_v31 = vrot.slane %v1211_v30, 4 }
 0x222   : > { %v1234_v32 = vpop.xlane.xlu0 %1233 }
 0x223   : > { %v1213_v33 = vadd.f32 %v1212_v31, %v1211_v30  ;;  %v1235_v34 = vrot.slane %v1234_v32, 4 }
 0x224   : > { %v1289_v44 = vpop.permute.xlu1 %1288 }
 0x225   : > { %v1236_v35 = vadd.f32 %v1235_v34, %v1234_v32  ;;  %v1214_v36 = vrot.slane %v1213_v33, 2 }
 0x227   : > { %v1215_v37 = vadd.f32 %v1214_v36, %v1213_v33  ;;  %v1237_v38 = vrot.slane %v1236_v35, 2 }
 0x228   : > { %v1320_v54 = vpop.permute.xlu1 %1319 }
 0x229   : > { %v1216_v39 = vrot.slane %v1215_v37, 1  ;;  %v1238_v40 = vadd.f32 %v1237_v38, %v1236_v35 }
 0x22a   : > { %v1284_v45 = vpop.permute.xlu0 %1283 }
 0x22b   : > { %v1217_v41 = vadd.f32 %v1216_v39, %v1215_v37  ;;  %v1239_v42 = vrot.slane %v1238_v40, 1 }
 0x22c   : > { %v1274_v60 = vpop.permute.xlu1 %1273 }
 0x22d   : > { %5586 = vpush %v1217_v41  ;;  %v1240_v43 = vadd.f32 %v1239_v42, %v1238_v40 }
 0x22e   : > { %v1325_v56 = vpop.permute.xlu0 %1324 }
 0x22f   : > { %5588 = vpush %v1240_v43 }
 0x230   : > { %v1310_v62 = vpop.permute.xlu1 %1309 }
 0x232   : > { %v1279_v61 = vpop.permute.xlu0 %1278 }
 0x234   : > { %v1264_v1 = vpop.permute.xlu1 %1263 }
 0x236   : > { %v1315_v63 = vpop.permute.xlu0 %1314 }
 0x23a   : > { %v1269_v2 = vpop.permute.xlu0 %1268 }
 0x23e   : > { %v1305_v22 = vpop.permute.xlu0 %1304 }
 0x25e   : > { %s5587_s1 = spop %5586 }
 0x25f   : > { %v1219_v46 = vstv %s5587_s1  ;;  %s7207_s1 = sld [smem:[#allocation6_spill]] }
 0x260   : > { %v1221_v48 = vmul.f32 0.00016276042, %v1219_v46  ;;  %s5589_s2 = spop %5588 }
 0x261   : > { %v1242_v49 = vstv %s5589_s2  ;;  %s7208_s2 = sld [smem:[#allocation9_spill]] }
 0x262   : > { %v1243_v52 = vmul.f32 0.00016276042, %v1242_v49  ;;  %v1244_v53 = vmul.f32 %v1221_v48, %v1221_v48  ;;  %v1251_v4 = vsub.f32 %v6050_v51, %v1221_v48  ;;  %v1252_v5 = vsub.f32 %v6054_v55, %v1221_v48 }
 0x263   : > { %v1253_v6 = vsub.f32 %v6065_v3, %v1221_v48  ;;  %v1254_v7 = vsub.f32 %v6070_v11, %v1221_v48  ;;  %v1249_v9 = vsub.f32 %v6048_v50, %v1221_v48  ;;  %v1250_v10 = vsub.f32 %v6046_v47, %v1221_v48  ;;  %v1300_v3 = vpop.permute.xlu1 %1299 }
 0x264   : > { %v1245_v57 = vsub.f32 %v1243_v52, %v1244_v53 }
 0x266   : > { %v1246_v58 = vmax.f32 %v1245_v57, 0.0 }
 0x268   : > { %v1247_v59 = vadd.f32 1e-05, %v1246_v58 }
 0x26a   : > { %5667 = vrsqrt.f32 %v1247_v59 }
 0x277   : > { %v5668_v8 = vpop.eup %5667 }
 0x278   : > { %v1260_v12 = vmul.f32 %v5668_v8, %v1254_v7  ;;  %v1259_v13 = vmul.f32 %v5668_v8, %v1253_v6  ;;  %v1258_v14 = vmul.f32 %v5668_v8, %v1252_v5  ;;  %v1257_v15 = vmul.f32 %v5668_v8, %v1251_v4 }
 0x279   : > { %v1256_v16 = vmul.f32 %v5668_v8, %v1250_v10  ;;  %v1255_v17 = vmul.f32 %v5668_v8, %v1249_v9 }
 0x27a   : > { %v1296_v18 = vmul.f32 %v1289_v44, %v1260_v12  ;;  %v1295_v19 = vmul.f32 %v1284_v45, %v1259_v13  ;;  %v1294_v51 = vmul.f32 %v1279_v61, %v1258_v14  ;;  %v1293_v20 = vmul.f32 %v1274_v60, %v1257_v15 }
 0x27b   : > { %v1292_v55 = vmul.f32 %v1269_v2, %v1256_v16  ;;  %v1291_v21 = vmul.f32 %v1264_v1, %v1255_v17 }
 0x27c   : > { %v1332_v11 = vadd.f32 %v1325_v56, %v1296_v18  ;;  %v1331_v23 = vadd.f32 %v1320_v54, %v1295_v19  ;;  %v1330_v24 = vadd.f32 %v1315_v63, %v1294_v51  ;;  %v1329_v50 = vadd.f32 %v1310_v62, %v1293_v20 }
 0x27d   : > { %v1328_v25 = vadd.f32 %v1305_v22, %v1292_v55  ;;  %v1327_v47 = vadd.f32 %v1300_v3, %v1291_v21  ;;  %v1634_v21 = vld [vmem:[%s5874_s3] sm:$0xff] }
 0x27e   : > { %v1344_v26 = vmul.f32 0.044715, %v1332_v11  ;;  %v1343_v27 = vmul.f32 0.044715, %v1331_v23  ;;  %v1342_v28 = vmul.f32 0.044715, %v1330_v24 }
 0x27f   : > { %v1341_v29 = vmul.f32 0.044715, %v1329_v50  ;;  %v1340_v32 = vmul.f32 0.044715, %v1328_v25  ;;  %v1339_v35 = vmul.f32 0.044715, %v1327_v47 }
 0x280   : > { %v1350_v30 = vmul.f32 %v1344_v26, %v1332_v11  ;;  %v1349_v31 = vmul.f32 %v1343_v27, %v1331_v23  ;;  %v1348_v33 = vmul.f32 %v1342_v28, %v1330_v24  ;;  %v1338_v62 = vmul.f32 0.5, %v1332_v11  ;;  %v1627_v3 = vld [vmem:[%s5869_s29] sm:$0xff]  ;;  %v1993_v26 = vld [vmem:[%s5889_s19 + $0x28] sm:$0xff]  ;;  %v1995_v28 = vld [vmem:[%s5889_s19 + $0x38] sm:$0xff] }
 0x281   : > { %v1347_v34 = vmul.f32 %v1341_v29, %v1329_v50  ;;  %v1346_v38 = vmul.f32 %v1340_v32, %v1328_v25  ;;  %v1345_v41 = vmul.f32 %v1339_v35, %v1327_v47  ;;  %v1337_v2 = vmul.f32 0.5, %v1331_v23  ;;  %v1988_v22 = vld [vmem:[%s5889_s19] sm:$0xff]  ;;  %v1998_v29 = vld [vmem:[%s5889_s19 + $0x50] sm:$0xff]  ;;  %v1999_v32 = vld [vmem:[%s5889_s19 + $0x58] sm:$0xff] }
 0x282   : > { %v1356_v36 = vmul.f32 %v1350_v30, %v1332_v11  ;;  %v1355_v37 = vmul.f32 %v1349_v31, %v1331_v23  ;;  %v1354_v39 = vmul.f32 %v1348_v33, %v1330_v24  ;;  %v1336_v13 = vmul.f32 0.5, %v1330_v24  ;;  %v1996_v27 = vld [vmem:[%s5889_s19 + $0x40] sm:$0xff]  ;;  %v1997_v30 = vld [vmem:[%s5889_s19 + $0x48] sm:$0xff]  ;;  %v2203_v31 = vld [vmem:[%s5894_s24 + $0x50] sm:$0xff] }
 0x283   : > { %v1353_v40 = vmul.f32 %v1347_v34, %v1329_v50  ;;  %v1352_v44 = vmul.f32 %v1346_v38, %v1328_v25  ;;  %v1351_v48 = vmul.f32 %v1345_v41, %v1327_v47  ;;  %v1335_v14 = vmul.f32 0.5, %v1329_v50  ;;  %v2215_v33 = vld [vmem:[%s5899_s30 + $0x50] sm:$0xff]  ;;  %v2204_v34 = vld [vmem:[%s5894_s24 + $0x58] sm:$0xff]  ;;  %v2201_v35 = vld [vmem:[%s5894_s24 + $0x40] sm:$0xff] }
 0x284   : > { %v1362_v42 = vadd.f32 %v1356_v36, %v1332_v11  ;;  %v1361_v43 = vadd.f32 %v1355_v37, %v1331_v23  ;;  %v1360_v45 = vadd.f32 %v1354_v39, %v1330_v24  ;;  %v1334_v19 = vmul.f32 0.5, %v1328_v25  ;;  %v1635_v11 = vld [vmem:[%s5879_s8] sm:$0xff]  ;;  %v1990_v23 = vld [vmem:[%s5889_s19 + $0x10] sm:$0xff]  ;;  %v1989_v24 = vld [vmem:[%s5889_s19 + $0x8] sm:$0xff] }
 0x285   : > { %v1359_v46 = vadd.f32 %v1353_v40, %v1329_v50  ;;  %v1358_v53 = vadd.f32 %v1352_v44, %v1328_v25  ;;  %v1357_v57 = vadd.f32 %v1351_v48, %v1327_v47  ;;  %v1333_v51 = vmul.f32 0.5, %v1327_v47  ;;  %v1992_v50 = vld [vmem:[%s5889_s19 + $0x20] sm:$0xff]  ;;  %v1991_v25 = vld [vmem:[%s5889_s19 + $0x18] sm:$0xff]  ;;  %v1994_v47 = vld [vmem:[%s5889_s19 + $0x30] sm:$0xff] }
 0x286   : > { %v1368_v49 = vmul.f32 0.7978846, %v1362_v42  ;;  %v1367_v52 = vmul.f32 0.7978846, %v1361_v43  ;;  %v1366_v54 = vmul.f32 0.7978846, %v1360_v45 }
 0x287   : > { %v1365_v56 = vmul.f32 0.7978846, %v1359_v46  ;;  %v1364_v58 = vmul.f32 0.7978846, %v1358_v53  ;;  %v1363_v59 = vmul.f32 0.7978846, %v1357_v57 }
 0x288   : > { %5669 = vtanh.f32 %v1368_v49  ;;  %v2216_v36 = vld [vmem:[%s5899_s30 + $0x58] sm:$0xff]  ;;  %v2213_v37 = vld [vmem:[%s5899_s30 + $0x40] sm:$0xff]  ;;  %v2202_v38 = vld [vmem:[%s5894_s24 + $0x48] sm:$0xff] }
 0x289   : > { %5671 = vtanh.f32 %v1367_v52  ;;  %v2199_v39 = vld [vmem:[%s5894_s24 + $0x30] sm:$0xff]  ;;  %v2214_v40 = vld [vmem:[%s5899_s30 + $0x48] sm:$0xff]  ;;  %v2200_v42 = vld [vmem:[%s5894_s24 + $0x38] sm:$0xff] }
 0x28a   : > { %5673 = vtanh.f32 %v1366_v54  ;;  %v2211_v41 = vld [vmem:[%s5899_s30 + $0x30] sm:$0xff]  ;;  %v2197_v43 = vld [vmem:[%s5894_s24 + $0x20] sm:$0xff]  ;;  %v2212_v44 = vld [vmem:[%s5899_s30 + $0x38] sm:$0xff] }
 0x28b   : > { %5675 = vtanh.f32 %v1365_v56  ;;  %v2209_v45 = vld [vmem:[%s5899_s30 + $0x20] sm:$0xff]  ;;  %v2198_v46 = vld [vmem:[%s5894_s24 + $0x28] sm:$0xff]  ;;  %v2195_v48 = vld [vmem:[%s5894_s24 + $0x10] sm:$0xff] }
 0x28c   : > { %5677 = vtanh.f32 %v1364_v58  ;;  %v2210_v49 = vld [vmem:[%s5899_s30 + $0x28] sm:$0xff]  ;;  %v2207_v52 = vld [vmem:[%s5899_s30 + $0x10] sm:$0xff]  ;;  %v2196_v53 = vld [vmem:[%s5894_s24 + $0x18] sm:$0xff] }
 0x28d   : > { %5679 = vtanh.f32 %v1363_v59  ;;  %v2737_v54 = vld [vmem:[%s5904_s6 + $0x20] sm:$0xff]  ;;  %v2208_v56 = vld [vmem:[%s5899_s30 + $0x18] sm:$0xff]  ;;  %v2738_v58 = vld [vmem:[%s5904_s6 + $0x28] sm:$0xff] }
 0x28e   : > { %v2193_v57 = vld [vmem:[%s5894_s24] sm:$0xff] }
 0x28f   : > { %v2205_v59 = vld [vmem:[%s5899_s30] sm:$0xff] }
 0x295   : > { %v5670_v60 = vpop.eup %5669 }
 0x296   : > { %v5672_v61 = vpop.eup %5671  ;;  %v1380_v63 = vadd.f32 1.0, %v5670_v60  ;;  %v2194_v60 = vld [vmem:[%s5894_s24 + $0x8] sm:$0xff] }
 0x297   : > { %v5674_v1 = vpop.eup %5673  ;;  %v1379_v4 = vadd.f32 1.0, %v5672_v61  ;;  %v2735_v61 = vld [vmem:[%s5904_s6 + $0x10] sm:$0xff] }
 0x298   : > { %v5676_v5 = vpop.eup %5675  ;;  %v6094_v6 = vmul.f32 %v1380_v63, %v1338_v62  ;;  %v1378_v7 = vadd.f32 1.0, %v5674_v1  ;;  %v2206_v62 = vld [vmem:[%s5899_s30 + $0x8] sm:$0xff]  ;;  %v2733_v63 = vld [vmem:[%s5904_s6] sm:$0xff]  ;;  %v2736_v1 = vld [vmem:[%s5904_s6 + $0x18] sm:$0xff] }
 0x299   : > { %v5678_v8 = vpop.eup %5677  ;;  %v6096_v9 = vmul.f32 %v1379_v4, %v1337_v2  ;;  %v1377_v10 = vadd.f32 1.0, %v5676_v5  ;;  %v2734_v2 = vld [vmem:[%s5904_s6 + $0x8] sm:$0xff]  ;;  %v4862_v4 = vld [vmem:[%s5984_s4] ss:$0 sm:$0xff] }
 0x29a   : > { %v5680_v12 = vpop.eup %5679  ;;  %1426 = vrot.lane.b32.xlu0 %v6094_v6, %s5827_s7  ;;  %v6100_v15 = vmul.f32 %v1378_v7, %v1336_v13  ;;  %v1376_v16 = vadd.f32 1.0, %v5678_v8 }
 0x29b   : > { %1424 = vrot.lane.b32.xlu1 %v6096_v9, %s5827_s7  ;;  %v6102_v17 = vmul.f32 %v1377_v10, %v1335_v14  ;;  %v1375_v18 = vadd.f32 1.0, %v5680_v12 }
 0x29c   : > { %v6106_v20 = vmul.f32 %v1376_v16, %v1334_v19 }
 0x29d   : > { %v6108_v55 = vmul.f32 %v1375_v18, %v1333_v51 }
 0x29e   : > { %1422 = vrot.lane.b32.xlu0 %v6100_v15, %s5827_s7 }
 0x29f   : > { %1420 = vrot.lane.b32.xlu1 %v6102_v17, %s5827_s7 }
 0x2a2   : > { %1418 = vrot.lane.b32.xlu0 %v6106_v20, %s5827_s7 }
 0x2a3   : > { %1416 = vrot.lane.b32.xlu1 %v6108_v55, %s5827_s7  ;;  %s7209_s7 = sld [smem:[#allocation10_spill]] }
 0x2a6   : > { %1553 = vrot.lane.b32.xlu0 %v6094_v6, %s5828_s10 }
 0x2a7   : > { %1551 = vrot.lane.b32.xlu1 %v6096_v9, %s5828_s10 }
 0x2aa   : > { %1549 = vrot.lane.b32.xlu0 %v6100_v15, %s5828_s10 }
 0x2ab   : > { %1547 = vrot.lane.b32.xlu1 %v6102_v17, %s5828_s10 }
 0x2ae   : > { %1545 = vrot.lane.b32.xlu0 %v6106_v20, %s5828_s10 }
 0x2af   : > { %1543 = vrot.lane.b32.xlu1 %v6108_v55, %s5828_s10  ;;  %s7210_s10 = sld [smem:[#allocation11_spill]] }
 0x2b2   : > { %1956 = vperm.xlu0 %5642, %v1634_v21  }
 0x2b3   : > { %1630 = vperm.xlu1 %5641, %v1627_v3  }
 0x2b6   : > { %2002 = vperm.xlu0 %5642, %v1988_v22  }
 0x2b7   : > { %1962 = vperm.xlu1 %5641, %v1635_v11  }
 0x2ba   : > { %2012 = vperm.xlu0 %5642, %v1990_v23  }
 0x2bb   : > { %2007 = vperm.xlu1 %5641, %v1989_v24  }
 0x2be   : > { %2022 = vperm.xlu0 %5642, %v1992_v50  }
 0x2bf   : > { %2017 = vperm.xlu1 %5641, %v1991_v25  }
 0x2c2   : > { %2032 = vperm.xlu0 %5642, %v1994_v47  }
 0x2c3   : > { %2027 = vperm.xlu1 %5641, %v1993_v26   ;;  %v4865_v26 = vld [vmem:[%s5984_s4 + $0x1] ss:$0 sm:$0xff] }
 0x2c6   : > { %2042 = vperm.xlu0 %5642, %v1996_v27  }
 0x2c7   : > { %2037 = vperm.xlu1 %5641, %v1995_v28  }
 0x2ca   : > { %2052 = vperm.xlu0 %5642, %v1998_v29  }
 0x2cb   : > { %2047 = vperm.xlu1 %5641, %v1997_v30  }
 0x2ce   : > { %2641 = vperm.xlu0 %5642, %v2203_v31  }
 0x2cf   : > { %2057 = vperm.xlu1 %5641, %v1999_v32  }
 0x2d2   : > { %2713 = vperm.xlu0 %5642, %v2215_v33  }
 0x2d3   : > { %2646 = vperm.xlu1 %5641, %v2204_v34   ;;  %v1451_v34 = vld [vmem:[%s5864_s25] sm:$0xf] }
 0x2d6   : > { %2631 = vperm.xlu0 %5642, %v2201_v35  }
 0x2d7   : > { %2718 = vperm.xlu1 %5641, %v2216_v36  }
 0x2da   : > { %2703 = vperm.xlu0 %5642, %v2213_v37  }
 0x2db   : > { %2636 = vperm.xlu1 %5641, %v2202_v38  }
 0x2de   : > { %2621 = vperm.xlu0 %5642, %v2199_v39   ;;  %v1406_v39 = vpack.c.bf16 %v6094_v6, %v6096_v9 }
 0x2df   : > { %2708 = vperm.xlu1 %5641, %v2214_v40  }
 0x2e2   : > { %2693 = vperm.xlu0 %5642, %v2211_v41  }
 0x2e3   : > { %2626 = vperm.xlu1 %5641, %v2200_v42  }
 0x2e6   : > { %2611 = vperm.xlu0 %5642, %v2197_v43  }
 0x2e7   : > { %2698 = vperm.xlu1 %5641, %v2212_v44  }
 0x2ea   : > { %2683 = vperm.xlu0 %5642, %v2209_v45  }
 0x2eb   : > { %2616 = vperm.xlu1 %5641, %v2198_v46  }
 0x2ee   : > { %2601 = vperm.xlu0 %5642, %v2195_v48   ;;  %v1405_v48 = vpack.c.bf16 %v6100_v15, %v6102_v17 }
 0x2ef   : > { %2688 = vperm.xlu1 %5641, %v2210_v49  }
 0x2f2   : > { %2673 = vperm.xlu0 %5642, %v2207_v52  }
 0x2f3   : > { %2606 = vperm.xlu1 %5641, %v2196_v53  }
 0x2f6   : > { %2797 = vperm.xlu0 %5642, %v2737_v54  }
 0x2f7   : > { %2678 = vperm.xlu1 %5641, %v2208_v56   ;;  %v1404_v56 = vpack.c.bf16 %v6106_v20, %v6108_v55 }
 0x2fa   : > { %2591 = vperm.xlu0 %5642, %v2193_v57   ;;  %v4861_v57 = vld [vmem:[%s5864_s25 + $0x4] sm:$0xf] }
 0x2fb   : > { %2802 = vperm.xlu1 %5641, %v2738_v58   ;;  %v4866_v58 = vld [vmem:[%s5864_s25 + $0x8] sm:$0xf] }
 0x2fe   : > { %2663 = vperm.xlu0 %5642, %v2205_v59   ;;  %v6198_v59 = vld [vmem:[%s5974_s20 + $0x78] sm:$0xff] }
 0x2ff   : > { %2596 = vperm.xlu1 %5641, %v2194_v60   ;;  %v6204_v60 = vld [vmem:[%s5974_s20 + $0x70] sm:$0xff] }
 0x302   : > { %2787 = vperm.xlu0 %5642, %v2735_v61   ;;  %v6219_v61 = vld [vmem:[%s5974_s20 + $0x68] sm:$0xff] }
 0x303   : > { %2668 = vperm.xlu1 %5641, %v2206_v62   ;;  %v6225_v62 = vld [vmem:[%s5974_s20 + $0x60] sm:$0xff] }
 0x306   : > { %2777 = vperm.xlu0 %5642, %v2733_v63   ;;  %v6232_v63 = vld [vmem:[%s5974_s20 + $0x58] sm:$0xff] }
 0x307   : > { %2792 = vperm.xlu1 %5641, %v2736_v1   ;;  %v6239_v1 = vld [vmem:[%s5974_s20 + $0x50] sm:$0xff] }
 0x30b   : > { %2782 = vperm.xlu1 %5641, %v2734_v2   ;;  %v6247_v2 = vld [vmem:[%s5974_s20 + $0x48] sm:$0xff] }
 0x30c   : > { %v1427_v5 = vpop.permute.xlu0 %1426 }
 0x30d   : > { %v1440_v7 = vsel %vm1434_vm3, 0.0, %v1427_v5  ;;  %v1425_v8 = vpop.permute.xlu1 %1424  ;;  %v6260_v5 = vld [vmem:[%s5974_s20 + $0x38] sm:$0xff] }
 0x30e   : > { %v1450_v10 = vmul.f32 %v4862_v4, %v1440_v7  ;;  %v1439_v12 = vsel %vm1434_vm3, 0.0, %v1425_v8  ;;  %v6267_v7 = vld [vmem:[%s5974_s20 + $0x30] sm:$0xff]  ;;  %v6271_v8 = vld [vmem:[%s5974_s20 + $0x28] sm:$0xff] }
 0x30f   : > { %v1449_v13 = vmul.f32 %v4862_v4, %v1439_v12  ;;  %v6285_v12 = vld [vmem:[%s5974_s20 + $0x18] sm:$0xff] }
 0x310   : > { %v1423_v14 = vpop.permute.xlu0 %1422 }
 0x311   : > { %v1454_v16 = vpack.c.bf16 %v1450_v10, %v1449_v13  ;;  %v1438_v18 = vsel %vm1434_vm3, 0.0, %v1423_v14  ;;  %v1421_v19 = vpop.permute.xlu1 %1420  ;;  %v6278_v10 = vld [vmem:[%s5974_s20 + $0x20] sm:$0xff]  ;;  %v6292_v13 = vld [vmem:[%s5974_s20 + $0x10] sm:$0xff]  ;;  %v6299_v14 = vld [vmem:[%s5974_s20 + $0x8] sm:$0xff] }
 0x312   : > { %v1448_v51 = vmul.f32 %v4862_v4, %v1438_v18  ;;  %v1437_v21 = vsel %vm1434_vm3, 0.0, %v1421_v19 }
 0x313   : > { %v1447_v3 = vmul.f32 %v4862_v4, %v1437_v21  ;;  %5158 = vmatpush3.bf16.msra.mxu1 %v1454_v16  ;;  %v6306_v16 = vld [vmem:[%s5974_s20] sm:$0xff] }
 0x314   : > { %v1419_v22 = vpop.permute.xlu0 %1418  ;;  %5159 = vmatprep.subr.bf16.mxu1 %v5823_v0 }
 0x315   : > { %v1453_v11 = vpack.c.bf16 %v1448_v51, %v1447_v3  ;;  %v1436_v23 = vsel %vm1434_vm3, 0.0, %v1419_v22  ;;  %v1417_v24 = vpop.permute.xlu1 %1416 }
 0x316   : > { %v1446_v50 = vmul.f32 %v4862_v4, %v1436_v23  ;;  %v1435_v25 = vsel %vm1434_vm3, 0.0, %v1417_v24 }
 0x317   : > { %v1445_v47 = vmul.f32 %v4862_v4, %v1435_v25  ;;  %5160 = vmatpush3.bf16.msra.mxu1 %v1453_v11  ;;  %v6254_v4 = vld [vmem:[%s5974_s20 + $0x40] sm:$0xff] }
 0x318   : > { %v1554_v27 = vpop.permute.xlu0 %1553  ;;  %5161 = vmatprep.subr.bf16.mxu1 %v5823_v0 }
 0x319   : > { %v1452_v28 = vpack.c.bf16 %v1446_v50, %v1445_v47  ;;  %v1567_v29 = vsel %vm1561_vm4, %v1554_v27, 0.0  ;;  %v1552_v30 = vpop.permute.xlu1 %1551 }
 0x31a   : > { %v1577_v31 = vmul.f32 %v4865_v26, %v1567_v29  ;;  %v1566_v32 = vsel %vm1561_vm4, %v1552_v30, 0.0 }
 0x31b   : > { %v1576_v33 = vmul.f32 %v4865_v26, %v1566_v32  ;;  %5162 = vmatpush3.bf16.msra.mxu1 %v1452_v28 }
 0x31c   : > { %v1550_v35 = vpop.permute.xlu0 %1549  ;;  %5167 = vmatprep.subr.bf16.mxu1 %v5823_v0 }
 0x31d   : > { %v1582_v36 = vpack.c.bf16 %v1577_v31, %v1576_v33  ;;  %v1565_v37 = vsel %vm1561_vm4, %v1550_v35, 0.0  ;;  %v1548_v38 = vpop.permute.xlu1 %1547 }
 0x31e   : > { %v1575_v40 = vmul.f32 %v4865_v26, %v1565_v37  ;;  %v1564_v41 = vsel %vm1561_vm4, %v1548_v38, 0.0  ;;  %5164 = vmatmul.mubr.msk.bf16.vlgmr.msra.gmra.mxu1 %vm1455_vm5, %v1451_v34 }
 0x31f   : > { %v1574_v42 = vmul.f32 %v4865_v26, %v1564_v41  ;;  %5168 = vmatpush3.bf16.msra.mxu1 %v1406_v39  ;;  %5178 = vmatpush3.bf16.msra.mxu0 %v1582_v36 }
 0x320   : > { %v1546_v43 = vpop.permute.xlu0 %1545  ;;  %5169 = vmatprep.subr.bf16.mxu1 %v5823_v0  ;;  %5179 = vmatprep.subr.bf16.mxu0 %v5823_v0 }
 0x321   : > { %v1581_v44 = vpack.c.bf16 %v1575_v40, %v1574_v42  ;;  %v1563_v45 = vsel %vm1561_vm4, %v1546_v43, 0.0  ;;  %v1544_v46 = vpop.permute.xlu1 %1543  ;;  %5173 = vmatprep.mubr.msk.bf16.mxu1 %vm5824_vm0, %v5823_v0  ;;  %v6359_v43 = vld [vmem:[%s5979_s27] sm:$0xff] }
 0x322   : > { %v1573_v49 = vmul.f32 %v4865_v26, %v1563_v45  ;;  %v1562_v52 = vsel %vm1561_vm4, %v1544_v46, 0.0 }
 0x323   : > { %v1572_v53 = vmul.f32 %v4865_v26, %v1562_v52  ;;  %5170 = vmatpush3.bf16.msra.mxu1 %v1405_v48  ;;  %5180 = vmatpush3.bf16.msra.mxu0 %v1581_v44 }
 0x324   : > { %5171 = vmatprep.subr.bf16.mxu1 %v5823_v0  ;;  %5181 = vmatprep.subr.bf16.mxu0 %v5823_v0 }
 0x325   : > { %v1580_v54 = vpack.c.bf16 %v1573_v49, %v1572_v53 }
 0x327   : > { %5172 = vmatpush3.bf16.msra.mxu1 %v1404_v56  ;;  %5182 = vmatpush3.bf16.msra.mxu0 %v1580_v54 }
 0x328   : > { %5187 = vmatprep.subr.mxu1 %v5823_v0  ;;  %5222 = vmatprep.subr.mxu0 %v5823_v0 }
 0x32a   : > { %5174 = vmatmul.mubr.msk.bf16.vlgmr.msra.gmra.mxu1 %vm1455_vm5, %v4861_v57  ;;  %5184 = vmatmul.mubr.msk.bf16.vlgmr.msra.gmra.mxu0 %vm1455_vm5, %v4866_v58 }
 0x32b   : > { %5188 = vmatpush3.msra.mxu1 %v6198_v59  ;;  %5223 = vmatpush3.msra.mxu0 %v6198_v59 }
 0x32c   : > { %5189 = vmatprep.subr.mxu1 %v5823_v0  ;;  %5224 = vmatprep.subr.mxu0 %v5823_v0 }
 0x32d   : > { %5190 = vmatpush3.msra.mxu1 %v6204_v60  ;;  %5225 = vmatpush3.msra.mxu0 %v6204_v60 }
 0x32e   : > { %5191 = vmatprep.subr.mxu1 %v5823_v0  ;;  %5226 = vmatprep.subr.mxu0 %v5823_v0  ;;  %v1631_v50 = vpop.permute.xlu1 %1630 }
 0x32f   : > { %5219 = vmatprep.mubr.msk.f32.mxu1 %vm5824_vm0, %v5823_v0  ;;  %5254 = vmatprep.mubr.msk.f32.mxu0 %vm5824_vm0, %v5823_v0 }
 0x330   : > { %5192 = vmatpush3.msra.mxu1 %v6219_v61  ;;  %5227 = vmatpush3.msra.mxu0 %v6219_v61 }
 0x331   : > { %5193 = vmatprep.subr.mxu1 %v5823_v0  ;;  %5228 = vmatprep.subr.mxu0 %v5823_v0 }
 0x332   : > { %5194 = vmatpush3.msra.mxu1 %v6225_v62  ;;  %5229 = vmatpush3.msra.mxu0 %v6225_v62 }
 0x333   : > { %5195 = vmatprep.subr.mxu1 %v5823_v0  ;;  %5230 = vmatprep.subr.mxu0 %v5823_v0 }
 0x334   : > { %5196 = vmatpush3.msra.mxu1 %v6232_v63  ;;  %5231 = vmatpush3.msra.mxu0 %v6232_v63 }
 0x335   : > { %5197 = vmatprep.subr.mxu1 %v5823_v0  ;;  %5232 = vmatprep.subr.mxu0 %v5823_v0 }
 0x336   : > { %5198 = vmatpush3.msra.mxu1 %v6239_v1  ;;  %5233 = vmatpush3.msra.mxu0 %v6239_v1 }
 0x337   : > { %5199 = vmatprep.subr.mxu1 %v5823_v0  ;;  %5234 = vmatprep.subr.mxu0 %v5823_v0 }
 0x338   : > { %5200 = vmatpush3.msra.mxu1 %v6247_v2  ;;  %5235 = vmatpush3.msra.mxu0 %v6247_v2 }
 0x339   : > { %5201 = vmatprep.subr.mxu1 %v5823_v0  ;;  %5236 = vmatprep.subr.mxu0 %v5823_v0 }
 0x33a   : > { %5202 = vmatpush3.msra.mxu1 %v6254_v4  ;;  %5237 = vmatpush3.msra.mxu0 %v6254_v4 }
 0x33b   : > { %5203 = vmatprep.subr.mxu1 %v5823_v0  ;;  %5238 = vmatprep.subr.mxu0 %v5823_v0 }
 0x33c   : > { %5204 = vmatpush3.msra.mxu1 %v6260_v5  ;;  %5239 = vmatpush3.msra.mxu0 %v6260_v5 }
 0x33d   : > { %5205 = vmatprep.subr.mxu1 %v5823_v0  ;;  %5240 = vmatprep.subr.mxu0 %v5823_v0 }
 0x33e   : > { %5206 = vmatpush3.msra.mxu1 %v6267_v7  ;;  %5241 = vmatpush3.msra.mxu0 %v6267_v7 }
 0x33f   : > { %5207 = vmatprep.subr.mxu1 %v5823_v0  ;;  %5242 = vmatprep.subr.mxu0 %v5823_v0 }
 0x340   : > { %5208 = vmatpush3.msra.mxu1 %v6271_v8  ;;  %5243 = vmatpush3.msra.mxu0 %v6271_v8 }
 0x341   : > { %5209 = vmatprep.subr.mxu1 %v5823_v0  ;;  %5244 = vmatprep.subr.mxu0 %v5823_v0 }
 0x342   : > { %5210 = vmatpush3.msra.mxu1 %v6278_v10  ;;  %5245 = vmatpush3.msra.mxu0 %v6278_v10 }
 0x343   : > { %5211 = vmatprep.subr.mxu1 %v5823_v0  ;;  %5246 = vmatprep.subr.mxu0 %v5823_v0 }
 0x344   : > { %5212 = vmatpush3.msra.mxu1 %v6285_v12  ;;  %5247 = vmatpush3.msra.mxu0 %v6285_v12 }
 0x345   : > { %5213 = vmatprep.subr.mxu1 %v5823_v0  ;;  %5248 = vmatprep.subr.mxu0 %v5823_v0 }
 0x346   : > { %5214 = vmatpush3.msra.mxu1 %v6292_v13  ;;  %5249 = vmatpush3.msra.mxu0 %v6292_v13 }
 0x347   : > { %5215 = vmatprep.subr.mxu1 %v5823_v0  ;;  %5250 = vmatprep.subr.mxu0 %v5823_v0 }
 0x348   : > { %5216 = vmatpush3.msra.mxu1 %v6299_v14  ;;  %5251 = vmatpush3.msra.mxu0 %v6299_v14 }
 0x349   : > { %5217 = vmatprep.subr.mxu1 %v5823_v0  ;;  %5252 = vmatprep.subr.mxu0 %v5823_v0 }
 0x34a   : > { %5218 = vmatpush3.msra.mxu1 %v6306_v16  ;;  %5253 = vmatpush3.msra.mxu0 %v6306_v16 }
 0x34b   : > { %5257 = vmatprep.subr.mxu1 %v5823_v0  ;;  %5281 = vmatprep.subr.mxu0 %v5823_v0 }
 0x3de   : > { %v1493_v18 = vpop.f32.mrf.mxu1 }
 0x3e0   : > { %v5165_v19 = vpop.f32.mrf.mxu1 }
 0x3e2   : > { %v1496_v51 = vpop.f32.mrf.mxu1 }
 0x3e4   : > { %v5166_v21 = vpop.f32.mrf.mxu1 }
 0x3e5   : > { %v1944_v21 = vlaneseq }
 0x3ea   : > { %v1536_v3 = vpop.f32.mrf.mxu1  ;;  %v1620_v22 = vpop.f32.mrf.mxu0 }
 0x3eb   : > { %v1537_v11 = vadd.f32 %v1536_v3, %v1493_v18  ;;  %v5649_v18 = vld [vmem:[%s7202_s11] sm:$0xff]   ;;  %v1945_v3 = vshrl.u32 %v1944_v21, 7 }
 0x3ec   : > { %v5175_v23 = vpop.f32.mrf.mxu1  ;;  %v5185_v24 = vpop.f32.mrf.mxu0 }
 0x3ed   : > { %v1626_v25 = vadd.f32 %v1620_v22, %v1537_v11  ;;  %v6370_v22 = vsub.s32 0, %v1945_v3 }
 0x3ee   : > { %v1539_v47 = vpop.f32.mrf.mxu1  ;;  %v1623_v26 = vpop.f32.mrf.mxu0 }
 0x3ef   : > { %v6316_v27 = vadd.f32 %v1631_v50, %v1626_v25  ;;  %v1957_v26 = vpop.permute.xlu0 %1956 }
 0x3f0   : > { %v5176_v28 = vpop.f32.mrf.mxu1  ;;  %v5186_v29 = vpop.f32.mrf.mxu0 }
 0x3f1   : > { %v1636_v30 = vrot.slane %v6316_v27, 4  ;;  %v1642_v31 = vmul.f32 %v6316_v27, %v6316_v27  ;;  %v1963_v29 = vpop.permute.xlu1 %1962 }
 0x3f3   : > { %v1637_v32 = vadd.f32 %v1636_v30, %v6316_v27  ;;  %v1643_v33 = vrot.slane %v1642_v31, 4 }
 0x3f5   : > { %v1638_v34 = vrot.slane %v1637_v32, 2  ;;  %v1644_v35 = vadd.f32 %v1643_v33, %v1642_v31 }
 0x3f7   : > { %v1639_v36 = vadd.f32 %v1638_v34, %v1637_v32  ;;  %v1645_v37 = vrot.slane %v1644_v35, 2 }
 0x3f9   : > { %v1640_v38 = vrot.slane %v1639_v36, 1  ;;  %v1646_v39 = vadd.f32 %v1645_v37, %v1644_v35 }
 0x3fb   : > { %v1641_v40 = vadd.f32 %v1640_v38, %v1639_v36  ;;  %v1647_v41 = vrot.slane %v1646_v39, 1 }
 0x3fd   : > { %5220 = vmatmul.mubr.f32.vlgmr.msra.gmra.mxu1 %v1641_v40  ;;  %v1648_v42 = vadd.f32 %v1647_v41, %v1646_v39  ;;  %v5650_v41 = vld [vmem:[%s7202_s11 + $0x8] sm:$0xff]  }
 0x3fe   : > { %5259 = vmatprep.mubr.msk.f32.mxu1 %vm5824_vm0, %v5823_v0  ;;  %5258 = vmatpush3.msra.mxu1 %v6359_v43 }
 0x3ff   : > { %5255 = vmatmul.mubr.f32.vlgmr.msra.gmra.mxu0 %v1648_v42  ;;  %5262 = vmatprep.subr.mxu1 %v5823_v0  ;;  %v5651_v42 = vld [vmem:[%s7202_s11 + $0x10] sm:$0xff]  }
 0x400   : > { %5282 = vmatpush3.msra.mxu0 %v6198_v59  ;;  %5313 = vmatprep.mubr.msk.f32.mxu0 %vm5824_vm0, %v5823_v0 }
 0x401   : > { %5283 = vmatprep.subr.mxu0 %v5823_v0 }
 0x402   : > { %5284 = vmatpush3.msra.mxu0 %v6204_v60 }
 0x403   : > { %5285 = vmatprep.subr.mxu0 %v5823_v0 }
 0x404   : > { %5286 = vmatpush3.msra.mxu0 %v6219_v61 }
 0x405   : > { %5287 = vmatprep.subr.mxu0 %v5823_v0 }
 0x406   : > { %5288 = vmatpush3.msra.mxu0 %v6225_v62 }
 0x407   : > { %5289 = vmatprep.subr.mxu0 %v5823_v0 }
 0x408   : > { %5290 = vmatpush3.msra.mxu0 %v6232_v63 }
 0x409   : > { %5291 = vmatprep.subr.mxu0 %v5823_v0 }
 0x40a   : > { %5292 = vmatpush3.msra.mxu0 %v6239_v1 }
 0x40b   : > { %5293 = vmatprep.subr.mxu0 %v5823_v0 }
 0x40c   : > { %5294 = vmatpush3.msra.mxu0 %v6247_v2 }
 0x40d   : > { %5295 = vmatprep.subr.mxu0 %v5823_v0 }
 0x40e   : > { %5296 = vmatpush3.msra.mxu0 %v6254_v4 }
 0x40f   : > { %5297 = vmatprep.subr.mxu0 %v5823_v0 }
 0x410   : > { %5298 = vmatpush3.msra.mxu0 %v6260_v5 }
 0x411   : > { %5299 = vmatprep.subr.mxu0 %v5823_v0 }
 0x412   : > { %5300 = vmatpush3.msra.mxu0 %v6267_v7 }
 0x413   : > { %5301 = vmatprep.subr.mxu0 %v5823_v0 }
 0x414   : > { %5302 = vmatpush3.msra.mxu0 %v6271_v8 }
 0x415   : > { %5303 = vmatprep.subr.mxu0 %v5823_v0 }
 0x416   : > { %5304 = vmatpush3.msra.mxu0 %v6278_v10 }
 0x417   : > { %5305 = vmatprep.subr.mxu0 %v5823_v0 }
 0x418   : > { %5306 = vmatpush3.msra.mxu0 %v6285_v12 }
 0x419   : > { %5307 = vmatprep.subr.mxu0 %v5823_v0 }
 0x41a   : > { %5308 = vmatpush3.msra.mxu0 %v6292_v13 }
 0x41b   : > { %5309 = vmatprep.subr.mxu0 %v5823_v0 }
 0x41c   : > { %5310 = vmatpush3.msra.mxu0 %v6299_v14 }
 0x41d   : > { %5311 = vmatprep.subr.mxu0 %v5823_v0 }
 0x41e   : > { %5312 = vmatpush3.msra.mxu0 %v6306_v16 }
 0x41f   : > { %5361 = vmatprep.subr.bf16.mxu0 %v5823_v0 }
 0x4bd   : > { %v1715_v44 = vpop.f32.mrf.mxu1 }
 0x4be   : > { %v1720_v45 = vmul.f32 0.010416667, %v1715_v44  ;;  %v5652_v44 = vld [vmem:[%s7202_s11 + $0x18] sm:$0xff]  }
 0x4bf   : > { %v5221_v46 = vpop.f32.mrf.mxu1  ;;  %v1787_v48 = vpop.f32.mrf.mxu0 }
 0x4c0   : > { %v1792_v49 = vmul.f32 %v1720_v45, %v1720_v45  ;;  %v1791_v52 = vmul.f32 0.010416667, %v1787_v48  ;;  %5260 = vmatmul.mubr.msk.f32.vlgmr.msra.gmra.mxu1 %vm1797_vm6, %v1720_v45  ;;  %v5653_v45 = vld [vmem:[%s7202_s11 + $0x20] sm:$0xff]   ;;  %v2008_v46 = vpop.permute.xlu1 %2007 }
 0x4c1   : > { %v5256_v53 = vpop.f32.mrf.mxu0  ;;  %5263 = vmatpush3.msra.mxu1 %v6359_v43  ;;  %5264 = vmatprep.mubr.msk.f32.mxu1 %vm5824_vm0, %v5823_v0 }
 0x4c2   : > { %v1793_v54 = vsub.f32 %v1791_v52, %v1792_v49 }
 0x4c4   : > { %v1794_v56 = vmax.f32 %v1793_v54, 0.0  ;;  %v2018_v49 = vpop.permute.xlu1 %2017 }
 0x4c6   : > { %v1795_v57 = vadd.f32 1e-05, %v1794_v56 }
 0x4c8   : > { %5681 = vrsqrt.f32 %v1795_v57 }
 0x4d5   : > { %v5682_v58 = vpop.eup %5681 }
 0x4d6   : > { %5265 = vmatmul.mubr.msk.f32.vlgmr.msra.gmra.mxu1 %vm1797_vm6, %v5682_v58  ;;  %v2028_v58 = vpop.permute.xlu1 %2027 }
 0x4d7   : > { %5269 = vmatprep.mubr.msk.bf16.mxu1 %vm1797_vm6, %v5649_v18 }
 0x580   : > { %v1867_v19 = vpop.f32.mrf.mxu1 }
 0x581   : > { %v1947_v11 = vrot.slane %v1867_v19, %v6370_v22 }
 0x582   : > { %v5261_v51 = vpop.f32.mrf.mxu1 }
 0x583   : > { %v1948_v24 = vsub.f32 %v6316_v27, %v1947_v11 }
 0x596   : > { %v1940_v23 = vpop.f32.mrf.mxu1 }
 0x597   : > { %v1952_v50 = vrot.slane %v1940_v23, %v6370_v22 }
 0x598   : > { %v5266_v25 = vpop.f32.mrf.mxu1 }
 0x599   : > { %v1953_v47 = vmul.f32 %v1952_v50, %v1948_v24 }
 0x59b   : > { %v1959_v28 = vmul.f32 %v1957_v26, %v1953_v47 }
 0x59d   : > { %v1965_v30 = vadd.f32 %v1963_v29, %v1959_v28 }
 0x59f   : > { %v1967_v31 = vmul.f32 0.044715, %v1965_v30  ;;  %v1966_v37 = vmul.f32 0.5, %v1965_v30 }
 0x5a1   : > { %v1968_v32 = vmul.f32 %v1967_v31, %v1965_v30 }
 0x5a3   : > { %v1969_v33 = vmul.f32 %v1968_v32, %v1965_v30 }
 0x5a5   : > { %v1970_v34 = vadd.f32 %v1969_v33, %v1965_v30  ;;  %v2038_v30 = vpop.permute.xlu1 %2037 }
 0x5a7   : > { %v1971_v35 = vmul.f32 0.7978846, %v1970_v34 }
 0x5a9   : > { %5683 = vtanh.f32 %v1971_v35 }
 0x5b6   : > { %v5684_v36 = vpop.eup %5683 }
 0x5b7   : > { %v1973_v27 = vadd.f32 1.0, %v5684_v36 }
 0x5b9   : > { %v1974_v38 = vmul.f32 %v1973_v27, %v1966_v37 }
 0x5bb   : > { %v1987_v39 = vpack.c.bf16 %v1974_v38, %v1974_v38 }
 0x5bd   : > { %5583 = vmatprep.subr.msk.bf16.mxu1 %vm2108_vm7, %v1987_v39  ;;  %v2110_v40 = vsel %vm2108_vm7, %v1987_v39, 0 }
 0x5be   : > { %5268 = vmatpush3.bf16.msra.mxu1 %v2110_v40 }
 0x5bf   : > { %5316 = vmatprep.subr.mxu1 %v5823_v0 }
 0x5c1   : > { %5270 = vmatmul.mubr.msk.bf16.vlgmr.msra.gmra.mxu1 %vm1797_vm6, %v5650_v41 }
 0x5c2   : > { %5273 = vmatprep.mubr.msk.bf16.mxu1 %vm1797_vm6, %v5651_v42  ;;  %5317 = vmatpush3.msra.mxu1 %v6198_v59  ;;  %v5654_v59 = vld [vmem:[%s7202_s11 + $0x28] sm:$0xff]  }
 0x5c3   : > { %5318 = vmatprep.subr.mxu1 %v5823_v0 }
 0x5c4   : > { %5319 = vmatpush3.msra.mxu1 %v6204_v60  ;;  %v2003_v60 = vpop.permute.xlu0 %2002 }
 0x5c5   : > { %5320 = vmatprep.subr.mxu1 %v5823_v0 }
 0x5c6   : > { %5321 = vmatpush3.msra.mxu1 %v6219_v61 }
 0x5c7   : > { %5322 = vmatprep.subr.mxu1 %v5823_v0 }
 0x5c8   : > { %5323 = vmatpush3.msra.mxu1 %v6225_v62  ;;  %v2013_v48 = vpop.permute.xlu0 %2012 }
 0x5c9   : > { %5274 = vmatmul.mubr.msk.bf16.gmra.mxu1 %vm1797_vm6, %v5652_v44  ;;  %5324 = vmatprep.subr.mxu1 %v5823_v0 }
 0x5ca   : > { %5277 = vmatprep.mubr.msk.bf16.mxu1 %vm1797_vm6, %v5653_v45  ;;  %5325 = vmatpush3.msra.mxu1 %v6232_v63 }
 0x5cb   : > { %5326 = vmatprep.subr.mxu1 %v5823_v0 }
 0x5cc   : > { %5327 = vmatpush3.msra.mxu1 %v6239_v1  ;;  %v2023_v54 = vpop.permute.xlu0 %2022 }
 0x5cd   : > { %5328 = vmatprep.subr.mxu1 %v5823_v0 }
 0x5ce   : > { %5329 = vmatpush3.msra.mxu1 %v6247_v2 }
 0x5cf   : > { %5330 = vmatprep.subr.mxu1 %v5823_v0 }
 0x5d0   : > { %5331 = vmatpush3.msra.mxu1 %v6254_v4  ;;  %v2033_v3 = vpop.permute.xlu0 %2032 }
 0x5d1   : > { %5278 = vmatmul.mubr.msk.bf16.gmra.mxu1 %vm1797_vm6, %v5654_v59  ;;  %5332 = vmatprep.subr.mxu1 %v5823_v0 }
 0x5d2   : > { %5333 = vmatpush3.msra.mxu1 %v6260_v5  ;;  %5348 = vmatprep.mubr.msk.f32.mxu1 %vm5824_vm0, %v5823_v0 }
 0x5d3   : > { %5334 = vmatprep.subr.mxu1 %v5823_v0 }
 0x5d4   : > { %5335 = vmatpush3.msra.mxu1 %v6267_v7  ;;  %v2043_v37 = vpop.permute.xlu0 %2042 }
 0x5d5   : > { %5336 = vmatprep.subr.mxu1 %v5823_v0 }
 0x5d6   : > { %5337 = vmatpush3.msra.mxu1 %v6271_v8 }
 0x5d7   : > { %5338 = vmatprep.subr.mxu1 %v5823_v0 }
 0x5d8   : > { %5339 = vmatpush3.msra.mxu1 %v6278_v10 }
 0x5d9   : > { %5340 = vmatprep.subr.mxu1 %v5823_v0 }
 0x5da   : > { %5341 = vmatpush3.msra.mxu1 %v6285_v12 }
 0x5db   : > { %5342 = vmatprep.subr.mxu1 %v5823_v0 }
 0x5dc   : > { %5343 = vmatpush3.msra.mxu1 %v6292_v13 }
 0x5dd   : > { %5344 = vmatprep.subr.mxu1 %v5823_v0 }
 0x5de   : > { %5345 = vmatpush3.msra.mxu1 %v6299_v14 }
 0x5df   : > { %5346 = vmatprep.subr.mxu1 %v5823_v0 }
 0x5e0   : > { %5347 = vmatpush3.msra.mxu1 %v6306_v16 }
 0x5e1   : > { %5351 = vmatprep.subr.mxu1 %v5823_v0 }
 0x681   : > { %v5271_v52 = vpop.f32.mrf.mxu1 }
 0x682   : > { %v6424_v19 = vadd.f32 %v5271_v52, %v2013_v48 }
 0x683   : > { %v2146_v53 = vpop.f32.mrf.mxu1 }
 0x684   : > { %v6422_v57 = vadd.f32 %v2146_v53, %v2003_v60  ;;  %v2236_v47 = vmul.f32 %v6424_v19, %v6424_v19  ;;  %v2048_v60 = vpop.permute.xlu1 %2047 }
 0x685   : > { %v5272_v56 = vpop.f32.mrf.mxu1 }
 0x686   : > { %v2234_v11 = vmul.f32 %v6422_v57, %v6422_v57  ;;  %v6430_v23 = vadd.f32 %v5272_v56, %v2018_v49  ;;  %v2053_v56 = vpop.permute.xlu0 %2052 }
 0x687   : > { %v2149_v18 = vpop.f32.mrf.mxu1 }
 0x688   : > { %v6426_v51 = vadd.f32 %v2149_v18, %v2008_v46  ;;  %v2237_v32 = vmul.f32 %v6430_v23, %v6430_v23 }
 0x689   : > { %v5275_v21 = vpop.f32.mrf.mxu1 }
 0x68a   : > { %v2217_v24 = vadd.f32 %v6426_v51, %v6422_v57  ;;  %v2235_v50 = vmul.f32 %v6426_v51, %v6426_v51  ;;  %v6444_v35 = vadd.f32 %v5275_v21, %v2033_v3 }
 0x68b   : > { %v2162_v25 = vpop.f32.mrf.mxu1 }
 0x68c   : > { %v2218_v26 = vadd.f32 %v2217_v24, %v6424_v19  ;;  %v2246_v28 = vadd.f32 %v2235_v50, %v2234_v11  ;;  %v6439_v29 = vadd.f32 %v2162_v25, %v2023_v54  ;;  %v2240_v48 = vmul.f32 %v6444_v35, %v6444_v35 }
 0x68d   : > { %v5276_v31 = vpop.f32.mrf.mxu1 }
 0x68e   : > { %v2247_v33 = vadd.f32 %v2246_v28, %v2236_v47  ;;  %v2219_v34 = vadd.f32 %v2218_v26, %v6430_v23  ;;  %v2238_v38 = vmul.f32 %v6439_v29, %v6439_v29  ;;  %v6451_v44 = vadd.f32 %v5276_v31, %v2038_v30  ;;  %v2058_v26 = vpop.permute.xlu1 %2057 }
 0x68f   : > { %v2165_v36 = vpop.f32.mrf.mxu1 }
 0x690   : > { %v2220_v27 = vadd.f32 %v2219_v34, %v6439_v29  ;;  %v2248_v39 = vadd.f32 %v2247_v33, %v2237_v32  ;;  %v6449_v40 = vadd.f32 %v2165_v36, %v2028_v58  ;;  %v2241_v58 = vmul.f32 %v6451_v44, %v6451_v44 }
 0x691   : > { %v5279_v41 = vpop.f32.mrf.mxu1 }
 0x692   : > { %v2249_v42 = vadd.f32 %v2248_v39, %v2238_v38  ;;  %v2221_v45 = vadd.f32 %v2220_v27, %v6449_v40  ;;  %v2239_v59 = vmul.f32 %v6449_v40, %v6449_v40  ;;  %v6464_v3 = vadd.f32 %v5279_v41, %v2053_v56 }
 0x693   : > { %v2178_v46 = vpop.f32.mrf.mxu1 }
 0x694   : > { %v2222_v49 = vadd.f32 %v2221_v45, %v6444_v35  ;;  %v2250_v52 = vadd.f32 %v2249_v42, %v2239_v59  ;;  %v6459_v53 = vadd.f32 %v2178_v46, %v2043_v37  ;;  %v2244_v33 = vmul.f32 %v6464_v3, %v6464_v3 }
 0x695   : > { %v5280_v54 = vpop.f32.mrf.mxu1 }
 0x696   : > { %v2251_v18 = vadd.f32 %v2250_v52, %v2240_v48  ;;  %v2223_v21 = vadd.f32 %v2222_v49, %v6451_v44  ;;  %v2242_v50 = vmul.f32 %v6459_v53, %v6459_v53  ;;  %v6471_v30 = vadd.f32 %v5280_v54, %v2058_v26 }
 0x697   : > { %v2181_v11 = vpop.f32.mrf.mxu1 }
 0x698   : > { %v2224_v24 = vadd.f32 %v2223_v21, %v6459_v53  ;;  %v2252_v25 = vadd.f32 %v2251_v18, %v2241_v58  ;;  %v6469_v47 = vadd.f32 %v2181_v11, %v2048_v60  ;;  %v2245_v37 = vmul.f32 %v6471_v30, %v6471_v30 }
 0x69a   : > { %v2253_v28 = vadd.f32 %v2252_v25, %v2242_v50  ;;  %v2225_v31 = vadd.f32 %v2224_v24, %v6469_v47  ;;  %v2243_v32 = vmul.f32 %v6469_v47, %v6469_v47 }
 0x69c   : > { %v2226_v34 = vadd.f32 %v2225_v31, %v6464_v3  ;;  %v2254_v36 = vadd.f32 %v2253_v28, %v2243_v32 }
 0x69e   : > { %v2227_v27 = vadd.f32 %v2226_v34, %v6471_v30  ;;  %v2255_v38 = vadd.f32 %v2254_v36, %v2244_v33  ;;  %v2647_v34 = vpop.permute.xlu1 %2646  ;;  %v2642_v36 = vpop.permute.xlu0 %2641 }
 0x6a0   : > { %v2228_v39 = vrot.slane %v2227_v27, 4  ;;  %v2256_v41 = vadd.f32 %v2255_v38, %v2245_v37 }
 0x6a2   : > { %v2229_v42 = vadd.f32 %v2228_v39, %v2227_v27  ;;  %v2257_v45 = vrot.slane %v2256_v41, 4  ;;  %v2719_v37 = vpop.permute.xlu1 %2718  ;;  %v2714_v27 = vpop.permute.xlu0 %2713 }
 0x6a4   : > { %v2258_v59 = vadd.f32 %v2257_v45, %v2256_v41  ;;  %v2230_v60 = vrot.slane %v2229_v42, 2 }
 0x6a6   : > { %v2259_v46 = vrot.slane %v2258_v59, 2  ;;  %v2231_v48 = vadd.f32 %v2230_v60, %v2229_v42  ;;  %v2632_v39 = vpop.permute.xlu0 %2631 }
 0x6a8   : > { %v2232_v49 = vrot.slane %v2231_v48, 1  ;;  %v2260_v52 = vadd.f32 %v2259_v46, %v2258_v59 }
 0x6aa   : > { %v2233_v54 = vadd.f32 %v2232_v49, %v2231_v48  ;;  %v2261_v56 = vrot.slane %v2260_v52, 1  ;;  %v2704_v45 = vpop.permute.xlu0 %2703 }
 0x6ac   : > { %5314 = vmatmul.mubr.f32.vlgmr.msra.gmra.mxu0 %v2233_v54  ;;  %v2262_v58 = vadd.f32 %v2261_v56, %v2260_v52 }
 0x6ad   : > { %5367 = vmatprep.mubr.msk.bf16.mxu0 %vm5824_vm0, %v5823_v0 }
 0x6ae   : > { %5349 = vmatmul.mubr.f32.vlgmr.msra.gmra.mxu1 %v2262_v58  ;;  %v2622_v60 = vpop.permute.xlu0 %2621 }
 0x6af   : > { %5352 = vmatpush3.msra.mxu1 %v6359_v43  ;;  %5353 = vmatprep.mubr.msk.f32.mxu1 %vm5824_vm0, %v5823_v0 }
 0x6b0   : > { %5356 = vmatprep.subr.mxu1 %v5823_v0 }
 0x6b2   : > { %v2694_v48 = vpop.permute.xlu0 %2693 }
 0x76c   : > { %v2329_v18 = vpop.f32.mrf.mxu0 }
 0x76d   : > { %v2334_v21 = vmul.f32 0.0006510417, %v2329_v18 }
 0x76e   : > { %v5315_v11 = vpop.f32.mrf.mxu0  ;;  %v2401_v24 = vpop.f32.mrf.mxu1 }
 0x76f   : > { %v2406_v50 = vmul.f32 %v2334_v21, %v2334_v21  ;;  %v2405_v25 = vmul.f32 0.0006510417, %v2401_v24  ;;  %5354 = vmatmul.mubr.msk.f32.vlgmr.msra.gmra.mxu1 %vm1797_vm6, %v2334_v21 }
 0x770   : > { %v5350_v26 = vpop.f32.mrf.mxu1  ;;  %5357 = vmatpush3.msra.mxu1 %v6359_v43  ;;  %5358 = vmatprep.mubr.msk.f32.mxu1 %vm5824_vm0, %v5823_v0  ;;  %v2637_v43 = vpop.permute.xlu1 %2636 }
 0x771   : > { %v2407_v28 = vsub.f32 %v2405_v25, %v2406_v50  ;;  %5371 = vmatprep.subr.bf16.mxu1 %v5823_v0  ;;  %v6512_v50 = vpop.permute.xlu0 %2611 }
 0x773   : > { %v2408_v31 = vmax.f32 %v2407_v28, 0.0 }
 0x774   : > { %v2709_v42 = vpop.permute.xlu1 %2708 }
 0x775   : > { %v2409_v32 = vadd.f32 1e-05, %v2408_v31 }
 0x777   : > { %5685 = vrsqrt.f32 %v2409_v32 }
 0x778   : > { %v2627_v59 = vpop.permute.xlu1 %2626 }
 0x77c   : > { %v2699_v46 = vpop.permute.xlu1 %2698 }
 0x780   : > { %v6506_v18 = vpop.permute.xlu1 %2616 }
 0x784   : > { %v5686_v33 = vpop.eup %5685 }
 0x785   : > { %5359 = vmatmul.mubr.msk.f32.vlgmr.msra.gmra.mxu1 %vm1797_vm6, %v5686_v33 }
 0x786   : > { %5377 = vmatprep.mubr.msk.bf16.mxu1 %vm5824_vm0, %v5823_v0 }
 0x82f   : > { %v2480_v38 = vpop.f32.mrf.mxu1 }
 0x830   : > { %v6497_v49 = vrot.slane %v2480_v38, %v6370_v22 }
 0x831   : > { %v5355_v41 = vpop.f32.mrf.mxu1 }
 0x832   : > { %v2572_v56 = vsub.f32 %v6471_v30, %v6497_v49  ;;  %v2571_v58 = vsub.f32 %v6464_v3, %v6497_v49  ;;  %v2570_v11 = vsub.f32 %v6469_v47, %v6497_v49  ;;  %v2569_v24 = vsub.f32 %v6459_v53, %v6497_v49  ;;  %v6520_v53 = vpop.permute.xlu1 %2688 }
 0x833   : > { %v2568_v47 = vsub.f32 %v6451_v44, %v6497_v49 }
 0x845   : > { %v2553_v52 = vpop.f32.mrf.mxu1 }
 0x846   : > { %v6500_v54 = vrot.slane %v2553_v52, %v6370_v22 }
 0x847   : > { %v5360_v21 = vpop.f32.mrf.mxu1 }
 0x848   : > { %v2588_v25 = vmul.f32 %v6500_v54, %v2572_v56  ;;  %v2587_v26 = vmul.f32 %v6500_v54, %v2571_v58  ;;  %v2586_v30 = vmul.f32 %v6500_v54, %v2570_v11  ;;  %v2585_v28 = vmul.f32 %v6500_v54, %v2569_v24  ;;  %v6524_v58 = vpop.permute.xlu0 %2683 }
 0x849   : > { %v2567_v56 = vsub.f32 %v6444_v35, %v6497_v49 }
 0x84a   : > { %v2660_v3 = vmul.f32 %v2647_v34, %v2588_v25  ;;  %v2659_v31 = vmul.f32 %v2642_v36, %v2587_v26  ;;  %v2658_v32 = vmul.f32 %v2637_v43, %v2586_v30  ;;  %v2657_v33 = vmul.f32 %v2632_v39, %v2585_v28  ;;  %v2607_v30 = vpop.permute.xlu1 %2606 }
 0x84b   : > { %v2584_v34 = vmul.f32 %v6500_v54, %v2568_v47 }
 0x84c   : > { %v2732_v38 = vadd.f32 %v2719_v37, %v2660_v3  ;;  %v2731_v41 = vadd.f32 %v2714_v27, %v2659_v31  ;;  %v2730_v52 = vadd.f32 %v2709_v42, %v2658_v32  ;;  %v2729_v21 = vadd.f32 %v2704_v45, %v2657_v33  ;;  %v2602_v28 = vpop.permute.xlu0 %2601 }
 0x84d   : > { %v2583_v37 = vmul.f32 %v6500_v54, %v2567_v56  ;;  %v2656_v44 = vmul.f32 %v2627_v59, %v2584_v34  ;;  %v2566_v34 = vsub.f32 %v6449_v40, %v6497_v49  ;;  %v2563_v40 = vsub.f32 %v6424_v19, %v6497_v49 }
 0x84e   : > { %v2744_v11 = vsub.f32 0.0, %v2732_v38  ;;  %v2743_v24 = vsub.f32 0.0, %v2731_v41  ;;  %v2742_v36 = vsub.f32 0.0, %v2730_v52  ;;  %v2741_v43 = vsub.f32 0.0, %v2729_v21  ;;  %v2679_v38 = vpop.permute.xlu1 %2678 }
 0x84f   : > { %v2655_v42 = vmul.f32 %v2622_v60, %v2583_v37  ;;  %v2728_v45 = vadd.f32 %v2699_v46, %v2656_v44  ;;  %v2565_v37 = vsub.f32 %v6439_v29, %v6497_v49  ;;  %v2582_v44 = vmul.f32 %v6500_v54, %v2566_v34 }
 0x850   : > { %v2755_v27 = vmul.f32 1.442695, %v2744_v11  ;;  %v2753_v39 = vmul.f32 1.442695, %v2743_v24  ;;  %v2751_v25 = vmul.f32 1.442695, %v2742_v36  ;;  %v2674_v41 = vpop.permute.xlu0 %2673  ;;  %v2579_v29 = vmul.f32 %v6500_v54, %v2563_v40 }
 0x851   : > { %v2749_v26 = vmul.f32 1.442695, %v2741_v43  ;;  %v2727_v35 = vadd.f32 %v2694_v48, %v2655_v42  ;;  %v2740_v3 = vsub.f32 0.0, %v2728_v45  ;;  %v2581_v42 = vmul.f32 %v6500_v54, %v2565_v37 }
 0x852   : > { %5687 = vpow2.f32 %v2755_v27  ;;  %v2803_v47 = vpop.permute.xlu1 %2802 }
 0x853   : > { %5689 = vpow2.f32 %v2753_v39  ;;  %v2739_v31 = vsub.f32 0.0, %v2727_v35  ;;  %v2747_v32 = vmul.f32 1.442695, %v2740_v3  ;;  %v2654_v3 = vmul.f32 %v6506_v18, %v2582_v44 }
 0x854   : > { %5691 = vpow2.f32 %v2751_v25  ;;  %v2798_v60 = vpop.permute.xlu0 %2797  ;;  %v2564_v25 = vsub.f32 %v6430_v23, %v6497_v49  ;;  %v2653_v23 = vmul.f32 %v6512_v50, %v2581_v42 }
 0x855   : > { %5693 = vpow2.f32 %v2749_v26  ;;  %v2745_v33 = vmul.f32 1.442695, %v2739_v31  ;;  %v2562_v31 = vsub.f32 %v6426_v51, %v6497_v49 }
 0x856   : > { %5695 = vpow2.f32 %v2747_v32  ;;  %v2597_v43 = vpop.permute.xlu1 %2596  ;;  %v2580_v35 = vmul.f32 %v6500_v54, %v2564_v25  ;;  %v2725_v18 = vadd.f32 %v6524_v58, %v2653_v23  ;;  %v4884_v23 = vld [vmem:[%s7203_s16 + $0x4] sm:$0xf] }
 0x857   : > { %5697 = vpow2.f32 %v2745_v33  ;;  %v2561_v33 = vsub.f32 %v6422_v57, %v6497_v49 }
 0x858   : > { %v2592_v39 = vpop.permute.xlu0 %2591  ;;  %v2652_v19 = vmul.f32 %v2607_v30, %v2580_v35 }
 0x85a   : > { %v2669_v32 = vpop.permute.xlu1 %2668 }
 0x85f   : > { %v5688_v59 = vpop.eup %5687 }
 0x860   : > { %v5690_v52 = vpop.eup %5689  ;;  %v2762_v21 = vadd.f32 1.0, %v5688_v59  ;;  %v2664_v59 = vpop.permute.xlu0 %2663 }
 0x861   : > { %v5692_v46 = vpop.eup %5691  ;;  %v2761_v56 = vadd.f32 1.0, %v5690_v52  ;;  %v2578_v52 = vmul.f32 %v6500_v54, %v2562_v31 }
 0x862   : > { %v5694_v11 = vpop.eup %5693  ;;  %5699 = vrcp.f32 %v2762_v21  ;;  %v2760_v48 = vadd.f32 1.0, %v5692_v46  ;;  %v2651_v21 = vmul.f32 %v2602_v28, %v2579_v29  ;;  %v2577_v46 = vmul.f32 %v6500_v54, %v2561_v33  ;;  %v3046_v33 = vld [vmem:[%s7204_s0] sm:$0xff]  ;;  %s7213_s0 = sld [smem:[#allocation12_spill]] }
 0x863   : > { %5701 = vrcp.f32 %v2761_v56  ;;  %v2759_v24 = vadd.f32 1.0, %v5694_v11  ;;  %v5696_v36 = vpop.eup %5695  ;;  %v2726_v56 = vadd.f32 %v6520_v53, %v2654_v3  ;;  %v2650_v34 = vmul.f32 %v2597_v43, %v2578_v52  ;;  %v3409_v52 = vld [vmem:[%s7206_s28 + $0x58] sm:$0xff] }
 0x864   : > { %5703 = vrcp.f32 %v2760_v48  ;;  %v5698_v27 = vpop.eup %5697  ;;  %v2758_v26 = vadd.f32 1.0, %v5696_v36  ;;  %v2793_v36 = vpop.permute.xlu1 %2792  ;;  %v2723_v57 = vadd.f32 %v2674_v41, %v2651_v21  ;;  %v2649_v49 = vmul.f32 %v2592_v39, %v2577_v46  ;;  %v3613_v21 = vld [vmem:[%s7208_s2 + $0x58] sm:$0xff] }
 0x865   : > { %5705 = vrcp.f32 %v2759_v24  ;;  %v2757_v45 = vadd.f32 1.0, %v5698_v27  ;;  %v2724_v24 = vadd.f32 %v2679_v38, %v2652_v19  ;;  %v2788_v27 = vpop.permute.xlu0 %2787  ;;  %v2722_v58 = vadd.f32 %v2669_v32, %v2650_v34  ;;  %v3047_v19 = vld [vmem:[%s7207_s1] sm:$0xff]  ;;  %v3625_v46 = vld [vmem:[%s7209_s7 + $0x58] sm:$0xff]  ;;  %s7215_s1 = sld [smem:[#allocation15_spill]] }
 0x866   : > { %5707 = vrcp.f32 %v2758_v26  ;;  %v2721_v40 = vadd.f32 %v2664_v59, %v2649_v49  ;;  %v3039_v59 = vld [vmem:[%s7205_s26] sm:$0xff]  ;;  %v3619_v49 = vld [vmem:[%s7209_s7 + $0x28] sm:$0xff]  ;;  %s7214_s26 = sld [smem:[#allocation14_spill]] }
 0x867   : > { %5709 = vrcp.f32 %v2757_v45  ;;  %v3606_v34 = vld [vmem:[%s7208_s2 + $0x20] sm:$0xff] }
 0x869   : > { %v2778_v35 = vpop.permute.xlu0 %2777 }
 0x86f   : > { %v5700_v11 = vpop.eup %5699 }
 0x870   : > { %v5702_v48 = vpop.eup %5701  ;;  %v2774_v51 = vmul.f32 %v5700_v11, %v2726_v56  ;;  %v3622_v56 = vld [vmem:[%s7209_s7 + $0x40] sm:$0xff]  ;;  %v3611_v11 = vld [vmem:[%s7208_s2 + $0x48] sm:$0xff] }
 0x871   : > { %v5704_v50 = vpop.eup %5703  ;;  %v2773_v37 = vmul.f32 %v5702_v48, %v2725_v18  ;;  %v3608_v18 = vld [vmem:[%s7208_s2 + $0x30] sm:$0xff]  ;;  %v3623_v48 = vld [vmem:[%s7209_s7 + $0x48] sm:$0xff] }
 0x872   : > { %v5706_v30 = vpop.eup %5705  ;;  %v2810_v44 = vmul.f32 %v2803_v47, %v2774_v51  ;;  %v2772_v28 = vmul.f32 %v5704_v50, %v2724_v24  ;;  %v2783_v47 = vpop.permute.xlu1 %2782  ;;  %v3620_v51 = vld [vmem:[%s7209_s7 + $0x30] sm:$0xff]  ;;  %v3609_v24 = vld [vmem:[%s7208_s2 + $0x38] sm:$0xff] }
 0x873   : > { %v2809_v25 = vmul.f32 %v2798_v60, %v2773_v37  ;;  %v2771_v54 = vmul.f32 %v5706_v30, %v2723_v57  ;;  %v5708_v42 = vpop.eup %5707  ;;  %v3621_v50 = vld [vmem:[%s7209_s7 + $0x38] sm:$0xff]  ;;  %v3607_v37 = vld [vmem:[%s7208_s2 + $0x28] sm:$0xff]  ;;  %v3604_v57 = vld [vmem:[%s7208_s2 + $0x10] sm:$0xff] }
 0x874   : > { %v6551_v53 = vadd.f32 %v2810_v44, %v6094_v6  ;;  %v2808_v26 = vmul.f32 %v2793_v36, %v2772_v28  ;;  %v5710_v45 = vpop.eup %5709  ;;  %v2770_v41 = vmul.f32 %v5708_v42, %v2722_v58  ;;  %v3618_v36 = vld [vmem:[%s7209_s7 + $0x20] sm:$0xff]  ;;  %v3616_v30 = vld [vmem:[%s7209_s7 + $0x10] sm:$0xff]  ;;  %v3617_v28 = vld [vmem:[%s7209_s7 + $0x18] sm:$0xff] }
 0x875   : > { %v6554_v38 = vadd.f32 %v2809_v25, %v6096_v9  ;;  %v2807_v43 = vmul.f32 %v2788_v27, %v2771_v54  ;;  %v2769_v9 = vmul.f32 %v5710_v45, %v2721_v40  ;;  %v3605_v27 = vld [vmem:[%s7208_s2 + $0x18] sm:$0xff]  ;;  %v4145_v44 = vld [vmem:[%s7210_s10 + $0x20] sm:$0xff]  ;;  %v4146_v54 = vld [vmem:[%s7210_s10 + $0x28] sm:$0xff] }
 0x876   : > { %2839 = vrot.lane.b32.xlu1 %v6551_v53, %s5829_s15  ;;  %v6561_v60 = vadd.f32 %v2808_v26, %v6100_v15  ;;  %v2806_v29 = vmul.f32 %v2783_v47, %v2770_v41  ;;  %v3602_v25 = vld [vmem:[%s7208_s2] sm:$0xff]  ;;  %v3603_v58 = vld [vmem:[%s7208_s2 + $0x8] sm:$0xff]  ;;  %v4143_v42 = vld [vmem:[%s7210_s10 + $0x10] sm:$0xff] }
 0x877   : > { %2837 = vrot.lane.b32.xlu0 %v6554_v38, %s5829_s15  ;;  %v2819_v6 = vpack.c.bf16 %v6551_v53, %v6554_v38  ;;  %v6564_v39 = vadd.f32 %v2807_v43, %v6102_v17  ;;  %v2805_v3 = vmul.f32 %v2778_v35, %v2769_v9  ;;  %v3614_v26 = vld [vmem:[%s7209_s7] sm:$0xff]  ;;  %v3615_v43 = vld [vmem:[%s7209_s7 + $0x8] sm:$0xff]  ;;  %v4144_v45 = vld [vmem:[%s7210_s10 + $0x18] sm:$0xff] }
 0x878   : > { %v6572_v31 = vadd.f32 %v2806_v29, %v6106_v20  ;;  %v6588_v20 = vld [vmem:[%s5974_s20 + $0x78] sm:$0xff]  ;;  %v4141_v40 = vld [vmem:[%s7210_s10] sm:$0xff]  ;;  %v4142_v47 = vld [vmem:[%s7210_s10 + $0x8] sm:$0xff] }
 0x879   : > { %5372 = vmatpush3.bf16.msra.mxu1 %v2819_v6  ;;  %v2818_v15 = vpack.c.bf16 %v6561_v60, %v6564_v39  ;;  %v6575_v17 = vadd.f32 %v2805_v3, %v6108_v55  ;;  %v6597_v55 = vld [vmem:[%s5974_s20 + $0x70] sm:$0xff]  ;;  %v4885_v6 = vld [vmem:[%s5984_s4 + $0x2] ss:$0 sm:$0xff] }
 0x87a   : > { %2835 = vrot.lane.b32.xlu1 %v6561_v60, %s5829_s15  ;;  %5373 = vmatprep.subr.bf16.mxu1 %v5823_v0 }
 0x87b   : > { %2833 = vrot.lane.b32.xlu0 %v6564_v39, %s5829_s15  ;;  %v2817_v32 = vpack.c.bf16 %v6572_v31, %v6575_v17 }
 0x87d   : > { %5374 = vmatpush3.bf16.msra.mxu1 %v2818_v15 }
 0x87e   : > { %2831 = vrot.lane.b32.xlu1 %v6572_v31, %s5829_s15  ;;  %5375 = vmatprep.subr.bf16.mxu1 %v5823_v0 }
 0x87f   : > { %2829 = vrot.lane.b32.xlu0 %v6575_v17, %s5829_s15  ;;  %s7211_s15 = sld [smem:[#allocation13_spill]] }
 0x881   : > { %5376 = vmatpush3.bf16.msra.mxu1 %v2817_v32 }
 0x882   : > { %2965 = vrot.lane.b32.xlu1 %v6551_v53, %s5830_s18  ;;  %5391 = vmatprep.subr.mxu1 %v5823_v0 }
 0x883   : > { %2963 = vrot.lane.b32.xlu0 %v6554_v38, %s5830_s18 }
 0x884   : > { %5378 = vmatmul.mubr.msk.bf16.vlgmr.msra.gmra.mxu1 %vm1455_vm5, %v4884_v23 }
 0x885   : > { %5392 = vmatpush3.msra.mxu1 %v6588_v20  ;;  %5423 = vmatprep.mubr.msk.f32.mxu1 %vm5824_vm0, %v5823_v0  ;;  %v4240_v41 = vld [vmem:[%s7211_s15] sm:$0xff]  ;;  %v4242_v9 = vld [vmem:[%s7211_s15 + $0x10] sm:$0xff]  ;;  %v4241_v29 = vld [vmem:[%s7211_s15 + $0x8] sm:$0xff] }
 0x886   : > { %2961 = vrot.lane.b32.xlu1 %v6561_v60, %s5830_s18  ;;  %5393 = vmatprep.subr.mxu1 %v5823_v0 }
 0x887   : > { %2959 = vrot.lane.b32.xlu0 %v6564_v39, %s5830_s18  ;;  %5394 = vmatpush3.msra.mxu1 %v6597_v55 }
 0x888   : > { %5395 = vmatprep.subr.mxu1 %v5823_v0 }
 0x889   : > { %5396 = vmatpush3.msra.mxu1 %v6219_v61  ;;  %v3398_v61 = vld [vmem:[%s7206_s28] sm:$0xff] }
 0x88a   : > { %2957 = vrot.lane.b32.xlu1 %v6572_v31, %s5830_s18  ;;  %5397 = vmatprep.subr.mxu1 %v5823_v0 }
 0x88b   : > { %2955 = vrot.lane.b32.xlu0 %v6575_v17, %s5830_s18  ;;  %5398 = vmatpush3.msra.mxu1 %v6225_v62  ;;  %v3400_v62 = vld [vmem:[%s7206_s28 + $0x10] sm:$0xff]  ;;  %s7212_s18 = sld [smem:[#allocation7_spill]] }
 0x88c   : > { %5399 = vmatprep.subr.mxu1 %v5823_v0 }
 0x88d   : > { %5400 = vmatpush3.msra.mxu1 %v6232_v63  ;;  %v3399_v63 = vld [vmem:[%s7206_s28 + $0x8] sm:$0xff] }
 0x88e   : > { %3366 = vperm.xlu1 %5641, %v3046_v33   ;;  %5401 = vmatprep.subr.mxu1 %v5823_v0 }
 0x88f   : > { %3042 = vperm.xlu0 %5642, %v3039_v59   ;;  %5402 = vmatpush3.msra.mxu1 %v6239_v1  ;;  %v3402_v1 = vld [vmem:[%s7206_s28 + $0x20] sm:$0xff] }
 0x890   : > { %5403 = vmatprep.subr.mxu1 %v5823_v0  ;;  %v4244_v59 = vld [vmem:[%s7211_s15 + $0x20] sm:$0xff] }
 0x891   : > { %5404 = vmatpush3.msra.mxu1 %v6247_v2  ;;  %v3401_v2 = vld [vmem:[%s7206_s28 + $0x18] sm:$0xff] }
 0x892   : > { %3412 = vperm.xlu1 %5641, %v3398_v61   ;;  %5405 = vmatprep.subr.mxu1 %v5823_v0 }
 0x893   : > { %3372 = vperm.xlu0 %5642, %v3047_v19   ;;  %5406 = vmatpush3.msra.mxu1 %v6254_v4  ;;  %v3404_v4 = vld [vmem:[%s7206_s28 + $0x30] sm:$0xff]  ;;  %v4243_v19 = vld [vmem:[%s7211_s15 + $0x18] sm:$0xff] }
 0x894   : > { %5407 = vmatprep.subr.mxu1 %v5823_v0 }
 0x895   : > { %5408 = vmatpush3.msra.mxu1 %v6260_v5  ;;  %v3403_v5 = vld [vmem:[%s7206_s28 + $0x28] sm:$0xff] }
 0x896   : > { %3422 = vperm.xlu1 %5641, %v3400_v62   ;;  %5409 = vmatprep.subr.mxu1 %v5823_v0 }
 0x897   : > { %3417 = vperm.xlu0 %5642, %v3399_v63   ;;  %5410 = vmatpush3.msra.mxu1 %v6267_v7  ;;  %v3406_v7 = vld [vmem:[%s7206_s28 + $0x40] sm:$0xff] }
 0x898   : > { %5411 = vmatprep.subr.mxu1 %v5823_v0 }
 0x899   : > { %5412 = vmatpush3.msra.mxu1 %v6271_v8  ;;  %v3405_v8 = vld [vmem:[%s7206_s28 + $0x38] sm:$0xff] }
 0x89a   : > { %3432 = vperm.xlu1 %5641, %v3402_v1   ;;  %5413 = vmatprep.subr.mxu1 %v5823_v0 }
 0x89b   : > { %3427 = vperm.xlu0 %5642, %v3401_v2   ;;  %5414 = vmatpush3.msra.mxu1 %v6278_v10  ;;  %v3408_v10 = vld [vmem:[%s7206_s28 + $0x50] sm:$0xff] }
 0x89c   : > { %5415 = vmatprep.subr.mxu1 %v5823_v0 }
 0x89d   : > { %5416 = vmatpush3.msra.mxu1 %v6285_v12  ;;  %v3407_v12 = vld [vmem:[%s7206_s28 + $0x48] sm:$0xff] }
 0x89e   : > { %3442 = vperm.xlu1 %5641, %v3404_v4   ;;  %5417 = vmatprep.subr.mxu1 %v5823_v0 }
 0x89f   : > { %3437 = vperm.xlu0 %5642, %v3403_v5   ;;  %5418 = vmatpush3.msra.mxu1 %v6292_v13  ;;  %v3612_v13 = vld [vmem:[%s7208_s2 + $0x50] sm:$0xff] }
 0x8a0   : > { %5419 = vmatprep.subr.mxu1 %v5823_v0 }
 0x8a1   : > { %5420 = vmatpush3.msra.mxu1 %v6299_v14  ;;  %v3624_v14 = vld [vmem:[%s7209_s7 + $0x50] sm:$0xff] }
 0x8a2   : > { %3452 = vperm.xlu1 %5641, %v3406_v7   ;;  %5421 = vmatprep.subr.mxu1 %v5823_v0  ;;  %v4246_v7 = vld [vmem:[%s7211_s15 + $0x30] sm:$0xff] }
 0x8a3   : > { %3447 = vperm.xlu0 %5642, %v3405_v8   ;;  %5422 = vmatpush3.msra.mxu1 %v6306_v16  ;;  %v3610_v16 = vld [vmem:[%s7208_s2 + $0x40] sm:$0xff] }
 0x8a4   : > { %5461 = vmatprep.subr.mxu1 %v5823_v0 }
 0x8a6   : > { %3462 = vperm.xlu1 %5641, %v3408_v10   ;;  %v4245_v10 = vld [vmem:[%s7211_s15 + $0x28] sm:$0xff] }
 0x8a7   : > { %3457 = vperm.xlu0 %5642, %v3407_v12  }
 0x8aa   : > { %4049 = vperm.xlu1 %5641, %v3612_v13  }
 0x8ab   : > { %3467 = vperm.xlu0 %5642, %v3409_v52  }
 0x8ae   : > { %4121 = vperm.xlu1 %5641, %v3624_v14  }
 0x8af   : > { %4054 = vperm.xlu0 %5642, %v3613_v21  }
 0x8b2   : > { %4039 = vperm.xlu1 %5641, %v3610_v16  }
 0x8b3   : > { %4126 = vperm.xlu0 %5642, %v3625_v46   ;;  %v4888_v46 = vld [vmem:[%s5984_s4 + $0x3] ss:$0 sm:$0xff] }
 0x8b6   : > { %4111 = vperm.xlu1 %5641, %v3622_v56   ;;  %v4248_v56 = vld [vmem:[%s7211_s15 + $0x40] sm:$0xff] }
 0x8b7   : > { %4044 = vperm.xlu0 %5642, %v3611_v11  }
 0x8ba   : > { %4029 = vperm.xlu1 %5641, %v3608_v18   ;;  %v4247_v18 = vld [vmem:[%s7211_s15 + $0x38] sm:$0xff] }
 0x8bb   : > { %4116 = vperm.xlu0 %5642, %v3623_v48  }
 0x8be   : > { %4101 = vperm.xlu1 %5641, %v3620_v51  }
 0x8bf   : > { %4034 = vperm.xlu0 %5642, %v3609_v24  }
 0x8c2   : > { %4019 = vperm.xlu1 %5641, %v3606_v34  }
 0x8c3   : > { %4106 = vperm.xlu0 %5642, %v3621_v50  }
 0x8c6   : > { %4091 = vperm.xlu1 %5641, %v3618_v36  }
 0x8c7   : > { %4024 = vperm.xlu0 %5642, %v3607_v37   ;;  %v4250_v37 = vld [vmem:[%s7211_s15 + $0x50] sm:$0xff] }
 0x8ca   : > { %4009 = vperm.xlu1 %5641, %v3604_v57   ;;  %v2864_v57 = vld [vmem:[%s7203_s16] sm:$0xf] }
 0x8cb   : > { %4096 = vperm.xlu0 %5642, %v3619_v49  }
 0x8ce   : > { %4081 = vperm.xlu1 %5641, %v3616_v30   ;;  %v4249_v30 = vld [vmem:[%s7211_s15 + $0x48] sm:$0xff] }
 0x8cf   : > { %4014 = vperm.xlu0 %5642, %v3605_v27  }
 0x8d2   : > { %4205 = vperm.xlu1 %5641, %v4145_v44  }
 0x8d3   : > { %4086 = vperm.xlu0 %5642, %v3617_v28  }
 0x8d6   : > { %3999 = vperm.xlu1 %5641, %v3602_v25  }
 0x8d7   : > { %4210 = vperm.xlu0 %5642, %v4146_v54  }
 0x8da   : > { %4071 = vperm.xlu1 %5641, %v3614_v26  }
 0x8db   : > { %4004 = vperm.xlu0 %5642, %v3603_v58  }
 0x8de   : > { %4195 = vperm.xlu1 %5641, %v4143_v42   ;;  %v4251_v42 = vld [vmem:[%s7211_s15 + $0x58] sm:$0xff] }
 0x8df   : > { %4076 = vperm.xlu0 %5642, %v3615_v43  }
 0x8e2   : > { %4185 = vperm.xlu1 %5641, %v4141_v40  }
 0x8e3   : > { %4200 = vperm.xlu0 %5642, %v4144_v45  }
 0x8e6   : > { %4254 = vperm.xlu1 %5641, %v4240_v41  }
 0x8e7   : > { %4190 = vperm.xlu0 %5642, %v4142_v47  }
 0x8e8   : > { %v2840_v35 = vpop.permute.xlu1 %2839 }
 0x8e9   : > { %v2853_v3 = vsel %vm2847_vm8, 0.0, %v2840_v35  ;;  %v2838_v15 = vpop.permute.xlu0 %2837  ;;  %v4889_v35 = vld [vmem:[%s7203_s16 + $0x8] sm:$0xf] }
 0x8ea   : > { %v2863_v32 = vmul.f32 %v4885_v6, %v2853_v3  ;;  %v2852_v23 = vsel %vm2847_vm8, 0.0, %v2838_v15  ;;  %4264 = vperm.xlu1 %5641, %v4242_v9   ;;  %v6726_v3 = vld [vmem:[%s5974_s20 + $0x60] sm:$0xff]  ;;  %v6731_v15 = vld [vmem:[%s5974_s20 + $0x58] sm:$0xff] }
 0x8eb   : > { %v2862_v33 = vmul.f32 %v4885_v6, %v2852_v23  ;;  %4259 = vperm.xlu0 %5642, %v4241_v29   ;;  %v6721_v29 = vld [vmem:[%s5974_s20 + $0x68] sm:$0xff] }
 0x8ec   : > { %v2836_v61 = vpop.permute.xlu1 %2835  ;;  %v6741_v23 = vld [vmem:[%s5974_s20 + $0x48] sm:$0xff] }
 0x8ed   : > { %v2867_v62 = vpack.c.bf16 %v2863_v32, %v2862_v33  ;;  %v2851_v63 = vsel %vm2847_vm8, 0.0, %v2836_v61  ;;  %v2834_v1 = vpop.permute.xlu0 %2833  ;;  %v6736_v32 = vld [vmem:[%s5974_s20 + $0x50] sm:$0xff]  ;;  %v6746_v33 = vld [vmem:[%s5974_s20 + $0x40] sm:$0xff] }
 0x8ee   : > { %v2861_v2 = vmul.f32 %v4885_v6, %v2851_v63  ;;  %v2850_v4 = vsel %vm2847_vm8, 0.0, %v2834_v1  ;;  %4274 = vperm.xlu1 %5641, %v4244_v59   ;;  %v6751_v59 = vld [vmem:[%s5974_s20 + $0x38] sm:$0xff]  ;;  %v6756_v61 = vld [vmem:[%s5974_s20 + $0x30] sm:$0xff] }
 0x8ef   : > { %v2860_v5 = vmul.f32 %v4885_v6, %v2850_v4  ;;  %5362 = vmatpush3.bf16.msra.mxu0 %v2867_v62  ;;  %4269 = vperm.xlu0 %5642, %v4243_v19   ;;  %v6761_v19 = vld [vmem:[%s5974_s20 + $0x28] sm:$0xff]  ;;  %v6766_v62 = vld [vmem:[%s5974_s20 + $0x20] sm:$0xff]  ;;  %v6771_v63 = vld [vmem:[%s5974_s20 + $0x18] sm:$0xff] }
 0x8f0   : > { %v2832_v8 = vpop.permute.xlu1 %2831  ;;  %5363 = vmatprep.subr.bf16.mxu0 %v5823_v0  ;;  %v6776_v1 = vld [vmem:[%s5974_s20 + $0x10] sm:$0xff]  ;;  %v6786_v4 = vld [vmem:[%s5974_s20] sm:$0xff] }
 0x8f1   : > { %v2866_v12 = vpack.c.bf16 %v2861_v2, %v2860_v5  ;;  %v2849_v13 = vsel %vm2847_vm8, 0.0, %v2832_v8  ;;  %v2830_v52 = vpop.permute.xlu0 %2829  ;;  %v6781_v2 = vld [vmem:[%s5974_s20 + $0x8] sm:$0xff] }
 0x8f2   : > { %v2859_v14 = vmul.f32 %v4885_v6, %v2849_v13  ;;  %v2848_v21 = vsel %vm2847_vm8, 0.0, %v2830_v52  ;;  %4284 = vperm.xlu1 %5641, %v4246_v7  }
 0x8f3   : > { %v2858_v16 = vmul.f32 %v4885_v6, %v2848_v21  ;;  %5364 = vmatpush3.bf16.msra.mxu0 %v2866_v12  ;;  %4279 = vperm.xlu0 %5642, %v4245_v10  }
 0x8f4   : > { %v2966_v11 = vpop.permute.xlu1 %2965  ;;  %5365 = vmatprep.subr.bf16.mxu0 %v5823_v0 }
 0x8f5   : > { %v2865_v48 = vpack.c.bf16 %v2859_v14, %v2858_v16  ;;  %v2979_v51 = vsel %vm2973_vm9, %v2966_v11, 0.0  ;;  %v2964_v24 = vpop.permute.xlu0 %2963 }
 0x8f6   : > { %v2989_v34 = vmul.f32 %v4888_v46, %v2979_v51  ;;  %v2978_v50 = vsel %vm2973_vm9, %v2964_v24, 0.0  ;;  %4294 = vperm.xlu1 %5641, %v4248_v56  }
 0x8f7   : > { %v2988_v36 = vmul.f32 %v4888_v46, %v2978_v50  ;;  %4289 = vperm.xlu0 %5642, %v4247_v18   ;;  %5366 = vmatpush3.bf16.msra.mxu0 %v2865_v48 }
 0x8f8   : > { %v2962_v49 = vpop.permute.xlu1 %2961  ;;  %5381 = vmatprep.subr.bf16.mxu0 %v5823_v0 }
 0x8f9   : > { %v2994_v27 = vpack.c.bf16 %v2989_v34, %v2988_v36  ;;  %v2977_v44 = vsel %vm2973_vm9, %v2962_v49, 0.0  ;;  %v2960_v28 = vpop.permute.xlu0 %2959 }
 0x8fa   : > { %v2987_v25 = vmul.f32 %v4888_v46, %v2977_v44  ;;  %v2976_v54 = vsel %vm2973_vm9, %v2960_v28, 0.0  ;;  %4304 = vperm.xlu1 %5641, %v4250_v37   ;;  %5368 = vmatmul.mubr.msk.bf16.vlgmr.msra.gmra.mxu0 %vm1455_vm5, %v2864_v57 }
 0x8fb   : > { %v2986_v26 = vmul.f32 %v4888_v46, %v2976_v54  ;;  %4299 = vperm.xlu0 %5642, %v4249_v30   ;;  %5382 = vmatpush3.bf16.msra.mxu0 %v2994_v27 }
 0x8fc   : > { %v2958_v58 = vpop.permute.xlu1 %2957  ;;  %5383 = vmatprep.subr.bf16.mxu0 %v5823_v0  ;;  %5387 = vmatprep.mubr.msk.bf16.mxu0 %vm5824_vm0, %v5823_v0 }
 0x8fd   : > { %v2993_v43 = vpack.c.bf16 %v2987_v25, %v2986_v26  ;;  %v2975_v40 = vsel %vm2973_vm9, %v2958_v58, 0.0  ;;  %v2956_v45 = vpop.permute.xlu0 %2955  ;;  %v6797_v26 = vld [vmem:[%s5979_s27] sm:$0xff] }
 0x8fe   : > { %v2985_v41 = vmul.f32 %v4888_v46, %v2975_v40  ;;  %v2974_v47 = vsel %vm2973_vm9, %v2956_v45, 0.0 }
 0x8ff   : > { %v2984_v6 = vmul.f32 %v4888_v46, %v2974_v47  ;;  %4309 = vperm.xlu0 %5642, %v4251_v42   ;;  %5384 = vmatpush3.bf16.msra.mxu0 %v2993_v43 }
 0x900   : > { %5385 = vmatprep.subr.bf16.mxu0 %v5823_v0 }
 0x901   : > { %v2992_v9 = vpack.c.bf16 %v2985_v41, %v2984_v6 }
 0x903   : > { %5386 = vmatpush3.bf16.msra.mxu0 %v2992_v9 }
 0x904   : > { %5426 = vmatprep.subr.mxu0 %v5823_v0 }
 0x906   : > { %5388 = vmatmul.mubr.msk.bf16.vlgmr.msra.gmra.mxu0 %vm1455_vm5, %v4889_v35 }
 0x907   : > { %5427 = vmatpush3.msra.mxu0 %v6588_v20  ;;  %5458 = vmatprep.mubr.msk.f32.mxu0 %vm5824_vm0, %v5823_v0 }
 0x908   : > { %5428 = vmatprep.subr.mxu0 %v5823_v0 }
 0x909   : > { %5429 = vmatpush3.msra.mxu0 %v6597_v55 }
 0x90a   : > { %5430 = vmatprep.subr.mxu0 %v5823_v0  ;;  %v3043_v56 = vpop.permute.xlu0 %3042 }
 0x90b   : > { %5431 = vmatpush3.msra.mxu0 %v6721_v29 }
 0x90c   : > { %5432 = vmatprep.subr.mxu0 %v5823_v0 }
 0x90d   : > { %5433 = vmatpush3.msra.mxu0 %v6726_v3 }
 0x90e   : > { %5434 = vmatprep.subr.mxu0 %v5823_v0 }
 0x90f   : > { %5435 = vmatpush3.msra.mxu0 %v6731_v15 }
 0x910   : > { %5436 = vmatprep.subr.mxu0 %v5823_v0 }
 0x911   : > { %5437 = vmatpush3.msra.mxu0 %v6736_v32 }
 0x912   : > { %5438 = vmatprep.subr.mxu0 %v5823_v0 }
 0x913   : > { %5439 = vmatpush3.msra.mxu0 %v6741_v23 }
 0x914   : > { %5440 = vmatprep.subr.mxu0 %v5823_v0 }
 0x915   : > { %5441 = vmatpush3.msra.mxu0 %v6746_v33 }
 0x916   : > { %5442 = vmatprep.subr.mxu0 %v5823_v0 }
 0x917   : > { %5443 = vmatpush3.msra.mxu0 %v6751_v59 }
 0x918   : > { %5444 = vmatprep.subr.mxu0 %v5823_v0 }
 0x919   : > { %5445 = vmatpush3.msra.mxu0 %v6756_v61 }
 0x91a   : > { %5446 = vmatprep.subr.mxu0 %v5823_v0 }
 0x91b   : > { %5447 = vmatpush3.msra.mxu0 %v6761_v19 }
 0x91c   : > { %5448 = vmatprep.subr.mxu0 %v5823_v0 }
 0x91d   : > { %5449 = vmatpush3.msra.mxu0 %v6766_v62 }
 0x91e   : > { %5450 = vmatprep.subr.mxu0 %v5823_v0 }
 0x91f   : > { %5451 = vmatpush3.msra.mxu0 %v6771_v63 }
 0x920   : > { %5452 = vmatprep.subr.mxu0 %v5823_v0 }
 0x921   : > { %5453 = vmatpush3.msra.mxu0 %v6776_v1 }
 0x922   : > { %5454 = vmatprep.subr.mxu0 %v5823_v0 }
 0x923   : > { %5455 = vmatpush3.msra.mxu0 %v6781_v2 }
 0x924   : > { %5456 = vmatprep.subr.mxu0 %v5823_v0 }
 0x925   : > { %5457 = vmatpush3.msra.mxu0 %v6786_v4 }
 0x926   : > { %5485 = vmatprep.subr.mxu0 %v5823_v0 }
 0x944   : > { %v2948_v5 = vpop.f32.mrf.mxu1 }
 0x946   : > { %v5379_v7 = vpop.f32.mrf.mxu1 }
 0x947   : > { %v5655_v7 = vld [vmem:[%s7212_s18] sm:$0xff]  }
 0x948   : > { %v2951_v8 = vpop.f32.mrf.mxu1 }
 0x94a   : > { %v5380_v10 = vpop.f32.mrf.mxu1 }
 0x9ba   : > { %v2905_v12 = vpop.f32.mrf.mxu0 }
 0x9bb   : > { %v2949_v21 = vadd.f32 %v2948_v5, %v2905_v12 }
 0x9bc   : > { %v5369_v13 = vpop.f32.mrf.mxu0 }
 0x9be   : > { %v2908_v52 = vpop.f32.mrf.mxu0 }
 0x9c0   : > { %v5370_v14 = vpop.f32.mrf.mxu0 }
 0x9c6   : > { %v3032_v16 = vpop.f32.mrf.mxu0 }
 0x9c7   : > { %v3038_v46 = vadd.f32 %v3032_v16, %v2949_v21 }
 0x9c8   : > { %v5389_v11 = vpop.f32.mrf.mxu0 }
 0x9c9   : > { %v6790_v18 = vadd.f32 %v3043_v56, %v3038_v46  ;;  %v3367_v46 = vpop.permute.xlu1 %3366  ;;  %v3373_v11 = vpop.permute.xlu0 %3372 }
 0x9ca   : > { %v3035_v48 = vpop.f32.mrf.mxu0 }
 0x9cb   : > { %v3048_v51 = vrot.slane %v6790_v18, 4  ;;  %v3054_v24 = vmul.f32 %v6790_v18, %v6790_v18 }
 0x9cc   : > { %v5390_v34 = vpop.f32.mrf.mxu0 }
 0x9cd   : > { %v3049_v50 = vadd.f32 %v3048_v51, %v6790_v18  ;;  %v3055_v36 = vrot.slane %v3054_v24, 4 }
 0x9cf   : > { %v3050_v37 = vrot.slane %v3049_v50, 2  ;;  %v3056_v57 = vadd.f32 %v3055_v36, %v3054_v24 }
 0x9d1   : > { %v3051_v49 = vadd.f32 %v3050_v37, %v3049_v50  ;;  %v3057_v30 = vrot.slane %v3056_v57, 2 }
 0x9d3   : > { %v3052_v27 = vrot.slane %v3051_v49, 1  ;;  %v3058_v44 = vadd.f32 %v3057_v30, %v3056_v57 }
 0x9d5   : > { %v3053_v28 = vadd.f32 %v3052_v27, %v3051_v49  ;;  %v3059_v25 = vrot.slane %v3058_v44, 1 }
 0x9d7   : > { %5424 = vmatmul.mubr.f32.vlgmr.msra.gmra.mxu1 %v3053_v28  ;;  %v3060_v54 = vadd.f32 %v3059_v25, %v3058_v44  ;;  %v5656_v44 = vld [vmem:[%s7212_s18 + $0x8] sm:$0xff]   ;;  %v5657_v28 = vld [vmem:[%s7212_s18 + $0x10] sm:$0xff]   ;;  %v5658_v25 = vld [vmem:[%s7212_s18 + $0x18] sm:$0xff]  }
 0x9d8   : > { %5462 = vmatpush3.msra.mxu1 %v6797_v26  ;;  %5463 = vmatprep.mubr.msk.f32.mxu1 %vm5824_vm0, %v5823_v0 }
 0x9d9   : > { %5459 = vmatmul.mubr.f32.vlgmr.msra.gmra.mxu0 %v3060_v54  ;;  %5466 = vmatprep.subr.mxu1 %v5823_v0  ;;  %v5659_v54 = vld [vmem:[%s7212_s18 + $0x20] sm:$0xff]  }
 0x9da   : > { %5486 = vmatpush3.msra.mxu0 %v6588_v20  ;;  %5517 = vmatprep.mubr.msk.f32.mxu0 %vm5824_vm0, %v5823_v0 }
 0x9db   : > { %5487 = vmatprep.subr.mxu0 %v5823_v0 }
 0x9dc   : > { %5488 = vmatpush3.msra.mxu0 %v6597_v55 }
 0x9dd   : > { %5489 = vmatprep.subr.mxu0 %v5823_v0 }
 0x9de   : > { %5490 = vmatpush3.msra.mxu0 %v6721_v29 }
 0x9df   : > { %5491 = vmatprep.subr.mxu0 %v5823_v0 }
 0x9e0   : > { %5492 = vmatpush3.msra.mxu0 %v6726_v3 }
 0x9e1   : > { %5493 = vmatprep.subr.mxu0 %v5823_v0 }
 0x9e2   : > { %5494 = vmatpush3.msra.mxu0 %v6731_v15 }
 0x9e3   : > { %5495 = vmatprep.subr.mxu0 %v5823_v0 }
 0x9e4   : > { %5496 = vmatpush3.msra.mxu0 %v6736_v32 }
 0x9e5   : > { %5497 = vmatprep.subr.mxu0 %v5823_v0 }
 0x9e6   : > { %5498 = vmatpush3.msra.mxu0 %v6741_v23 }
 0x9e7   : > { %5499 = vmatprep.subr.mxu0 %v5823_v0 }
 0x9e8   : > { %5500 = vmatpush3.msra.mxu0 %v6746_v33 }
 0x9e9   : > { %5501 = vmatprep.subr.mxu0 %v5823_v0 }
 0x9ea   : > { %5502 = vmatpush3.msra.mxu0 %v6751_v59 }
 0x9eb   : > { %5503 = vmatprep.subr.mxu0 %v5823_v0 }
 0x9ec   : > { %5504 = vmatpush3.msra.mxu0 %v6756_v61 }
 0x9ed   : > { %5505 = vmatprep.subr.mxu0 %v5823_v0 }
 0x9ee   : > { %5506 = vmatpush3.msra.mxu0 %v6761_v19 }
 0x9ef   : > { %5507 = vmatprep.subr.mxu0 %v5823_v0 }
 0x9f0   : > { %5508 = vmatpush3.msra.mxu0 %v6766_v62 }
 0x9f1   : > { %5509 = vmatprep.subr.mxu0 %v5823_v0 }
 0x9f2   : > { %5510 = vmatpush3.msra.mxu0 %v6771_v63 }
 0x9f3   : > { %5511 = vmatprep.subr.mxu0 %v5823_v0 }
 0x9f4   : > { %5512 = vmatpush3.msra.mxu0 %v6776_v1 }
 0x9f5   : > { %5513 = vmatprep.subr.mxu0 %v5823_v0 }
 0x9f6   : > { %5514 = vmatpush3.msra.mxu0 %v6781_v2 }
 0x9f7   : > { %5515 = vmatprep.subr.mxu0 %v5823_v0 }
 0x9f8   : > { %5516 = vmatpush3.msra.mxu0 %v6786_v4 }
 0x9f9   : > { %5555 = vmatprep.subr.mxu0 %v5823_v0 }
 0xa97   : > { %v3127_v58 = vpop.f32.mrf.mxu1 }
 0xa98   : > { %v3131_v42 = vmul.f32 0.010416667, %v3127_v58 }
 0xa99   : > { %v5425_v43 = vpop.f32.mrf.mxu1  ;;  %v3198_v40 = vpop.f32.mrf.mxu0 }
 0xa9a   : > { %v3203_v45 = vmul.f32 %v3131_v42, %v3131_v42  ;;  %v3202_v41 = vmul.f32 0.010416667, %v3198_v40  ;;  %5464 = vmatmul.mubr.msk.f32.vlgmr.msra.gmra.mxu1 %vm1797_vm6, %v3131_v42 }
 0xa9b   : > { %v5460_v47 = vpop.f32.mrf.mxu0  ;;  %5467 = vmatpush3.msra.mxu1 %v6797_v26  ;;  %5468 = vmatprep.mubr.msk.f32.mxu1 %vm5824_vm0, %v5823_v0 }
 0xa9c   : > { %v3204_v6 = vsub.f32 %v3202_v41, %v3203_v45 }
 0xa9e   : > { %v3205_v9 = vmax.f32 %v3204_v6, 0.0 }
 0xaa0   : > { %v3206_v35 = vadd.f32 1e-05, %v3205_v9 }
 0xaa2   : > { %5711 = vrsqrt.f32 %v3206_v35 }
 0xaaf   : > { %v5712_v5 = vpop.eup %5711 }
 0xab0   : > { %5469 = vmatmul.mubr.msk.f32.vlgmr.msra.gmra.mxu1 %vm1797_vm6, %v5712_v5 }
 0xab1   : > { %5473 = vmatprep.mubr.msk.bf16.mxu1 %vm1797_vm6, %v5655_v7 }
 0xb5a   : > { %v3277_v8 = vpop.f32.mrf.mxu1 }
 0xb5b   : > { %v3357_v12 = vrot.slane %v3277_v8, %v6370_v22 }
 0xb5c   : > { %v5465_v10 = vpop.f32.mrf.mxu1 }
 0xb5d   : > { %v3358_v52 = vsub.f32 %v6790_v18, %v3357_v12 }
 0xb70   : > { %v3350_v13 = vpop.f32.mrf.mxu1 }
 0xb71   : > { %v3362_v14 = vrot.slane %v3350_v13, %v6370_v22 }
 0xb72   : > { %v5470_v21 = vpop.f32.mrf.mxu1 }
 0xb73   : > { %v3363_v16 = vmul.f32 %v3362_v14, %v3358_v52 }
 0xb75   : > { %v3369_v56 = vmul.f32 %v3367_v46, %v3363_v16 }
 0xb77   : > { %v3375_v48 = vadd.f32 %v3373_v11, %v3369_v56 }
 0xb79   : > { %v3377_v51 = vmul.f32 0.044715, %v3375_v48  ;;  %v3376_v57 = vmul.f32 0.5, %v3375_v48 }
 0xb7b   : > { %v3378_v24 = vmul.f32 %v3377_v51, %v3375_v48 }
 0xb7d   : > { %v3379_v34 = vmul.f32 %v3378_v24, %v3375_v48 }
 0xb7f   : > { %v3380_v50 = vadd.f32 %v3379_v34, %v3375_v48 }
 0xb81   : > { %v3381_v36 = vmul.f32 0.7978846, %v3380_v50 }
 0xb83   : > { %5713 = vtanh.f32 %v3381_v36 }
 0xb90   : > { %v5714_v37 = vpop.eup %5713 }
 0xb91   : > { %v3383_v18 = vadd.f32 1.0, %v5714_v37 }
 0xb93   : > { %v3384_v49 = vmul.f32 %v3383_v18, %v3376_v57 }
 0xb95   : > { %v3397_v30 = vpack.c.bf16 %v3384_v49, %v3384_v49 }
 0xb97   : > { %5584 = vmatprep.subr.msk.bf16.mxu1 %vm2108_vm7, %v3397_v30  ;;  %v3519_v27 = vsel %vm2108_vm7, %v3397_v30, 0 }
 0xb98   : > { %5472 = vmatpush3.bf16.msra.mxu1 %v3519_v27 }
 0xb99   : > { %5520 = vmatprep.subr.mxu1 %v5823_v0 }
 0xb9b   : > { %5474 = vmatmul.mubr.msk.bf16.vlgmr.msra.gmra.mxu1 %vm1797_vm6, %v5656_v44 }
 0xb9c   : > { %5477 = vmatprep.mubr.msk.bf16.mxu1 %vm1797_vm6, %v5657_v28  ;;  %5521 = vmatpush3.msra.mxu1 %v6588_v20  ;;  %v5660_v20 = vld [vmem:[%s7212_s18 + $0x28] sm:$0xff]  }
 0xb9d   : > { %5522 = vmatprep.subr.mxu1 %v5823_v0 }
 0xb9e   : > { %5523 = vmatpush3.msra.mxu1 %v6597_v55  ;;  %v3413_v55 = vpop.permute.xlu1 %3412 }
 0xb9f   : > { %5524 = vmatprep.subr.mxu1 %v5823_v0 }
 0xba0   : > { %5525 = vmatpush3.msra.mxu1 %v6721_v29  ;;  %v3418_v29 = vpop.permute.xlu0 %3417 }
 0xba1   : > { %5526 = vmatprep.subr.mxu1 %v5823_v0 }
 0xba2   : > { %5527 = vmatpush3.msra.mxu1 %v6726_v3  ;;  %v3423_v3 = vpop.permute.xlu1 %3422 }
 0xba3   : > { %5478 = vmatmul.mubr.msk.bf16.gmra.mxu1 %vm1797_vm6, %v5658_v25  ;;  %5528 = vmatprep.subr.mxu1 %v5823_v0 }
 0xba4   : > { %5481 = vmatprep.mubr.msk.bf16.mxu1 %vm1797_vm6, %v5659_v54  ;;  %5529 = vmatpush3.msra.mxu1 %v6731_v15  ;;  %v3428_v15 = vpop.permute.xlu0 %3427 }
 0xba5   : > { %5530 = vmatprep.subr.mxu1 %v5823_v0 }
 0xba6   : > { %5531 = vmatpush3.msra.mxu1 %v6736_v32 }
 0xba7   : > { %5532 = vmatprep.subr.mxu1 %v5823_v0 }
 0xba8   : > { %5533 = vmatpush3.msra.mxu1 %v6741_v23 }
 0xba9   : > { %5534 = vmatprep.subr.mxu1 %v5823_v0 }
 0xbaa   : > { %5535 = vmatpush3.msra.mxu1 %v6746_v33  ;;  %v3433_v33 = vpop.permute.xlu1 %3432 }
 0xbab   : > { %5482 = vmatmul.mubr.msk.bf16.gmra.mxu1 %vm1797_vm6, %v5660_v20  ;;  %5536 = vmatprep.subr.mxu1 %v5823_v0 }
 0xbac   : > { %5537 = vmatpush3.msra.mxu1 %v6751_v59  ;;  %5552 = vmatprep.mubr.msk.f32.mxu1 %vm5824_vm0, %v5823_v0 }
 0xbad   : > { %5538 = vmatprep.subr.mxu1 %v5823_v0 }
 0xbae   : > { %5539 = vmatpush3.msra.mxu1 %v6756_v61 }
 0xbaf   : > { %5540 = vmatprep.subr.mxu1 %v5823_v0 }
 0xbb0   : > { %5541 = vmatpush3.msra.mxu1 %v6761_v19  ;;  %v3438_v19 = vpop.permute.xlu0 %3437 }
 0xbb1   : > { %5542 = vmatprep.subr.mxu1 %v5823_v0 }
 0xbb2   : > { %5543 = vmatpush3.msra.mxu1 %v6766_v62 }
 0xbb3   : > { %5544 = vmatprep.subr.mxu1 %v5823_v0 }
 0xbb4   : > { %5545 = vmatpush3.msra.mxu1 %v6771_v63  ;;  %v3448_v35 = vpop.permute.xlu0 %3447 }
 0xbb5   : > { %5546 = vmatprep.subr.mxu1 %v5823_v0 }
 0xbb6   : > { %5547 = vmatpush3.msra.mxu1 %v6776_v1 }
 0xbb7   : > { %5548 = vmatprep.subr.mxu1 %v5823_v0 }
 0xbb8   : > { %5549 = vmatpush3.msra.mxu1 %v6781_v2  ;;  %v3458_v34 = vpop.permute.xlu0 %3457 }
 0xbb9   : > { %5550 = vmatprep.subr.mxu1 %v5823_v0 }
 0xbba   : > { %5551 = vmatpush3.msra.mxu1 %v6786_v4  ;;  %v3443_v4 = vpop.permute.xlu1 %3442 }
 0xbbb   : > { %5560 = vmatprep.subr.mxu1 %v5823_v0 }
 0xbbe   : > { %v3453_v52 = vpop.permute.xlu1 %3452 }
 0xbc2   : > { %v3463_v30 = vpop.permute.xlu1 %3462 }
 0xc5b   : > { %v5475_v32 = vpop.f32.mrf.mxu1 }
 0xc5c   : > { %v6896_v63 = vadd.f32 %v5475_v32, %v3423_v3 }
 0xc5d   : > { %v3555_v23 = vpop.f32.mrf.mxu1 }
 0xc5e   : > { %v6894_v61 = vadd.f32 %v3555_v23, %v3413_v55  ;;  %v3645_v41 = vmul.f32 %v6896_v63, %v6896_v63 }
 0xc5f   : > { %v5476_v59 = vpop.f32.mrf.mxu1 }
 0xc60   : > { %v3643_v58 = vmul.f32 %v6894_v61, %v6894_v61  ;;  %v6902_v42 = vadd.f32 %v5476_v59, %v3428_v15  ;;  %v3468_v15 = vpop.permute.xlu0 %3467 }
 0xc61   : > { %v3558_v62 = vpop.f32.mrf.mxu1 }
 0xc62   : > { %v6898_v1 = vadd.f32 %v3558_v62, %v3418_v29  ;;  %v3646_v7 = vmul.f32 %v6902_v42, %v6902_v42 }
 0xc63   : > { %v5479_v2 = vpop.f32.mrf.mxu1 }
 0xc64   : > { %v3626_v43 = vadd.f32 %v6898_v1, %v6894_v61  ;;  %v3644_v40 = vmul.f32 %v6898_v1, %v6898_v1  ;;  %v6916_v12 = vadd.f32 %v5479_v2, %v3443_v4 }
 0xc65   : > { %v3571_v45 = vpop.f32.mrf.mxu1 }
 0xc66   : > { %v3627_v47 = vadd.f32 %v3626_v43, %v6896_v63  ;;  %v3655_v6 = vadd.f32 %v3644_v40, %v3643_v58  ;;  %v6911_v9 = vadd.f32 %v3571_v45, %v3433_v33  ;;  %v3649_v36 = vmul.f32 %v6916_v12, %v6916_v12 }
 0xc67   : > { %v5480_v5 = vpop.f32.mrf.mxu1 }
 0xc68   : > { %v3656_v8 = vadd.f32 %v3655_v6, %v3645_v41  ;;  %v3628_v10 = vadd.f32 %v3627_v47, %v6902_v42  ;;  %v3647_v21 = vmul.f32 %v6911_v9, %v6911_v9  ;;  %v6923_v48 = vadd.f32 %v5480_v5, %v3448_v35 }
 0xc69   : > { %v3574_v13 = vpop.f32.mrf.mxu1 }
 0xc6a   : > { %v3629_v14 = vadd.f32 %v3628_v10, %v6911_v9  ;;  %v3657_v16 = vadd.f32 %v3656_v8, %v3646_v7  ;;  %v6921_v46 = vadd.f32 %v3574_v13, %v3438_v19  ;;  %v3650_v27 = vmul.f32 %v6923_v48, %v6923_v48 }
 0xc6b   : > { %v5483_v56 = vpop.f32.mrf.mxu1 }
 0xc6c   : > { %v3658_v11 = vadd.f32 %v3657_v16, %v3647_v21  ;;  %v3630_v51 = vadd.f32 %v3629_v14, %v6921_v46  ;;  %v3648_v24 = vmul.f32 %v6921_v46, %v6921_v46  ;;  %v6936_v25 = vadd.f32 %v5483_v56, %v3463_v30 }
 0xc6d   : > { %v3587_v50 = vpop.f32.mrf.mxu1 }
 0xc6e   : > { %v3631_v37 = vadd.f32 %v3630_v51, %v6916_v12  ;;  %v3659_v57 = vadd.f32 %v3658_v11, %v3648_v24  ;;  %v6931_v18 = vadd.f32 %v3587_v50, %v3453_v52  ;;  %v3653_v19 = vmul.f32 %v6936_v25, %v6936_v25 }
 0xc6f   : > { %v5484_v49 = vpop.f32.mrf.mxu1 }
 0xc70   : > { %v3660_v44 = vadd.f32 %v3659_v57, %v3649_v36  ;;  %v3632_v28 = vadd.f32 %v3631_v37, %v6923_v48  ;;  %v3651_v55 = vmul.f32 %v6931_v18, %v6931_v18  ;;  %v6943_v23 = vadd.f32 %v5484_v49, %v3468_v15  ;;  %v4055_v49 = vpop.permute.xlu0 %4054 }
 0xc71   : > { %v3590_v54 = vpop.f32.mrf.mxu1 }
 0xc72   : > { %v3633_v20 = vadd.f32 %v3632_v28, %v6931_v18  ;;  %v3661_v29 = vadd.f32 %v3660_v44, %v3650_v27  ;;  %v6941_v3 = vadd.f32 %v3590_v54, %v3458_v34  ;;  %v3654_v4 = vmul.f32 %v6943_v23, %v6943_v23 }
 0xc74   : > { %v3662_v32 = vadd.f32 %v3661_v29, %v3651_v55  ;;  %v3634_v33 = vadd.f32 %v3633_v20, %v6941_v3  ;;  %v3652_v59 = vmul.f32 %v6941_v3, %v6941_v3  ;;  %v4127_v27 = vpop.permute.xlu0 %4126 }
 0xc76   : > { %v3635_v62 = vadd.f32 %v3634_v33, %v6936_v25  ;;  %v3663_v2 = vadd.f32 %v3662_v32, %v3652_v59 }
 0xc78   : > { %v3636_v58 = vadd.f32 %v3635_v62, %v6943_v23  ;;  %v3664_v43 = vadd.f32 %v3663_v2, %v3653_v19  ;;  %v4045_v54 = vpop.permute.xlu0 %4044 }
 0xc7a   : > { %v3637_v40 = vrot.slane %v3636_v58, 4  ;;  %v3665_v45 = vadd.f32 %v3664_v43, %v3654_v4 }
 0xc7c   : > { %v3638_v41 = vadd.f32 %v3637_v40, %v3636_v58  ;;  %v3666_v47 = vrot.slane %v3665_v45, 4  ;;  %v4117_v29 = vpop.permute.xlu0 %4116 }
 0xc7e   : > { %v3667_v6 = vadd.f32 %v3666_v47, %v3665_v45  ;;  %v3639_v35 = vrot.slane %v3638_v41, 2 }
 0xc80   : > { %v3668_v5 = vrot.slane %v3667_v6, 2  ;;  %v3640_v7 = vadd.f32 %v3639_v35, %v3638_v41  ;;  %v4035_v32 = vpop.permute.xlu0 %4034 }
 0xc82   : > { %v3641_v8 = vrot.slane %v3640_v7, 1  ;;  %v3669_v10 = vadd.f32 %v3668_v5, %v3667_v6 }
 0xc84   : > { %v3642_v13 = vadd.f32 %v3641_v8, %v3640_v7  ;;  %v3670_v52 = vrot.slane %v3669_v10, 1  ;;  %v4107_v19 = vpop.permute.xlu0 %4106 }
 0xc86   : > { %5518 = vmatmul.mubr.f32.vlgmr.msra.gmra.mxu0 %v3642_v13  ;;  %v3671_v14 = vadd.f32 %v3670_v52, %v3669_v10 }
 0xc87   : > { %5556 = vmatpush3.msra.mxu0 %v6797_v26  ;;  %5557 = vmatprep.mubr.msk.f32.mxu0 %vm5824_vm0, %v5823_v0 }
 0xc88   : > { %5553 = vmatmul.mubr.f32.vlgmr.msra.gmra.mxu1 %v3671_v14  ;;  %v6982_v6 = vpop.permute.xlu0 %4024 }
 0xc89   : > { %5561 = vmatpush3.msra.mxu1 %v6797_v26  ;;  %5562 = vmatprep.mubr.msk.f32.mxu1 %vm5824_vm0, %v5823_v0  ;;  %v5661_v26 = vld [vmem:[%s7213_s0] sm:$0xff]   ;;  %v4050_v0 = vpop.permute.xlu1 %4049 }
 0xc8d   : > { %v4122_v30 = vpop.permute.xlu1 %4121 }
 0xc91   : > { %v4040_v28 = vpop.permute.xlu1 %4039 }
 0xc95   : > { %v4112_v55 = vpop.permute.xlu1 %4111 }
 0xc99   : > { %v4030_v15 = vpop.permute.xlu1 %4029 }
 0xc9d   : > { %v4102_v33 = vpop.permute.xlu1 %4101 }
 0xca1   : > { %v6978_v41 = vpop.permute.xlu1 %4019 }
 0xd46   : > { %v3738_v21 = vpop.f32.mrf.mxu0 }
 0xd47   : > { %v3742_v16 = vmul.f32 0.0006510417, %v3738_v21  ;;  %v6990_v21 = vpop.permute.xlu1 %4091 }
 0xd48   : > { %v5519_v56 = vpop.f32.mrf.mxu0  ;;  %v3809_v11 = vpop.f32.mrf.mxu1 }
 0xd49   : > { %v3814_v51 = vmul.f32 %v3742_v16, %v3742_v16  ;;  %v3813_v24 = vmul.f32 0.0006510417, %v3809_v11  ;;  %5558 = vmatmul.mubr.msk.f32.vlgmr.msra.gmra.mxu0 %vm1797_vm6, %v3742_v16  ;;  %v6992_v11 = vpop.permute.xlu0 %4096 }
 0xd4a   : > { %v5554_v34 = vpop.f32.mrf.mxu1  ;;  %5571 = vmatprep.mubr.msk.bf16.mxu0 %vm1455_vm5, %v5661_v26 }
 0xd4b   : > { %v3815_v50 = vsub.f32 %v3813_v24, %v3814_v51 }
 0xd4d   : > { %v3816_v36 = vmax.f32 %v3815_v50, 0.0 }
 0xd4f   : > { %v3817_v37 = vadd.f32 1e-05, %v3816_v36 }
 0xd51   : > { %5715 = vrsqrt.f32 %v3817_v37 }
 0xd5e   : > { %v5716_v57 = vpop.eup %5715 }
 0xd5f   : > { %5563 = vmatmul.mubr.msk.f32.vlgmr.msra.gmra.mxu1 %vm1797_vm6, %v5716_v57 }
 0xe09   : > { %v3888_v44 = vpop.f32.mrf.mxu0 }
 0xe0a   : > { %v6965_v59 = vrot.slane %v3888_v44, %v6370_v22 }
 0xe0b   : > { %v5559_v20 = vpop.f32.mrf.mxu0 }
 0xe0c   : > { %v3979_v4 = vsub.f32 %v6936_v25, %v6965_v59  ;;  %v3980_v58 = vsub.f32 %v6943_v23, %v6965_v59  ;;  %v3977_v40 = vsub.f32 %v6931_v18, %v6965_v59  ;;  %v3978_v45 = vsub.f32 %v6941_v3, %v6965_v59 }
 0xe0d   : > { %v3975_v52 = vsub.f32 %v6916_v12, %v6965_v59  ;;  %v3976_v14 = vsub.f32 %v6923_v48, %v6965_v59 }
 0xe1f   : > { %v3961_v62 = vpop.f32.mrf.mxu1 }
 0xe20   : > { %v6968_v2 = vrot.slane %v3961_v62, %v6370_v22 }
 0xe21   : > { %v5564_v43 = vpop.f32.mrf.mxu1 }
 0xe22   : > { %v3995_v47 = vmul.f32 %v6968_v2, %v3979_v4  ;;  %v3996_v22 = vmul.f32 %v6968_v2, %v3980_v58  ;;  %v3993_v25 = vmul.f32 %v6968_v2, %v3977_v40  ;;  %v3994_v35 = vmul.f32 %v6968_v2, %v3978_v45 }
 0xe23   : > { %v3991_v34 = vmul.f32 %v6968_v2, %v3975_v52  ;;  %v3992_v50 = vmul.f32 %v6968_v2, %v3976_v14 }
 0xe24   : > { %v4067_v23 = vmul.f32 %v4050_v0, %v3995_v47  ;;  %v4068_v5 = vmul.f32 %v4055_v49, %v3996_v22  ;;  %v4065_v7 = vmul.f32 %v4040_v28, %v3993_v25  ;;  %v4066_v8 = vmul.f32 %v4045_v54, %v3994_v35 }
 0xe25   : > { %v4063_v12 = vmul.f32 %v4030_v15, %v3991_v34  ;;  %v4064_v0 = vmul.f32 %v4035_v32, %v3992_v50  ;;  %v3973_v47 = vsub.f32 %v6911_v9, %v6965_v59  ;;  %v3974_v22 = vsub.f32 %v6921_v46, %v6965_v59 }
 0xe26   : > { %v4139_v18 = vadd.f32 %v4122_v30, %v4067_v23  ;;  %v4140_v10 = vadd.f32 %v4127_v27, %v4068_v5  ;;  %v4137_v13 = vadd.f32 %v4112_v55, %v4065_v7  ;;  %v4138_v3 = vadd.f32 %v4117_v29, %v4066_v8  ;;  %v4010_v30 = vpop.permute.xlu1 %4009  ;;  %v4015_v27 = vpop.permute.xlu0 %4014 }
 0xe27   : > { %v4135_v48 = vadd.f32 %v4102_v33, %v4063_v12  ;;  %v4136_v49 = vadd.f32 %v4107_v19, %v4064_v0  ;;  %v3989_v23 = vmul.f32 %v6968_v2, %v3973_v47  ;;  %v3971_v5 = vsub.f32 %v6896_v63, %v6965_v59 }
 0xe28   : > { %v4151_v16 = vsub.f32 0.0, %v4139_v18  ;;  %v4152_v56 = vsub.f32 0.0, %v4140_v10  ;;  %v4149_v51 = vsub.f32 0.0, %v4137_v13  ;;  %v4150_v24 = vsub.f32 0.0, %v4138_v3 }
 0xe29   : > { %v4147_v44 = vsub.f32 0.0, %v4135_v48  ;;  %v4148_v28 = vsub.f32 0.0, %v4136_v49  ;;  %v3990_v18 = vmul.f32 %v6968_v2, %v3974_v22  ;;  %v3972_v10 = vsub.f32 %v6902_v42, %v6965_v59  ;;  %v5662_v22 = vld [vmem:[%s7213_s0 + $0x8] sm:$0xff]  }
 0xe2a   : > { %v4161_v36 = vmul.f32 1.442695, %v4151_v16  ;;  %v4163_v37 = vmul.f32 1.442695, %v4152_v56  ;;  %v4157_v57 = vmul.f32 1.442695, %v4149_v51  ;;  %v4082_v55 = vpop.permute.xlu1 %4081  ;;  %v4087_v29 = vpop.permute.xlu0 %4086  ;;  %v3987_v13 = vmul.f32 %v6968_v2, %v3971_v5 }
 0xe2b   : > { %v4159_v26 = vmul.f32 1.442695, %v4150_v24  ;;  %v4153_v54 = vmul.f32 1.442695, %v4147_v44  ;;  %v4155_v20 = vmul.f32 1.442695, %v4148_v28  ;;  %v3988_v46 = vmul.f32 %v6968_v2, %v3972_v10 }
 0xe2c   : > { %5717 = vpow2.f32 %v4161_v36  ;;  %v4061_v52 = vmul.f32 %v6978_v41, %v3989_v23  ;;  %v4062_v14 = vmul.f32 %v6982_v6, %v3990_v18  ;;  %v3969_v63 = vsub.f32 %v6894_v61, %v6965_v59  ;;  %v5665_v23 = vld [vmem:[%s7213_s0 + $0x20] sm:$0xff]   ;;  %v5666_v5 = vld [vmem:[%s7213_s0 + $0x28] sm:$0xff]  }
 0xe2d   : > { %5719 = vpow2.f32 %v4163_v37  ;;  %v4059_v56 = vmul.f32 %v4010_v30, %v3987_v13  ;;  %v3970_v42 = vsub.f32 %v6898_v1, %v6965_v59  ;;  %v4060_v24 = vmul.f32 %v4015_v27, %v3988_v46 }
 0xe2e   : > { %5721 = vpow2.f32 %v4157_v57  ;;  %v4206_v15 = vpop.permute.xlu1 %4205  ;;  %v4211_v43 = vpop.permute.xlu0 %4210  ;;  %v3985_v34 = vmul.f32 %v6968_v2, %v3969_v63  ;;  %v4133_v50 = vadd.f32 %v6990_v21, %v4061_v52  ;;  %v4134_v37 = vadd.f32 %v6992_v11, %v4062_v14 }
 0xe2f   : > { %5723 = vpow2.f32 %v4159_v26  ;;  %v3986_v36 = vmul.f32 %v6968_v2, %v3970_v42  ;;  %v4131_v26 = vadd.f32 %v4082_v55, %v4059_v56  ;;  %v4132_v0 = vadd.f32 %v4087_v29, %v4060_v24 }
 0xe30   : > { %5725 = vpow2.f32 %v4153_v54 }
 0xe31   : > { %5727 = vpow2.f32 %v4155_v20 }
 0xe32   : > { %v4000_v35 = vpop.permute.xlu1 %3999  ;;  %v4005_v8 = vpop.permute.xlu0 %4004 }
 0xe33   : > { %v4057_v48 = vmul.f32 %v4000_v35, %v3985_v34  ;;  %v4058_v27 = vmul.f32 %v4005_v8, %v3986_v36  ;;  %v5664_v35 = vld [vmem:[%s7213_s0 + $0x18] sm:$0xff]  }
 0xe36   : > { %v4072_v16 = vpop.permute.xlu1 %4071  ;;  %v4077_v51 = vpop.permute.xlu0 %4076 }
 0xe37   : > { %v4130_v29 = vadd.f32 %v4077_v51, %v4058_v27 }
 0xe39   : > { %v5718_v62 = vpop.eup %5717 }
 0xe3a   : > { %v5720_v4 = vpop.eup %5719  ;;  %v4169_v32 = vadd.f32 1.0, %v5718_v62  ;;  %v4196_v1 = vpop.permute.xlu1 %4195  ;;  %v4129_v62 = vadd.f32 %v4072_v16, %v4057_v48 }
 0xe3b   : > { %v5722_v58 = vpop.eup %5721  ;;  %v4170_v33 = vadd.f32 1.0, %v5720_v4  ;;  %v4201_v44 = vpop.permute.xlu0 %4200 }
 0xe3c   : > { %v5724_v19 = vpop.eup %5723  ;;  %5729 = vrcp.f32 %v4169_v32  ;;  %v4167_v40 = vadd.f32 1.0, %v5722_v58 }
 0xe3d   : > { %5731 = vrcp.f32 %v4170_v33  ;;  %v4168_v45 = vadd.f32 1.0, %v5724_v19  ;;  %v5726_v25 = vpop.eup %5725 }
 0xe3e   : > { %5733 = vrcp.f32 %v4167_v40  ;;  %v5728_v7 = vpop.eup %5727  ;;  %v4165_v9 = vadd.f32 1.0, %v5726_v25  ;;  %v4186_v19 = vpop.permute.xlu1 %4185  ;;  %v5663_v25 = vld [vmem:[%s7213_s0 + $0x10] sm:$0xff]  }
 0xe3f   : > { %5735 = vrcp.f32 %v4168_v45  ;;  %v4166_v3 = vadd.f32 1.0, %v5728_v7  ;;  %v4191_v40 = vpop.permute.xlu0 %4190 }
 0xe40   : > { %5737 = vrcp.f32 %v4165_v9 }
 0xe41   : > { %5739 = vrcp.f32 %v4166_v3 }
 0xe49   : > { %v5730_v41 = vpop.eup %5729 }
 0xe4a   : > { %v5732_v6 = vpop.eup %5731  ;;  %v4181_v57 = vmul.f32 %v5730_v41, %v4133_v50 }
 0xe4b   : > { %v5734_v61 = vpop.eup %5733  ;;  %v4182_v12 = vmul.f32 %v5732_v6, %v4134_v37 }
 0xe4c   : > { %v5736_v49 = vpop.eup %5735  ;;  %v4217_v59 = vmul.f32 %v4206_v15, %v4181_v57  ;;  %v4179_v30 = vmul.f32 %v5734_v61, %v4131_v26 }
 0xe4d   : > { %v4218_v28 = vmul.f32 %v4211_v43, %v4182_v12  ;;  %v4180_v21 = vmul.f32 %v5736_v49, %v4132_v0  ;;  %v5738_v55 = vpop.eup %5737 }
 0xe4e   : > { %v4223_v2 = vadd.f32 %v4217_v59, %v6554_v38  ;;  %v4215_v54 = vmul.f32 %v4196_v1, %v4179_v30  ;;  %v5740_v32 = vpop.eup %5739  ;;  %v4177_v33 = vmul.f32 %v5738_v55, %v4129_v62 }
 0xe4f   : > { %v4224_v11 = vadd.f32 %v4218_v28, %v6551_v53  ;;  %v4216_v20 = vmul.f32 %v4201_v44, %v4180_v21  ;;  %v4178_v43 = vmul.f32 %v5740_v32, %v4130_v29 }
 0xe50   : > { %v4221_v4 = vadd.f32 %v4215_v54, %v6564_v39  ;;  %v4213_v53 = vmul.f32 %v4186_v19, %v4177_v33 }
 0xe51   : > { %v4239_v58 = vpack.c.bf16 %v4224_v11, %v4223_v2  ;;  %v4222_v15 = vadd.f32 %v4216_v20, %v6561_v60  ;;  %v4214_v45 = vmul.f32 %v4191_v40, %v4178_v43 }
 0xe52   : > { %v4219_v39 = vadd.f32 %v4213_v53, %v6575_v17  ;;  %v4260_v17 = vpop.permute.xlu0 %4259 }
 0xe53   : > { %5565 = vmatprep.subr.bf16.mxu0 %v4239_v58  ;;  %v4238_v38 = vpack.c.bf16 %v4222_v15, %v4221_v4  ;;  %v4220_v47 = vadd.f32 %v4214_v45, %v6572_v31  ;;  %v4255_v31 = vpop.permute.xlu1 %4254 }
 0xe54   : > { %5566 = vmatpush3.bf16.msra.mxu0 %v4239_v58 }
 0xe55   : > { %5567 = vmatprep.subr.bf16.mxu0 %v4238_v38  ;;  %v4237_v60 = vpack.c.bf16 %v4220_v47, %v4219_v39 }
 0xe56   : > { %v4270_v8 = vpop.permute.xlu0 %4269 }
 0xe57   : > { %v4265_v7 = vpop.permute.xlu1 %4264 }
 0xe58   : > { %5568 = vmatpush3.bf16.msra.mxu0 %v4238_v38 }
 0xe59   : > { %5569 = vmatprep.subr.bf16.mxu0 %v4237_v60 }
 0xe5a   : > { %v4280_v46 = vpop.permute.xlu0 %4279 }
 0xe5b   : > { %v4275_v9 = vpop.permute.xlu1 %4274 }
 0xe5c   : > { %5570 = vmatpush3.bf16.msra.mxu0 %v4237_v60 }
 0xe5e   : > { %v4290_v57 = vpop.permute.xlu0 %4289 }
 0xe5f   : > { %5572 = vmatmul.mubr.msk.bf16.vlgmr.msra.gmra.mxu0 %vm1455_vm5, %v5662_v22  ;;  %v4285_v56 = vpop.permute.xlu1 %4284 }
 0xe60   : > { %5575 = vmatprep.mubr.msk.bf16.mxu0 %vm1455_vm5, %v5663_v25 }
 0xe62   : > { %v4300_v20 = vpop.permute.xlu0 %4299 }
 0xe63   : > { %v4295_v1 = vpop.permute.xlu1 %4294 }
 0xe66   : > { %v4310_v60 = vpop.permute.xlu0 %4309 }
 0xe67   : > { %5576 = vmatmul.mubr.msk.bf16.gmra.mxu0 %vm1455_vm5, %v5664_v35  ;;  %v4305_v15 = vpop.permute.xlu1 %4304 }
 0xe68   : > { %5579 = vmatprep.mubr.msk.bf16.mxu0 %vm1455_vm5, %v5665_v23 }
 0xe6f   : > { %5580 = vmatmul.mubr.msk.bf16.gmra.mxu0 %vm1455_vm5, %v5666_v5 }
 0xf1f   : > { %v5573_v18 = vpop.f32.mrf.mxu0 }
 0xf20   : > { %v7036_v14 = vadd.f32 %v5573_v18, %v4265_v7 }
 0xf21   : > { %v4394_v10 = vpop.f32.mrf.mxu0 }
 0xf22   : > { %v7034_v3 = vadd.f32 %v4394_v10, %v4255_v31  ;;  %v4490_v36 = vmul.f32 %v7036_v14, %v7036_v14 }
 0xf23   : > { %v5574_v13 = vpop.f32.mrf.mxu0 }
 0xf24   : > { %v4488_v42 = vmul.f32 %v7034_v3, %v7034_v3  ;;  %v7042_v51 = vadd.f32 %v5574_v13, %v4270_v8  ;;  %v4448_v13 = vld [vmem:[%s7214_s26 + $0x38] sm:$0xff] }
 0xf25   : > { %v4397_v52 = vpop.f32.mrf.mxu0 }
 0xf26   : > { %v7038_v63 = vadd.f32 %v4397_v52, %v4260_v17  ;;  %v4491_v61 = vmul.f32 %v7042_v51, %v7042_v51  ;;  %v4450_v52 = vld [vmem:[%s7214_s26 + $0x48] sm:$0xff] }
 0xf27   : > { %v5577_v16 = vpop.f32.mrf.mxu0 }
 0xf28   : > { %v4465_v24 = vadd.f32 %v7038_v63, %v7034_v3  ;;  %v4489_v34 = vmul.f32 %v7038_v63, %v7038_v63  ;;  %v7056_v48 = vadd.f32 %v5577_v16, %v4285_v56  ;;  %v4449_v16 = vld [vmem:[%s7214_s26 + $0x40] sm:$0xff]  ;;  %v4452_v56 = vld [vmem:[%s7214_s26 + $0x58] sm:$0xff] }
 0xf29   : > { %v4410_v50 = vpop.f32.mrf.mxu0 }
 0xf2a   : > { %v4466_v41 = vadd.f32 %v4465_v24, %v7036_v14  ;;  %v4500_v37 = vadd.f32 %v4489_v34, %v4488_v42  ;;  %v7051_v6 = vadd.f32 %v4410_v50, %v4275_v9  ;;  %v4494_v55 = vmul.f32 %v7056_v48, %v7056_v48  ;;  %v4447_v9 = vld [vmem:[%s7214_s26 + $0x30] sm:$0xff]  ;;  %v4460_v24 = vld [vmem:[%s7215_s1 + $0x38] sm:$0xff]  ;;  %v4462_v50 = vld [vmem:[%s7215_s1 + $0x48] sm:$0xff] }
 0xf2b   : > { %v5578_v26 = vpop.f32.mrf.mxu0  ;;  %v4451_v42 = vld [vmem:[%s7214_s26 + $0x50] sm:$0xff] }
 0xf2c   : > { %v4501_v12 = vadd.f32 %v4500_v37, %v4490_v36  ;;  %v4467_v0 = vadd.f32 %v4466_v41, %v7042_v51  ;;  %v4492_v30 = vmul.f32 %v7051_v6, %v7051_v6  ;;  %v7063_v2 = vadd.f32 %v5578_v26, %v4290_v57  ;;  %v4459_v34 = vld [vmem:[%s7215_s1 + $0x30] sm:$0xff]  ;;  %v4461_v36 = vld [vmem:[%s7215_s1 + $0x40] sm:$0xff]  ;;  %v4464_v41 = vld [vmem:[%s7215_s1 + $0x58] sm:$0xff] }
 0xf2d   : > { %v4413_v49 = vpop.f32.mrf.mxu0  ;;  %v4463_v37 = vld [vmem:[%s7215_s1 + $0x50] sm:$0xff]  ;;  %v4442_v26 = vld [vmem:[%s7214_s26 + $0x8] sm:$0xff] }
 0xf2e   : > { %v4468_v59 = vadd.f32 %v4467_v0, %v7051_v6  ;;  %v4502_v27 = vadd.f32 %v4501_v12, %v4491_v61  ;;  %v7061_v44 = vadd.f32 %v4413_v49, %v4280_v46  ;;  %v4495_v33 = vmul.f32 %v7063_v2, %v7063_v2  ;;  %v4441_v46 = vld [vmem:[%s7214_s26] sm:$0xff]  ;;  %v4443_v57 = vld [vmem:[%s7214_s26 + $0x10] sm:$0xff]  ;;  %v4444_v12 = vld [vmem:[%s7214_s26 + $0x18] sm:$0xff] }
 0xf2f   : > { %v5581_v28 = vpop.f32.mrf.mxu0  ;;  %v4445_v61 = vld [vmem:[%s7214_s26 + $0x20] sm:$0xff]  ;;  %v4446_v49 = vld [vmem:[%s7214_s26 + $0x28] sm:$0xff] }
 0xf30   : > { %v4503_v21 = vadd.f32 %v4502_v27, %v4492_v30  ;;  %v4469_v54 = vadd.f32 %v4468_v59, %v7061_v44  ;;  %v4493_v11 = vmul.f32 %v7061_v44, %v7061_v44  ;;  %v7076_v40 = vadd.f32 %v5581_v28, %v4305_v15  ;;  %v4453_v0 = vld [vmem:[%s7215_s1] sm:$0xff]  ;;  %v4454_v59 = vld [vmem:[%s7215_s1 + $0x8] sm:$0xff]  ;;  %v4456_v27 = vld [vmem:[%s7215_s1 + $0x18] sm:$0xff] }
 0xf31   : > { %v4426_v62 = vpop.f32.mrf.mxu0  ;;  %v4457_v30 = vld [vmem:[%s7215_s1 + $0x20] sm:$0xff]  ;;  %v4458_v28 = vld [vmem:[%s7215_s1 + $0x28] sm:$0xff] }
 0xf32   : > { %v4470_v4 = vadd.f32 %v4469_v54, %v7056_v48  ;;  %v4504_v29 = vadd.f32 %v4503_v21, %v4493_v11  ;;  %v7071_v32 = vadd.f32 %v4426_v62, %v4295_v1  ;;  %v4498_v5 = vmul.f32 %v7076_v40, %v7076_v40  ;;  %v4455_v1 = vld [vmem:[%s7215_s1 + $0x10] sm:$0xff] }
 0xf33   : > { %v5582_v58 = vpop.f32.mrf.mxu0 }
 0xf34   : > { %v4505_v19 = vadd.f32 %v4504_v29, %v4494_v55  ;;  %v4471_v43 = vadd.f32 %v4470_v4, %v7063_v2  ;;  %v4496_v45 = vmul.f32 %v7071_v32, %v7071_v32  ;;  %v7083_v25 = vadd.f32 %v5582_v58, %v4310_v60 }
 0xf35   : > { %v4429_v38 = vpop.f32.mrf.mxu0 }
 0xf36   : > { %v4472_v53 = vadd.f32 %v4471_v43, %v7071_v32  ;;  %v4506_v39 = vadd.f32 %v4505_v19, %v4495_v33  ;;  %v7081_v47 = vadd.f32 %v4429_v38, %v4300_v20  ;;  %v4499_v7 = vmul.f32 %v7083_v25, %v7083_v25 }
 0xf38   : > { %v4507_v22 = vadd.f32 %v4506_v39, %v4496_v45  ;;  %v4473_v35 = vadd.f32 %v4472_v53, %v7081_v47  ;;  %v4497_v23 = vmul.f32 %v7081_v47, %v7081_v47 }
 0xf3a   : > { %v4508_v31 = vadd.f32 %v4507_v22, %v4497_v23  ;;  %v4474_v17 = vadd.f32 %v4473_v35, %v7076_v40 }
 0xf3c   : > { %v4475_v8 = vadd.f32 %v4474_v17, %v7083_v25  ;;  %v4509_v18 = vadd.f32 %v4508_v31, %v4498_v5 }
 0xf3e   : > { %4476 = vadd.xlane.f32.xlu1 %v4475_v8  ;;  %v4510_v10 = vadd.f32 %v4509_v18, %v4499_v7 }
 0xf40   : > { %4511 = vadd.xlane.f32.xlu0 %v4510_v10 }
 0xf4f   : > { %4583 = vperm.xlu1 %5641, %v4447_v9  }
 0xf53   : > { %4588 = vperm.xlu1 %5641, %v4448_v13  }
 0xf56   : > { %4553 = vperm.xlu0 %5642, %v4441_v46  }
 0xf57   : > { %4598 = vperm.xlu1 %5641, %v4450_v52  }
 0xf5a   : > { %4593 = vperm.xlu0 %5642, %v4449_v16  }
 0xf5b   : > { %4608 = vperm.xlu1 %5641, %v4452_v56  }
 0xf5e   : > { %4603 = vperm.xlu0 %5642, %v4451_v42  }
 0xf5f   : > { %4660 = vperm.xlu1 %5641, %v4460_v24  }
 0xf62   : > { %4655 = vperm.xlu0 %5642, %v4459_v34  }
 0xf63   : > { %4670 = vperm.xlu1 %5641, %v4462_v50  }
 0xf66   : > { %4665 = vperm.xlu0 %5642, %v4461_v36  }
 0xf67   : > { %4680 = vperm.xlu1 %5641, %v4464_v41  }
 0xf6a   : > { %4675 = vperm.xlu0 %5642, %v4463_v37  }
 0xf6b   : > { %4563 = vperm.xlu1 %5641, %v4443_v57  }
 0xf6e   : > { %4558 = vperm.xlu0 %5642, %v4442_v26  }
 0xf6f   : > { %4573 = vperm.xlu1 %5641, %v4445_v61  }
 0xf72   : > { %4568 = vperm.xlu0 %5642, %v4444_v12  }
 0xf73   : > { %4625 = vperm.xlu1 %5641, %v4453_v0  }
 0xf76   : > { %4578 = vperm.xlu0 %5642, %v4446_v49  }
 0xf77   : > { %4635 = vperm.xlu1 %5641, %v4455_v1  }
 0xf7a   : > { %4630 = vperm.xlu0 %5642, %v4454_v59  }
 0xf7b   : > { %4645 = vperm.xlu1 %5641, %v4457_v30  }
 0xf7e   : > { %4640 = vperm.xlu0 %5642, %v4456_v27  }
 0xf82   : > { %4650 = vperm.xlu0 %5642, %v4458_v28  }
 0xfc7   : > { %v4477_v21 = vpop.xlane.xlu1 %4476 }
 0xfc8   : > { %v4478_v54 = vrot.slane %v4477_v21, 4 }
 0xfc9   : > { %v4512_v11 = vpop.xlane.xlu0 %4511 }
 0xfca   : > { %v4479_v20 = vadd.f32 %v4478_v54, %v4477_v21  ;;  %v4513_v62 = vrot.slane %v4512_v11, 4 }
 0xfcb   : > { %v4584_v53 = vpop.permute.xlu1 %4583 }
 0xfcc   : > { %v4480_v55 = vrot.slane %v4479_v20, 2  ;;  %v4514_v4 = vadd.f32 %v4513_v62, %v4512_v11 }
 0xfce   : > { %v4515_v29 = vrot.slane %v4514_v4, 2  ;;  %v4481_v58 = vadd.f32 %v4480_v55, %v4479_v20 }
 0xfcf   : > { %v4589_v22 = vpop.permute.xlu1 %4588 }
 0xfd0   : > { %v4482_v15 = vrot.slane %v4481_v58, 1  ;;  %v4516_v33 = vadd.f32 %v4515_v29, %v4514_v4 }
 0xfd1   : > { %v7120_v35 = vpop.permute.xlu0 %4553 }
 0xfd2   : > { %v4483_v19 = vadd.f32 %v4482_v15, %v4481_v58  ;;  %v4517_v43 = vrot.slane %v4516_v33, 1 }
 0xfd3   : > { %v4599_v7 = vpop.permute.xlu1 %4598 }
 0xfd4   : > { %5590 = vpush %v4483_v19  ;;  %v4518_v38 = vadd.f32 %v4517_v43, %v4516_v33 }
 0xfd5   : > { %v4594_v8 = vpop.permute.xlu0 %4593 }
 0xfd6   : > { %5592 = vpush %v4518_v38 }
 0xfd7   : > { %v4609_v10 = vpop.permute.xlu1 %4608 }
 0xfd9   : > { %v4604_v9 = vpop.permute.xlu0 %4603 }
 0xfdb   : > { %v4661_v13 = vpop.permute.xlu1 %4660 }
 0xfdd   : > { %v4656_v46 = vpop.permute.xlu0 %4655 }
 0xfdf   : > { %v4671_v36 = vpop.permute.xlu1 %4670 }
 0xfe1   : > { %v4666_v41 = vpop.permute.xlu0 %4665 }
 0xfe3   : > { %v4681_v49 = vpop.permute.xlu1 %4680 }
 0xfe5   : > { %v4676_v1 = vpop.permute.xlu0 %4675 }
0x1005   : > { %s5591_s0 = spop %5590 }
0x1006   : > { %v4485_v45 = vstv %s5591_s0  ;;  %s5585_s0 = smul.u32 48, %s7217_s23 }
0x1007   : > { %s5593_s1 = spop %5592  ;;  %v7118_v39 = vmul.f32 8.138021e-05, %v4485_v45  ;;  %v4564_v45 = vpop.permute.xlu1 %4563 }
0x1008   : > { %v4520_v60 = vstv %s5593_s1  ;;  %s958_s1 = scalar_lea.vmem %s5994_s14, %s5585_s0 }
0x1009   : > { %v4521_v23 = vmul.f32 8.138021e-05, %v4520_v60  ;;  %v4522_v5 = vmul.f32 %v7118_v39, %v7118_v39  ;;  %v4533_v16 = vsub.f32 %v7056_v48, %v7118_v39  ;;  %v4534_v56 = vsub.f32 %v7063_v2, %v7118_v39 }
0x100a   : > { %v4535_v42 = vsub.f32 %v7071_v32, %v7118_v39  ;;  %v4536_v24 = vsub.f32 %v7081_v47, %v7118_v39  ;;  %v4537_v34 = vsub.f32 %v7076_v40, %v7118_v39  ;;  %v4538_v50 = vsub.f32 %v7083_v25, %v7118_v39 }
0x100b   : > { %v4523_v31 = vsub.f32 %v4521_v23, %v4522_v5  ;;  %v4574_v23 = vpop.permute.xlu1 %4573 }
0x100d   : > { %v4524_v17 = vmax.f32 %v4523_v31, 0.0 }
0x100f   : > { %v4525_v18 = vadd.f32 1e-05, %v4524_v17 }
0x1011   : > { %5741 = vrsqrt.f32 %v4525_v18 }
0x101e   : > { %v7124_v52 = vpop.eup %5741 }
0x101f   : > { %v4545_v37 = vmul.f32 %v7124_v52, %v4533_v16  ;;  %v4546_v48 = vmul.f32 %v7124_v52, %v4534_v56  ;;  %v4547_v2 = vmul.f32 %v7124_v52, %v4535_v42  ;;  %v4548_v57 = vmul.f32 %v7124_v52, %v4536_v24  ;;  %v4626_v42 = vpop.permute.xlu1 %4625 }
0x1020   : > { %v4549_v32 = vmul.f32 %v7124_v52, %v4537_v34  ;;  %v4550_v47 = vmul.f32 %v7124_v52, %v4538_v50  ;;  %v4527_v16 = vsub.f32 %v7034_v3, %v7118_v39  ;;  %v4528_v24 = vsub.f32 %v7038_v63, %v7118_v39 }
0x1021   : > { %v4617_v26 = vmul.f32 %v4584_v53, %v4545_v37  ;;  %v4618_v61 = vmul.f32 %v4589_v22, %v4546_v48  ;;  %v4619_v40 = vmul.f32 %v4594_v8, %v4547_v2  ;;  %v4620_v12 = vmul.f32 %v4599_v7, %v4548_v57  ;;  %v4559_v53 = vpop.permute.xlu0 %4558 }
0x1022   : > { %v4621_v0 = vmul.f32 %v4604_v9, %v4549_v32  ;;  %v4622_v25 = vmul.f32 %v4609_v10, %v4550_v47  ;;  %v4530_v37 = vsub.f32 %v7042_v51, %v7118_v39  ;;  %v4540_v3 = vmul.f32 %v7124_v52, %v4528_v24 }
0x1023   : > { %v4689_v59 = vadd.f32 %v4656_v46, %v4617_v26  ;;  %v4690_v30 = vadd.f32 %v4661_v13, %v4618_v61  ;;  %v4691_v27 = vadd.f32 %v4666_v41, %v4619_v40  ;;  %v4692_v28 = vadd.f32 %v4671_v36, %v4620_v12  ;;  %v4636_v47 = vpop.permute.xlu1 %4635 }
0x1024   : > { %v4693_v21 = vadd.f32 %v4676_v1, %v4621_v0  ;;  %v4694_v54 = vadd.f32 %v4681_v49, %v4622_v25  ;;  %v4529_v36 = vsub.f32 %v7036_v14, %v7118_v39  ;;  %v4539_v41 = vmul.f32 %v7124_v52, %v4527_v16  ;;  %v4731_v49 = vld [vmem:[%s5989_s12] sm:$0xff] }
0x1025   : > { %v4695_v11 = vsub.f32 0.0, %v4689_v59  ;;  %v4696_v20 = vsub.f32 0.0, %v4690_v30  ;;  %v4697_v62 = vsub.f32 0.0, %v4691_v27  ;;  %v4698_v55 = vsub.f32 0.0, %v4692_v28  ;;  %v4569_v60 = vpop.permute.xlu0 %4568  ;;  %v4732_v30 = vld [vmem:[%s5989_s12 + $0x8] sm:$0xff] }
0x1026   : > { %v4699_v4 = vsub.f32 0.0, %v4693_v21  ;;  %v4700_v29 = vsub.f32 0.0, %v4694_v54  ;;  %v4531_v48 = vsub.f32 %v7051_v6, %v7118_v39  ;;  %v4541_v63 = vmul.f32 %v7124_v52, %v4529_v36  ;;  %v4733_v54 = vld [vmem:[%s5989_s12 + $0x10] sm:$0xff] }
0x1027   : > { %v4701_v58 = vmul.f32 1.442695, %v4695_v11  ;;  %v4703_v15 = vmul.f32 1.442695, %v4696_v20  ;;  %v4705_v33 = vmul.f32 1.442695, %v4697_v62  ;;  %v4532_v2 = vsub.f32 %v7061_v44, %v7118_v39  ;;  %v4646_v27 = vpop.permute.xlu1 %4645 }
0x1028   : > { %v4707_v19 = vmul.f32 1.442695, %v4698_v55  ;;  %v4709_v43 = vmul.f32 1.442695, %v4699_v4  ;;  %v4711_v38 = vmul.f32 1.442695, %v4700_v29  ;;  %v4542_v14 = vmul.f32 %v7124_v52, %v4530_v37 }
0x1029   : > { %5743 = vpow2.f32 %v4701_v58  ;;  %v4579_v31 = vpop.permute.xlu0 %4578  ;;  %v4543_v57 = vmul.f32 %v7124_v52, %v4531_v48  ;;  %v4611_v32 = vmul.f32 %v7120_v35, %v4539_v41  ;;  %v4544_v51 = vmul.f32 %v7124_v52, %v4532_v2  ;;  %v4734_v4 = vld [vmem:[%s5989_s12 + $0x18] sm:$0xff] }
0x102a   : > { %5745 = vpow2.f32 %v4703_v15  ;;  %v4612_v26 = vmul.f32 %v4559_v53, %v4540_v3  ;;  %v4613_v6 = vmul.f32 %v4564_v45, %v4541_v63  ;;  %v4614_v40 = vmul.f32 %v4569_v60, %v4542_v14  ;;  %v4736_v45 = vld [vmem:[%s5989_s12 + $0x28] sm:$0xff] }
0x102b   : > { %5747 = vpow2.f32 %v4705_v33  ;;  %v4615_v12 = vmul.f32 %v4574_v23, %v4543_v57  ;;  %v4683_v44 = vadd.f32 %v4626_v42, %v4611_v32  ;;  %v4616_v0 = vmul.f32 %v4579_v31, %v4544_v51 }
0x102c   : > { %5749 = vpow2.f32 %v4707_v19  ;;  %v4685_v35 = vadd.f32 %v4636_v47, %v4613_v6  ;;  %v4735_v19 = vld [vmem:[%s5989_s12 + $0x20] sm:$0xff] }
0x102d   : > { %5751 = vpow2.f32 %v4709_v43  ;;  %v4631_v50 = vpop.permute.xlu0 %4630  ;;  %v4687_v62 = vadd.f32 %v4646_v27, %v4615_v12 }
0x102e   : > { %5753 = vpow2.f32 %v4711_v38  ;;  %v4684_v25 = vadd.f32 %v4631_v50, %v4612_v26 }
0x1031   : > { %v4641_v61 = vpop.permute.xlu0 %4640 }
0x1032   : > { %v4686_v28 = vadd.f32 %v4641_v61, %v4614_v40 }
0x1035   : > { %v4651_v20 = vpop.permute.xlu0 %4650 }
0x1036   : > { %v5744_v22 = vpop.eup %5743  ;;  %v4688_v15 = vadd.f32 %v4651_v20, %v4616_v0 }
0x1037   : > { %v5746_v5 = vpop.eup %5745  ;;  %v4713_v17 = vadd.f32 1.0, %v5744_v22 }
0x1038   : > { %v5748_v7 = vpop.eup %5747  ;;  %v4714_v8 = vadd.f32 1.0, %v5746_v5 }
0x1039   : > { %v5750_v18 = vpop.eup %5749  ;;  %v4715_v10 = vadd.f32 1.0, %v5748_v7  ;;  %5755 = vrcp.f32 %v4713_v17 }
0x103a   : > { %v5752_v9 = vpop.eup %5751  ;;  %v4716_v13 = vadd.f32 1.0, %v5750_v18  ;;  %5757 = vrcp.f32 %v4714_v8 }
0x103b   : > { %v5754_v46 = vpop.eup %5753  ;;  %v4717_v56 = vadd.f32 1.0, %v5752_v9  ;;  %5759 = vrcp.f32 %v4715_v10 }
0x103c   : > { %v4718_v34 = vadd.f32 1.0, %v5754_v46  ;;  %5761 = vrcp.f32 %v4716_v13 }
0x103d   : > { %5763 = vrcp.f32 %v4717_v56 }
0x103e   : > { %5765 = vrcp.f32 %v4718_v34 }
0x1046   : > { %v5756_v39 = vpop.eup %5755 }
0x1047   : > { %v5758_v1 = vpop.eup %5757  ;;  %v4725_v59 = vmul.f32 %v5756_v39, %v4683_v44 }
0x1048   : > { %v5760_v52 = vpop.eup %5759  ;;  %v4726_v21 = vmul.f32 %v5758_v1, %v4684_v25 }
0x1049   : > { %v5762_v11 = vpop.eup %5761  ;;  %v4727_v55 = vmul.f32 %v5760_v52, %v4685_v35  ;;  %v4737_v29 = vadd.f32 %v4731_v49, %v4725_v59 }
0x104a   : > { %v5764_v58 = vpop.eup %5763  ;;  %v4728_v33 = vmul.f32 %v5762_v11, %v4686_v28  ;;  %v4738_v43 = vadd.f32 %v4732_v30, %v4726_v21 }
0x104b   : > { %v5766_v38 = vpop.eup %5765  ;;  %v4729_v53 = vmul.f32 %v5764_v58, %v4687_v62  ;;  %v4739_v60 = vadd.f32 %v4733_v54, %v4727_v55  ;;  %4743 = vst [vmem:[%s958_s1] sm:$0xff] %v4737_v29 }
0x104c   : > { %v4730_v22 = vmul.f32 %v5766_v38, %v4688_v15  ;;  %v4740_v23 = vadd.f32 %v4734_v4, %v4728_v33  ;;  %4744 = vst [vmem:[%s958_s1 + $0x8] sm:$0xff] %v4738_v43 }
0x104d   : > { %v4741_v5 = vadd.f32 %v4735_v19, %v4729_v53  ;;  %4745 = vst [vmem:[%s958_s1 + $0x10] sm:$0xff] %v4739_v60 }
0x104e   : > { %v4742_v31 = vadd.f32 %v4736_v45, %v4730_v22  ;;  %4746 = vst [vmem:[%s958_s1 + $0x18] sm:$0xff] %v4740_v23 }
0x104f   : > { %4747 = vst [vmem:[%s958_s1 + $0x20] sm:$0xff] %v4741_v5 }
0x1050   : > { %4748 = vst [vmem:[%s958_s1 + $0x28] sm:$0xff] %v4742_v31 }
0x1051 PF: > { %s73_s22 = sadd.s32 1, %s5790_s22  }
0x1052   : > { %p70_p4 = scmp.ge.s32.totalorder %s73_s22, 4  }
0x1054   :  { %72 = sbr.rel (!%p70_p4) target bundleno = 49 (0x31), region = 210 }

// kernel: hlayer_block_forward.3
= control target key start
LH: loop header
LB: loop body
LE: loop exit
PB: predicated region body
PF: predicated region fallthrough
CT: control target
= control target key end

     0   :  { %s4874_s6 = smov 1   ;;  %s4875_s10 = smov 2   ;;  %s5831_s0 = inlined_call_operand.smem [shape: u32[31], index: -1, kind: input, shape index: {}] }
   0x1   :  { %s4920_s5 = sld [smem:[%s5831_s0]]   ;;  %s4876_s14 = smov 3  }
   0x2   :  { %s4925_s9 = sld [smem:[%s5831_s0 + %s4874_s6]]   ;;  %s4877_s18 = smov 4  }
   0x3   :  { %s4930_s13 = sld [smem:[%s5831_s0 + %s4875_s10]]   ;;  %s4878_s22 = smov 5  }
   0x4   :  { %s4935_s17 = sld [smem:[%s5831_s0 + %s4876_s14]]   ;;  %s4879_s26 = smov 6  }
   0x5   :  { %s4940_s21 = sld [smem:[%s5831_s0 + %s4877_s18]]   ;;  %s4880_s30 = smov 7  }
   0x6   :  { %s4945_s25 = sld [smem:[%s5831_s0 + %s4878_s22]]   ;;  %s4881_s4 = smov 8  }
   0x7   :  { %s4950_s29 = sld [smem:[%s5831_s0 + %s4879_s26]]   ;;  %s4882_s10 = smov 9  }
   0x8   :  { %s4955_s3 = sld [smem:[%s5831_s0 + %s4880_s30]]   ;;  %s4883_s15 = smov 10  }
   0x9   :  { %s4960_s8 = sld [smem:[%s5831_s0 + %s4881_s4]]   ;;  %s4884_s20 = smov 11  }
   0xa   :  { %s4965_s14 = sld [smem:[%s5831_s0 + %s4882_s10]]   ;;  %s4885_s26 = smov 12  }
   0xb   :  { %s4970_s19 = sld [smem:[%s5831_s0 + %s4883_s15]]   ;;  %s4886_s1 = smov 13  }
   0xc   :  { %s4975_s24 = sld [smem:[%s5831_s0 + %s4884_s20]]   ;;  %s4887_s7 = smov 14  }
   0xd   :  { %s4980_s30 = sld [smem:[%s5831_s0 + %s4885_s26]]   ;;  %s4888_s15 = smov 15  }
   0xe   :  { %s4985_s6 = sld [smem:[%s5831_s0 + %s4886_s1]]   ;;  %s4889_s22 = smov 16  }
   0xf   :  { %s4990_s12 = sld [smem:[%s5831_s0 + %s4887_s7]]   ;;  %s4890_s28 = smov 17  }
  0x10   :  { %s4995_s20 = sld [smem:[%s5831_s0 + %s4888_s15]]   ;;  %s4891_s7 = smov 18  }
  0x11   :  { %s5000_s27 = sld [smem:[%s5831_s0 + %s4889_s22]]   ;;  %s4892_s15 = smov 19  }
  0x12   :  { %s5005_s4 = sld [smem:[%s5831_s0 + %s4890_s28]]   ;;  %s4893_s22 = smov 20  }
  0x13   :  { %s4894_s28 = smov 21  }
  0x15   :  { %5843 = sst [smem:[#allocation2_spill]] %s4990_s12 }
  0x16   :  { %5844 = sst [smem:[#allocation3_spill]] %s4995_s20 }
  0x17   :  { %5845 = sst [smem:[#allocation4_spill]] %s5000_s27 }
  0x18   :  { %5846 = sst [smem:[#allocation5_spill]] %s5005_s4 }
  0x19   :  { %s5010_s12 = sld [smem:[%s5831_s0 + %s4891_s7]]   ;;  %s4895_s7 = smov 22  }
  0x1a   :  { %s5015_s20 = sld [smem:[%s5831_s0 + %s4892_s15]]   ;;  %s4896_s15 = smov 23  }
  0x1b   :  { %s5020_s27 = sld [smem:[%s5831_s0 + %s4893_s22]]   ;;  %s4897_s22 = smov 24  }
  0x1c   :  { %s5025_s4 = sld [smem:[%s5831_s0 + %s4894_s28]]   ;;  %s4898_s28 = smov 25  }
  0x1f   :  { %5847 = sst [smem:[#allocation6_spill]] %s5010_s12 }
  0x20   :  { %5848 = sst [smem:[#allocation7_spill]] %s5015_s20 }
  0x21   :  { %5849 = sst [smem:[#allocation8_spill]] %s5020_s27 }
  0x22   :  { %5850 = sst [smem:[#allocation9_spill]] %s5025_s4 }
  0x23   :  { %s5030_s12 = sld [smem:[%s5831_s0 + %s4895_s7]]   ;;  %s4899_s7 = smov 26  }
  0x24   :  { %s5035_s20 = sld [smem:[%s5831_s0 + %s4896_s15]]   ;;  %s4900_s15 = smov 27  }
  0x25   :  { %s5040_s27 = sld [smem:[%s5831_s0 + %s4897_s22]]   ;;  %s4901_s22 = smov 28  }
  0x26   :  { %s5045_s4 = sld [smem:[%s5831_s0 + %s4898_s28]]   ;;  %s4902_s28 = smov 29  }
  0x29   :  { %5851 = sst [smem:[#allocation10_spill]] %s5030_s12 }
  0x2a   :  { %5852 = sst [smem:[#allocation11_spill]] %s5035_s20 }
  0x2b   :  { %5853 = sst [smem:[#allocation12_spill]] %s5040_s27 }
  0x2c   :  { %5854 = sst [smem:[#allocation13_spill]] %s5045_s4 }
  0x2d   :  { %s5050_s12 = sld [smem:[%s5831_s0 + %s4899_s7]]   ;;  %s4903_s7 = smov 30  }
  0x2e   :  { %s5055_s20 = sld [smem:[%s5831_s0 + %s4900_s15]]   ;;  %s5072_s15 = smov 0  }
  0x2f   :  { %s5060_s27 = sld [smem:[%s5831_s0 + %s4901_s22]]  }
  0x30   :  { %s5065_s4 = sld [smem:[%s5831_s0 + %s4902_s28]]  }
  0x33   :  { %5855 = sst [smem:[#allocation14_spill]] %s5050_s12 }
  0x34   :  { %s5070_s12 = sld [smem:[%s5831_s0 + %s4903_s7]]  }
  0x35 LB: > { %s4319_s16 = sadd.s32 4294967295, %s4872_s15   ;;  %p4323_p0 = scmp.ge.s32.totalorder %s4872_s15, 1  ;;  %s4872_s15 = sphi %s5072_s15, %s71_s15  }
  0x36   : > { %p843_p1 = scmp.lt.s32.totalorder %s4872_s15, 3 }
  0x38   : > { %p844_p2 = pnand %p4323_p0, %p843_p1 }
  0x39   : > { %p921_p3 = scmp.lt.s32.totalorder (!%p844_p2), %s4319_s16, 1  ;;  %s4905_s22 = smov (!%p844_p2), 112  }
  0x3a   : > { %847 = sbr.rel (%p844_p2) target bundleno = 4183 (0x1057), region = 140  ;;  %s4907_s28 = smov (!%p844_p2), 1  }
  0x3b   : > { %s4909_s1 = smov (!%p844_p2), 127   ;;  %s5856_s2 = sld [smem:[#allocation2_spill]] (!%p844_p2) }
  0x3c   : > { %s4910_s7 = smov (!%p844_p2), 2   ;;  %s5857_s10 = sld [smem:[#allocation3_spill]] (!%p844_p2) }
  0x3d   : > { %s5858_s11 = sld [smem:[#allocation4_spill]] (!%p844_p2) }
  0x3f   : > { %v4904_v0 = vmov 0   ;;  %s5870_s16 = smov (!%p921_p3, %s4319_s16), 1  ;;  %v4767_v37 = vld [vmem:[%s4925_s9 + $0x4] ss:$8 sps:$4 sm:$0xff]   ;;  %vm1043_vm0 = vcmask 523264   ;;  %v1174_v43 = vld [vmem:[%s4930_s13 + $0x10] sm:$0xff] }
  0x40   : > { %1123 = vmatprep.subr.bf16.mxu1 %v4904_v0  ;;  %1050 = vmatprep.subr.bf16.mxu0 %v4904_v0  ;;  %s4708_s0 = smul.u32 192, %s5870_s16  ;;  %v4770_v38 = vld [vmem:[%s4925_s9 + $0x24] ss:$8 sps:$4 sm:$0xff]   ;;  %v4765_v41 = vld [vmem:[%s4925_s9] ss:$8 sps:$4 sm:$0xff]   ;;  %v1175_v44 = vld [vmem:[%s4930_s13 + $0x18] sm:$0xff] }
  0x41   : > { %4763 = vset.pattern.permute.xlu0 %v4904_v0  ;;  %4764 = vset.pattern.permute.xlu1 %v4904_v0  ;;  %v1172_v39 = vld [vmem:[%s4930_s13] sm:$0xff]  ;;  %v1173_v40 = vld [vmem:[%s4930_s13 + $0x8] sm:$0xff]  ;;  %v4771_v42 = vld [vmem:[%s4925_s9 + $0x14] ss:$8 sps:$4 sm:$0xff]   ;;  %vm1208_vm1 = vcmask 261120   ;;  %vm4908_vm2 = vmmov 0  }
  0x42   : > { %s5088_s18 = scalar_lea.vmem %s4920_s5, %s4708_s0  ;;  %4341 = vmatprep.mubr.msk.bf16.mxu1 %vm1043_vm0, %v4767_v37  ;;  %4335 = vmatprep.mubr.msk.bf16.mxu0 %vm1043_vm0, %v4770_v38  ;;  %v4773_v45 = vld [vmem:[%s4925_s9 + $0x10] ss:$8 sps:$4 sm:$0xff]   ;;  %v4768_v58 = vld [vmem:[%s4925_s9 + $0x20] ss:$8 sps:$4 sm:$0xff]   ;;  %v4774_v59 = vld [vmem:[%s4925_s9 + $0x34] ss:$8 sps:$4 sm:$0xff]  }
  0x43   : > { %v946_v1 = vld [vmem:[%s5088_s18 + $0x70] sm:$0xff]  ;;  %v947_v2 = vld [vmem:[%s5088_s18 + $0x78] sm:$0xff]  ;;  %v944_v3 = vld [vmem:[%s5088_s18 + $0x60] sm:$0xff]  ;;  %vm1373_vm3 = vcmask 7168   ;;  %vm1488_vm4 = vcmask 252928   ;;  %vm1731_vm5 = vcmask 1041408  }
  0x44   : > { %v963_v4 = vpack.c.bf16 %v947_v2, %v946_v1  ;;  %v945_v5 = vld [vmem:[%s5088_s18 + $0x68] sm:$0xff]  ;;  %v942_v6 = vld [vmem:[%s5088_s18 + $0x50] sm:$0xff]  ;;  %v943_v7 = vld [vmem:[%s5088_s18 + $0x58] sm:$0xff]  ;;  %vm1727_vm6 = vcmask 15360   ;;  %vm1986_vm7 = vcmask 64512   ;;  %vm1999_vm8 = vcmask 1043456  }
  0x45   : > { %v961_v8 = vpack.c.bf16 %v943_v7, %v942_v6  ;;  %v940_v9 = vld [vmem:[%s5088_s18 + $0x40] sm:$0xff]  ;;  %v941_v10 = vld [vmem:[%s5088_s18 + $0x48] sm:$0xff]  ;;  %v962_v11 = vpack.c.bf16 %v945_v5, %v944_v3  ;;  %v938_v13 = vld [vmem:[%s5088_s18 + $0x30] sm:$0xff]  ;;  %s4911_s0 = smov 126   ;;  %vm2744_vm9 = vcmask 244736  }
  0x46   : > { %1021 = vrot.lane.b32.xlu0 %v963_v4, %s4905_s22  ;;  %1124 = vmatpush1.bf16.msra.mxu1 %v963_v4  ;;  %v960_v12 = vpack.c.bf16 %v941_v10, %v940_v9  ;;  %v939_v14 = vld [vmem:[%s5088_s18 + $0x38] sm:$0xff]  ;;  %v936_v15 = vld [vmem:[%s5088_s18 + $0x20] sm:$0xff]  ;;  %v937_v16 = vld [vmem:[%s5088_s18 + $0x28] sm:$0xff] }
  0x47   : > { %1017 = vrot.lane.b32.xlu1 %v961_v8, %s4905_s22  ;;  %1125 = vmatprep.subr.bf16.mxu1 %v4904_v0  ;;  %v934_v17 = vld [vmem:[%s5088_s18 + $0x10] sm:$0xff]  ;;  %v959_v18 = vpack.c.bf16 %v939_v14, %v938_v13  ;;  %v935_v19 = vld [vmem:[%s5088_s18 + $0x18] sm:$0xff]  ;;  %v932_v20 = vld [vmem:[%s5088_s18] sm:$0xff]  ;;  %v958_v22 = vpack.c.bf16 %v937_v16, %v936_v15 }
  0x48   : > { %v933_v21 = vld [vmem:[%s5088_s18 + $0x8] sm:$0xff]  ;;  %v957_v23 = vpack.c.bf16 %v935_v19, %v934_v17  ;;  %v954_v25 = vld [vmem:[%s5088_s18 + $0xb0] sm:$0xff]  ;;  %v955_v26 = vld [vmem:[%s5088_s18 + $0xb8] sm:$0xff] }
  0x49   : > { %v956_v24 = vpack.c.bf16 %v933_v21, %v932_v20  ;;  %v952_v27 = vld [vmem:[%s5088_s18 + $0xa0] sm:$0xff]  ;;  %v953_v28 = vld [vmem:[%s5088_s18 + $0xa8] sm:$0xff]  ;;  %v967_v29 = vpack.c.bf16 %v955_v26, %v954_v25  ;;  %v950_v31 = vld [vmem:[%s5088_s18 + $0x90] sm:$0xff] }
  0x4a   : > { %1019 = vrot.lane.b32.xlu0 %v962_v11, %s4905_s22  ;;  %1126 = vmatpush1.bf16.msra.mxu1 %v962_v11  ;;  %v966_v30 = vpack.c.bf16 %v953_v28, %v952_v27  ;;  %v951_v32 = vld [vmem:[%s5088_s18 + $0x98] sm:$0xff]  ;;  %v948_v33 = vld [vmem:[%s5088_s18 + $0x80] sm:$0xff]  ;;  %v949_v34 = vld [vmem:[%s5088_s18 + $0x88] sm:$0xff]  ;;  %s5859_s18 = sld [smem:[#allocation5_spill]] }
  0x4b   : > { %1015 = vrot.lane.b32.xlu1 %v960_v12, %s4905_s22  ;;  %1127 = vmatprep.subr.bf16.mxu1 %v4904_v0  ;;  %v965_v35 = vpack.c.bf16 %v951_v32, %v950_v31  ;;  %v964_v36 = vpack.c.bf16 %v949_v34, %v948_v33  ;;  %v4776_v60 = vld [vmem:[%s4925_s9 + $0x30] ss:$8 sps:$4 sm:$0xff]  }
  0x4e   : > { %1013 = vrot.lane.b32.xlu0 %v959_v18, %s4905_s22  ;;  %1128 = vmatpush1.bf16.msra.mxu1 %v961_v8 }
  0x4f   : > { %1011 = vrot.lane.b32.xlu1 %v958_v22, %s4905_s22  ;;  %1129 = vmatprep.subr.bf16.mxu1 %v4904_v0 }
  0x52   : > { %1009 = vrot.lane.b32.xlu0 %v957_v23, %s4905_s22  ;;  %1130 = vmatpush1.bf16.msra.mxu1 %v960_v12 }
  0x53   : > { %1007 = vrot.lane.b32.xlu1 %v956_v24, %s4905_s22  ;;  %1131 = vmatprep.subr.bf16.mxu1 %v4904_v0 }
  0x56   : > { %1029 = vrot.lane.b32.xlu0 %v967_v29, %s4905_s22  ;;  %1132 = vmatpush1.bf16.msra.mxu1 %v959_v18 }
  0x57   : > { %1027 = vrot.lane.b32.xlu1 %v966_v30, %s4905_s22  ;;  %1133 = vmatprep.subr.bf16.mxu1 %v4904_v0 }
  0x5a   : > { %1025 = vrot.lane.b32.xlu0 %v965_v35, %s4905_s22  ;;  %1134 = vmatpush1.bf16.msra.mxu1 %v958_v22 }
  0x5b   : > { %1023 = vrot.lane.b32.xlu1 %v964_v36, %s4905_s22  ;;  %1135 = vmatprep.subr.bf16.mxu1 %v4904_v0  ;;  %s5860_s22 = sld [smem:[#allocation7_spill]] }
  0x5e   : > { %1136 = vmatpush1.bf16.msra.mxu1 %v957_v23  ;;  %1178 = vperm.xlu0 %4763, %v1172_v39  }
  0x5f   : > { %1137 = vmatprep.subr.bf16.mxu1 %v4904_v0  ;;  %1183 = vperm.xlu1 %4764, %v1173_v40  }
  0x62   : > { %1138 = vmatpush1.bf16.msra.mxu1 %v956_v24  ;;  %1193 = vperm.xlu0 %4763, %v1175_v44   ;;  %v1206_v44 = vld [vmem:[%s4940_s21 + $0x10] sm:$0xff] }
  0x63   : > { %1147 = vmatprep.subr.bf16.mxu1 %v4904_v0  ;;  %1188 = vperm.xlu1 %4764, %v1174_v43   ;;  %v1203_v43 = vld [vmem:[%s4935_s17 + $0x18] sm:$0xff] }
  0x66   : > { %1148 = vmatpush2.bf16.msra.mxu1 %v967_v29 }
  0x67   : > { %1149 = vmatprep.subr.bf16.mxu1 %v4904_v0 }
  0x6a   : > { %1150 = vmatpush2.bf16.msra.mxu1 %v966_v30 }
  0x6b   : > { %1151 = vmatprep.subr.bf16.mxu1 %v4904_v0 }
  0x6e   : > { %1152 = vmatpush2.bf16.msra.mxu1 %v965_v35 }
  0x6f   : > { %1153 = vmatprep.subr.bf16.mxu1 %v4904_v0 }
  0x72   : > { %1154 = vmatpush2.bf16.msra.mxu1 %v964_v36 }
  0x75   : > { %1156 = vmatmul.mubr.bf16.vlgmr.msra.gmra.mxu1 %v4765_v41 }
  0x76   : > { %4342 = vmatprep.mubr.msk.bf16.mxu1 %vm1043_vm0, %v4771_v42 }
  0x7d   : > { %1164 = vmatmul.mubr.bf16.gmra.mxu1 %v4773_v45  ;;  %v1202_v45 = vld [vmem:[%s4935_s17 + $0x10] sm:$0xff] }
  0xb8   : > { %v1022_v46 = vpop.permute.xlu0 %1021 }
  0xb9   : > { %1051 = vmatpush1.bf16.msra.mxu0 %v1022_v46  ;;  %v1018_v48 = vpop.permute.xlu1 %1017  ;;  %v1200_v46 = vld [vmem:[%s4935_s17] sm:$0xff] }
  0xba   : > { %1052 = vmatprep.subr.bf16.mxu0 %v4904_v0 }
  0xbc   : > { %v1020_v47 = vpop.permute.xlu0 %1019 }
  0xbd   : > { %1053 = vmatpush1.bf16.msra.mxu0 %v1020_v47  ;;  %v1016_v49 = vpop.permute.xlu1 %1015  ;;  %v1207_v47 = vld [vmem:[%s4940_s21 + $0x18] sm:$0xff] }
  0xbe   : > { %1054 = vmatprep.subr.bf16.mxu0 %v4904_v0 }
  0xc0   : > { %v1014_v50 = vpop.permute.xlu0 %1013 }
  0xc1   : > { %1055 = vmatpush1.bf16.msra.mxu0 %v1018_v48  ;;  %v1012_v51 = vpop.permute.xlu1 %1011  ;;  %v1204_v48 = vld [vmem:[%s4940_s21] sm:$0xff] }
  0xc2   : > { %1056 = vmatprep.subr.bf16.mxu0 %v4904_v0 }
  0xc4   : > { %v1010_v52 = vpop.permute.xlu0 %1009 }
  0xc5   : > { %1057 = vmatpush1.bf16.msra.mxu0 %v1016_v49  ;;  %v1008_v53 = vpop.permute.xlu1 %1007  ;;  %v1201_v49 = vld [vmem:[%s4935_s17 + $0x8] sm:$0xff] }
  0xc6   : > { %1058 = vmatprep.subr.bf16.mxu0 %v4904_v0 }
  0xc8   : > { %v1030_v54 = vpop.permute.xlu0 %1029 }
  0xc9   : > { %1059 = vmatpush1.bf16.msra.mxu0 %v1014_v50  ;;  %v1028_v55 = vpop.permute.xlu1 %1027  ;;  %v1205_v50 = vld [vmem:[%s4940_s21 + $0x8] sm:$0xff] }
  0xca   : > { %1060 = vmatprep.subr.bf16.mxu0 %v4904_v0 }
  0xcc   : > { %v1026_v56 = vpop.permute.xlu0 %1025 }
  0xcd   : > { %1061 = vmatpush1.bf16.msra.mxu0 %v1012_v51  ;;  %v1024_v57 = vpop.permute.xlu1 %1023 }
  0xce   : > { %1062 = vmatprep.subr.bf16.mxu0 %v4904_v0 }
  0xd1   : > { %1063 = vmatpush1.bf16.msra.mxu0 %v1010_v52 }
  0xd2   : > { %1064 = vmatprep.subr.bf16.mxu0 %v4904_v0 }
  0xd5   : > { %1065 = vmatpush1.bf16.msra.mxu0 %v1008_v53 }
  0xd6   : > { %1074 = vmatprep.subr.bf16.mxu0 %v4904_v0 }
  0xd9   : > { %1075 = vmatpush2.bf16.msra.mxu0 %v1030_v54  ;;  %v1179_v8 = vpop.permute.xlu0 %1178 }
  0xda   : > { %1076 = vmatprep.subr.bf16.mxu0 %v4904_v0  ;;  %v1184_v10 = vpop.permute.xlu1 %1183 }
  0xdd   : > { %1077 = vmatpush2.bf16.msra.mxu0 %v1028_v55  ;;  %v1194_v29 = vpop.permute.xlu0 %1193 }
  0xde   : > { %1078 = vmatprep.subr.bf16.mxu0 %v4904_v0  ;;  %v1189_v18 = vpop.permute.xlu1 %1188 }
  0xe1   : > { %1079 = vmatpush2.bf16.msra.mxu0 %v1026_v56 }
  0xe2   : > { %1080 = vmatprep.subr.bf16.mxu0 %v4904_v0 }
  0xe5   : > { %1081 = vmatpush2.bf16.msra.mxu0 %v1024_v57 }
  0xe8   : > { %1083 = vmatmul.mubr.bf16.vlgmr.msra.gmra.mxu0 %v4768_v58 }
  0xe9   : > { %4336 = vmatprep.mubr.msk.bf16.mxu0 %vm1043_vm0, %v4774_v59 }
  0xf0   : > { %1091 = vmatmul.mubr.bf16.gmra.mxu0 %v4776_v60 }
 0x135   : > { %v1157_v61 = vpop.f32.mrf.mxu1 }
 0x137   : > { %v1159_v62 = vpop.f32.mrf.mxu1 }
 0x139   : > { %v1160_v63 = vpop.f32.mrf.mxu1 }
 0x13b   : > { %v1162_v1 = vpop.f32.mrf.mxu1 }
 0x13d   : > { %v1165_v2 = vpop.f32.mrf.mxu1 }
 0x13f   : > { %v1167_v3 = vpop.f32.mrf.mxu1 }
 0x141   : > { %v1168_v4 = vpop.f32.mrf.mxu1 }
 0x143   : > { %v1170_v5 = vpop.f32.mrf.mxu1 }
 0x1a8   : > { %v1084_v6 = vpop.f32.mrf.mxu0 }
 0x1a9   : > { %v1158_v0 = vadd.f32 %v1157_v61, %v1084_v6 }
 0x1aa   : > { %v1086_v7 = vpop.f32.mrf.mxu0 }
 0x1ab   : > { %v5164_v13 = vadd.f32 %v1179_v8, %v1158_v0 }
 0x1ac   : > { %v1087_v9 = vpop.f32.mrf.mxu0 }
 0x1ad   : > { %v1161_v11 = vadd.f32 %v1160_v63, %v1087_v9  ;;  %v1228_v20 = vmul.f32 %v5164_v13, %v5164_v13  ;;  %v1209_v23 = vsel %vm1208_vm1, %v5164_v13, 0.0 }
 0x1ae   : > { %v1089_v12 = vpop.f32.mrf.mxu0 }
 0x1af   : > { %v5166_v14 = vadd.f32 %v1184_v10, %v1161_v11  ;;  %v1232_v33 = vsel %vm1208_vm1, %v1228_v20, 0.0 }
 0x1b0   : > { %v1092_v15 = vpop.f32.mrf.mxu0 }
 0x1b1   : > { %v1229_v16 = vmul.f32 %v5166_v14, %v5166_v14  ;;  %v1166_v17 = vadd.f32 %v1165_v2, %v1092_v15  ;;  %v1210_v21 = vsel %vm1208_vm1, %v5166_v14, 0.0 }
 0x1b2   : > { %v1094_v19 = vpop.f32.mrf.mxu0  ;;  %v1211_v31 = vadd.f32 %v1210_v21, %v1209_v23 }
 0x1b3   : > { %v5174_v22 = vadd.f32 %v1189_v18, %v1166_v17  ;;  %v1233_v28 = vsel %vm1208_vm1, %v1229_v16, 0.0 }
 0x1b4   : > { %v1095_v24 = vpop.f32.mrf.mxu0  ;;  %v1234_v36 = vadd.f32 %v1233_v28, %v1232_v33 }
 0x1b5   : > { %v1230_v25 = vmul.f32 %v5174_v22, %v5174_v22  ;;  %v1169_v26 = vadd.f32 %v1168_v4, %v1095_v24  ;;  %v1212_v27 = vsel %vm1208_vm1, %v5174_v22, 0.0 }
 0x1b6   : > { %v1097_v30 = vpop.f32.mrf.mxu0  ;;  %v1213_v35 = vadd.f32 %v1212_v27, %v1211_v31 }
 0x1b7   : > { %v5183_v32 = vadd.f32 %v1194_v29, %v1169_v26  ;;  %v1235_v34 = vsel %vm1208_vm1, %v1230_v25, 0.0 }
 0x1b8   : > { %v1236_v40 = vadd.f32 %v1235_v34, %v1234_v36 }
 0x1b9   : > { %v1214_v37 = vsel %vm1208_vm1, %v5183_v32, 0.0  ;;  %v1231_v38 = vmul.f32 %v5183_v32, %v5183_v32 }
 0x1ba   : > { %v1215_v39 = vadd.f32 %v1214_v37, %v1213_v35 }
 0x1bb   : > { %v1237_v41 = vsel %vm1208_vm1, %v1231_v38, 0.0 }
 0x1bc   : > { %1216 = vadd.xlane.f32.xlu1 %v1215_v39  ;;  %v1238_v42 = vadd.f32 %v1237_v41, %v1236_v40 }
 0x1be   : > { %1239 = vadd.xlane.f32.xlu0 %v1238_v42 }
 0x1cd   : > { %1280 = vperm.xlu1 %4764, %v1203_v43  }
 0x1d1   : > { %1299 = vperm.xlu1 %4764, %v1206_v44  }
 0x1d4   : > { %1275 = vperm.xlu0 %4763, %v1202_v45  }
 0x1d5   : > { %1265 = vperm.xlu1 %4764, %v1200_v46  }
 0x1d8   : > { %1304 = vperm.xlu0 %4763, %v1207_v47  }
 0x1d9   : > { %1289 = vperm.xlu1 %4764, %v1204_v48  }
 0x1dc   : > { %1270 = vperm.xlu0 %4763, %v1201_v49  }
 0x1e0   : > { %1294 = vperm.xlu0 %4763, %v1205_v50  }
 0x245   : > { %v1217_v51 = vpop.xlane.xlu1 %1216 }
 0x246   : > { %v1218_v52 = vrot.slane %v1217_v51, 4 }
 0x247   : > { %v1240_v53 = vpop.xlane.xlu0 %1239 }
 0x248   : > { %v1219_v54 = vadd.f32 %v1218_v52, %v1217_v51  ;;  %v1241_v55 = vrot.slane %v1240_v53, 4 }
 0x249   : > { %v1281_v9 = vpop.permute.xlu1 %1280 }
 0x24a   : > { %v1242_v56 = vadd.f32 %v1241_v55, %v1240_v53  ;;  %v1220_v57 = vrot.slane %v1219_v54, 2 }
 0x24c   : > { %v1221_v58 = vadd.f32 %v1220_v57, %v1219_v54  ;;  %v1243_v59 = vrot.slane %v1242_v56, 2  ;;  %v4906_v54 = vmov 0.0  }
 0x24d   : > { %v1300_v11 = vpop.permute.xlu1 %1299  ;;  %4498 = vmatprep.subr.bf16.mxu1 %v4906_v54  ;;  %4514 = vmatprep.subr.bf16.mxu0 %v4906_v54 }
 0x24e   : > { %v1222_v60 = vrot.slane %v1221_v58, 1  ;;  %v1244_v61 = vadd.f32 %v1243_v59, %v1242_v56  ;;  %4502 = vmatprep.mubr.msk.bf16.mxu1 %vm4908_vm2, %v4906_v54  ;;  %4518 = vmatprep.mubr.msk.bf16.mxu0 %vm4908_vm2, %v4906_v54 }
 0x24f   : > { %v1276_v10 = vpop.permute.xlu0 %1275 }
 0x250   : > { %v1223_v62 = vadd.f32 %v1222_v60, %v1221_v58  ;;  %v1245_v63 = vrot.slane %v1244_v61, 1 }
 0x251   : > { %v1266_v15 = vpop.permute.xlu1 %1265 }
 0x252   : > { %4709 = vpush %v1223_v62  ;;  %v1246_v1 = vadd.f32 %v1245_v63, %v1244_v61 }
 0x253   : > { %v1305_v12 = vpop.permute.xlu0 %1304 }
 0x254   : > { %4711 = vpush %v1246_v1 }
 0x255   : > { %v1290_v31 = vpop.permute.xlu1 %1289 }
 0x257   : > { %v1271_v16 = vpop.permute.xlu0 %1270 }
 0x25b   : > { %v1295_v33 = vpop.permute.xlu0 %1294 }
 0x283   : > { %s4710_s23 = spop %4709 }
 0x284   : > { %v1225_v2 = vstv %s4710_s23  ;;  %s5861_s23 = sld [smem:[#allocation8_spill]] }
 0x285   : > { %v1227_v3 = vmul.f32 0.0009765625, %v1225_v2  ;;  %s4712_s26 = spop %4711 }
 0x286   : > { %v1248_v4 = vstv %s4712_s26  ;;  %s5862_s26 = sld [smem:[#allocation9_spill]] }
 0x287   : > { %v1249_v5 = vmul.f32 0.0009765625, %v1248_v4  ;;  %v1250_v6 = vmul.f32 %v1227_v3, %v1227_v3  ;;  %v1255_v17 = vsub.f32 %v5164_v13, %v1227_v3  ;;  %v1256_v18 = vsub.f32 %v5166_v14, %v1227_v3 }
 0x288   : > { %v1257_v19 = vsub.f32 %v5174_v22, %v1227_v3  ;;  %v1258_v20 = vsub.f32 %v5183_v32, %v1227_v3 }
 0x289   : > { %v1251_v7 = vsub.f32 %v1249_v5, %v1250_v6 }
 0x28b   : > { %v1252_v0 = vmax.f32 %v1251_v7, 0.0 }
 0x28d   : > { %v1253_v8 = vadd.f32 1e-05, %v1252_v0  ;;  %v1556_v0 = vld [vmem:[%s4955_s3] sm:$0xff] }
 0x28f   : > { %4789 = vrsqrt.f32 %v1253_v8  ;;  %v1549_v8 = vld [vmem:[%s4950_s29] sm:$0xff] }
 0x29c   : > { %v4790_v21 = vpop.eup %4789 }
 0x29d   : > { %v1262_v23 = vmul.f32 %v4790_v21, %v1258_v20  ;;  %v1261_v24 = vmul.f32 %v4790_v21, %v1257_v19  ;;  %v1260_v25 = vmul.f32 %v4790_v21, %v1256_v18  ;;  %v1259_v26 = vmul.f32 %v4790_v21, %v1255_v17  ;;  %v1924_v17 = vld [vmem:[%s4970_s19 + $0x30] sm:$0xff]  ;;  %v1923_v18 = vld [vmem:[%s4970_s19 + $0x28] sm:$0xff]  ;;  %v1925_v20 = vld [vmem:[%s4970_s19 + $0x38] sm:$0xff] }
 0x29e   : > { %v2074_v19 = vld [vmem:[%s4975_s24 + $0x30] sm:$0xff] }
 0x29f   : > { %v1286_v27 = vmul.f32 %v1281_v9, %v1262_v23  ;;  %v1285_v28 = vmul.f32 %v1276_v10, %v1261_v24  ;;  %v1284_v29 = vmul.f32 %v1271_v16, %v1260_v25  ;;  %v1283_v30 = vmul.f32 %v1266_v15, %v1259_v26  ;;  %v1918_v9 = vld [vmem:[%s4970_s19] sm:$0xff]  ;;  %v1921_v16 = vld [vmem:[%s4970_s19 + $0x18] sm:$0xff]  ;;  %v2082_v21 = vld [vmem:[%s4980_s30 + $0x30] sm:$0xff] }
 0x2a0   : > { %v1557_v10 = vld [vmem:[%s4960_s8] sm:$0xff]  ;;  %v2075_v23 = vld [vmem:[%s4975_s24 + $0x38] sm:$0xff] }
 0x2a1   : > { %v1310_v34 = vadd.f32 %v1305_v12, %v1286_v27  ;;  %v1309_v35 = vadd.f32 %v1300_v11, %v1285_v28  ;;  %v1308_v13 = vadd.f32 %v1295_v33, %v1284_v29  ;;  %v1307_v36 = vadd.f32 %v1290_v31, %v1283_v30  ;;  %v1920_v11 = vld [vmem:[%s4970_s19 + $0x10] sm:$0xff]  ;;  %v1919_v12 = vld [vmem:[%s4970_s19 + $0x8] sm:$0xff]  ;;  %v1922_v15 = vld [vmem:[%s4970_s19 + $0x20] sm:$0xff] }
 0x2a2   : > { %v2072_v24 = vld [vmem:[%s4975_s24 + $0x20] sm:$0xff]  ;;  %v2083_v25 = vld [vmem:[%s4980_s30 + $0x38] sm:$0xff]  ;;  %v2073_v27 = vld [vmem:[%s4975_s24 + $0x28] sm:$0xff] }
 0x2a3   : > { %v1318_v14 = vmul.f32 0.044715, %v1310_v34  ;;  %v1317_v37 = vmul.f32 0.044715, %v1309_v35  ;;  %v1316_v22 = vmul.f32 0.044715, %v1308_v13 }
 0x2a4   : > { %v1315_v38 = vmul.f32 0.044715, %v1307_v36  ;;  %v1314_v57 = vmul.f32 0.5, %v1310_v34  ;;  %v1313_v60 = vmul.f32 0.5, %v1309_v35  ;;  %v1312_v4 = vmul.f32 0.5, %v1308_v13  ;;  %v2080_v26 = vld [vmem:[%s4980_s30 + $0x20] sm:$0xff] }
 0x2a5   : > { %v1322_v32 = vmul.f32 %v1318_v14, %v1310_v34  ;;  %v1321_v39 = vmul.f32 %v1317_v37, %v1309_v35  ;;  %v1320_v40 = vmul.f32 %v1316_v22, %v1308_v13  ;;  %v1311_v5 = vmul.f32 0.5, %v1307_v36  ;;  %v2070_v28 = vld [vmem:[%s4975_s24 + $0x10] sm:$0xff]  ;;  %v2081_v29 = vld [vmem:[%s4980_s30 + $0x28] sm:$0xff]  ;;  %v2071_v31 = vld [vmem:[%s4975_s24 + $0x18] sm:$0xff] }
 0x2a6   : > { %v1319_v41 = vmul.f32 %v1315_v38, %v1307_v36  ;;  %v2078_v30 = vld [vmem:[%s4980_s30 + $0x10] sm:$0xff]  ;;  %v2068_v33 = vld [vmem:[%s4975_s24] sm:$0xff]  ;;  %v2077_v14 = vld [vmem:[%s4980_s30 + $0x8] sm:$0xff] }
 0x2a7   : > { %v1326_v42 = vmul.f32 %v1322_v32, %v1310_v34  ;;  %v1325_v43 = vmul.f32 %v1321_v39, %v1309_v35  ;;  %v1324_v44 = vmul.f32 %v1320_v40, %v1308_v13  ;;  %v2553_v37 = vld [vmem:[%s4985_s6] sm:$0xff]  ;;  %v2556_v22 = vld [vmem:[%s4985_s6 + $0x18] sm:$0xff]  ;;  %v2554_v38 = vld [vmem:[%s4985_s6 + $0x8] sm:$0xff] }
 0x2a8   : > { %v1323_v45 = vmul.f32 %v1319_v41, %v1307_v36  ;;  %v4344_v32 = vld [vmem:[%s5065_s4] ss:$0 sm:$0xff] }
 0x2a9   : > { %v1330_v46 = vadd.f32 %v1326_v42, %v1310_v34  ;;  %v1329_v47 = vadd.f32 %v1325_v43, %v1309_v35  ;;  %v1328_v48 = vadd.f32 %v1324_v44, %v1308_v13  ;;  %v2079_v34 = vld [vmem:[%s4980_s30 + $0x18] sm:$0xff]  ;;  %v2076_v35 = vld [vmem:[%s4980_s30] sm:$0xff]  ;;  %v2069_v13 = vld [vmem:[%s4975_s24 + $0x8] sm:$0xff] }
 0x2aa   : > { %v1327_v49 = vadd.f32 %v1323_v45, %v1307_v36  ;;  %v2555_v36 = vld [vmem:[%s4985_s6 + $0x10] sm:$0xff] }
 0x2ab   : > { %v1334_v50 = vmul.f32 0.7978846, %v1330_v46  ;;  %v1333_v51 = vmul.f32 0.7978846, %v1329_v47  ;;  %v1332_v52 = vmul.f32 0.7978846, %v1328_v48 }
 0x2ac   : > { %v1331_v53 = vmul.f32 0.7978846, %v1327_v49 }
 0x2ad   : > { %4791 = vtanh.f32 %v1334_v50 }
 0x2ae   : > { %4793 = vtanh.f32 %v1333_v51 }
 0x2af   : > { %4795 = vtanh.f32 %v1332_v52  ;;  %v4347_v52 = vld [vmem:[%s5065_s4 + $0x1] ss:$0 sm:$0xff] }
 0x2b0   : > { %4797 = vtanh.f32 %v1331_v53 }
 0x2ba   : > { %v4792_v55 = vpop.eup %4791 }
 0x2bb   : > { %v4794_v56 = vpop.eup %4793  ;;  %v1342_v58 = vadd.f32 1.0, %v4792_v55 }
 0x2bc   : > { %v4796_v59 = vpop.eup %4795  ;;  %v1341_v61 = vadd.f32 1.0, %v4794_v56 }
 0x2bd   : > { %v4798_v62 = vpop.eup %4797  ;;  %v5206_v63 = vmul.f32 %v1342_v58, %v1314_v57  ;;  %v1340_v1 = vadd.f32 1.0, %v4796_v59 }
 0x2be   : > { %v5208_v2 = vmul.f32 %v1341_v61, %v1313_v60  ;;  %v1339_v3 = vadd.f32 1.0, %v4798_v62  ;;  %v1386_v61 = vld [vmem:[%s4945_s25] sm:$0xf] }
 0x2bf   : > { %1367 = vrot.lane.b32.xlu0 %v5206_v63, %s4907_s28  ;;  %v5216_v6 = vmul.f32 %v1340_v1, %v1312_v4 }
 0x2c0   : > { %1365 = vrot.lane.b32.xlu1 %v5208_v2, %s4907_s28  ;;  %v5218_v7 = vmul.f32 %v1339_v3, %v1311_v5  ;;  %v1353_v5 = vpack.c.bf16 %v5206_v63, %v5208_v2 }
 0x2c3   : > { %1363 = vrot.lane.b32.xlu0 %v5216_v6, %s4907_s28 }
 0x2c4   : > { %1361 = vrot.lane.b32.xlu1 %v5218_v7, %s4907_s28  ;;  %s5863_s28 = sld [smem:[#allocation10_spill]] }
 0x2c7   : > { %1482 = vrot.lane.b32.xlu0 %v5206_v63, %s4909_s1 }
 0x2c8   : > { %1480 = vrot.lane.b32.xlu1 %v5208_v2, %s4909_s1 }
 0x2cb   : > { %1478 = vrot.lane.b32.xlu0 %v5216_v6, %s4909_s1 }
 0x2cc   : > { %1476 = vrot.lane.b32.xlu1 %v5218_v7, %s4909_s1  ;;  %s5864_s1 = sld [smem:[#allocation12_spill]] }
 0x2cf   : > { %1890 = vperm.xlu0 %4763, %v1556_v0  }
 0x2d0   : > { %1552 = vperm.xlu1 %4764, %v1549_v8  }
 0x2d3   : > { %1928 = vperm.xlu0 %4763, %v1918_v9  }
 0x2d4   : > { %1896 = vperm.xlu1 %4764, %v1557_v10  }
 0x2d7   : > { %1938 = vperm.xlu0 %4763, %v1920_v11   ;;  %v1352_v11 = vpack.c.bf16 %v5216_v6, %v5218_v7 }
 0x2d8   : > { %1933 = vperm.xlu1 %4764, %v1919_v12   ;;  %v4343_v12 = vld [vmem:[%s4945_s25 + $0x4] sm:$0xf] }
 0x2db   : > { %1948 = vperm.xlu0 %4763, %v1922_v15   ;;  %v4348_v15 = vld [vmem:[%s4945_s25 + $0x8] sm:$0xf] }
 0x2dc   : > { %1943 = vperm.xlu1 %4764, %v1921_v16   ;;  %v5286_v16 = vld [vmem:[%s5055_s20 + $0x18] sm:$0xff] }
 0x2df   : > { %1958 = vperm.xlu0 %4763, %v1924_v17   ;;  %v5292_v17 = vld [vmem:[%s5055_s20 + $0x10] sm:$0xff] }
 0x2e0   : > { %1953 = vperm.xlu1 %4764, %v1923_v18   ;;  %v5296_v18 = vld [vmem:[%s5055_s20 + $0x8] sm:$0xff] }
 0x2e3   : > { %2489 = vperm.xlu0 %4763, %v2074_v19   ;;  %v5303_v19 = vld [vmem:[%s5055_s20] sm:$0xff] }
 0x2e4   : > { %1963 = vperm.xlu1 %4764, %v1925_v20  }
 0x2e7   : > { %2537 = vperm.xlu0 %4763, %v2082_v21  }
 0x2e8   : > { %2494 = vperm.xlu1 %4764, %v2075_v23  }
 0x2eb   : > { %2479 = vperm.xlu0 %4763, %v2072_v24  }
 0x2ec   : > { %2542 = vperm.xlu1 %4764, %v2083_v25  }
 0x2ef   : > { %2527 = vperm.xlu0 %4763, %v2080_v26  }
 0x2f0   : > { %2484 = vperm.xlu1 %4764, %v2073_v27  }
 0x2f3   : > { %2469 = vperm.xlu0 %4763, %v2070_v28  }
 0x2f4   : > { %2532 = vperm.xlu1 %4764, %v2081_v29  }
 0x2f7   : > { %2517 = vperm.xlu0 %4763, %v2078_v30  }
 0x2f8   : > { %2474 = vperm.xlu1 %4764, %v2071_v31  }
 0x2fb   : > { %2459 = vperm.xlu0 %4763, %v2068_v33  }
 0x2fc   : > { %2522 = vperm.xlu1 %4764, %v2079_v34  }
 0x2ff   : > { %2507 = vperm.xlu0 %4763, %v2076_v35  }
 0x300   : > { %2464 = vperm.xlu1 %4764, %v2069_v13  }
 0x303   : > { %2593 = vperm.xlu0 %4763, %v2555_v36  }
 0x304   : > { %2512 = vperm.xlu1 %4764, %v2077_v14  }
 0x307   : > { %2583 = vperm.xlu0 %4763, %v2553_v37  }
 0x308   : > { %2598 = vperm.xlu1 %4764, %v2556_v22  }
 0x30c   : > { %2588 = vperm.xlu1 %4764, %v2554_v38  }
 0x331   : > { %v1368_v39 = vpop.permute.xlu0 %1367 }
 0x332   : > { %v1377_v40 = vsel %vm1373_vm3, 0.0, %v1368_v39  ;;  %v1366_v41 = vpop.permute.xlu1 %1365 }
 0x333   : > { %v1385_v42 = vmul.f32 %v4344_v32, %v1377_v40  ;;  %v1376_v43 = vsel %vm1373_vm3, 0.0, %v1366_v41 }
 0x334   : > { %v1384_v44 = vmul.f32 %v4344_v32, %v1376_v43 }
 0x335   : > { %v1364_v45 = vpop.permute.xlu0 %1363 }
 0x336   : > { %v1388_v46 = vpack.c.bf16 %v1385_v42, %v1384_v44  ;;  %v1375_v47 = vsel %vm1373_vm3, 0.0, %v1364_v45  ;;  %v1362_v48 = vpop.permute.xlu1 %1361 }
 0x337   : > { %v1383_v49 = vmul.f32 %v4344_v32, %v1375_v47  ;;  %v1374_v50 = vsel %vm1373_vm3, 0.0, %v1362_v48 }
 0x338   : > { %v1382_v51 = vmul.f32 %v4344_v32, %v1374_v50  ;;  %4499 = vmatpush3.bf16.msra.mxu1 %v1388_v46 }
 0x339   : > { %v1483_v53 = vpop.permute.xlu0 %1482  ;;  %4500 = vmatprep.subr.bf16.mxu1 %v4906_v54 }
 0x33a   : > { %v1387_v55 = vpack.c.bf16 %v1383_v49, %v1382_v51  ;;  %v1492_v56 = vsel %vm1488_vm4, %v1483_v53, 0.0  ;;  %v1481_v57 = vpop.permute.xlu1 %1480  ;;  %v5319_v49 = vld [vmem:[%s5060_s27] sm:$0x3] }
 0x33b   : > { %v1500_v58 = vmul.f32 %v4347_v52, %v1492_v56  ;;  %v1491_v59 = vsel %vm1488_vm4, %v1481_v57, 0.0 }
 0x33c   : > { %v1499_v60 = vmul.f32 %v4347_v52, %v1491_v59  ;;  %4501 = vmatpush3.bf16.msra.mxu1 %v1387_v55 }
 0x33d   : > { %v1479_v62 = vpop.permute.xlu0 %1478  ;;  %4506 = vmatprep.subr.bf16.mxu1 %v4906_v54 }
 0x33e   : > { %v1504_v1 = vpack.c.bf16 %v1500_v58, %v1499_v60  ;;  %v1490_v3 = vsel %vm1488_vm4, %v1479_v62, 0.0  ;;  %v1477_v4 = vpop.permute.xlu1 %1476  ;;  %v4777_v62 = vld [vmem:[%s4965_s14] sm:$0xff]  }
 0x33f   : > { %v1498_v0 = vmul.f32 %v4347_v52, %v1490_v3  ;;  %v1489_v8 = vsel %vm1488_vm4, %v1477_v4, 0.0  ;;  %4503 = vmatmul.mubr.msk.bf16.vlgmr.msra.gmra.mxu1 %vm1208_vm1, %v1386_v61  ;;  %v1878_v4 = vlaneseq }
 0x340   : > { %v1497_v9 = vmul.f32 %v4347_v52, %v1489_v8  ;;  %4507 = vmatpush3.bf16.msra.mxu1 %v1353_v5  ;;  %4515 = vmatpush3.bf16.msra.mxu0 %v1504_v1 }
 0x341   : > { %4508 = vmatprep.subr.bf16.mxu1 %v4906_v54  ;;  %4516 = vmatprep.subr.bf16.mxu0 %v4906_v54  ;;  %v1879_v5 = vshrl.u32 %v1878_v4, 7 }
 0x342   : > { %v1503_v10 = vpack.c.bf16 %v1498_v0, %v1497_v9  ;;  %4510 = vmatprep.mubr.msk.bf16.mxu1 %vm4908_vm2, %v4906_v54 }
 0x343   : > { %v5343_v0 = vsub.s32 0, %v1879_v5 }
 0x344   : > { %4509 = vmatpush3.bf16.msra.mxu1 %v1352_v11  ;;  %4517 = vmatpush3.bf16.msra.mxu0 %v1503_v10 }
 0x345   : > { %4522 = vmatprep.subr.mxu1 %v4906_v54  ;;  %4533 = vmatprep.subr.mxu0 %v4906_v54 }
 0x347   : > { %4511 = vmatmul.mubr.msk.bf16.vlgmr.msra.gmra.mxu1 %vm1208_vm1, %v4343_v12  ;;  %4519 = vmatmul.mubr.msk.bf16.vlgmr.msra.gmra.mxu0 %vm1208_vm1, %v4348_v15 }
 0x348   : > { %4530 = vmatprep.mubr.msk.f32.mxu1 %vm4908_vm2, %v4906_v54  ;;  %4541 = vmatprep.mubr.msk.f32.mxu0 %vm4908_vm2, %v4906_v54 }
 0x349   : > { %4523 = vmatpush3.msra.mxu1 %v5286_v16  ;;  %4534 = vmatpush3.msra.mxu0 %v5286_v16 }
 0x34a   : > { %4524 = vmatprep.subr.mxu1 %v4906_v54  ;;  %4535 = vmatprep.subr.mxu0 %v4906_v54 }
 0x34b   : > { %4525 = vmatpush3.msra.mxu1 %v5292_v17  ;;  %4536 = vmatpush3.msra.mxu0 %v5292_v17  ;;  %v1553_v30 = vpop.permute.xlu1 %1552 }
 0x34c   : > { %4526 = vmatprep.subr.mxu1 %v4906_v54  ;;  %4537 = vmatprep.subr.mxu0 %v4906_v54 }
 0x34d   : > { %4527 = vmatpush3.msra.mxu1 %v5296_v18  ;;  %4538 = vmatpush3.msra.mxu0 %v5296_v18 }
 0x34e   : > { %4528 = vmatprep.subr.mxu1 %v4906_v54  ;;  %4539 = vmatprep.subr.mxu0 %v4906_v54 }
 0x34f   : > { %4529 = vmatpush3.msra.mxu1 %v5303_v19  ;;  %4540 = vmatpush3.msra.mxu0 %v5303_v19 }
 0x350   : > { %4544 = vmatprep.subr.mxu1 %v4906_v54 }
 0x3ff   : > { %v1426_v20 = vpop.f32.mrf.mxu1 }
 0x401   : > { %v4504_v21 = vpop.f32.mrf.mxu1 }
 0x403   : > { %v1429_v23 = vpop.f32.mrf.mxu1 }
 0x404   : > { %v1897_v23 = vpop.permute.xlu1 %1896 }
 0x405   : > { %v4505_v24 = vpop.f32.mrf.mxu1 }
 0x407   : > { %v1469_v25 = vpop.f32.mrf.mxu1  ;;  %v1542_v26 = vpop.f32.mrf.mxu0 }
 0x408   : > { %v1470_v27 = vadd.f32 %v1469_v25, %v1426_v20  ;;  %v1891_v20 = vpop.permute.xlu0 %1890 }
 0x409   : > { %v4512_v28 = vpop.f32.mrf.mxu1  ;;  %v4520_v29 = vpop.f32.mrf.mxu0 }
 0x40a   : > { %v1548_v31 = vadd.f32 %v1542_v26, %v1470_v27 }
 0x40b   : > { %v1472_v33 = vpop.f32.mrf.mxu1  ;;  %v1545_v34 = vpop.f32.mrf.mxu0 }
 0x40c   : > { %v1555_v35 = vadd.f32 %v1553_v30, %v1548_v31 }
 0x40d   : > { %v4513_v13 = vpop.f32.mrf.mxu1  ;;  %v4521_v36 = vpop.f32.mrf.mxu0 }
 0x40e   : > { %v1558_v14 = vsel %vm1208_vm1, %v1555_v35, 0.0  ;;  %v1565_v37 = vmul.f32 %v1555_v35, %v1555_v35  ;;  %v4778_v36 = vld [vmem:[%s4965_s14 + $0x8] sm:$0xff]  }
 0x40f   : > { %v1559_v22 = vrot.slane %v1558_v14, 4 }
 0x410   : > { %v1566_v38 = vsel %vm1208_vm1, %v1565_v37, 0.0  ;;  %v4780_v37 = vld [vmem:[%s4965_s14 + $0x18] sm:$0xff]  }
 0x411   : > { %v1560_v32 = vadd.f32 %v1559_v22, %v1558_v14  ;;  %v1567_v39 = vrot.slane %v1566_v38, 4  ;;  %v4779_v14 = vld [vmem:[%s4965_s14 + $0x10] sm:$0xff]   ;;  %v1929_v22 = vpop.permute.xlu0 %1928 }
 0x413   : > { %v1561_v40 = vrot.slane %v1560_v32, 2  ;;  %v1568_v41 = vadd.f32 %v1567_v39, %v1566_v38  ;;  %v1934_v38 = vpop.permute.xlu1 %1933 }
 0x415   : > { %v1562_v42 = vadd.f32 %v1561_v40, %v1560_v32  ;;  %v1569_v43 = vrot.slane %v1568_v41, 2  ;;  %v1939_v32 = vpop.permute.xlu0 %1938 }
 0x417   : > { %v1563_v44 = vrot.slane %v1562_v42, 1  ;;  %v1570_v45 = vadd.f32 %v1569_v43, %v1568_v41  ;;  %v1944_v40 = vpop.permute.xlu1 %1943 }
 0x419   : > { %v1564_v46 = vadd.f32 %v1563_v44, %v1562_v42  ;;  %v1571_v47 = vrot.slane %v1570_v45, 1 }
 0x41b   : > { %4531 = vmatmul.mubr.msk.f32.vlgmr.msra.gmra.mxu1 %vm1208_vm1, %v1564_v46  ;;  %v1572_v48 = vadd.f32 %v1571_v47, %v1570_v45  ;;  %v1949_v45 = vpop.permute.xlu0 %1948 }
 0x41c   : > { %4546 = vmatprep.mubr.msk.f32.mxu1 %vm4908_vm2, %v4906_v54  ;;  %4545 = vmatpush3.msk.msra.mxu1 %vm1731_vm5, %v5319_v49 }
 0x41d   : > { %4542 = vmatmul.mubr.msk.f32.vlgmr.msra.gmra.mxu0 %vm1208_vm1, %v1572_v48  ;;  %4549 = vmatprep.subr.mxu1 %v4906_v54 }
 0x41e   : > { %4556 = vmatprep.mubr.msk.bf16.mxu0 %vm1986_vm7, %v4777_v62 }
 0x41f   : > { %v1959_v4 = vpop.permute.xlu0 %1958 }
 0x4db   : > { %v1642_v50 = vpop.f32.mrf.mxu1 }
 0x4dc   : > { %v1647_v51 = vmul.f32 0.015625, %v1642_v50 }
 0x4dd   : > { %v4532_v52 = vpop.f32.mrf.mxu1  ;;  %v1717_v53 = vpop.f32.mrf.mxu0 }
 0x4de   : > { %v1722_v55 = vmul.f32 %v1647_v51, %v1647_v51  ;;  %v1721_v56 = vmul.f32 0.015625, %v1717_v53  ;;  %4547 = vmatmul.mubr.msk.f32.vlgmr.msra.gmra.mxu1 %vm1727_vm6, %v1647_v51  ;;  %v1954_v51 = vpop.permute.xlu1 %1953 }
 0x4df   : > { %v4543_v57 = vpop.f32.mrf.mxu0  ;;  %4550 = vmatpush3.msk.msra.mxu1 %vm1731_vm5, %v5319_v49  ;;  %4551 = vmatprep.mubr.msk.f32.mxu1 %vm4908_vm2, %v4906_v54 }
 0x4e0   : > { %v1723_v58 = vsub.f32 %v1721_v56, %v1722_v55  ;;  %4564 = vmatprep.subr.mxu1 %v4906_v54 }
 0x4e2   : > { %v1724_v59 = vmax.f32 %v1723_v58, 0.0 }
 0x4e4   : > { %v1725_v60 = vadd.f32 1e-05, %v1724_v59 }
 0x4e6   : > { %4799 = vrsqrt.f32 %v1725_v60 }
 0x4f3   : > { %v4800_v61 = vpop.eup %4799 }
 0x4f4   : > { %4552 = vmatmul.mubr.msk.f32.vlgmr.msra.gmra.mxu1 %vm1727_vm6, %v4800_v61 }
 0x4f5   : > { %4565 = vmatpush3.msra.mxu1 %v5286_v16  ;;  %4572 = vmatprep.mubr.msk.f32.mxu1 %vm4908_vm2, %v4906_v54 }
 0x4f6   : > { %4566 = vmatprep.subr.mxu1 %v4906_v54 }
 0x4f7   : > { %4567 = vmatpush3.msra.mxu1 %v5292_v17 }
 0x4f8   : > { %4568 = vmatprep.subr.mxu1 %v4906_v54 }
 0x4f9   : > { %4569 = vmatpush3.msra.mxu1 %v5296_v18 }
 0x4fa   : > { %4570 = vmatprep.subr.mxu1 %v4906_v54 }
 0x4fb   : > { %4571 = vmatpush3.msra.mxu1 %v5303_v19 }
 0x4fc   : > { %4575 = vmatprep.subr.mxu1 %v4906_v54 }
 0x59e   : > { %v1801_v1 = vpop.f32.mrf.mxu1 }
 0x59f   : > { %v1881_v8 = vrot.slane %v1801_v1, %v5343_v0 }
 0x5a0   : > { %v4548_v3 = vpop.f32.mrf.mxu1 }
 0x5a1   : > { %v1882_v10 = vsub.f32 %v1555_v35, %v1881_v8 }
 0x5b4   : > { %v1874_v9 = vpop.f32.mrf.mxu1 }
 0x5b5   : > { %v1886_v11 = vrot.slane %v1874_v9, %v5343_v0 }
 0x5b6   : > { %v4553_v12 = vpop.f32.mrf.mxu1 }
 0x5b7   : > { %v1887_v15 = vmul.f32 %v1886_v11, %v1882_v10 }
 0x5b9   : > { %v1893_v21 = vmul.f32 %v1891_v20, %v1887_v15  ;;  %v1964_v20 = vpop.permute.xlu1 %1963 }
 0x5bb   : > { %v1899_v24 = vadd.f32 %v1897_v23, %v1893_v21 }
 0x5bd   : > { %v1901_v25 = vmul.f32 0.044715, %v1899_v24  ;;  %v1900_v31 = vmul.f32 0.5, %v1899_v24 }
 0x5bf   : > { %v1902_v26 = vmul.f32 %v1901_v25, %v1899_v24 }
 0x5c1   : > { %v1903_v27 = vmul.f32 %v1902_v26, %v1899_v24 }
 0x5c3   : > { %v1904_v28 = vadd.f32 %v1903_v27, %v1899_v24 }
 0x5c5   : > { %v1905_v29 = vmul.f32 0.7978846, %v1904_v28 }
 0x5c7   : > { %4801 = vtanh.f32 %v1905_v29 }
 0x5d4   : > { %v4802_v30 = vpop.eup %4801 }
 0x5d5   : > { %v1907_v33 = vadd.f32 1.0, %v4802_v30 }
 0x5d7   : > { %v1908_v34 = vmul.f32 %v1907_v33, %v1900_v31 }
 0x5d9   : > { %v1917_v35 = vpack.c.bf16 %v1908_v34, %v1908_v34 }
 0x5db   : > { %4706 = vmatprep.subr.msk.bf16.mxu0 %vm1999_vm8, %v1917_v35  ;;  %v2001_v13 = vsel %vm1999_vm8, %v1917_v35, 0 }
 0x5dc   : > { %4555 = vmatpush3.bf16.msra.mxu0 %v2001_v13 }
 0x5dd   : > { %4586 = vmatprep.subr.mxu0 %v4906_v54 }
 0x5df   : > { %4557 = vmatmul.mubr.msk.bf16.vlgmr.msra.gmra.mxu0 %vm1986_vm7, %v4778_v36 }
 0x5e0   : > { %4560 = vmatprep.mubr.msk.bf16.mxu0 %vm1986_vm7, %v4779_v14  ;;  %4587 = vmatpush3.msk.msra.mxu0 %vm1731_vm5, %v5319_v49 }
 0x5e1   : > { %4596 = vmatprep.subr.bf16.mxu0 %v4906_v54 }
 0x5e7   : > { %4561 = vmatmul.mubr.msk.bf16.gmra.mxu0 %vm1986_vm7, %v4780_v37 }
 0x5e8   : > { %4588 = vmatprep.mubr.msk.f32.mxu0 %vm4908_vm2, %v4906_v54 }
 0x69f   : > { %v4558_v39 = vpop.f32.mrf.mxu0 }
 0x6a0   : > { %v5363_v44 = vadd.f32 %v4558_v39, %v1939_v32 }
 0x6a1   : > { %v2037_v41 = vpop.f32.mrf.mxu0 }
 0x6a2   : > { %v5361_v42 = vadd.f32 %v2037_v41, %v1929_v22  ;;  %v2107_v53 = vmul.f32 %v5363_v44, %v5363_v44  ;;  %v2087_v58 = vsel %vm1208_vm1, %v5363_v44, 0.0 }
 0x6a3   : > { %v4559_v43 = vpop.f32.mrf.mxu0 }
 0x6a4   : > { %v2105_v47 = vmul.f32 %v5361_v42, %v5361_v42  ;;  %v5367_v48 = vadd.f32 %v4559_v43, %v1944_v40  ;;  %v2084_v55 = vsel %vm1208_vm1, %v5361_v42, 0.0  ;;  %v2116_v10 = vsel %vm1208_vm1, %v2107_v53, 0.0 }
 0x6a5   : > { %v2040_v46 = vpop.f32.mrf.mxu0 }
 0x6a6   : > { %v5369_v50 = vadd.f32 %v2040_v46, %v1934_v38  ;;  %v2113_v61 = vsel %vm1208_vm1, %v2105_v47, 0.0  ;;  %v2108_v62 = vmul.f32 %v5367_v48, %v5367_v48  ;;  %v2089_v11 = vsel %vm1208_vm1, %v5367_v48, 0.0 }
 0x6a7   : > { %v4562_v52 = vpop.f32.mrf.mxu0 }
 0x6a8   : > { %v2085_v56 = vsel %vm1208_vm1, %v5369_v50, 0.0  ;;  %v2106_v57 = vmul.f32 %v5369_v50, %v5369_v50  ;;  %v5390_v12 = vadd.f32 %v4562_v52, %v1959_v4  ;;  %v2118_v25 = vsel %vm1208_vm1, %v2108_v62, 0.0 }
 0x6a9   : > { %v2086_v59 = vadd.f32 %v2085_v56, %v2084_v55  ;;  %v2053_v60 = vpop.f32.mrf.mxu0 }
 0x6aa   : > { %v2114_v1 = vsel %vm1208_vm1, %v2106_v57, 0.0  ;;  %v5385_v3 = vadd.f32 %v2053_v60, %v1949_v45  ;;  %v2111_v31 = vmul.f32 %v5390_v12, %v5390_v12  ;;  %v2095_v14 = vsel %vm1208_vm1, %v5390_v12, 0.0 }
 0x6ab   : > { %v2088_v5 = vadd.f32 %v2087_v58, %v2086_v59  ;;  %v2115_v8 = vadd.f32 %v2114_v1, %v2113_v61  ;;  %v4563_v9 = vpop.f32.mrf.mxu0 }
 0x6ac   : > { %v2109_v15 = vmul.f32 %v5385_v3, %v5385_v3  ;;  %v2091_v26 = vsel %vm1208_vm1, %v5385_v3, 0.0  ;;  %v5397_v27 = vadd.f32 %v4563_v9, %v1964_v20  ;;  %v2124_v39 = vsel %vm1208_vm1, %v2111_v31, 0.0 }
 0x6ad   : > { %v2117_v21 = vadd.f32 %v2116_v10, %v2115_v8  ;;  %v2090_v23 = vadd.f32 %v2089_v11, %v2088_v5  ;;  %v2056_v24 = vpop.f32.mrf.mxu0 }
 0x6ae   : > { %v5399_v28 = vadd.f32 %v2056_v24, %v1954_v51  ;;  %v2120_v33 = vsel %vm1208_vm1, %v2109_v15, 0.0  ;;  %v2112_v37 = vmul.f32 %v5397_v27, %v5397_v27  ;;  %v2097_v40 = vsel %vm1208_vm1, %v5397_v27, 0.0 }
 0x6af   : > { %v2092_v29 = vadd.f32 %v2091_v26, %v2090_v23  ;;  %v2119_v30 = vadd.f32 %v2118_v25, %v2117_v21  ;;  %v2490_v26 = vpop.permute.xlu0 %2489 }
 0x6b0   : > { %v2093_v34 = vsel %vm1208_vm1, %v5399_v28, 0.0  ;;  %v2110_v35 = vmul.f32 %v5399_v28, %v5399_v28  ;;  %v2126_v45 = vsel %vm1208_vm1, %v2112_v37, 0.0 }
 0x6b1   : > { %v2121_v13 = vadd.f32 %v2120_v33, %v2119_v30  ;;  %v2094_v36 = vadd.f32 %v2093_v34, %v2092_v29  ;;  %v2495_v29 = vpop.permute.xlu1 %2494 }
 0x6b2   : > { %v2122_v22 = vsel %vm1208_vm1, %v2110_v35, 0.0 }
 0x6b3   : > { %v2096_v38 = vadd.f32 %v2095_v14, %v2094_v36  ;;  %v2123_v32 = vadd.f32 %v2122_v22, %v2121_v13  ;;  %v2538_v30 = vpop.permute.xlu0 %2537 }
 0x6b5   : > { %v2098_v41 = vadd.f32 %v2097_v40, %v2096_v38  ;;  %v2125_v43 = vadd.f32 %v2124_v39, %v2123_v32  ;;  %v2543_v31 = vpop.permute.xlu1 %2542 }
 0x6b7   : > { %v2099_v46 = vrot.slane %v2098_v41, 4  ;;  %v2127_v47 = vadd.f32 %v2126_v45, %v2125_v43  ;;  %v2480_v34 = vpop.permute.xlu0 %2479 }
 0x6b9   : > { %v2100_v51 = vadd.f32 %v2099_v46, %v2098_v41  ;;  %v2128_v52 = vrot.slane %v2127_v47, 4  ;;  %v2485_v35 = vpop.permute.xlu1 %2484 }
 0x6bb   : > { %v2101_v53 = vrot.slane %v2100_v51, 2  ;;  %v2129_v55 = vadd.f32 %v2128_v52, %v2127_v47 }
 0x6bd   : > { %v2102_v56 = vadd.f32 %v2101_v53, %v2100_v51  ;;  %v2130_v57 = vrot.slane %v2129_v55, 2  ;;  %v2528_v51 = vpop.permute.xlu0 %2527  ;;  %v2533_v52 = vpop.permute.xlu1 %2532 }
 0x6bf   : > { %v2103_v58 = vrot.slane %v2102_v56, 1  ;;  %v2131_v60 = vadd.f32 %v2130_v57, %v2129_v55 }
 0x6c1   : > { %v2104_v59 = vadd.f32 %v2103_v58, %v2102_v56  ;;  %v2132_v61 = vrot.slane %v2131_v60, 1 }
 0x6c3   : > { %4573 = vmatmul.mubr.msk.f32.vlgmr.msra.gmra.mxu1 %vm1208_vm1, %v2104_v59  ;;  %v2133_v62 = vadd.f32 %v2132_v61, %v2131_v60 }
 0x6c4   : > { %4576 = vmatpush3.msra.mxu1 %v5286_v16  ;;  %4583 = vmatprep.mubr.msk.f32.mxu1 %vm4908_vm2, %v4906_v54 }
 0x6c5   : > { %4577 = vmatprep.subr.mxu1 %v4906_v54 }
 0x6c6   : > { %4578 = vmatpush3.msra.mxu1 %v5292_v17 }
 0x6c7   : > { %4579 = vmatprep.subr.mxu1 %v4906_v54 }
 0x6c8   : > { %4580 = vmatpush3.msra.mxu1 %v5296_v18 }
 0x6c9   : > { %4581 = vmatprep.subr.mxu1 %v4906_v54 }
 0x6ca   : > { %4582 = vmatpush3.msra.mxu1 %v5303_v19 }
 0x6cb   : > { %4584 = vmatmul.mubr.msk.f32.vlgmr.msra.gmra.mxu1 %vm1208_vm1, %v2133_v62  ;;  %4591 = vmatprep.subr.mxu1 %v4906_v54 }
 0x6cc   : > { %4592 = vmatpush3.msk.msra.mxu1 %vm1731_vm5, %v5319_v49  ;;  %4593 = vmatprep.mubr.msk.f32.mxu1 %vm4908_vm2, %v4906_v54 }
 0x6cd   : > { %4604 = vmatprep.subr.bf16.mxu1 %v4906_v54 }
 0x783   : > { %v2203_v1 = vpop.f32.mrf.mxu1 }
 0x784   : > { %v2207_v4 = vmul.f32 0.0009765625, %v2203_v1  ;;  %v2470_v1 = vpop.permute.xlu0 %2469 }
 0x785   : > { %v4574_v5 = vpop.f32.mrf.mxu1 }
 0x786   : > { %4589 = vmatmul.mubr.msk.f32.vlgmr.msra.gmra.mxu0 %vm1727_vm6, %v2207_v4  ;;  %v2282_v9 = vmul.f32 %v2207_v4, %v2207_v4  ;;  %v2475_v4 = vpop.permute.xlu1 %2474 }
 0x787   : > { %4600 = vmatprep.mubr.msk.bf16.mxu0 %vm4908_vm2, %v4906_v54 }
 0x788   : > { %v2518_v5 = vpop.permute.xlu0 %2517 }
 0x78b   : > { %v2277_v8 = vpop.f32.mrf.mxu1 }
 0x78c   : > { %v2281_v10 = vmul.f32 0.0009765625, %v2277_v8  ;;  %v2523_v8 = vpop.permute.xlu1 %2522 }
 0x78d   : > { %v4585_v11 = vpop.f32.mrf.mxu1 }
 0x78e   : > { %v2283_v15 = vsub.f32 %v2281_v10, %v2282_v9 }
 0x790   : > { %v2284_v20 = vmax.f32 %v2283_v15, 0.0 }
 0x792   : > { %v2285_v21 = vadd.f32 1e-05, %v2284_v20  ;;  %v2460_v20 = vpop.permute.xlu0 %2459 }
 0x794   : > { %4803 = vrsqrt.f32 %v2285_v21 }
 0x7a1   : > { %v4804_v23 = vpop.eup %4803 }
 0x7a2   : > { %4594 = vmatmul.mubr.msk.f32.vlgmr.msra.gmra.mxu1 %vm1727_vm6, %v4804_v23 }
 0x7a3   : > { %4608 = vmatprep.mubr.msk.bf16.mxu1 %vm4908_vm2, %v4906_v54 }
 0x846   : > { %v2356_v24 = vpop.f32.mrf.mxu0 }
 0x847   : > { %v5441_v33 = vrot.slane %v2356_v24, %v5343_v0  ;;  %v2465_v24 = vpop.permute.xlu1 %2464 }
 0x848   : > { %v4590_v25 = vpop.f32.mrf.mxu0 }
 0x849   : > { %v2441_v13 = vsub.f32 %v5385_v3, %v5441_v33  ;;  %v2442_v14 = vsub.f32 %v5399_v28, %v5441_v33  ;;  %v2443_v37 = vsub.f32 %v5390_v12, %v5441_v33  ;;  %v2444_v22 = vsub.f32 %v5397_v27, %v5441_v33 }
 0x862   : > { %v2429_v36 = vpop.f32.mrf.mxu1 }
 0x863   : > { %v2448_v38 = vrot.slane %v2429_v36, %v5343_v0  ;;  %v2438_v36 = vsub.f32 %v5369_v50, %v5441_v33 }
 0x864   : > { %v4595_v32 = vpop.f32.mrf.mxu1 }
 0x865   : > { %v2453_v39 = vmul.f32 %v2448_v38, %v2441_v13  ;;  %v2454_v40 = vmul.f32 %v2448_v38, %v2442_v14  ;;  %v2455_v41 = vmul.f32 %v2448_v38, %v2443_v37  ;;  %v2456_v43 = vmul.f32 %v2448_v38, %v2444_v22  ;;  %v2513_v14 = vpop.permute.xlu1 %2512 }
 0x866   : > { %v2450_v22 = vmul.f32 %v2448_v38, %v2438_v36  ;;  %v3327_v36 = vld [vmem:[%s5862_s26 + $0x18] sm:$0xff] }
 0x867   : > { %v2503_v45 = vmul.f32 %v2490_v26, %v2455_v41  ;;  %v2504_v46 = vmul.f32 %v2495_v29, %v2456_v43  ;;  %v2501_v3 = vmul.f32 %v2480_v34, %v2453_v39  ;;  %v2502_v47 = vmul.f32 %v2485_v35, %v2454_v40  ;;  %v2508_v35 = vpop.permute.xlu0 %2507 }
 0x868   : > { %v2439_v29 = vsub.f32 %v5363_v44, %v5441_v33  ;;  %v2437_v34 = vsub.f32 %v5361_v42, %v5441_v33  ;;  %v2498_v41 = vmul.f32 %v2465_v24, %v2450_v22  ;;  %v3330_v24 = vld [vmem:[%s5862_s26 + $0x30] sm:$0xff]  ;;  %v3324_v22 = vld [vmem:[%s5862_s26] sm:$0xff] }
 0x869   : > { %v2551_v28 = vadd.f32 %v2538_v30, %v2503_v45  ;;  %v2552_v53 = vadd.f32 %v2543_v31, %v2504_v46  ;;  %v2549_v55 = vadd.f32 %v2528_v51, %v2501_v3  ;;  %v2550_v12 = vadd.f32 %v2533_v52, %v2502_v47  ;;  %v2599_v43 = vpop.permute.xlu1 %2598 }
 0x86a   : > { %v2440_v30 = vsub.f32 %v5367_v48, %v5441_v33  ;;  %v2451_v31 = vmul.f32 %v2448_v38, %v2439_v29  ;;  %v2449_v37 = vmul.f32 %v2448_v38, %v2437_v34  ;;  %v3321_v29 = vld [vmem:[%s5861_s23 + $0x28] sm:$0xff]  ;;  %v3318_v34 = vld [vmem:[%s5861_s23 + $0x10] sm:$0xff] }
 0x86b   : > { %v2559_v56 = vsub.f32 0.0, %v2551_v28  ;;  %v2560_v57 = vsub.f32 0.0, %v2552_v53  ;;  %v2557_v27 = vsub.f32 0.0, %v2549_v55  ;;  %v2558_v58 = vsub.f32 0.0, %v2550_v12  ;;  %v2594_v40 = vpop.permute.xlu0 %2593 }
 0x86c   : > { %v2452_v13 = vmul.f32 %v2448_v38, %v2440_v30  ;;  %v2499_v32 = vmul.f32 %v2470_v1, %v2451_v31  ;;  %v2497_v44 = vmul.f32 %v2460_v20, %v2449_v37  ;;  %v2546_v28 = vadd.f32 %v2513_v14, %v2498_v41  ;;  %v2813_v1 = vld [vmem:[%s5859_s18] sm:$0xff]  ;;  %v3175_v20 = vld [vmem:[%s5860_s22 + $0x38] sm:$0xff]  ;;  %v3329_v31 = vld [vmem:[%s5862_s26 + $0x28] sm:$0xff] }
 0x86d   : > { %v2565_v59 = vmul.f32 1.442695, %v2559_v56  ;;  %v2567_v60 = vmul.f32 1.442695, %v2560_v57  ;;  %v2561_v61 = vmul.f32 1.442695, %v2557_v27  ;;  %v2589_v56 = vpop.permute.xlu1 %2588 }
 0x86e   : > { %v2563_v62 = vmul.f32 1.442695, %v2558_v58  ;;  %v2500_v39 = vmul.f32 %v2475_v4, %v2452_v13  ;;  %v2547_v48 = vadd.f32 %v2518_v5, %v2499_v32  ;;  %v2545_v42 = vadd.f32 %v2508_v35, %v2497_v44  ;;  %v3168_v4 = vld [vmem:[%s5860_s22] sm:$0xff]  ;;  %v3169_v5 = vld [vmem:[%s5860_s22 + $0x8] sm:$0xff]  ;;  %v3319_v35 = vld [vmem:[%s5861_s23 + $0x18] sm:$0xff] }
 0x86f   : > { %4805 = vpow2.f32 %v2565_v59  ;;  %v2584_v55 = vpop.permute.xlu0 %2583  ;;  %v3328_v30 = vld [vmem:[%s5862_s26 + $0x20] sm:$0xff]  ;;  %v3326_v13 = vld [vmem:[%s5862_s26 + $0x10] sm:$0xff]  ;;  %v3317_v37 = vld [vmem:[%s5861_s23 + $0x8] sm:$0xff] }
 0x870   : > { %4807 = vpow2.f32 %v2567_v60  ;;  %v2548_v46 = vadd.f32 %v2523_v8, %v2500_v39  ;;  %v3170_v8 = vld [vmem:[%s5860_s22 + $0x10] sm:$0xff]  ;;  %v3316_v14 = vld [vmem:[%s5861_s23] sm:$0xff]  ;;  %v3325_v32 = vld [vmem:[%s5862_s26 + $0x8] sm:$0xff] }
 0x871   : > { %4809 = vpow2.f32 %v2561_v61  ;;  %v3803_v39 = vld [vmem:[%s5863_s28 + $0x10] sm:$0xff]  ;;  %v3804_v44 = vld [vmem:[%s5863_s28 + $0x18] sm:$0xff]  ;;  %v3802_v41 = vld [vmem:[%s5863_s28 + $0x8] sm:$0xff] }
 0x872   : > { %4811 = vpow2.f32 %v2563_v62  ;;  %v4370_v62 = vld [vmem:[%s5856_s2 + $0x4] sm:$0xf] }
 0x87c   : > { %v4806_v9 = vpop.eup %4805 }
 0x87d   : > { %v4808_v10 = vpop.eup %4807  ;;  %v2571_v11 = vadd.f32 1.0, %v4806_v9  ;;  %v3171_v9 = vld [vmem:[%s5860_s22 + $0x18] sm:$0xff] }
 0x87e   : > { %v4810_v15 = vpop.eup %4809  ;;  %v2572_v21 = vadd.f32 1.0, %v4808_v10  ;;  %v3172_v10 = vld [vmem:[%s5860_s22 + $0x20] sm:$0xff] }
 0x87f   : > { %v4812_v23 = vpop.eup %4811  ;;  %4813 = vrcp.f32 %v2571_v11  ;;  %v2569_v25 = vadd.f32 1.0, %v4810_v15  ;;  %v3173_v11 = vld [vmem:[%s5860_s22 + $0x28] sm:$0xff]  ;;  %v3174_v15 = vld [vmem:[%s5860_s22 + $0x30] sm:$0xff] }
 0x880   : > { %4815 = vrcp.f32 %v2572_v21  ;;  %v2570_v26 = vadd.f32 1.0, %v4812_v23  ;;  %v3322_v21 = vld [vmem:[%s5861_s23 + $0x30] sm:$0xff]  ;;  %v3323_v23 = vld [vmem:[%s5861_s23 + $0x38] sm:$0xff] }
 0x881   : > { %4817 = vrcp.f32 %v2569_v25  ;;  %v3331_v25 = vld [vmem:[%s5862_s26 + $0x38] sm:$0xff] }
 0x882   : > { %4819 = vrcp.f32 %v2570_v26  ;;  %v3320_v26 = vld [vmem:[%s5861_s23 + $0x20] sm:$0xff] }
 0x88c   : > { %v4814_v45 = vpop.eup %4813 }
 0x88d   : > { %v4816_v3 = vpop.eup %4815  ;;  %v2579_v47 = vmul.f32 %v4814_v45, %v2547_v48  ;;  %v3868_v48 = vld [vmem:[%s5864_s1 + $0x8] sm:$0xff]  ;;  %v3869_v45 = vld [vmem:[%s5864_s1 + $0x10] sm:$0xff] }
 0x88e   : > { %v4818_v51 = vpop.eup %4817  ;;  %v2580_v52 = vmul.f32 %v4816_v3, %v2548_v46  ;;  %v3870_v46 = vld [vmem:[%s5864_s1 + $0x18] sm:$0xff]  ;;  %v3871_v3 = vld [vmem:[%s5864_s1 + $0x20] sm:$0xff] }
 0x88f   : > { %v4820_v53 = vpop.eup %4819  ;;  %v2603_v50 = vmul.f32 %v2594_v40, %v2579_v47  ;;  %v2577_v33 = vmul.f32 %v4818_v51, %v2545_v42  ;;  %v3801_v40 = vld [vmem:[%s5863_s28] sm:$0xff]  ;;  %v3872_v47 = vld [vmem:[%s5864_s1 + $0x28] sm:$0xff]  ;;  %v3873_v42 = vld [vmem:[%s5864_s1 + $0x30] sm:$0xff] }
 0x890   : > { %v2604_v38 = vmul.f32 %v2599_v43, %v2580_v52  ;;  %v2578_v12 = vmul.f32 %v4820_v53, %v2546_v28  ;;  %v3867_v43 = vld [vmem:[%s5864_s1] sm:$0xff]  ;;  %v3874_v51 = vld [vmem:[%s5864_s1 + $0x38] sm:$0xff] }
 0x891   : > { %v5461_v57 = vadd.f32 %v2603_v50, %v5208_v2  ;;  %v2601_v27 = vmul.f32 %v2584_v55, %v2577_v33  ;;  %v4371_v52 = vld [vmem:[%s5065_s4 + $0x2] ss:$0 sm:$0xff] }
 0x892   : > { %v5464_v58 = vadd.f32 %v2604_v38, %v5206_v63  ;;  %v2602_v59 = vmul.f32 %v2589_v56, %v2578_v12 }
 0x893   : > { %2622 = vrot.lane.b32.xlu0 %v5461_v57, %s4910_s7  ;;  %v5471_v61 = vadd.f32 %v2601_v27, %v5218_v7  ;;  %v2812_v7 = vld [vmem:[%s5858_s11] sm:$0xff]  ;;  %s5867_s11 = sld [smem:[#allocation13_spill]] }
 0x894   : > { %2624 = vrot.lane.b32.xlu1 %v5464_v58, %s4910_s7  ;;  %v2610_v60 = vpack.c.bf16 %v5464_v58, %v5461_v57  ;;  %v5474_v2 = vadd.f32 %v2602_v59, %v5216_v6  ;;  %v2805_v6 = vld [vmem:[%s5857_s10] sm:$0xff]  ;;  %s5866_s10 = sld [smem:[#allocation11_spill]] }
 0x896   : > { %4605 = vmatpush3.bf16.msra.mxu1 %v2610_v60  ;;  %v2609_v63 = vpack.c.bf16 %v5474_v2, %v5471_v61 }
 0x897   : > { %2618 = vrot.lane.b32.xlu0 %v5471_v61, %s4910_s7  ;;  %4606 = vmatprep.subr.bf16.mxu1 %v4906_v54 }
 0x898   : > { %2620 = vrot.lane.b32.xlu1 %v5474_v2, %s4910_s7  ;;  %s5865_s7 = sld [smem:[#allocation6_spill]] }
 0x89a   : > { %4607 = vmatpush3.bf16.msra.mxu1 %v2609_v63 }
 0x89b   : > { %2736 = vrot.lane.b32.xlu0 %v5461_v57, %s4911_s0  ;;  %4620 = vmatprep.subr.mxu1 %v4906_v54 }
 0x89c   : > { %2738 = vrot.lane.b32.xlu1 %v5464_v58, %s4911_s0 }
 0x89d   : > { %4609 = vmatmul.mubr.msk.bf16.vlgmr.msra.gmra.mxu1 %vm1208_vm1, %v4370_v62 }
 0x89e   : > { %4621 = vmatpush3.msra.mxu1 %v5286_v16  ;;  %4628 = vmatprep.mubr.msk.f32.mxu1 %vm4908_vm2, %v4906_v54 }
 0x89f   : > { %2732 = vrot.lane.b32.xlu0 %v5471_v61, %s4911_s0  ;;  %4622 = vmatprep.subr.mxu1 %v4906_v54 }
 0x8a0   : > { %2734 = vrot.lane.b32.xlu1 %v5474_v2, %s4911_s0  ;;  %4623 = vmatpush3.msra.mxu1 %v5292_v17  ;;  %s5868_s0 = sld [smem:[#allocation14_spill]] }
 0x8a1   : > { %4624 = vmatprep.subr.mxu1 %v4906_v54 }
 0x8a2   : > { %4625 = vmatpush3.msra.mxu1 %v5296_v18 }
 0x8a3   : > { %2808 = vperm.xlu0 %4763, %v2805_v6   ;;  %4626 = vmatprep.subr.mxu1 %v4906_v54  ;;  %v4374_v6 = vld [vmem:[%s5065_s4 + $0x3] ss:$0 sm:$0xff] }
 0x8a4   : > { %3140 = vperm.xlu1 %4764, %v2812_v7   ;;  %4627 = vmatpush3.msra.mxu1 %v5303_v19 }
 0x8a5   : > { %4642 = vmatprep.subr.mxu1 %v4906_v54 }
 0x8a7   : > { %3146 = vperm.xlu0 %4763, %v2813_v1  }
 0x8a8   : > { %3178 = vperm.xlu1 %4764, %v3168_v4  }
 0x8ab   : > { %3183 = vperm.xlu0 %4763, %v3169_v5  }
 0x8ac   : > { %3188 = vperm.xlu1 %4764, %v3170_v8  }
 0x8af   : > { %3193 = vperm.xlu0 %4763, %v3171_v9  }
 0x8b0   : > { %3198 = vperm.xlu1 %4764, %v3172_v10  }
 0x8b3   : > { %3203 = vperm.xlu0 %4763, %v3173_v11   ;;  %v2642_v11 = vld [vmem:[%s5856_s2] sm:$0xf] }
 0x8b4   : > { %3208 = vperm.xlu1 %4764, %v3174_v15  }
 0x8b7   : > { %3213 = vperm.xlu0 %4763, %v3175_v20  }
 0x8b8   : > { %3737 = vperm.xlu1 %4764, %v3322_v21  }
 0x8bb   : > { %3742 = vperm.xlu0 %4763, %v3323_v23  }
 0x8bc   : > { %3785 = vperm.xlu1 %4764, %v3330_v24  }
 0x8bf   : > { %3790 = vperm.xlu0 %4763, %v3331_v25  }
 0x8c0   : > { %3727 = vperm.xlu1 %4764, %v3320_v26  }
 0x8c3   : > { %3732 = vperm.xlu0 %4763, %v3321_v29  }
 0x8c4   : > { %3775 = vperm.xlu1 %4764, %v3328_v30   ;;  %v4375_v30 = vld [vmem:[%s5856_s2 + $0x8] sm:$0xf] }
 0x8c7   : > { %3780 = vperm.xlu0 %4763, %v3329_v31  }
 0x8c8   : > { %3717 = vperm.xlu1 %4764, %v3318_v34  }
 0x8cb   : > { %3722 = vperm.xlu0 %4763, %v3319_v35  }
 0x8cc   : > { %3765 = vperm.xlu1 %4764, %v3326_v13  }
 0x8cf   : > { %3770 = vperm.xlu0 %4763, %v3327_v36  }
 0x8d0   : > { %3707 = vperm.xlu1 %4764, %v3316_v14  }
 0x8d3   : > { %3712 = vperm.xlu0 %4763, %v3317_v37  }
 0x8d4   : > { %3755 = vperm.xlu1 %4764, %v3324_v22  }
 0x8d7   : > { %3760 = vperm.xlu0 %4763, %v3325_v32  }
 0x8d8   : > { %3841 = vperm.xlu1 %4764, %v3803_v39  }
 0x8db   : > { %3846 = vperm.xlu0 %4763, %v3804_v44  }
 0x8dc   : > { %3831 = vperm.xlu1 %4764, %v3801_v40  }
 0x8df   : > { %3836 = vperm.xlu0 %4763, %v3802_v41  }
 0x8e0   : > { %3877 = vperm.xlu1 %4764, %v3867_v43  }
 0x8e3   : > { %3882 = vperm.xlu0 %4763, %v3868_v48  }
 0x8e4   : > { %3887 = vperm.xlu1 %4764, %v3869_v45  }
 0x8e7   : > { %3892 = vperm.xlu0 %4763, %v3870_v46  }
 0x8e8   : > { %3897 = vperm.xlu1 %4764, %v3871_v3  }
 0x8eb   : > { %3902 = vperm.xlu0 %4763, %v3872_v47  }
 0x8ec   : > { %3907 = vperm.xlu1 %4764, %v3873_v42  }
 0x8ef   : > { %3912 = vperm.xlu0 %4763, %v3874_v51  }
 0x905   : > { %v2623_v28 = vpop.permute.xlu0 %2622 }
 0x906   : > { %v2632_v53 = vsel %vm1727_vm6, 0.0, %v2623_v28  ;;  %v2625_v50 = vpop.permute.xlu1 %2624 }
 0x907   : > { %v2640_v33 = vmul.f32 %v4371_v52, %v2632_v53  ;;  %v2633_v55 = vsel %vm1727_vm6, 0.0, %v2625_v50 }
 0x908   : > { %v2641_v38 = vmul.f32 %v4371_v52, %v2633_v55 }
 0x909   : > { %v2619_v12 = vpop.permute.xlu0 %2618 }
 0x90a   : > { %v2644_v56 = vpack.c.bf16 %v2641_v38, %v2640_v33  ;;  %v2630_v27 = vsel %vm1727_vm6, 0.0, %v2619_v12  ;;  %v2621_v59 = vpop.permute.xlu1 %2620 }
 0x90b   : > { %v2638_v60 = vmul.f32 %v4371_v52, %v2630_v27  ;;  %v2631_v63 = vsel %vm1727_vm6, 0.0, %v2621_v59 }
 0x90c   : > { %v2639_v62 = vmul.f32 %v4371_v52, %v2631_v63  ;;  %4597 = vmatpush3.bf16.msra.mxu0 %v2644_v56 }
 0x90d   : > { %v2737_v7 = vpop.permute.xlu0 %2736  ;;  %4598 = vmatprep.subr.bf16.mxu0 %v4906_v54 }
 0x90e   : > { %v2643_v1 = vpack.c.bf16 %v2639_v62, %v2638_v60  ;;  %v2747_v4 = vsel %vm2744_vm9, %v2737_v7, 0.0  ;;  %v2739_v5 = vpop.permute.xlu1 %2738 }
 0x90f   : > { %v2755_v8 = vmul.f32 %v4374_v6, %v2747_v4  ;;  %v2748_v9 = vsel %vm2744_vm9, %v2739_v5, 0.0  ;;  %v5583_v4 = vld [vmem:[%s5055_s20 + $0x18] sm:$0xff]  ;;  %v5595_v5 = vld [vmem:[%s5055_s20 + $0x8] sm:$0xff] }
 0x910   : > { %v2756_v10 = vmul.f32 %v4374_v6, %v2748_v9  ;;  %4599 = vmatpush3.bf16.msra.mxu0 %v2643_v1  ;;  %v4781_v9 = vld [vmem:[%s5865_s7] sm:$0xff]  }
 0x911   : > { %v2733_v15 = vpop.permute.xlu0 %2732  ;;  %4612 = vmatprep.subr.bf16.mxu0 %v4906_v54 }
 0x912   : > { %v2760_v20 = vpack.c.bf16 %v2756_v10, %v2755_v8  ;;  %v2745_v21 = vsel %vm2744_vm9, %v2733_v15, 0.0  ;;  %v2735_v23 = vpop.permute.xlu1 %2734  ;;  %v5600_v8 = vld [vmem:[%s5055_s20] sm:$0xff] }
 0x913   : > { %v2753_v24 = vmul.f32 %v4374_v6, %v2745_v21  ;;  %v2746_v25 = vsel %vm2744_vm9, %v2735_v23, 0.0  ;;  %4601 = vmatmul.mubr.msk.bf16.vlgmr.msra.gmra.mxu0 %vm1208_vm1, %v2642_v11 }
 0x914   : > { %v2754_v26 = vmul.f32 %v4374_v6, %v2746_v25  ;;  %4613 = vmatpush3.bf16.msra.mxu0 %v2760_v20  ;;  %4616 = vmatprep.mubr.msk.bf16.mxu0 %vm4908_vm2, %v4906_v54 }
 0x915   : > { %4614 = vmatprep.subr.bf16.mxu0 %v4906_v54 }
 0x916   : > { %v2759_v29 = vpack.c.bf16 %v2754_v26, %v2753_v24 }
 0x918   : > { %4615 = vmatpush3.bf16.msra.mxu0 %v2759_v29 }
 0x919   : > { %4631 = vmatprep.subr.mxu0 %v4906_v54 }
 0x91b   : > { %4617 = vmatmul.mubr.msk.bf16.vlgmr.msra.gmra.mxu0 %vm1208_vm1, %v4375_v30 }
 0x91c   : > { %4632 = vmatpush3.msra.mxu0 %v5286_v16  ;;  %4639 = vmatprep.mubr.msk.f32.mxu0 %vm4908_vm2, %v4906_v54 }
 0x91d   : > { %4633 = vmatprep.subr.mxu0 %v4906_v54 }
 0x91e   : > { %4634 = vmatpush3.msra.mxu0 %v5292_v17  ;;  %v2809_v17 = vpop.permute.xlu0 %2808 }
 0x91f   : > { %4635 = vmatprep.subr.mxu0 %v4906_v54  ;;  %v3141_v26 = vpop.permute.xlu1 %3140 }
 0x920   : > { %4636 = vmatpush3.msra.mxu0 %v5296_v18 }
 0x921   : > { %4637 = vmatprep.subr.mxu0 %v4906_v54 }
 0x922   : > { %4638 = vmatpush3.msra.mxu0 %v5303_v19  ;;  %v3147_v30 = vpop.permute.xlu0 %3146 }
 0x95d   : > { %v2725_v31 = vpop.f32.mrf.mxu1 }
 0x95f   : > { %v4610_v34 = vpop.f32.mrf.mxu1 }
 0x961   : > { %v2728_v35 = vpop.f32.mrf.mxu1 }
 0x963   : > { %v4611_v13 = vpop.f32.mrf.mxu1 }
 0x9d3   : > { %v2682_v16 = vpop.f32.mrf.mxu0 }
 0x9d4   : > { %v2726_v22 = vadd.f32 %v2725_v31, %v2682_v16 }
 0x9d5   : > { %v4602_v36 = vpop.f32.mrf.mxu0 }
 0x9d7   : > { %v2685_v14 = vpop.f32.mrf.mxu0 }
 0x9d9   : > { %v4603_v37 = vpop.f32.mrf.mxu0 }
 0x9db   : > { %v2798_v32 = vpop.f32.mrf.mxu0 }
 0x9dc   : > { %v2804_v39 = vadd.f32 %v2798_v32, %v2726_v22 }
 0x9dd   : > { %v4618_v44 = vpop.f32.mrf.mxu0 }
 0x9de   : > { %v2811_v40 = vadd.f32 %v2809_v17, %v2804_v39  ;;  %v4782_v44 = vld [vmem:[%s5865_s7 + $0x8] sm:$0xff]  }
 0x9df   : > { %v2801_v41 = vpop.f32.mrf.mxu0 }
 0x9e0   : > { %v2814_v18 = vsel %vm1208_vm1, %v2811_v40, 0.0  ;;  %v2821_v43 = vmul.f32 %v2811_v40, %v2811_v40  ;;  %v5616_v41 = vld [vmem:[%s5060_s27] sm:$0x3] }
 0x9e1   : > { %v2815_v48 = vrot.slane %v2814_v18, 4  ;;  %v4619_v19 = vpop.f32.mrf.mxu0 }
 0x9e2   : > { %v2822_v45 = vsel %vm1208_vm1, %v2821_v43, 0.0  ;;  %v3179_v43 = vpop.permute.xlu1 %3178 }
 0x9e3   : > { %v2816_v46 = vadd.f32 %v2815_v48, %v2814_v18  ;;  %v2823_v3 = vrot.slane %v2822_v45, 4  ;;  %v4784_v18 = vld [vmem:[%s5865_s7 + $0x18] sm:$0xff]   ;;  %v3184_v48 = vpop.permute.xlu0 %3183 }
 0x9e5   : > { %v2817_v47 = vrot.slane %v2816_v46, 2  ;;  %v2824_v42 = vadd.f32 %v2823_v3, %v2822_v45 }
 0x9e6   : > { %v3189_v19 = vpop.permute.xlu1 %3188 }
 0x9e7   : > { %v2818_v51 = vadd.f32 %v2817_v47, %v2816_v46  ;;  %v2825_v52 = vrot.slane %v2824_v42, 2  ;;  %v3194_v46 = vpop.permute.xlu0 %3193 }
 0x9e9   : > { %v2819_v28 = vrot.slane %v2818_v51, 1  ;;  %v2826_v53 = vadd.f32 %v2825_v52, %v2824_v42 }
 0x9ea   : > { %v3199_v52 = vpop.permute.xlu1 %3198 }
 0x9eb   : > { %v2820_v50 = vadd.f32 %v2819_v28, %v2818_v51  ;;  %v2827_v33 = vrot.slane %v2826_v53, 1 }
 0x9ed   : > { %4629 = vmatmul.mubr.msk.f32.vlgmr.msra.gmra.mxu1 %vm1208_vm1, %v2820_v50  ;;  %v2828_v55 = vadd.f32 %v2827_v33, %v2826_v53 }
 0x9ee   : > { %4643 = vmatpush3.msk.msra.mxu1 %vm1731_vm5, %v5319_v49  ;;  %4644 = vmatprep.mubr.msk.f32.mxu1 %vm4908_vm2, %v4906_v54 }
 0x9ef   : > { %4640 = vmatmul.mubr.msk.f32.vlgmr.msra.gmra.mxu0 %vm1208_vm1, %v2828_v55  ;;  %4647 = vmatprep.subr.mxu1 %v4906_v54  ;;  %v3204_v55 = vpop.permute.xlu0 %3203 }
 0x9f0   : > { %4654 = vmatprep.mubr.msk.bf16.mxu0 %vm1986_vm7, %v4781_v9 }
 0xaad   : > { %v2898_v38 = vpop.f32.mrf.mxu1 }
 0xaae   : > { %v2902_v12 = vmul.f32 0.015625, %v2898_v38 }
 0xaaf   : > { %v4630_v56 = vpop.f32.mrf.mxu1  ;;  %v2972_v27 = vpop.f32.mrf.mxu0 }
 0xab0   : > { %v2977_v59 = vmul.f32 %v2902_v12, %v2902_v12  ;;  %v2976_v60 = vmul.f32 0.015625, %v2972_v27  ;;  %4645 = vmatmul.mubr.msk.f32.vlgmr.msra.gmra.mxu1 %vm1727_vm6, %v2902_v12 }
 0xab1   : > { %v4641_v63 = vpop.f32.mrf.mxu0  ;;  %4648 = vmatpush3.msk.msra.mxu1 %vm1731_vm5, %v5319_v49  ;;  %4649 = vmatprep.mubr.msk.f32.mxu1 %vm4908_vm2, %v4906_v54  ;;  %v5590_v49 = vld [vmem:[%s5055_s20 + $0x10] sm:$0xff] }
 0xab2   : > { %v2978_v62 = vsub.f32 %v2976_v60, %v2977_v59  ;;  %4662 = vmatprep.subr.mxu1 %v4906_v54 }
 0xab4   : > { %v2979_v6 = vmax.f32 %v2978_v62, 0.0 }
 0xab6   : > { %v2980_v7 = vadd.f32 1e-05, %v2979_v6 }
 0xab8   : > { %4821 = vrsqrt.f32 %v2980_v7 }
 0xac5   : > { %v4822_v1 = vpop.eup %4821 }
 0xac6   : > { %4650 = vmatmul.mubr.msk.f32.vlgmr.msra.gmra.mxu1 %vm1727_vm6, %v4822_v1 }
 0xac7   : > { %4663 = vmatpush3.msra.mxu1 %v5583_v4  ;;  %4670 = vmatprep.mubr.msk.f32.mxu1 %vm4908_vm2, %v4906_v54 }
 0xac8   : > { %4664 = vmatprep.subr.mxu1 %v4906_v54 }
 0xac9   : > { %4665 = vmatpush3.msra.mxu1 %v5590_v49 }
 0xaca   : > { %4666 = vmatprep.subr.mxu1 %v4906_v54 }
 0xacb   : > { %4667 = vmatpush3.msra.mxu1 %v5595_v5 }
 0xacc   : > { %4668 = vmatprep.subr.mxu1 %v4906_v54 }
 0xacd   : > { %4669 = vmatpush3.msra.mxu1 %v5600_v8 }
 0xace   : > { %4673 = vmatprep.subr.mxu1 %v4906_v54 }
 0xb70   : > { %v3051_v10 = vpop.f32.mrf.mxu1 }
 0xb71   : > { %v3131_v15 = vrot.slane %v3051_v10, %v5343_v0  ;;  %v3209_v10 = vpop.permute.xlu1 %3208 }
 0xb72   : > { %v4646_v11 = vpop.f32.mrf.mxu1 }
 0xb73   : > { %v3132_v21 = vsub.f32 %v2811_v40, %v3131_v15  ;;  %v4783_v40 = vld [vmem:[%s5865_s7 + $0x10] sm:$0xff]  }
 0xb86   : > { %v3124_v20 = vpop.f32.mrf.mxu1 }
 0xb87   : > { %v3136_v23 = vrot.slane %v3124_v20, %v5343_v0 }
 0xb88   : > { %v4651_v24 = vpop.f32.mrf.mxu1 }
 0xb89   : > { %v3137_v25 = vmul.f32 %v3136_v23, %v3132_v21 }
 0xb8b   : > { %v3143_v29 = vmul.f32 %v3141_v26, %v3137_v25  ;;  %v3214_v26 = vpop.permute.xlu0 %3213 }
 0xb8d   : > { %v3149_v31 = vadd.f32 %v3147_v30, %v3143_v29 }
 0xb8f   : > { %v3151_v34 = vmul.f32 0.044715, %v3149_v31  ;;  %v3150_v37 = vmul.f32 0.5, %v3149_v31 }
 0xb91   : > { %v3152_v35 = vmul.f32 %v3151_v34, %v3149_v31 }
 0xb93   : > { %v3153_v13 = vmul.f32 %v3152_v35, %v3149_v31 }
 0xb95   : > { %v3154_v16 = vadd.f32 %v3153_v13, %v3149_v31 }
 0xb97   : > { %v3155_v36 = vmul.f32 0.7978846, %v3154_v16 }
 0xb99   : > { %4823 = vtanh.f32 %v3155_v36 }
 0xba6   : > { %v4824_v14 = vpop.eup %4823 }
 0xba7   : > { %v3157_v22 = vadd.f32 1.0, %v4824_v14 }
 0xba9   : > { %v3158_v32 = vmul.f32 %v3157_v22, %v3150_v37 }
 0xbab   : > { %v3167_v39 = vpack.c.bf16 %v3158_v32, %v3158_v32 }
 0xbad   : > { %4707 = vmatprep.subr.msk.bf16.mxu0 %vm1999_vm8, %v3167_v39  ;;  %v3249_v17 = vsel %vm1999_vm8, %v3167_v39, 0 }
 0xbae   : > { %4653 = vmatpush3.bf16.msra.mxu0 %v3249_v17 }
 0xbaf   : > { %4684 = vmatprep.subr.mxu0 %v4906_v54 }
 0xbb1   : > { %4655 = vmatmul.mubr.msk.bf16.vlgmr.msra.gmra.mxu0 %vm1986_vm7, %v4782_v44 }
 0xbb2   : > { %4658 = vmatprep.mubr.msk.bf16.mxu0 %vm1986_vm7, %v4783_v40  ;;  %4685 = vmatpush3.msk.msra.mxu0 %vm1731_vm5, %v5616_v41 }
 0xbb9   : > { %4659 = vmatmul.mubr.msk.bf16.gmra.mxu0 %vm1986_vm7, %v4784_v18 }
 0xbba   : > { %4686 = vmatprep.mubr.msk.f32.mxu0 %vm4908_vm2, %v4906_v54 }
 0xc71   : > { %v4656_v45 = vpop.f32.mrf.mxu0 }
 0xc72   : > { %v5626_v51 = vadd.f32 %v4656_v45, %v3189_v19 }
 0xc73   : > { %v3285_v3 = vpop.f32.mrf.mxu0 }
 0xc74   : > { %v5624_v47 = vadd.f32 %v3285_v3, %v3179_v43  ;;  %v3355_v12 = vmul.f32 %v5626_v51, %v5626_v51  ;;  %v3335_v60 = vsel %vm1208_vm1, %v5626_v51, 0.0 }
 0xc75   : > { %v4657_v42 = vpop.f32.mrf.mxu0 }
 0xc76   : > { %v3353_v53 = vmul.f32 %v5624_v47, %v5624_v47  ;;  %v5630_v50 = vadd.f32 %v4657_v42, %v3194_v46  ;;  %v3332_v56 = vsel %vm1208_vm1, %v5624_v47, 0.0  ;;  %v3364_v21 = vsel %vm1208_vm1, %v3355_v12, 0.0 }
 0xc77   : > { %v3288_v28 = vpop.f32.mrf.mxu0 }
 0xc78   : > { %v5632_v33 = vadd.f32 %v3288_v28, %v3184_v48  ;;  %v3361_v6 = vsel %vm1208_vm1, %v3353_v53, 0.0  ;;  %v3356_v7 = vmul.f32 %v5630_v50, %v5630_v50  ;;  %v3337_v23 = vsel %vm1208_vm1, %v5630_v50, 0.0 }
 0xc79   : > { %v4660_v38 = vpop.f32.mrf.mxu0 }
 0xc7a   : > { %v3333_v27 = vsel %vm1208_vm1, %v5632_v33, 0.0  ;;  %v3354_v59 = vmul.f32 %v5632_v33, %v5632_v33  ;;  %v5653_v24 = vadd.f32 %v4660_v38, %v3209_v10  ;;  %v3366_v34 = vsel %vm1208_vm1, %v3356_v7, 0.0 }
 0xc7b   : > { %v3334_v63 = vadd.f32 %v3333_v27, %v3332_v56  ;;  %v3301_v62 = vpop.f32.mrf.mxu0 }
 0xc7c   : > { %v3362_v1 = vsel %vm1208_vm1, %v3354_v59, 0.0  ;;  %v5648_v9 = vadd.f32 %v3301_v62, %v3199_v52  ;;  %v3359_v37 = vmul.f32 %v5653_v24, %v5653_v24  ;;  %v3343_v40 = vsel %vm1208_vm1, %v5653_v24, 0.0 }
 0xc7d   : > { %v3336_v11 = vadd.f32 %v3335_v60, %v3334_v63  ;;  %v3363_v15 = vadd.f32 %v3362_v1, %v3361_v6  ;;  %v4661_v20 = vpop.f32.mrf.mxu0 }
 0xc7e   : > { %v3357_v25 = vmul.f32 %v5648_v9, %v5648_v9  ;;  %v3339_v35 = vsel %vm1208_vm1, %v5648_v9, 0.0  ;;  %v5660_v13 = vadd.f32 %v4661_v20, %v3214_v26  ;;  %v3372_v45 = vsel %vm1208_vm1, %v3359_v37, 0.0  ;;  %v3738_v26 = vpop.permute.xlu1 %3737 }
 0xc7f   : > { %v3365_v29 = vadd.f32 %v3364_v21, %v3363_v15  ;;  %v3338_v30 = vadd.f32 %v3337_v23, %v3336_v11  ;;  %v3304_v31 = vpop.f32.mrf.mxu0 }
 0xc80   : > { %v5662_v16 = vadd.f32 %v3304_v31, %v3204_v55  ;;  %v3368_v22 = vsel %vm1208_vm1, %v3357_v25, 0.0  ;;  %v3360_v18 = vmul.f32 %v5660_v13, %v5660_v13  ;;  %v3345_v46 = vsel %vm1208_vm1, %v5660_v13, 0.0 }
 0xc81   : > { %v3340_v36 = vadd.f32 %v3339_v35, %v3338_v30  ;;  %v3367_v14 = vadd.f32 %v3366_v34, %v3365_v29  ;;  %v3743_v29 = vpop.permute.xlu0 %3742 }
 0xc82   : > { %v3341_v32 = vsel %vm1208_vm1, %v5662_v16, 0.0  ;;  %v3358_v39 = vmul.f32 %v5662_v16, %v5662_v16  ;;  %v3374_v52 = vsel %vm1208_vm1, %v3360_v18, 0.0  ;;  %v3786_v30 = vpop.permute.xlu1 %3785 }
 0xc83   : > { %v3369_v17 = vadd.f32 %v3368_v22, %v3367_v14  ;;  %v3342_v44 = vadd.f32 %v3341_v32, %v3340_v36 }
 0xc84   : > { %v3370_v43 = vsel %vm1208_vm1, %v3358_v39, 0.0 }
 0xc85   : > { %v3344_v48 = vadd.f32 %v3343_v40, %v3342_v44  ;;  %v3371_v19 = vadd.f32 %v3370_v43, %v3369_v17  ;;  %v3791_v31 = vpop.permute.xlu0 %3790 }
 0xc86   : > { %v3728_v35 = vpop.permute.xlu1 %3727 }
 0xc87   : > { %v3346_v3 = vadd.f32 %v3345_v46, %v3344_v48  ;;  %v3373_v42 = vadd.f32 %v3372_v45, %v3371_v19 }
 0xc89   : > { %v3347_v28 = vrot.slane %v3346_v3, 4  ;;  %v3375_v53 = vadd.f32 %v3374_v52, %v3373_v42  ;;  %v3733_v36 = vpop.permute.xlu0 %3732 }
 0xc8b   : > { %v3348_v55 = vadd.f32 %v3347_v28, %v3346_v3  ;;  %v3376_v38 = vrot.slane %v3375_v53, 4  ;;  %v3776_v3 = vpop.permute.xlu1 %3775 }
 0xc8d   : > { %v3349_v12 = vrot.slane %v3348_v55, 2  ;;  %v3377_v56 = vadd.f32 %v3376_v38, %v3375_v53  ;;  %v3781_v42 = vpop.permute.xlu0 %3780 }
 0xc8f   : > { %v3350_v27 = vadd.f32 %v3349_v12, %v3348_v55  ;;  %v3378_v59 = vrot.slane %v3377_v56, 2 }
 0xc91   : > { %v3351_v60 = vrot.slane %v3350_v27, 1  ;;  %v3379_v62 = vadd.f32 %v3378_v59, %v3377_v56  ;;  %v3718_v59 = vpop.permute.xlu1 %3717 }
 0xc93   : > { %v3352_v63 = vadd.f32 %v3351_v60, %v3350_v27  ;;  %v3380_v6 = vrot.slane %v3379_v62, 1  ;;  %v3723_v60 = vpop.permute.xlu0 %3722 }
 0xc95   : > { %4671 = vmatmul.mubr.msk.f32.vlgmr.msra.gmra.mxu1 %vm1208_vm1, %v3352_v63  ;;  %v3381_v7 = vadd.f32 %v3380_v6, %v3379_v62  ;;  %v3766_v63 = vpop.permute.xlu1 %3765 }
 0xc96   : > { %4674 = vmatpush3.msra.mxu1 %v5583_v4  ;;  %4681 = vmatprep.mubr.msk.f32.mxu1 %vm4908_vm2, %v4906_v54 }
 0xc97   : > { %4675 = vmatprep.subr.mxu1 %v4906_v54  ;;  %v3771_v62 = vpop.permute.xlu0 %3770 }
 0xc98   : > { %4676 = vmatpush3.msra.mxu1 %v5590_v49 }
 0xc99   : > { %4677 = vmatprep.subr.mxu1 %v4906_v54 }
 0xc9a   : > { %4678 = vmatpush3.msra.mxu1 %v5595_v5 }
 0xc9b   : > { %4679 = vmatprep.subr.mxu1 %v4906_v54 }
 0xc9c   : > { %4680 = vmatpush3.msra.mxu1 %v5600_v8 }
 0xc9d   : > { %4682 = vmatmul.mubr.msk.f32.vlgmr.msra.gmra.mxu1 %vm1208_vm1, %v3381_v7  ;;  %4689 = vmatprep.subr.mxu1 %v4906_v54 }
 0xc9e   : > { %4690 = vmatpush3.msk.msra.mxu1 %vm1731_vm5, %v5616_v41  ;;  %4691 = vmatprep.mubr.msk.f32.mxu1 %vm4908_vm2, %v4906_v54  ;;  %v4785_v41 = vld [vmem:[%s5866_s10] sm:$0xff]  }
 0xd55   : > { %v3451_v4 = vpop.f32.mrf.mxu1 }
 0xd56   : > { %v3455_v49 = vmul.f32 0.0009765625, %v3451_v4 }
 0xd57   : > { %v4672_v1 = vpop.f32.mrf.mxu1 }
 0xd58   : > { %4687 = vmatmul.mubr.msk.f32.vlgmr.msra.gmra.mxu0 %vm1727_vm6, %v3455_v49  ;;  %v3530_v10 = vmul.f32 %v3455_v49, %v3455_v49  ;;  %v3708_v1 = vpop.permute.xlu1 %3707 }
 0xd59   : > { %4698 = vmatprep.mubr.msk.bf16.mxu0 %vm1208_vm1, %v4785_v41 }
 0xd5d   : > { %v3525_v5 = vpop.f32.mrf.mxu1 }
 0xd5e   : > { %v3529_v11 = vmul.f32 0.0009765625, %v3525_v5 }
 0xd5f   : > { %v4683_v8 = vpop.f32.mrf.mxu1 }
 0xd60   : > { %v3531_v15 = vsub.f32 %v3529_v11, %v3530_v10  ;;  %v3713_v11 = vpop.permute.xlu0 %3712 }
 0xd62   : > { %v3532_v20 = vmax.f32 %v3531_v15, 0.0 }
 0xd64   : > { %v3533_v21 = vadd.f32 1e-05, %v3532_v20 }
 0xd66   : > { %4825 = vrsqrt.f32 %v3533_v21 }
 0xd73   : > { %v4826_v23 = vpop.eup %4825 }
 0xd74   : > { %4692 = vmatmul.mubr.msk.f32.vlgmr.msra.gmra.mxu1 %vm1727_vm6, %v4826_v23 }
 0xe18   : > { %v3604_v54 = vpop.f32.mrf.mxu0 }
 0xe19   : > { %v5701_v34 = vrot.slane %v3604_v54, %v5343_v0  ;;  %v3756_v54 = vpop.permute.xlu1 %3755 }
 0xe1a   : > { %v4688_v25 = vpop.f32.mrf.mxu0 }
 0xe1b   : > { %v3689_v14 = vsub.f32 %v5648_v9, %v5701_v34  ;;  %v3690_v22 = vsub.f32 %v5662_v16, %v5701_v34  ;;  %v3691_v32 = vsub.f32 %v5653_v24, %v5701_v34  ;;  %v3692_v39 = vsub.f32 %v5660_v13, %v5701_v34 }
 0xe1c   : > { %v3687_v20 = vsub.f32 %v5626_v51, %v5701_v34  ;;  %v3688_v21 = vsub.f32 %v5630_v50, %v5701_v34  ;;  %v3685_v41 = vsub.f32 %v5624_v47, %v5701_v34 }
 0xe34   : > { %v3677_v37 = vpop.f32.mrf.mxu1 }
 0xe35   : > { %v3696_v17 = vrot.slane %v3677_v37, %v5343_v0 }
 0xe36   : > { %v4693_v44 = vpop.f32.mrf.mxu1 }
 0xe37   : > { %v3701_v40 = vmul.f32 %v3696_v17, %v3689_v14  ;;  %v3702_v18 = vmul.f32 %v3696_v17, %v3690_v22  ;;  %v3703_v43 = vmul.f32 %v3696_v17, %v3691_v32  ;;  %v3704_v48 = vmul.f32 %v3696_v17, %v3692_v39  ;;  %v3842_v14 = vpop.permute.xlu1 %3841 }
 0xe38   : > { %v3699_v23 = vmul.f32 %v3696_v17, %v3687_v20  ;;  %v3700_v25 = vmul.f32 %v3696_v17, %v3688_v21 }
 0xe39   : > { %v3751_v19 = vmul.f32 %v3738_v26, %v3703_v43  ;;  %v3752_v45 = vmul.f32 %v3743_v29, %v3704_v48  ;;  %v3749_v9 = vmul.f32 %v3728_v35, %v3701_v40  ;;  %v3750_v46 = vmul.f32 %v3733_v36, %v3702_v18  ;;  %v3761_v29 = vpop.permute.xlu0 %3760 }
 0xe3a   : > { %v3686_v26 = vsub.f32 %v5632_v33, %v5701_v34  ;;  %v3747_v35 = vmul.f32 %v3718_v59, %v3699_v23  ;;  %v3748_v36 = vmul.f32 %v3723_v60, %v3700_v25 }
 0xe3b   : > { %v3799_v16 = vadd.f32 %v3786_v30, %v3751_v19  ;;  %v3800_v52 = vadd.f32 %v3791_v31, %v3752_v45  ;;  %v3797_v28 = vadd.f32 %v3776_v3, %v3749_v9  ;;  %v3798_v24 = vadd.f32 %v3781_v42, %v3750_v46 }
 0xe3c   : > { %v3697_v30 = vmul.f32 %v3696_v17, %v3685_v41  ;;  %v3698_v31 = vmul.f32 %v3696_v17, %v3686_v26  ;;  %v3795_v50 = vadd.f32 %v3766_v63, %v3747_v35  ;;  %v3796_v39 = vadd.f32 %v3771_v62, %v3748_v36  ;;  %v3832_v17 = vpop.permute.xlu1 %3831 }
 0xe3d   : > { %v3807_v53 = vsub.f32 0.0, %v3799_v16  ;;  %v3808_v55 = vsub.f32 0.0, %v3800_v52  ;;  %v3805_v13 = vsub.f32 0.0, %v3797_v28  ;;  %v3806_v38 = vsub.f32 0.0, %v3798_v24  ;;  %v3847_v22 = vpop.permute.xlu0 %3846 }
 0xe3e   : > { %v3745_v51 = vmul.f32 %v3708_v1, %v3697_v30  ;;  %v3746_v37 = vmul.f32 %v3713_v11, %v3698_v31 }
 0xe3f   : > { %v3813_v0 = vmul.f32 1.442695, %v3807_v53  ;;  %v3815_v12 = vmul.f32 1.442695, %v3808_v55  ;;  %v3809_v56 = vmul.f32 1.442695, %v3805_v13 }
 0xe40   : > { %v3811_v27 = vmul.f32 1.442695, %v3806_v38  ;;  %v3793_v47 = vadd.f32 %v3756_v54, %v3745_v51  ;;  %v3794_v48 = vadd.f32 %v3761_v29, %v3746_v37  ;;  %v4786_v13 = vld [vmem:[%s5866_s10 + $0x8] sm:$0xff]   ;;  %v4787_v38 = vld [vmem:[%s5866_s10 + $0x10] sm:$0xff]  }
 0xe41   : > { %4827 = vpow2.f32 %v3813_v0  ;;  %v3837_v46 = vpop.permute.xlu0 %3836 }
 0xe42   : > { %4829 = vpow2.f32 %v3815_v12 }
 0xe43   : > { %4831 = vpow2.f32 %v3809_v56 }
 0xe44   : > { %4833 = vpow2.f32 %v3811_v27 }
 0xe45   : > { %v3883_v0 = vpop.permute.xlu0 %3882 }
 0xe49   : > { %v3893_v56 = vpop.permute.xlu0 %3892 }
 0xe4e   : > { %v4828_v6 = vpop.eup %4827 }
 0xe4f   : > { %v4830_v7 = vpop.eup %4829  ;;  %v3819_v4 = vadd.f32 1.0, %v4828_v6 }
 0xe50   : > { %v4832_v49 = vpop.eup %4831  ;;  %v3820_v5 = vadd.f32 1.0, %v4830_v7 }
 0xe51   : > { %v4834_v10 = vpop.eup %4833  ;;  %4835 = vrcp.f32 %v3819_v4  ;;  %v3817_v8 = vadd.f32 1.0, %v4832_v49  ;;  %v3903_v49 = vpop.permute.xlu0 %3902 }
 0xe52   : > { %4837 = vrcp.f32 %v3820_v5  ;;  %v3818_v15 = vadd.f32 1.0, %v4834_v10 }
 0xe53   : > { %4839 = vrcp.f32 %v3817_v8 }
 0xe54   : > { %4841 = vrcp.f32 %v3818_v15 }
 0xe55   : > { %v3913_v37 = vpop.permute.xlu0 %3912 }
 0xe5e   : > { %v4836_v32 = vpop.eup %4835 }
 0xe5f   : > { %v4838_v44 = vpop.eup %4837  ;;  %v3827_v40 = vmul.f32 %v4836_v32, %v3795_v50 }
 0xe60   : > { %v4840_v18 = vpop.eup %4839  ;;  %v3828_v43 = vmul.f32 %v4838_v44, %v3796_v39 }
 0xe61   : > { %v4842_v19 = vpop.eup %4841  ;;  %v3851_v33 = vmul.f32 %v3842_v14, %v3827_v40  ;;  %v3825_v34 = vmul.f32 %v4840_v18, %v3793_v47 }
 0xe62   : > { %v3852_v45 = vmul.f32 %v3847_v22, %v3828_v43  ;;  %v3826_v9 = vmul.f32 %v4842_v19, %v3794_v48 }
 0xe63   : > { %v3855_v3 = vadd.f32 %v3851_v33, %v5461_v57  ;;  %v3849_v42 = vmul.f32 %v3832_v17, %v3825_v34  ;;  %v4788_v57 = vld [vmem:[%s5866_s10 + $0x18] sm:$0xff]  }
 0xe64   : > { %v3856_v16 = vadd.f32 %v3852_v45, %v5464_v58  ;;  %v3850_v52 = vmul.f32 %v3837_v46, %v3826_v9  ;;  %v3878_v58 = vpop.permute.xlu1 %3877 }
 0xe65   : > { %v3853_v28 = vadd.f32 %v3849_v42, %v5471_v61 }
 0xe66   : > { %v3866_v24 = vpack.c.bf16 %v3856_v16, %v3855_v3  ;;  %v3854_v53 = vadd.f32 %v3850_v52, %v5474_v2 }
 0xe68   : > { %4694 = vmatprep.subr.bf16.mxu0 %v3866_v24  ;;  %v3865_v55 = vpack.c.bf16 %v3854_v53, %v3853_v28  ;;  %v3888_v61 = vpop.permute.xlu1 %3887 }
 0xe69   : > { %4695 = vmatpush3.bf16.msra.mxu0 %v3866_v24 }
 0xe6a   : > { %4696 = vmatprep.subr.bf16.mxu0 %v3865_v55 }
 0xe6c   : > { %v3898_v63 = vpop.permute.xlu1 %3897 }
 0xe6d   : > { %4697 = vmatpush3.bf16.msra.mxu0 %v3865_v55 }
 0xe70   : > { %4699 = vmatmul.mubr.msk.bf16.vlgmr.msra.gmra.mxu0 %vm1208_vm1, %v4786_v13  ;;  %v3908_v26 = vpop.permute.xlu1 %3907 }
 0xe71   : > { %4702 = vmatprep.mubr.msk.bf16.mxu0 %vm1208_vm1, %v4787_v38  ;;  %v4017_v38 = vld [vmem:[%s5867_s11 + $0x28] sm:$0xff] }
 0xe78   : > { %4703 = vmatmul.mubr.msk.bf16.gmra.mxu0 %vm1208_vm1, %v4788_v57  ;;  %v4018_v57 = vld [vmem:[%s5867_s11 + $0x30] sm:$0xff] }
 0xf30   : > { %v4700_v12 = vpop.f32.mrf.mxu0 }
 0xf31   : > { %v5732_v60 = vadd.f32 %v4700_v12, %v3888_v61  ;;  %v4019_v61 = vld [vmem:[%s5867_s11 + $0x38] sm:$0xff]  ;;  %v4026_v12 = vld [vmem:[%s5868_s0 + $0x30] sm:$0xff] }
 0xf32   : > { %v3981_v2 = vpop.f32.mrf.mxu0 }
 0xf33   : > { %v5730_v27 = vadd.f32 %v3981_v2, %v3878_v58  ;;  %v4057_v5 = vmul.f32 %v5732_v60, %v5732_v60  ;;  %v4031_v15 = vsel %vm1208_vm1, %v5732_v60, 0.0  ;;  %v4016_v58 = vld [vmem:[%s5867_s11 + $0x20] sm:$0xff] }
 0xf34   : > { %v4701_v59 = vpop.f32.mrf.mxu0  ;;  %v4012_v2 = vld [vmem:[%s5867_s11] sm:$0xff] }
 0xf35   : > { %v4055_v6 = vmul.f32 %v5730_v27, %v5730_v27  ;;  %v5736_v7 = vadd.f32 %v4701_v59, %v3893_v56  ;;  %v4028_v10 = vsel %vm1208_vm1, %v5730_v27, 0.0  ;;  %v4066_v35 = vsel %vm1208_vm1, %v4057_v5, 0.0  ;;  %v4025_v56 = vld [vmem:[%s5868_s0 + $0x28] sm:$0xff]  ;;  %v4027_v59 = vld [vmem:[%s5868_s0 + $0x38] sm:$0xff] }
 0xf36   : > { %v3984_v62 = vpop.f32.mrf.mxu0  ;;  %v4021_v5 = vld [vmem:[%s5868_s0 + $0x8] sm:$0xff] }
 0xf37   : > { %v5738_v4 = vadd.f32 %v3984_v62, %v3883_v0  ;;  %v4063_v23 = vsel %vm1208_vm1, %v4055_v6, 0.0  ;;  %v4058_v41 = vmul.f32 %v5736_v7, %v5736_v7  ;;  %v4033_v36 = vsel %vm1208_vm1, %v5736_v7, 0.0  ;;  %v4024_v0 = vld [vmem:[%s5868_s0 + $0x20] sm:$0xff]  ;;  %v4013_v62 = vld [vmem:[%s5867_s11 + $0x8] sm:$0xff] }
 0xf38   : > { %v4704_v1 = vpop.f32.mrf.mxu0  ;;  %v4020_v6 = vld [vmem:[%s5868_s0] sm:$0xff] }
 0xf39   : > { %v4029_v11 = vsel %vm1208_vm1, %v5738_v4, 0.0  ;;  %v4056_v8 = vmul.f32 %v5738_v4, %v5738_v4  ;;  %v5759_v51 = vadd.f32 %v4704_v1, %v3908_v26  ;;  %v4068_v39 = vsel %vm1208_vm1, %v4058_v41, 0.0  ;;  %v4022_v1 = vld [vmem:[%s5868_s0 + $0x10] sm:$0xff] }
 0xf3a   : > { %v4030_v20 = vadd.f32 %v4029_v11, %v4028_v10  ;;  %v3997_v21 = vpop.f32.mrf.mxu0  ;;  %v4023_v10 = vld [vmem:[%s5868_s0 + $0x18] sm:$0xff] }
 0xf3b   : > { %v4064_v54 = vsel %vm1208_vm1, %v4056_v8, 0.0  ;;  %v5754_v25 = vadd.f32 %v3997_v21, %v3898_v63  ;;  %v4061_v48 = vmul.f32 %v5759_v51, %v5759_v51  ;;  %v4039_v9 = vsel %vm1208_vm1, %v5759_v51, 0.0  ;;  %v4014_v63 = vld [vmem:[%s5867_s11 + $0x10] sm:$0xff] }
 0xf3c   : > { %v4032_v29 = vadd.f32 %v4031_v15, %v4030_v20  ;;  %v4065_v30 = vadd.f32 %v4064_v54, %v4063_v23  ;;  %v4705_v31 = vpop.f32.mrf.mxu0 }
 0xf3d   : > { %v4059_v14 = vmul.f32 %v5754_v25, %v5754_v25  ;;  %v4035_v44 = vsel %vm1208_vm1, %v5754_v25, 0.0  ;;  %v5766_v40 = vadd.f32 %v4705_v31, %v3913_v37  ;;  %v4074_v28 = vsel %vm1208_vm1, %v4061_v48, 0.0 }
 0xf3e   : > { %v4067_v22 = vadd.f32 %v4066_v35, %v4065_v30  ;;  %v4034_v50 = vadd.f32 %v4033_v36, %v4032_v29  ;;  %v4000_v32 = vpop.f32.mrf.mxu0 }
 0xf3f   : > { %v5768_v47 = vadd.f32 %v4000_v32, %v3903_v49  ;;  %v4070_v19 = vsel %vm1208_vm1, %v4059_v14, 0.0  ;;  %v4062_v46 = vmul.f32 %v5766_v40, %v5766_v40  ;;  %v4041_v52 = vsel %vm1208_vm1, %v5766_v40, 0.0  ;;  %v4015_v49 = vld [vmem:[%s5867_s11 + $0x18] sm:$0xff] }
 0xf40   : > { %v4036_v18 = vadd.f32 %v4035_v44, %v4034_v50  ;;  %v4069_v43 = vadd.f32 %v4068_v39, %v4067_v22 }
 0xf41   : > { %v4037_v33 = vsel %vm1208_vm1, %v5768_v47, 0.0  ;;  %v4060_v34 = vmul.f32 %v5768_v47, %v5768_v47  ;;  %v4076_v55 = vsel %vm1208_vm1, %v4062_v46, 0.0 }
 0xf42   : > { %v4071_v17 = vadd.f32 %v4070_v19, %v4069_v43  ;;  %v4038_v45 = vadd.f32 %v4037_v33, %v4036_v18 }
 0xf43   : > { %v4072_v3 = vsel %vm1208_vm1, %v4060_v34, 0.0 }
 0xf44   : > { %v4040_v42 = vadd.f32 %v4039_v9, %v4038_v45  ;;  %v4073_v16 = vadd.f32 %v4072_v3, %v4071_v17 }
 0xf46   : > { %v4042_v24 = vadd.f32 %v4041_v52, %v4040_v42  ;;  %v4075_v53 = vadd.f32 %v4074_v28, %v4073_v16 }
 0xf48   : > { %4043 = vadd.xlane.f32.xlu1 %v4042_v24  ;;  %v4077_v13 = vadd.f32 %v4076_v55, %v4075_v53 }
 0xf4a   : > { %4078 = vadd.xlane.f32.xlu0 %v4077_v13 }
 0xf59   : > { %4137 = vperm.xlu1 %4764, %v4017_v38  }
 0xf5d   : > { %4142 = vperm.xlu1 %4764, %v4018_v57  }
 0xf60   : > { %4132 = vperm.xlu0 %4763, %v4016_v58  }
 0xf61   : > { %4180 = vperm.xlu1 %4764, %v4024_v0  }
 0xf64   : > { %4147 = vperm.xlu0 %4763, %v4019_v61  }
 0xf65   : > { %4190 = vperm.xlu1 %4764, %v4026_v12  }
 0xf68   : > { %4185 = vperm.xlu0 %4763, %v4025_v56  }
 0xf69   : > { %4112 = vperm.xlu1 %4764, %v4012_v2  }
 0xf6c   : > { %4195 = vperm.xlu0 %4763, %v4027_v59  }
 0xf6d   : > { %4122 = vperm.xlu1 %4764, %v4014_v63  }
 0xf70   : > { %4117 = vperm.xlu0 %4763, %v4013_v62  }
 0xf71   : > { %4160 = vperm.xlu1 %4764, %v4020_v6  }
 0xf74   : > { %4127 = vperm.xlu0 %4763, %v4015_v49  }
 0xf75   : > { %4170 = vperm.xlu1 %4764, %v4022_v1  }
 0xf78   : > { %4165 = vperm.xlu0 %4763, %v4021_v5  }
 0xf7c   : > { %4175 = vperm.xlu0 %4763, %v4023_v10  }
 0xfd1   : > { %v4044_v11 = vpop.xlane.xlu1 %4043 }
 0xfd2   : > { %v4045_v8 = vrot.slane %v4044_v11, 4 }
 0xfd3   : > { %v4079_v15 = vpop.xlane.xlu0 %4078 }
 0xfd4   : > { %v4046_v20 = vadd.f32 %v4045_v8, %v4044_v11  ;;  %v4080_v21 = vrot.slane %v4079_v15, 4 }
 0xfd5   : > { %v4138_v43 = vpop.permute.xlu1 %4137 }
 0xfd6   : > { %v4047_v23 = vrot.slane %v4046_v20, 2  ;;  %v4081_v41 = vadd.f32 %v4080_v21, %v4079_v15 }
 0xfd8   : > { %v4082_v54 = vrot.slane %v4081_v41, 2  ;;  %v4048_v26 = vadd.f32 %v4047_v23, %v4046_v20 }
 0xfd9   : > { %v4143_v19 = vpop.permute.xlu1 %4142 }
 0xfda   : > { %v4049_v29 = vrot.slane %v4048_v26, 1  ;;  %v4083_v30 = vadd.f32 %v4082_v54, %v4081_v41 }
 0xfdb   : > { %v4133_v48 = vpop.permute.xlu0 %4132 }
 0xfdc   : > { %v4050_v31 = vadd.f32 %v4049_v29, %v4048_v26  ;;  %v4084_v35 = vrot.slane %v4083_v30, 1 }
 0xfdd   : > { %v4181_v34 = vpop.permute.xlu1 %4180 }
 0xfde   : > { %4713 = vpush %v4050_v31  ;;  %v4085_v36 = vadd.f32 %v4084_v35, %v4083_v30 }
 0xfdf   : > { %v4148_v33 = vpop.permute.xlu0 %4147 }
 0xfe0   : > { %4715 = vpush %v4085_v36 }
 0xfe1   : > { %v4191_v57 = vpop.permute.xlu1 %4190 }
 0xfe3   : > { %v4186_v17 = vpop.permute.xlu0 %4185 }
 0xfe5   : > { %v4113_v6 = vpop.permute.xlu1 %4112 }
 0xfe7   : > { %v4196_v58 = vpop.permute.xlu0 %4195 }
 0xfe9   : > { %v4123_v21 = vpop.permute.xlu1 %4122 }
 0xfeb   : > { %v4118_v49 = vpop.permute.xlu0 %4117 }
 0xfef   : > { %v4128_v41 = vpop.permute.xlu0 %4127 }
0x100f   : > { %s4714_s18 = spop %4713 }
0x1010   : > { %v4052_v14 = vstv %s4714_s18 }
0x1011   : > { %v5802_v37 = vmul.f32 0.00048828125, %v4052_v14  ;;  %s4716_s0 = spop %4715  ;;  %v4161_v14 = vpop.permute.xlu1 %4160 }
0x1012   : > { %v4087_v22 = vstv %s4716_s0  ;;  %s4407_s0 = sshll.u32 %s5870_s16, 5 }
0x1013   : > { %v4088_v50 = vmul.f32 0.00048828125, %v4087_v22  ;;  %v4089_v32 = vmul.f32 %v5802_v37, %v5802_v37  ;;  %v4098_v9 = vsub.f32 %v5754_v25, %v5802_v37  ;;  %v4099_v46 = vsub.f32 %v5768_v47, %v5802_v37  ;;  %s930_s18 = scalar_lea.vmem %s5070_s12, %s4407_s0 }
0x1014   : > { %v4100_v3 = vsub.f32 %v5759_v51, %v5802_v37  ;;  %v4101_v42 = vsub.f32 %v5766_v40, %v5802_v37  ;;  %v4094_v54 = vsub.f32 %v5730_v27, %v5802_v37  ;;  %v4095_v26 = vsub.f32 %v5738_v4, %v5802_v37 }
0x1015   : > { %v4090_v39 = vsub.f32 %v4088_v50, %v4089_v32  ;;  %v4096_v29 = vsub.f32 %v5732_v60, %v5802_v37  ;;  %v4097_v31 = vsub.f32 %v5736_v7, %v5802_v37  ;;  %v4166_v50 = vpop.permute.xlu0 %4165 }
0x1017   : > { %v4091_v44 = vmax.f32 %v4090_v39, 0.0 }
0x1019   : > { %v4092_v18 = vadd.f32 1e-05, %v4091_v44 }
0x101b   : > { %4843 = vrsqrt.f32 %v4092_v18 }
0x1028   : > { %v4844_v45 = vpop.eup %4843 }
0x1029   : > { %v4106_v16 = vmul.f32 %v4844_v45, %v4098_v9  ;;  %v4107_v52 = vmul.f32 %v4844_v45, %v4099_v46  ;;  %v4108_v28 = vmul.f32 %v4844_v45, %v4100_v3  ;;  %v4109_v24 = vmul.f32 %v4844_v45, %v4101_v42 }
0x102a   : > { %v4102_v30 = vmul.f32 %v4844_v45, %v4094_v54  ;;  %v4103_v35 = vmul.f32 %v4844_v45, %v4095_v26  ;;  %v4104_v36 = vmul.f32 %v4844_v45, %v4096_v29  ;;  %v4105_v22 = vmul.f32 %v4844_v45, %v4097_v31 }
0x102b   : > { %v4154_v53 = vmul.f32 %v4133_v48, %v4106_v16  ;;  %v4155_v55 = vmul.f32 %v4138_v43, %v4107_v52  ;;  %v4156_v13 = vmul.f32 %v4143_v19, %v4108_v28  ;;  %v4157_v38 = vmul.f32 %v4148_v33, %v4109_v24  ;;  %v4171_v43 = vpop.permute.xlu1 %4170  ;;  %v4176_v19 = vpop.permute.xlu0 %4175 }
0x102c   : > { %v4150_v32 = vmul.f32 %v4113_v6, %v4102_v30  ;;  %v4151_v27 = vmul.f32 %v4118_v49, %v4103_v35  ;;  %v4152_v39 = vmul.f32 %v4123_v21, %v4104_v36  ;;  %v4153_v44 = vmul.f32 %v4128_v41, %v4105_v22 }
0x102d   : > { %v4202_v25 = vadd.f32 %v4181_v34, %v4154_v53  ;;  %v4203_v0 = vadd.f32 %v4186_v17, %v4155_v55  ;;  %v4204_v61 = vadd.f32 %v4191_v57, %v4156_v13  ;;  %v4205_v47 = vadd.f32 %v4196_v58, %v4157_v38 }
0x102e   : > { %v4198_v4 = vadd.f32 %v4161_v14, %v4150_v32  ;;  %v4199_v48 = vadd.f32 %v4166_v50, %v4151_v27  ;;  %v4200_v33 = vadd.f32 %v4171_v43, %v4152_v39  ;;  %v4201_v37 = vadd.f32 %v4176_v19, %v4153_v44 }
0x102f   : > { %v4206_v12 = vsub.f32 0.0, %v4202_v25  ;;  %v4207_v56 = vsub.f32 0.0, %v4203_v0  ;;  %v4208_v51 = vsub.f32 0.0, %v4204_v61  ;;  %v4209_v2 = vsub.f32 0.0, %v4205_v47 }
0x1031   : > { %v4210_v59 = vmul.f32 1.442695, %v4206_v12  ;;  %v4212_v40 = vmul.f32 1.442695, %v4207_v56  ;;  %v4214_v63 = vmul.f32 1.442695, %v4208_v51 }
0x1032   : > { %v4216_v62 = vmul.f32 1.442695, %v4209_v2 }
0x1033   : > { %4845 = vpow2.f32 %v4210_v59 }
0x1034   : > { %4847 = vpow2.f32 %v4212_v40 }
0x1035   : > { %4849 = vpow2.f32 %v4214_v63 }
0x1036   : > { %4851 = vpow2.f32 %v4216_v62 }
0x1040   : > { %v4846_v1 = vpop.eup %4845 }
0x1041   : > { %v4848_v5 = vpop.eup %4847  ;;  %v4218_v10 = vadd.f32 1.0, %v4846_v1 }
0x1042   : > { %v4850_v11 = vpop.eup %4849  ;;  %v4219_v8 = vadd.f32 1.0, %v4848_v5 }
0x1043   : > { %v4852_v15 = vpop.eup %4851  ;;  %v4220_v20 = vadd.f32 1.0, %v4850_v11  ;;  %4853 = vrcp.f32 %v4218_v10 }
0x1044   : > { %v4221_v23 = vadd.f32 1.0, %v4852_v15  ;;  %4855 = vrcp.f32 %v4219_v8 }
0x1045   : > { %4857 = vrcp.f32 %v4220_v20 }
0x1046   : > { %4859 = vrcp.f32 %v4221_v23 }
0x1050   : > { %v4854_v18 = vpop.eup %4853 }
0x1051   : > { %v4856_v60 = vpop.eup %4855  ;;  %v4226_v34 = vmul.f32 %v4854_v18, %v4198_v4 }
0x1052   : > { %v4858_v7 = vpop.eup %4857  ;;  %v4227_v17 = vmul.f32 %v4856_v60, %v4199_v48 }
0x1053   : > { %v4860_v9 = vpop.eup %4859  ;;  %v4228_v45 = vmul.f32 %v4858_v7, %v4200_v33  ;;  %4230 = vst.msk [vmem:[%s930_s18] sm:$0xff] %vm1208_vm1, %v4226_v34 }
0x1054   : > { %v4229_v46 = vmul.f32 %v4860_v9, %v4201_v37  ;;  %4231 = vst.msk [vmem:[%s930_s18 + $0x8] sm:$0xff] %vm1208_vm1, %v4227_v17 }
0x1055   : > { %4232 = vst.msk [vmem:[%s930_s18 + $0x10] sm:$0xff] %vm1208_vm1, %v4228_v45 }
0x1056   : > { %4233 = vst.msk [vmem:[%s930_s18 + $0x18] sm:$0xff] %vm1208_vm1, %v4229_v46 }
0x1057 PF: > { %s71_s15 = sadd.s32 1, %s4872_s15  }
0x1058   : > { %p68_p4 = scmp.ge.s32.totalorder %s71_s15, 4  }
0x105a   :  { %70 = sbr.rel (!%p68_p4) target bundleno = 53 (0x35), region = 205 }

</bundles_post_ra>
